<compile_context>
chip_gen: v5e
topology: v5e:2x2
jax: 0.10.0
libtpu: 0.0.40
codegen_flags: <defaults>
</compile_context>

<pallas_src>
import functools

import jax
import jax.numpy as jnp
from jax.experimental import pallas as pl
from jax.experimental.pallas import tpu as pltpu

HIDDEN = 512
NEG_SLOPE = 0.01          # nn.LeakyReLU default
SOFTPLUS_BETA = 5.0       # nn.Softplus(beta=5)
SOFTPLUS_THRESH = 20.0    # nn.Softplus default threshold


def _round_up(v, m):
    return -(-v // m) * m


def _cdiv(a, b):
    return -(-a // b)


def _leaky_relu(x):
    return jnp.where(x > 0, x, NEG_SLOPE * x)


def pick_act_dtype():
    """bf16 inter-layer activations only where the VPU is bf16-native (v6e / v7x); f32 elsewhere."""
    try:
        kind = jax.devices()[0].device_kind.lower()
    except Exception:
        return jnp.float32
    if any(tag in kind for tag in ("v6", "v7", "7x")):
        return jnp.bfloat16
    return jnp.float32


def kinn_kernel(
    x_ref,
    # shared trunk
    w0_ref, b0_ref,
    wr1_ref, br1_ref,
    wr2_ref, br2_ref,
    w3_ref, b3_ref,
    # fused head-entry layer (ws1 | wl1)
    wsl1_ref, bsl1_ref,
    # second res-blocks of each head
    ws2_ref, bs2_ref,
    wl2_ref, bl2_ref,
    # per-head lane-padded output projections
    wso_ref, bso_ref,
    wlo_ref, blo_ref,
    # lane-dense outputs: sol_ref[:, :H] / lam_ref[:, :4H] valid, rest zero
    sol_ref, lam_ref,
    *, horizon, act_dtype,
):
    H = horizon

    def mm(a, w_ref):
        # bf16 x bf16 MXU matmul with f32 accumulation.
        return jnp.dot(a.astype(jnp.bfloat16), w_ref[...],
                       preferred_element_type=jnp.float32)

    def act(z_f32):
        # LeakyReLU on the f32 accumulator; carried activation stored in act_dtype.
        return _leaky_relu(z_f32).astype(act_dtype)

    x = x_ref[...]

    # ---- shared trunk ----
    h = act(mm(x, w0_ref) + b0_ref[...])
    h = act(mm(h, wr1_ref) + br1_ref[...] + h)              # ResidualBlock 1
    h = act(mm(h, wr2_ref) + br2_ref[...] + h)              # ResidualBlock 2
    emb = (mm(h, w3_ref) + b3_ref[...]).astype(act_dtype)   # final shared Linear (no activation)

    # ---- fused first layer of both heads (shared input emb) ----
    sl = mm(emb, wsl1_ref) + bsl1_ref[...]                  # (TB, 1024) f32
    s = act(sl[:, :HIDDEN] + emb)                           # slice at a 128-lane tile boundary
    l = act(sl[:, HIDDEN:] + emb)

    # ---- second res-block of each head ----
    s = act(mm(s, ws2_ref) + bs2_ref[...] + s)
    l = act(mm(l, wl2_ref) + bl2_ref[...] + l)

    # ---- per-head output projections (no concat, no block-diagonal zero MACs) ----
    z_s = mm(s, wso_ref) + bso_ref[...]                     # (TB, pad_s) f32
    z_l = mm(l, wlo_ref) + blo_ref[...]                     # (TB, pad_l) f32

    col_s = jax.lax.broadcasted_iota(jnp.int32, z_s.shape, 1)
    sol_ref[...] = jnp.where(col_s < H, jax.nn.sigmoid(z_s), 0.0).astype(sol_ref.dtype)

    col_l = jax.lax.broadcasted_iota(jnp.int32, z_l.shape, 1)
    bz = SOFTPLUS_BETA * z_l
    # Softplus(beta=5): (1/beta)*log1p(exp(beta*z)), linear above threshold.
    # exp argument clamped so no inf is ever produced (even transiently).
    sp = jnp.where(bz > SOFTPLUS_THRESH, z_l,
                   jnp.log1p(jnp.exp(jnp.minimum(bz, SOFTPLUS_THRESH))) / SOFTPLUS_BETA)
    lam_ref[...] = jnp.where(col_l < 4 * H, sp, 0.0).astype(lam_ref.dtype)


def kinn_forward(x, packed, *, horizon, tb=512, act_dtype=jnp.float32):
    """x: (B, 5) float32. packed: dict from pack_params (bf16 weights, f32 (1,N) biases)."""
    B, F = x.shape
    pad_s = packed["wso"].shape[1]
    pad_l = packed["wlo"].shape[1]

    # --- adaptive batch tiling: never pay MXU cycles for zero rows, and keep >= 2 grid
    #     steps when the batch allows it (so "parallel" can use both v7x TensorCores) ---
    tb = min(tb, _round_up(B, 16))
    n_steps = _cdiv(B, tb)
    if n_steps < 2 and B > 16:
        n_steps = 2
    tb = _round_up(_cdiv(B, n_steps), 16)
    b_pad = n_steps * tb
    if b_pad != B:
        x = jnp.pad(x, ((0, b_pad - B), (0, 0)))
    grid = (n_steps,)

    arg_order = ["w0", "b0", "wr1", "br1", "wr2", "br2", "w3", "b3",
                 "wsl1", "bsl1", "ws2", "bs2", "wl2", "bl2",
                 "wso", "bso", "wlo", "blo"]
    weights = [packed[k] for k in arg_order]

    # Whole-array VMEM residents: DMA'd once before the grid loop, single-buffered
    # (no second pipeline buffer wasting VMEM, no per-step re-fetch).
    wspec = pl.BlockSpec(memory_space=pltpu.MemorySpace.VMEM)
    in_specs = [pl.BlockSpec((tb, F), lambda i: (i, 0))] + [wspec] * len(weights)
    out_specs = (pl.BlockSpec((tb, pad_s), lambda i: (i, 0)),
                 pl.BlockSpec((tb, pad_l), lambda i: (i, 0)))
    out_shape = (jax.ShapeDtypeStruct((b_pad, pad_s), jnp.float32),
                 jax.ShapeDtypeStruct((b_pad, pad_l), jnp.float32))

    macs_per_row = (F * HIDDEN + 3 * HIDDEN * HIDDEN + HIDDEN * 2 * HIDDEN
                    + 2 * HIDDEN * HIDDEN + HIDDEN * (pad_s + pad_l))
    bytes_accessed = (sum(int(a.size) * a.dtype.itemsize for a in weights)
                      + int(x.size) * x.dtype.itemsize
                      + b_pad * (pad_s + pad_l) * 4)
    cost = pl.CostEstimate(
        flops=2 * b_pad * macs_per_row,
        transcendentals=2 * b_pad * (pad_s + pad_l),
        bytes_accessed=int(bytes_accessed),
    )

    out_sol, out_lam = pl.pallas_call(
        functools.partial(kinn_kernel, horizon=horizon, act_dtype=act_dtype),
        out_shape=out_shape,
        grid=grid,
        in_specs=in_specs,
        out_specs=out_specs,
        compiler_params=pltpu.CompilerParams(
            dimension_semantics=("parallel",),
            vmem_limit_bytes=32 << 20,   # v7x-safe; ample for TB<=512 at these sizes
        ),
        cost_estimate=cost,
    )(x, *weights)

    sol = out_sol[:B, :horizon]
    lam = out_lam[:B, :4 * horizon]
    return sol, lam


def init_params(horizon, key):
    """Deterministic synthetic parameters. Weights (in, out) bf16, biases (1, out) f32."""
    H = HIDDEN
    w_shapes = {
        "w0": (5, H), "wr1": (H, H), "wr2": (H, H), "w3": (H, H),
        "ws1": (H, H), "ws2": (H, H), "wso": (H, horizon),
        "wl1": (H, H), "wl2": (H, H), "wlo": (H, horizon * 4),
    }
    b_shapes = {
        "b0": (1, H), "br1": (1, H), "br2": (1, H), "b3": (1, H),
        "bs1": (1, H), "bs2": (1, H), "bso": (1, horizon),
        "bl1": (1, H), "bl2": (1, H), "blo": (1, horizon * 4),
    }
    params = {}
    names = sorted(list(w_shapes) + list(b_shapes))
    keys = jax.random.split(key, len(names))
    for k_rng, name in zip(keys, names):
        if name in w_shapes:
            shp = w_shapes[name]
            scale = 1.0 / jnp.sqrt(jnp.float32(shp[0]))
            params[name] = (scale * jax.random.normal(k_rng, shp, jnp.float32)).astype(jnp.bfloat16)
        else:
            shp = b_shapes[name]
            params[name] = 0.1 * jax.random.normal(k_rng, shp, jnp.float32)
    return params


def pack_params(params, horizon):
    """Build the fused / lane-padded weights consumed by the kernel (done once, outside jit)."""
    pad_s = _round_up(horizon, 128)
    pad_l = _round_up(4 * horizon, 128)

    wsl1 = jnp.concatenate([params["ws1"], params["wl1"]], axis=1)      # (512, 1024) bf16
    bsl1 = jnp.concatenate([params["bs1"], params["bl1"]], axis=1)      # (1, 1024) f32

    wso = jnp.zeros((HIDDEN, pad_s), jnp.bfloat16).at[:, :horizon].set(params["wso"])
    bso = jnp.zeros((1, pad_s), jnp.float32).at[:, :horizon].set(params["bso"])
    wlo = jnp.zeros((HIDDEN, pad_l), jnp.bfloat16).at[:, :4 * horizon].set(params["wlo"])
    blo = jnp.zeros((1, pad_l), jnp.float32).at[:, :4 * horizon].set(params["blo"])

    return {
        "w0": params["w0"], "b0": params["b0"],
        "wr1": params["wr1"], "br1": params["br1"],
        "wr2": params["wr2"], "br2": params["br2"],
        "w3": params["w3"], "b3": params["b3"],
        "wsl1": wsl1, "bsl1": bsl1,
        "ws2": params["ws2"], "bs2": params["bs2"],
        "wl2": params["wl2"], "bl2": params["bl2"],
        "wso": wso, "bso": bso, "wlo": wlo, "blo": blo,
    }


def kinn_reference(x, p):
    """Pure-JAX reference (bf16 weights, f32 activations / accumulate, unfused)."""
    def lin(h, w, b):
        return jnp.dot(h.astype(jnp.bfloat16), w, preferred_element_type=jnp.float32) + b

    h = _leaky_relu(lin(x, p["w0"], p["b0"]))
    h = _leaky_relu(lin(h, p["wr1"], p["br1"]) + h)
    h = _leaky_relu(lin(h, p["wr2"], p["br2"]) + h)
    emb = lin(h, p["w3"], p["b3"])

    s = _leaky_relu(lin(emb, p["ws1"], p["bs1"]) + emb)
    s = _leaky_relu(lin(s, p["ws2"], p["bs2"]) + s)
    sol = jax.nn.sigmoid(lin(s, p["wso"], p["bso"]))

    l = _leaky_relu(lin(emb, p["wl1"], p["bl1"]) + emb)
    l = _leaky_relu(lin(l, p["wl2"], p["bl2"]) + l)
    z = lin(l, p["wlo"], p["blo"])
    bz = SOFTPLUS_BETA * z
    lam = jnp.where(bz > SOFTPLUS_THRESH, z,
                    jnp.log1p(jnp.exp(jnp.minimum(bz, SOFTPLUS_THRESH))) / SOFTPLUS_BETA)
    return sol, lam


if __name__ == "__main__":
    horizon = 8
    batch = 8

    key = jax.random.PRNGKey(0)
    k_x, k_p = jax.random.split(key)
    x = jax.random.normal(k_x, (batch, 5), dtype=jnp.float32)
    params = init_params(horizon, k_p)
    packed = pack_params(params, horizon)

    act_dtype = pick_act_dtype()
    fwd = jax.jit(functools.partial(kinn_forward, horizon=horizon, act_dtype=act_dtype))
    sol, lam = fwd(x, packed)
    jax.block_until_ready((sol, lam))

    sol_ref, lam_ref = kinn_reference(x, params)
    assert sol.shape == (batch, horizon) and lam.shape == (batch, horizon * 4)

    # Reference carries f32 activations; tolerance is widened slightly on the
    # bf16-activation path (v6e / v7x) and kept tight on the f32 path (v5e and others).
    if act_dtype == jnp.bfloat16:
        rtol, atol = 5e-2, 2e-2
    else:
        rtol, atol = 2e-2, 5e-3
    assert jnp.allclose(sol, sol_ref, rtol=rtol, atol=atol), \
        float(jnp.max(jnp.abs(sol - sol_ref)))
    assert jnp.allclose(lam, lam_ref, rtol=rtol, atol=atol), \
        float(jnp.max(jnp.abs(lam - lam_ref)))

    print("KERNEL_OK")
</pallas_src>

<mosaic_0001>
module attributes {stable_mosaic.version = 11 : i64} {
  func.func @kinn_kernel(%arg0: i32, %arg1: memref<16x5xf32, #tpu.memory_space<vmem>>, %arg2: memref<5x512xbf16, #tpu.memory_space<vmem>>, %arg3: memref<1x512xf32, #tpu.memory_space<vmem>>, %arg4: memref<512x512xbf16, #tpu.memory_space<vmem>>, %arg5: memref<1x512xf32, #tpu.memory_space<vmem>>, %arg6: memref<512x512xbf16, #tpu.memory_space<vmem>>, %arg7: memref<1x512xf32, #tpu.memory_space<vmem>>, %arg8: memref<512x512xbf16, #tpu.memory_space<vmem>>, %arg9: memref<1x512xf32, #tpu.memory_space<vmem>>, %arg10: memref<512x1024xbf16, #tpu.memory_space<vmem>>, %arg11: memref<1x1024xf32, #tpu.memory_space<vmem>>, %arg12: memref<512x512xbf16, #tpu.memory_space<vmem>>, %arg13: memref<1x512xf32, #tpu.memory_space<vmem>>, %arg14: memref<512x512xbf16, #tpu.memory_space<vmem>>, %arg15: memref<1x512xf32, #tpu.memory_space<vmem>>, %arg16: memref<512x128xbf16, #tpu.memory_space<vmem>>, %arg17: memref<1x128xf32, #tpu.memory_space<vmem>>, %arg18: memref<512x128xbf16, #tpu.memory_space<vmem>>, %arg19: memref<1x128xf32, #tpu.memory_space<vmem>>, %arg20: memref<16x128xf32, #tpu.memory_space<vmem>>, %arg21: memref<16x128xf32, #tpu.memory_space<vmem>>) attributes {dimension_semantics = [#tpu.dimension_semantics<parallel>], iteration_bounds = array<i64: 1>, scalar_prefetch = 0 : i64, scratch_operands = 0 : i64, tpu.core_type = #tpu.core_type<tc>, window_params = [{transform_indices = @transform_0, window_bounds = array<i64: 16, 5>}, {pipeline_mode = #tpu.pipeline_mode<synchronous>, transform_indices = @transform_1, window_bounds = array<i64: 5, 512>}, {pipeline_mode = #tpu.pipeline_mode<synchronous>, transform_indices = @transform_2, window_bounds = array<i64: 1, 512>}, {pipeline_mode = #tpu.pipeline_mode<synchronous>, transform_indices = @transform_3, window_bounds = array<i64: 512, 512>}, {pipeline_mode = #tpu.pipeline_mode<synchronous>, transform_indices = @transform_4, window_bounds = array<i64: 1, 512>}, {pipeline_mode = #tpu.pipeline_mode<synchronous>, transform_indices = @transform_5, window_bounds = array<i64: 512, 512>}, {pipeline_mode = #tpu.pipeline_mode<synchronous>, transform_indices = @transform_6, window_bounds = array<i64: 1, 512>}, {pipeline_mode = #tpu.pipeline_mode<synchronous>, transform_indices = @transform_7, window_bounds = array<i64: 512, 512>}, {pipeline_mode = #tpu.pipeline_mode<synchronous>, transform_indices = @transform_8, window_bounds = array<i64: 1, 512>}, {pipeline_mode = #tpu.pipeline_mode<synchronous>, transform_indices = @transform_9, window_bounds = array<i64: 512, 1024>}, {pipeline_mode = #tpu.pipeline_mode<synchronous>, transform_indices = @transform_10, window_bounds = array<i64: 1, 1024>}, {pipeline_mode = #tpu.pipeline_mode<synchronous>, transform_indices = @transform_11, window_bounds = array<i64: 512, 512>}, {pipeline_mode = #tpu.pipeline_mode<synchronous>, transform_indices = @transform_12, window_bounds = array<i64: 1, 512>}, {pipeline_mode = #tpu.pipeline_mode<synchronous>, transform_indices = @transform_13, window_bounds = array<i64: 512, 512>}, {pipeline_mode = #tpu.pipeline_mode<synchronous>, transform_indices = @transform_14, window_bounds = array<i64: 1, 512>}, {pipeline_mode = #tpu.pipeline_mode<synchronous>, transform_indices = @transform_15, window_bounds = array<i64: 512, 128>}, {pipeline_mode = #tpu.pipeline_mode<synchronous>, transform_indices = @transform_16, window_bounds = array<i64: 1, 128>}, {pipeline_mode = #tpu.pipeline_mode<synchronous>, transform_indices = @transform_17, window_bounds = array<i64: 512, 128>}, {pipeline_mode = #tpu.pipeline_mode<synchronous>, transform_indices = @transform_18, window_bounds = array<i64: 1, 128>}, {transform_indices = @transform_19, window_bounds = array<i64: 16, 128>}, {transform_indices = @transform_20, window_bounds = array<i64: 16, 128>}]} {
    %c0 = arith.constant 0 : index
    %c0_0 = arith.constant 0 : index
    %0 = vector.load %arg1[%c0, %c0_0] : memref<16x5xf32, #tpu.memory_space<vmem>>, vector<16x5xf32>
    %1 = arith.truncf %0 : vector<16x5xf32> to vector<16x5xbf16>
    %c0_1 = arith.constant 0 : index
    %c0_2 = arith.constant 0 : index
    %2 = vector.load %arg2[%c0_1, %c0_2] : memref<5x512xbf16, #tpu.memory_space<vmem>>, vector<5x512xbf16>
    %cst = arith.constant dense<0.000000e+00> : vector<16x512xf32>
    %3 = tpu.matmul %1, %2, %cst {dimension_numbers = #tpu.dot_dimension_numbers<[1], [0], [0], [1], [0, 0, 1, 1], [], []>} : vector<16x5xbf16>, vector<5x512xbf16>, vector<16x512xf32> -> vector<16x512xf32>
    %c0_3 = arith.constant 0 : index
    %c0_4 = arith.constant 0 : index
    %4 = vector.load %arg3[%c0_3, %c0_4] : memref<1x512xf32, #tpu.memory_space<vmem>>, vector<1x512xf32>
    %5 = vector.broadcast %4 : vector<1x512xf32> to vector<16x512xf32>
    %6 = arith.addf %3, %5 : vector<16x512xf32>
    %cst_5 = arith.constant 0.000000e+00 : f32
    %7 = vector.broadcast %cst_5 : f32 to vector<16x512xf32>
    %8 = arith.cmpf ogt, %6, %7 : vector<16x512xf32>
    %cst_6 = arith.constant 0.00999999977 : f32
    %9 = vector.broadcast %cst_6 : f32 to vector<16x512xf32>
    %10 = arith.mulf %9, %6 : vector<16x512xf32>
    %11 = arith.select %8, %6, %10 : vector<16x512xi1>, vector<16x512xf32>
    %12 = arith.truncf %11 : vector<16x512xf32> to vector<16x512xbf16>
    %c0_7 = arith.constant 0 : index
    %c0_8 = arith.constant 0 : index
    %13 = vector.load %arg4[%c0_7, %c0_8] : memref<512x512xbf16, #tpu.memory_space<vmem>>, vector<512x512xbf16>
    %cst_9 = arith.constant dense<0.000000e+00> : vector<16x512xf32>
    %14 = tpu.matmul %12, %13, %cst_9 {dimension_numbers = #tpu.dot_dimension_numbers<[1], [0], [0], [1], [0, 0, 1, 1], [], []>} : vector<16x512xbf16>, vector<512x512xbf16>, vector<16x512xf32> -> vector<16x512xf32>
    %c0_10 = arith.constant 0 : index
    %c0_11 = arith.constant 0 : index
    %15 = vector.load %arg5[%c0_10, %c0_11] : memref<1x512xf32, #tpu.memory_space<vmem>>, vector<1x512xf32>
    %16 = vector.broadcast %15 : vector<1x512xf32> to vector<16x512xf32>
    %17 = arith.addf %14, %16 : vector<16x512xf32>
    %18 = arith.addf %17, %11 : vector<16x512xf32>
    %cst_12 = arith.constant 0.000000e+00 : f32
    %19 = vector.broadcast %cst_12 : f32 to vector<16x512xf32>
    %20 = arith.cmpf ogt, %18, %19 : vector<16x512xf32>
    %cst_13 = arith.constant 0.00999999977 : f32
    %21 = vector.broadcast %cst_13 : f32 to vector<16x512xf32>
    %22 = arith.mulf %21, %18 : vector<16x512xf32>
    %23 = arith.select %20, %18, %22 : vector<16x512xi1>, vector<16x512xf32>
    %24 = arith.truncf %23 : vector<16x512xf32> to vector<16x512xbf16>
    %c0_14 = arith.constant 0 : index
    %c0_15 = arith.constant 0 : index
    %25 = vector.load %arg6[%c0_14, %c0_15] : memref<512x512xbf16, #tpu.memory_space<vmem>>, vector<512x512xbf16>
    %cst_16 = arith.constant dense<0.000000e+00> : vector<16x512xf32>
    %26 = tpu.matmul %24, %25, %cst_16 {dimension_numbers = #tpu.dot_dimension_numbers<[1], [0], [0], [1], [0, 0, 1, 1], [], []>} : vector<16x512xbf16>, vector<512x512xbf16>, vector<16x512xf32> -> vector<16x512xf32>
    %c0_17 = arith.constant 0 : index
    %c0_18 = arith.constant 0 : index
    %27 = vector.load %arg7[%c0_17, %c0_18] : memref<1x512xf32, #tpu.memory_space<vmem>>, vector<1x512xf32>
    %28 = vector.broadcast %27 : vector<1x512xf32> to vector<16x512xf32>
    %29 = arith.addf %26, %28 : vector<16x512xf32>
    %30 = arith.addf %29, %23 : vector<16x512xf32>
    %cst_19 = arith.constant 0.000000e+00 : f32
    %31 = vector.broadcast %cst_19 : f32 to vector<16x512xf32>
    %32 = arith.cmpf ogt, %30, %31 : vector<16x512xf32>
    %cst_20 = arith.constant 0.00999999977 : f32
    %33 = vector.broadcast %cst_20 : f32 to vector<16x512xf32>
    %34 = arith.mulf %33, %30 : vector<16x512xf32>
    %35 = arith.select %32, %30, %34 : vector<16x512xi1>, vector<16x512xf32>
    %36 = arith.truncf %35 : vector<16x512xf32> to vector<16x512xbf16>
    %c0_21 = arith.constant 0 : index
    %c0_22 = arith.constant 0 : index
    %37 = vector.load %arg8[%c0_21, %c0_22] : memref<512x512xbf16, #tpu.memory_space<vmem>>, vector<512x512xbf16>
    %cst_23 = arith.constant dense<0.000000e+00> : vector<16x512xf32>
    %38 = tpu.matmul %36, %37, %cst_23 {dimension_numbers = #tpu.dot_dimension_numbers<[1], [0], [0], [1], [0, 0, 1, 1], [], []>} : vector<16x512xbf16>, vector<512x512xbf16>, vector<16x512xf32> -> vector<16x512xf32>
    %c0_24 = arith.constant 0 : index
    %c0_25 = arith.constant 0 : index
    %39 = vector.load %arg9[%c0_24, %c0_25] : memref<1x512xf32, #tpu.memory_space<vmem>>, vector<1x512xf32>
    %40 = vector.broadcast %39 : vector<1x512xf32> to vector<16x512xf32>
    %41 = arith.addf %38, %40 : vector<16x512xf32>
    %42 = arith.truncf %41 : vector<16x512xf32> to vector<16x512xbf16>
    %c0_26 = arith.constant 0 : index
    %c0_27 = arith.constant 0 : index
    %43 = vector.load %arg10[%c0_26, %c0_27] : memref<512x1024xbf16, #tpu.memory_space<vmem>>, vector<512x1024xbf16>
    %cst_28 = arith.constant dense<0.000000e+00> : vector<16x1024xf32>
    %44 = tpu.matmul %42, %43, %cst_28 {dimension_numbers = #tpu.dot_dimension_numbers<[1], [0], [0], [1], [0, 0, 1, 1], [], []>} : vector<16x512xbf16>, vector<512x1024xbf16>, vector<16x1024xf32> -> vector<16x1024xf32>
    %c0_29 = arith.constant 0 : index
    %c0_30 = arith.constant 0 : index
    %45 = vector.load %arg11[%c0_29, %c0_30] : memref<1x1024xf32, #tpu.memory_space<vmem>>, vector<1x1024xf32>
    %46 = vector.broadcast %45 : vector<1x1024xf32> to vector<16x1024xf32>
    %47 = arith.addf %44, %46 : vector<16x1024xf32>
    %48 = vector.extract_strided_slice %47 {offsets = [0, 0], sizes = [16, 512], strides = [1, 1]} : vector<16x1024xf32> to vector<16x512xf32>
    %49 = arith.addf %48, %41 : vector<16x512xf32>
    %cst_31 = arith.constant 0.000000e+00 : f32
    %50 = vector.broadcast %cst_31 : f32 to vector<16x512xf32>
    %51 = arith.cmpf ogt, %49, %50 : vector<16x512xf32>
    %cst_32 = arith.constant 0.00999999977 : f32
    %52 = vector.broadcast %cst_32 : f32 to vector<16x512xf32>
    %53 = arith.mulf %52, %49 : vector<16x512xf32>
    %54 = arith.select %51, %49, %53 : vector<16x512xi1>, vector<16x512xf32>
    %55 = vector.extract_strided_slice %47 {offsets = [0, 512], sizes = [16, 512], strides = [1, 1]} : vector<16x1024xf32> to vector<16x512xf32>
    %56 = arith.addf %55, %41 : vector<16x512xf32>
    %cst_33 = arith.constant 0.000000e+00 : f32
    %57 = vector.broadcast %cst_33 : f32 to vector<16x512xf32>
    %58 = arith.cmpf ogt, %56, %57 : vector<16x512xf32>
    %cst_34 = arith.constant 0.00999999977 : f32
    %59 = vector.broadcast %cst_34 : f32 to vector<16x512xf32>
    %60 = arith.mulf %59, %56 : vector<16x512xf32>
    %61 = arith.select %58, %56, %60 : vector<16x512xi1>, vector<16x512xf32>
    %62 = arith.truncf %54 : vector<16x512xf32> to vector<16x512xbf16>
    %c0_35 = arith.constant 0 : index
    %c0_36 = arith.constant 0 : index
    %63 = vector.load %arg12[%c0_35, %c0_36] : memref<512x512xbf16, #tpu.memory_space<vmem>>, vector<512x512xbf16>
    %cst_37 = arith.constant dense<0.000000e+00> : vector<16x512xf32>
    %64 = tpu.matmul %62, %63, %cst_37 {dimension_numbers = #tpu.dot_dimension_numbers<[1], [0], [0], [1], [0, 0, 1, 1], [], []>} : vector<16x512xbf16>, vector<512x512xbf16>, vector<16x512xf32> -> vector<16x512xf32>
    %c0_38 = arith.constant 0 : index
    %c0_39 = arith.constant 0 : index
    %65 = vector.load %arg13[%c0_38, %c0_39] : memref<1x512xf32, #tpu.memory_space<vmem>>, vector<1x512xf32>
    %66 = vector.broadcast %65 : vector<1x512xf32> to vector<16x512xf32>
    %67 = arith.addf %64, %66 : vector<16x512xf32>
    %68 = arith.addf %67, %54 : vector<16x512xf32>
    %cst_40 = arith.constant 0.000000e+00 : f32
    %69 = vector.broadcast %cst_40 : f32 to vector<16x512xf32>
    %70 = arith.cmpf ogt, %68, %69 : vector<16x512xf32>
    %cst_41 = arith.constant 0.00999999977 : f32
    %71 = vector.broadcast %cst_41 : f32 to vector<16x512xf32>
    %72 = arith.mulf %71, %68 : vector<16x512xf32>
    %73 = arith.select %70, %68, %72 : vector<16x512xi1>, vector<16x512xf32>
    %74 = arith.truncf %61 : vector<16x512xf32> to vector<16x512xbf16>
    %c0_42 = arith.constant 0 : index
    %c0_43 = arith.constant 0 : index
    %75 = vector.load %arg14[%c0_42, %c0_43] : memref<512x512xbf16, #tpu.memory_space<vmem>>, vector<512x512xbf16>
    %cst_44 = arith.constant dense<0.000000e+00> : vector<16x512xf32>
    %76 = tpu.matmul %74, %75, %cst_44 {dimension_numbers = #tpu.dot_dimension_numbers<[1], [0], [0], [1], [0, 0, 1, 1], [], []>} : vector<16x512xbf16>, vector<512x512xbf16>, vector<16x512xf32> -> vector<16x512xf32>
    %c0_45 = arith.constant 0 : index
    %c0_46 = arith.constant 0 : index
    %77 = vector.load %arg15[%c0_45, %c0_46] : memref<1x512xf32, #tpu.memory_space<vmem>>, vector<1x512xf32>
    %78 = vector.broadcast %77 : vector<1x512xf32> to vector<16x512xf32>
    %79 = arith.addf %76, %78 : vector<16x512xf32>
    %80 = arith.addf %79, %61 : vector<16x512xf32>
    %cst_47 = arith.constant 0.000000e+00 : f32
    %81 = vector.broadcast %cst_47 : f32 to vector<16x512xf32>
    %82 = arith.cmpf ogt, %80, %81 : vector<16x512xf32>
    %cst_48 = arith.constant 0.00999999977 : f32
    %83 = vector.broadcast %cst_48 : f32 to vector<16x512xf32>
    %84 = arith.mulf %83, %80 : vector<16x512xf32>
    %85 = arith.select %82, %80, %84 : vector<16x512xi1>, vector<16x512xf32>
    %86 = arith.truncf %73 : vector<16x512xf32> to vector<16x512xbf16>
    %c0_49 = arith.constant 0 : index
    %c0_50 = arith.constant 0 : index
    %87 = vector.load %arg16[%c0_49, %c0_50] : memref<512x128xbf16, #tpu.memory_space<vmem>>, vector<512x128xbf16>
    %cst_51 = arith.constant dense<0.000000e+00> : vector<16x128xf32>
    %88 = tpu.matmul %86, %87, %cst_51 {dimension_numbers = #tpu.dot_dimension_numbers<[1], [0], [0], [1], [0, 0, 1, 1], [], []>} : vector<16x512xbf16>, vector<512x128xbf16>, vector<16x128xf32> -> vector<16x128xf32>
    %c0_52 = arith.constant 0 : index
    %c0_53 = arith.constant 0 : index
    %89 = vector.load %arg17[%c0_52, %c0_53] : memref<1x128xf32, #tpu.memory_space<vmem>>, vector<1x128xf32>
    %90 = vector.broadcast %89 : vector<1x128xf32> to vector<16x128xf32>
    %91 = arith.addf %88, %90 : vector<16x128xf32>
    %92 = arith.truncf %85 : vector<16x512xf32> to vector<16x512xbf16>
    %c0_54 = arith.constant 0 : index
    %c0_55 = arith.constant 0 : index
    %93 = vector.load %arg18[%c0_54, %c0_55] : memref<512x128xbf16, #tpu.memory_space<vmem>>, vector<512x128xbf16>
    %cst_56 = arith.constant dense<0.000000e+00> : vector<16x128xf32>
    %94 = tpu.matmul %92, %93, %cst_56 {dimension_numbers = #tpu.dot_dimension_numbers<[1], [0], [0], [1], [0, 0, 1, 1], [], []>} : vector<16x512xbf16>, vector<512x128xbf16>, vector<16x128xf32> -> vector<16x128xf32>
    %c0_57 = arith.constant 0 : index
    %c0_58 = arith.constant 0 : index
    %95 = vector.load %arg19[%c0_57, %c0_58] : memref<1x128xf32, #tpu.memory_space<vmem>>, vector<1x128xf32>
    %96 = vector.broadcast %95 : vector<1x128xf32> to vector<16x128xf32>
    %97 = arith.addf %94, %96 : vector<16x128xf32>
    %98 = tpu.iota {dimensions = array<i32: 1>} : vector<16x128xi32>
    %c8_i32 = arith.constant 8 : i32
    %99 = vector.broadcast %c8_i32 : i32 to vector<16x128xi32>
    %100 = arith.cmpi slt, %98, %99 : vector<16x128xi32>
    %101 = arith.negf %91 : vector<16x128xf32>
    %102 = math.exp %101 : vector<16x128xf32>
    %cst_59 = arith.constant 1.000000e+00 : f32
    %103 = vector.broadcast %cst_59 : f32 to vector<16x128xf32>
    %104 = arith.addf %103, %102 : vector<16x128xf32>
    %105 = arith.divf %103, %104 : vector<16x128xf32>
    %cst_60 = arith.constant 0.000000e+00 : f32
    %106 = vector.broadcast %cst_60 : f32 to vector<16x128xf32>
    %107 = arith.select %100, %105, %106 : vector<16x128xi1>, vector<16x128xf32>
    %c0_61 = arith.constant 0 : index
    %c0_62 = arith.constant 0 : index
    %108 = vector.load %arg20[%c0_61, %c0_62] : memref<16x128xf32, #tpu.memory_space<vmem>>, vector<16x128xf32>
    tpu.vector_store %arg20[%c0_61, %c0_62], %107 {strides = array<i32>} : memref<16x128xf32, #tpu.memory_space<vmem>>, vector<16x128xf32>,
    %109 = tpu.iota {dimensions = array<i32: 1>} : vector<16x128xi32>
    %cst_63 = arith.constant 5.000000e+00 : f32
    %110 = vector.broadcast %cst_63 : f32 to vector<16x128xf32>
    %111 = arith.mulf %110, %97 : vector<16x128xf32>
    %cst_64 = arith.constant 2.000000e+01 : f32
    %112 = vector.broadcast %cst_64 : f32 to vector<16x128xf32>
    %113 = arith.cmpf ogt, %111, %112 : vector<16x128xf32>
    %cst_65 = arith.constant 2.000000e+01 : f32
    %114 = vector.broadcast %cst_65 : f32 to vector<16x128xf32>
    %115 = arith.minimumf %111, %114 : vector<16x128xf32>
    %116 = math.exp %115 : vector<16x128xf32>
    %117 = math.log1p %116 : vector<16x128xf32>
    %cst_66 = arith.constant 5.000000e+00 : f32
    %118 = vector.broadcast %cst_66 : f32 to vector<16x128xf32>
    %119 = arith.divf %117, %118 : vector<16x128xf32>
    %120 = arith.select %113, %97, %119 : vector<16x128xi1>, vector<16x128xf32>
    %c32_i32 = arith.constant 32 : i32
    %121 = vector.broadcast %c32_i32 : i32 to vector<16x128xi32>
    %122 = arith.cmpi slt, %109, %121 : vector<16x128xi32>
    %cst_67 = arith.constant 0.000000e+00 : f32
    %123 = vector.broadcast %cst_67 : f32 to vector<16x128xf32>
    %124 = arith.select %122, %120, %123 : vector<16x128xi1>, vector<16x128xf32>
    %c0_68 = arith.constant 0 : index
    %c0_69 = arith.constant 0 : index
    %125 = vector.load %arg21[%c0_68, %c0_69] : memref<16x128xf32, #tpu.memory_space<vmem>>, vector<16x128xf32>
    tpu.vector_store %arg21[%c0_68, %c0_69], %124 {strides = array<i32>} : memref<16x128xf32, #tpu.memory_space<vmem>>, vector<16x128xf32>,
    return
  }
  func.func @transform_0(%arg0: i32) -> (i32, i32) {
    %c0_i32 = arith.constant 0 : i32
    %c0_i32_0 = arith.constant 0 : i32
    return %arg0, %c0_i32 : i32, i32
  }
  func.func @transform_1(%arg0: i32) -> (i32, i32) {
    %c0_i32 = arith.constant 0 : i32
    %c0_i32_0 = arith.constant 0 : i32
    %c0_i32_1 = arith.constant 0 : i32
    return %c0_i32, %c0_i32_0 : i32, i32
  }
  func.func @transform_2(%arg0: i32) -> (i32, i32) {
    %c0_i32 = arith.constant 0 : i32
    %c0_i32_0 = arith.constant 0 : i32
    %c0_i32_1 = arith.constant 0 : i32
    return %c0_i32, %c0_i32_0 : i32, i32
  }
  func.func @transform_3(%arg0: i32) -> (i32, i32) {
    %c0_i32 = arith.constant 0 : i32
    %c0_i32_0 = arith.constant 0 : i32
    %c0_i32_1 = arith.constant 0 : i32
    return %c0_i32, %c0_i32_0 : i32, i32
  }
  func.func @transform_4(%arg0: i32) -> (i32, i32) {
    %c0_i32 = arith.constant 0 : i32
    %c0_i32_0 = arith.constant 0 : i32
    %c0_i32_1 = arith.constant 0 : i32
    return %c0_i32, %c0_i32_0 : i32, i32
  }
  func.func @transform_5(%arg0: i32) -> (i32, i32) {
    %c0_i32 = arith.constant 0 : i32
    %c0_i32_0 = arith.constant 0 : i32
    %c0_i32_1 = arith.constant 0 : i32
    return %c0_i32, %c0_i32_0 : i32, i32
  }
  func.func @transform_6(%arg0: i32) -> (i32, i32) {
    %c0_i32 = arith.constant 0 : i32
    %c0_i32_0 = arith.constant 0 : i32
    %c0_i32_1 = arith.constant 0 : i32
    return %c0_i32, %c0_i32_0 : i32, i32
  }
  func.func @transform_7(%arg0: i32) -> (i32, i32) {
    %c0_i32 = arith.constant 0 : i32
    %c0_i32_0 = arith.constant 0 : i32
    %c0_i32_1 = arith.constant 0 : i32
    return %c0_i32, %c0_i32_0 : i32, i32
  }
  func.func @transform_8(%arg0: i32) -> (i32, i32) {
    %c0_i32 = arith.constant 0 : i32
    %c0_i32_0 = arith.constant 0 : i32
    %c0_i32_1 = arith.constant 0 : i32
    return %c0_i32, %c0_i32_0 : i32, i32
  }
  func.func @transform_9(%arg0: i32) -> (i32, i32) {
    %c0_i32 = arith.constant 0 : i32
    %c0_i32_0 = arith.constant 0 : i32
    %c0_i32_1 = arith.constant 0 : i32
    return %c0_i32, %c0_i32_0 : i32, i32
  }
  func.func @transform_10(%arg0: i32) -> (i32, i32) {
    %c0_i32 = arith.constant 0 : i32
    %c0_i32_0 = arith.constant 0 : i32
    %c0_i32_1 = arith.constant 0 : i32
    return %c0_i32, %c0_i32_0 : i32, i32
  }
  func.func @transform_11(%arg0: i32) -> (i32, i32) {
    %c0_i32 = arith.constant 0 : i32
    %c0_i32_0 = arith.constant 0 : i32
    %c0_i32_1 = arith.constant 0 : i32
    return %c0_i32, %c0_i32_0 : i32, i32
  }
  func.func @transform_12(%arg0: i32) -> (i32, i32) {
    %c0_i32 = arith.constant 0 : i32
    %c0_i32_0 = arith.constant 0 : i32
    %c0_i32_1 = arith.constant 0 : i32
    return %c0_i32, %c0_i32_0 : i32, i32
  }
  func.func @transform_13(%arg0: i32) -> (i32, i32) {
    %c0_i32 = arith.constant 0 : i32
    %c0_i32_0 = arith.constant 0 : i32
    %c0_i32_1 = arith.constant 0 : i32
    return %c0_i32, %c0_i32_0 : i32, i32
  }
  func.func @transform_14(%arg0: i32) -> (i32, i32) {
    %c0_i32 = arith.constant 0 : i32
    %c0_i32_0 = arith.constant 0 : i32
    %c0_i32_1 = arith.constant 0 : i32
    return %c0_i32, %c0_i32_0 : i32, i32
  }
  func.func @transform_15(%arg0: i32) -> (i32, i32) {
    %c0_i32 = arith.constant 0 : i32
    %c0_i32_0 = arith.constant 0 : i32
    %c0_i32_1 = arith.constant 0 : i32
    return %c0_i32, %c0_i32_0 : i32, i32
  }
  func.func @transform_16(%arg0: i32) -> (i32, i32) {
    %c0_i32 = arith.constant 0 : i32
    %c0_i32_0 = arith.constant 0 : i32
    %c0_i32_1 = arith.constant 0 : i32
    return %c0_i32, %c0_i32_0 : i32, i32
  }
  func.func @transform_17(%arg0: i32) -> (i32, i32) {
    %c0_i32 = arith.constant 0 : i32
    %c0_i32_0 = arith.constant 0 : i32
    %c0_i32_1 = arith.constant 0 : i32
    return %c0_i32, %c0_i32_0 : i32, i32
  }
  func.func @transform_18(%arg0: i32) -> (i32, i32) {
    %c0_i32 = arith.constant 0 : i32
    %c0_i32_0 = arith.constant 0 : i32
    %c0_i32_1 = arith.constant 0 : i32
    return %c0_i32, %c0_i32_0 : i32, i32
  }
  func.func @transform_19(%arg0: i32) -> (i32, i32) {
    %c0_i32 = arith.constant 0 : i32
    %c0_i32_0 = arith.constant 0 : i32
    return %arg0, %c0_i32 : i32, i32
  }
  func.func @transform_20(%arg0: i32) -> (i32, i32) {
    %c0_i32 = arith.constant 0 : i32
    %c0_i32_0 = arith.constant 0 : i32
    return %arg0, %c0_i32 : i32, i32
  }
}

</mosaic_0001>

<bundles_post_ra>
// kernel: kinn_forward.1
= control target key start
LH: loop header
LB: loop body
LE: loop exit
PB: predicated region body
PF: predicated region fallthrough
CT: control target
= control target key end

     0   :  { %s14234_s0 = inlined_call_operand.vmem [shape: f32[16,5], index: 0, kind: input, shape index: {}]   ;;  %s14235_s1 = inlined_call_operand.vmem [shape: bf16[5,512], index: 1, kind: input, shape index: {}]   ;;  %s14236_s2 = inlined_call_operand.vmem [shape: f32[1,512], index: 2, kind: input, shape index: {}]   ;;  %s14237_s3 = inlined_call_operand.hbm [shape: bf16[512,512], index: 3, kind: input, shape index: {}]   ;;  %s14238_s4 = inlined_call_operand.hbm [shape: f32[1,512], index: 4, kind: input, shape index: {}]   ;;  %s14239_s5 = inlined_call_operand.hbm [shape: bf16[512,512], index: 5, kind: input, shape index: {}]   ;;  %s14240_s6 = inlined_call_operand.hbm [shape: f32[1,512], index: 6, kind: input, shape index: {}]   ;;  %s14241_s7 = inlined_call_operand.hbm [shape: bf16[512,512], index: 7, kind: input, shape index: {}]   ;;  %s14242_s8 = inlined_call_operand.hbm [shape: f32[1,512], index: 8, kind: input, shape index: {}]   ;;  %s14243_s9 = inlined_call_operand.hbm [shape: bf16[512,1024], index: 9, kind: input, shape index: {}]   ;;  %s14244_s10 = inlined_call_operand.vmem [shape: f32[1,1024], index: 10, kind: input, shape index: {}]   ;;  %s14245_s11 = inlined_call_operand.hbm [shape: bf16[512,512], index: 11, kind: input, shape index: {}]   ;;  %s14246_s12 = inlined_call_operand.hbm [shape: f32[1,512], index: 12, kind: input, shape index: {}]   ;;  %s14247_s13 = inlined_call_operand.hbm [shape: bf16[512,512], index: 13, kind: input, shape index: {}]   ;;  %s14248_s14 = inlined_call_operand.hbm [shape: f32[1,512], index: 14, kind: input, shape index: {}]   ;;  %s14249_s15 = inlined_call_operand.hbm [shape: bf16[512,128], index: 15, kind: input, shape index: {}]   ;;  %s14250_s16 = inlined_call_operand.vmem [shape: f32[1,128], index: 16, kind: input, shape index: {}]   ;;  %s14251_s17 = inlined_call_operand.hbm [shape: bf16[512,128], index: 17, kind: input, shape index: {}]   ;;  %s14252_s18 = inlined_call_operand.vmem [shape: f32[1,128], index: 18, kind: input, shape index: {}]   ;;  %s14253_s19 = inlined_call_operand.vmem [shape: f32[16,128], index: 19, kind: output, shape index: {0}]   ;;  %s14254_s20 = inlined_call_operand.vmem [shape: f32[16,128], index: 20, kind: output, shape index: {1}]  }
   0x1   :  { %14257 = sst [smem:[#allocation29_spill]] %s14234_s0 }
   0x2   :  { %14258 = sst [smem:[#allocation30_spill]] %s14235_s1 }
   0x3   :  { %14259 = sst [smem:[#allocation31_spill]] %s14236_s2 }
   0x4   :  { %14260 = sst [smem:[#allocation32_spill]] %s14237_s3 }
   0x5   :  { %14261 = sst [smem:[#allocation33_spill]] %s14238_s4 }
   0x6   :  { %26 = vsyncpa [#allocation3], 0 }
   0x7   :  { %27 = vsyncpa [#allocation5], 0 }
   0x8   :  { %28 = vsyncpa [#allocation8], 0 }
   0x9   :  { %29 = vsyncpa [#allocation11], 0 }
   0xa   :  { %30 = vsyncpa [#allocation14], 0 }
   0xb   :  { %31 = vsyncpa [#allocation17], 0  ;;  %s14262_s23 = sld [smem:[#allocation33_spill]] }
  0x11   :  { %s57_s24 = sshll.u32 %s14262_s23, 4  ;;  %s58_s24 = int_to_ptr.hbm [resolvable:$true] %s57_s24 }
  0x12   :  { %32 = vsyncpa [#allocation20], 0  ;;  %s13528_s2 = smov [#allocation4]   ;;  %s81_s27 = sshll.u32 %s14240_s6, 4  ;;  %s82_s27 = int_to_ptr.hbm [resolvable:$true] %s81_s27 }
  0x13   :  { %s59_s25 = sshll.u32 %s13528_s2, 4  ;;  %s13529_s28 = smov [#allocation7]   ;;  %s60_s25 = int_to_ptr.vmem [resolvable:$true] %s59_s25 }
  0x14   :  { %62 = dma.hbm_to_vmem [thread:$0]  %s58_s24, 64, %s60_s25, [#allocation5]  }
  0x15   :  { %s83_s4 = sshll.u32 %s13529_s28, 4  ;;  %s105_s0 = sshll.u32 %s14242_s8, 4  ;;  %s84_s4 = int_to_ptr.vmem [resolvable:$true] %s83_s4  ;;  %s106_s0 = int_to_ptr.hbm [resolvable:$true] %s105_s0 }
  0x16   :  { %86 = dma.hbm_to_vmem [thread:$0]  %s82_s27, 64, %s84_s4, [#allocation8]  }
  0x17   :  { %s13530_s21 = smov [#allocation10]   ;;  %s130_s2 = sshll.u32 %s14245_s11, 4  ;;  %s131_s2 = int_to_ptr.hbm [resolvable:$true] %s130_s2 }
  0x18   :  { %s107_s1 = sshll.u32 %s13530_s21, 4  ;;  %s13531_s6 = smov [#allocation13]   ;;  %s108_s1 = int_to_ptr.vmem [resolvable:$true] %s107_s1 }
  0x19   :  { %110 = dma.hbm_to_vmem [thread:$0]  %s106_s0, 64, %s108_s1, [#allocation11]  }
  0x1a   :  { %s132_s24 = sshll.u32 %s13531_s6, 4  ;;  %s154_s26 = sshll.u32 %s14247_s13, 4  ;;  %s133_s24 = int_to_ptr.vmem [resolvable:$true] %s132_s24  ;;  %s155_s26 = int_to_ptr.hbm [resolvable:$true] %s154_s26 }
  0x1b   :  { %s13532_s8 = smov 256   ;;  %s13533_s28 = smov 16  }
  0x1c   :  { %138 = dma.hbm_to_vmem [thread:$0]  %s131_s2, 16384, %s133_s24, [#allocation14], %s13532_s8, %s13532_s8, %s13533_s28  }
  0x1d   :  { %s178_s11 = sshll.u32 %s14249_s15, 4  ;;  %s13534_s29 = smov [#allocation16]   ;;  %s179_s11 = int_to_ptr.hbm [resolvable:$true] %s178_s11 }
  0x1e   :  { %s156_s30 = sshll.u32 %s13534_s29, 4  ;;  %s13535_s13 = smov [#allocation19]   ;;  %s157_s30 = int_to_ptr.vmem [resolvable:$true] %s156_s30 }
  0x1f   :  { %162 = dma.hbm_to_vmem [thread:$0]  %s155_s26, 16384, %s157_s30, [#allocation17], %s13532_s8, %s13532_s8, %s13533_s28  }
  0x20   :  { %s180_s0 = sshll.u32 %s13535_s13, 4  ;;  %s13536_s21 = smov 64   ;;  %s181_s0 = int_to_ptr.vmem [resolvable:$true] %s180_s0 }
  0x21   :  { %s13537_s1 = smov 4   ;;  %s14263_s15 = sld [smem:[#allocation32_spill]] }
  0x22   :  { %186 = dma.hbm_to_vmem [thread:$0]  %s179_s11, 4096, %s181_s0, [#allocation20], %s13536_s21, %s13536_s21, %s13537_s1  }
  0x23   :  { %s13538_s6 = smov [#allocation2]   ;;  %s67_s26 = sshll.u32 %s14239_s5, 4  ;;  %s68_s26 = int_to_ptr.hbm [resolvable:$true] %s67_s26 }
  0x24   :  { %s45_s24 = sshll.u32 %s13538_s6, 4  ;;  %s13539_s27 = smov [#allocation6]   ;;  %s46_s24 = int_to_ptr.vmem [resolvable:$true] %s45_s24 }
  0x25   :  { %s69_s4 = sshll.u32 %s13539_s27, 4  ;;  %s91_s30 = sshll.u32 %s14241_s7, 4  ;;  %s70_s4 = int_to_ptr.vmem [resolvable:$true] %s69_s4  ;;  %s92_s30 = int_to_ptr.hbm [resolvable:$true] %s91_s30 }
  0x26   :  { %75 = dma.hbm_to_vmem [thread:$0]  %s68_s26, 16384, %s70_s4, [#allocation5], %s13532_s8, %s13532_s8, %s13533_s28  }
  0x27   :  { %s43_s2 = sshll.u32 %s14263_s15, 4  ;;  %s115_s5 = sshll.u32 %s14243_s9, 4  ;;  %s44_s2 = int_to_ptr.hbm [resolvable:$true] %s43_s2  ;;  %s116_s5 = int_to_ptr.hbm [resolvable:$true] %s115_s5 }
  0x28   :  { %51 = dma.hbm_to_vmem [thread:$0]  %s44_s2, 16384, %s46_s24, [#allocation3], %s13532_s8, %s13532_s8, %s13533_s28  }
  0x29   :  { %s13540_s22 = smov [#allocation9]   ;;  %s13541_s15 = smov [#allocation12]  }
  0x2a   :  { %s93_s23 = sshll.u32 %s13540_s22, 4  ;;  %s117_s7 = sshll.u32 %s13541_s15, 4  ;;  %s94_s23 = int_to_ptr.vmem [resolvable:$true] %s93_s23  ;;  %s118_s7 = int_to_ptr.vmem [resolvable:$true] %s117_s7 }
  0x2b   :  { %99 = dma.hbm_to_vmem [thread:$0]  %s92_s30, 16384, %s94_s23, [#allocation8], %s13532_s8, %s13532_s8, %s13533_s28  }
  0x2c   :  { %s13542_s2 = smov 512   ;;  %s13543_s6 = smov 32  }
  0x2d   :  { %123 = dma.hbm_to_vmem [thread:$0]  %s116_s5, 32768, %s118_s7, [#allocation11], %s13542_s2, %s13542_s2, %s13543_s6  }
  0x2e   :  { %s144_s3 = sshll.u32 %s14246_s12, 4  ;;  %s13544_s9 = smov [#allocation15]   ;;  %s145_s3 = int_to_ptr.hbm [resolvable:$true] %s144_s3 }
  0x2f   :  { %s146_s26 = sshll.u32 %s13544_s9, 4  ;;  %s168_s11 = sshll.u32 %s14248_s14, 4  ;;  %s147_s26 = int_to_ptr.vmem [resolvable:$true] %s146_s26  ;;  %s169_s11 = int_to_ptr.hbm [resolvable:$true] %s168_s11 }
  0x30   :  { %149 = dma.hbm_to_vmem [thread:$0]  %s145_s3, 64, %s147_s26, [#allocation14]  }
  0x31   :  { %s13545_s8 = smov [#allocation18]   ;;  %s193_s13 = sshll.u32 %s14251_s17, 4  ;;  %s194_s13 = int_to_ptr.hbm [resolvable:$true] %s193_s13 }
  0x32   :  { %s170_s28 = sshll.u32 %s13545_s8, 4  ;;  %s13546_s12 = smov [#allocation21]   ;;  %s171_s28 = int_to_ptr.vmem [resolvable:$true] %s170_s28 }
  0x33   :  { %173 = dma.hbm_to_vmem [thread:$0]  %s169_s11, 64, %s171_s28, [#allocation17]  }
  0x34   :  { %s195_s0 = sshll.u32 %s13546_s12, 4  ;;  %s196_s0 = int_to_ptr.vmem [resolvable:$true] %s195_s0 }
  0x35   :  { %201 = dma.hbm_to_vmem [thread:$0]  %s194_s13, 4096, %s196_s0, [#allocation20], %s13536_s21, %s13536_s21, %s13537_s1  }
  0x36   :  { %13514 = dma.done.wait [#allocation3], 16384  }
  0x37   :  { %13515 = vsyncadd [#allocation3], 4294950912 }
  0x38   :  { %13516 = dma.done.wait [#allocation5], 16448  }
  0x39   :  { %13517 = vsyncadd [#allocation5], 4294950848 }
  0x3a   :  { %13518 = dma.done.wait [#allocation8], 16448  }
  0x3b   :  { %13519 = vsyncadd [#allocation8], 4294950848 }
  0x3c   :  { %13520 = dma.done.wait [#allocation11], 32832  }
  0x3d   :  { %13521 = vsyncadd [#allocation11], 4294934464 }
  0x3e   :  { %13522 = dma.done.wait [#allocation14], 16448  }
  0x3f   :  { %13523 = vsyncadd [#allocation14], 4294950848 }
  0x40   :  { %13524 = dma.done.wait [#allocation17], 16448  }
  0x41   :  { %13525 = vsyncadd [#allocation17], 4294950848 }
  0x42   :  { %13526 = dma.done.wait [#allocation20], 8192  }
  0x43   :  { %13527 = vsyncadd [#allocation20], 4294959104  ;;  %vm286_vm0 = vcmask 1041408   ;;  %vm287_vm1 = vcmask 1042432   ;;  %v13547_v0 = vmov 65535   ;;  %s14264_s21 = sld [smem:[#allocation30_spill]] }
  0x44   :  { %v288_v1 = vsel %vm286_vm0, 4294967295, %v13547_v0  ;;  %v8472_v8 = vld [vmem:[#allocation2 + $0xe0] sm:$0xf]  ;;  %v12230_v9 = vld [vmem:[#allocation2 + $0xec] sm:$0xf0]  ;;  %s14265_s15 = sld [smem:[#allocation29_spill]] }
  0x45   :  { %v289_v10 = vsel %vm287_vm1, %v288_v1, 0  ;;  %v8600_v11 = vld [vmem:[#allocation2 + $0x1e0] sm:$0xf]  ;;  %v12262_v12 = vld [vmem:[#allocation2 + $0x1ec] sm:$0xf0]  ;;  %v8473_v19 = vor.u32 %v12230_v9, %v8472_v8  ;;  %vm282_vm2 = vcmask 39936  }
  0x46   :  { %v8601_v20 = vor.u32 %v12262_v12, %v8600_v11  ;;  %v8456_v21 = vld [vmem:[#allocation2 + $0xc0] sm:$0xf]  ;;  %v12294_v27 = vld [vmem:[#allocation2 + $0x2ec] sm:$0xf0]  ;;  %s14266_s25 = sld [smem:[#allocation31_spill]] }
  0x47   :  { %v8728_v22 = vld [vmem:[#allocation2 + $0x2e0] sm:$0xf]  ;;  %v12326_v29 = vld [vmem:[#allocation2 + $0x3ec] sm:$0xf0] }
  0x48   :  { %v8856_v28 = vld [vmem:[#allocation2 + $0x3e0] sm:$0xf]  ;;  %v12226_v31 = vld [vmem:[#allocation2 + $0xcc] sm:$0xf0]  ;;  %v8729_v34 = vor.u32 %v12294_v27, %v8728_v22 }
  0x49   :  { %v260_v2 = vld [vmem:[%s14264_s21] sm:$0x77]  ;;  %v261_v3 = vld [vmem:[%s14264_s21 + $0x8] sm:$0x77]  ;;  %v12258_v33 = vld [vmem:[#allocation2 + $0x1cc] sm:$0xf0]  ;;  %v8857_v35 = vor.u32 %v12326_v29, %v8856_v28  ;;  %v8457_v38 = vor.u32 %v12226_v31, %v8456_v21 }
  0x4a   :  { %v274_v4 = vunpack.c.l.b16 %v260_v2  ;;  %v275_v5 = vunpack.c.h.b16 %v260_v2  ;;  %v276_v6 = vunpack.c.l.b16 %v261_v3  ;;  %v277_v7 = vunpack.c.h.b16 %v261_v3  ;;  %v257_v17 = vld [vmem:[%s14265_s15] sm:$0xff]  ;;  %v258_v18 = vld [vmem:[%s14265_s15 + $0x8] sm:$0xff]  ;;  %v12290_v40 = vld [vmem:[#allocation2 + $0x2cc] sm:$0xf0] }
  0x4b   :  { %v259_v30 = vpack.c.bf16 %v258_v18, %v257_v17  ;;  %v8584_v32 = vld [vmem:[#allocation2 + $0x1c0] sm:$0xf]  ;;  %v12322_v42 = vld [vmem:[#allocation2 + $0x3cc] sm:$0xf0] }
  0x4c   :  { %v278_v13 = vpack.c.b16 %v274_v4, %v274_v4  ;;  %v279_v14 = vpack.c.b16 %v275_v5, %v275_v5  ;;  %v280_v15 = vpack.c.b16 %v276_v6, %v276_v6  ;;  %v281_v16 = vpack.c.b16 %v277_v7, %v277_v7  ;;  %v8440_v36 = vld [vmem:[#allocation2 + $0xa0] sm:$0xf]  ;;  %v12222_v43 = vld [vmem:[#allocation2 + $0xac] sm:$0xf0] }
  0x4d   :  { %v8712_v37 = vld [vmem:[#allocation2 + $0x2c0] sm:$0xf]  ;;  %v8585_v39 = vor.u32 %v12258_v33, %v8584_v32  ;;  %v12254_v45 = vld [vmem:[#allocation2 + $0x1ac] sm:$0xf0]  ;;  %v8441_v50 = vor.u32 %v12222_v43, %v8440_v36  ;;  %v8474_v43 = vld [vmem:[#allocation2 + $0xf0] sm:$0xf0] }
  0x4e   :  { %v291_v23 = vand.u32 %v289_v10, %v278_v13  ;;  %v294_v24 = vand.u32 %v289_v10, %v279_v14  ;;  %v297_v25 = vand.u32 %v289_v10, %v280_v15  ;;  %v300_v26 = vand.u32 %v289_v10, %v281_v16  ;;  %v8840_v41 = vld [vmem:[#allocation2 + $0x3c0] sm:$0xf]  ;;  %v12286_v52 = vld [vmem:[#allocation2 + $0x2ac] sm:$0xf0] }
  0x4f   :  { %v8568_v44 = vld [vmem:[#allocation2 + $0x1a0] sm:$0xf]  ;;  %v8713_v46 = vor.u32 %v12290_v40, %v8712_v37  ;;  %v8841_v47 = vor.u32 %v12322_v42, %v8840_v41  ;;  %v12318_v54 = vld [vmem:[#allocation2 + $0x3ac] sm:$0xf0]  ;;  %v12228_v42 = vld [vmem:[#allocation2 + $0xe4] sm:$0xf] }
  0x50   :  { %309 = vmatpush.bf16.msra.mxu0 %v291_v23  ;;  %323 = vmatpush.bf16.msra.mxu1 %v294_v24  ;;  %v8424_v48 = vld [vmem:[#allocation2 + $0x80] sm:$0xf]  ;;  %v8569_v51 = vor.u32 %v12254_v45, %v8568_v44  ;;  %v12218_v55 = vld [vmem:[#allocation2 + $0x8c] sm:$0xf0]  ;;  %v12260_v44 = vld [vmem:[#allocation2 + $0x1e4] sm:$0xf] }
  0x51   :  { %337 = vmatpush.bf16.msra.mxu2 %v297_v25  ;;  %351 = vmatpush.bf16.msra.mxu3 %v300_v26  ;;  %v8696_v49 = vld [vmem:[#allocation2 + $0x2a0] sm:$0xf]  ;;  %v12250_v57 = vld [vmem:[#allocation2 + $0x18c] sm:$0xf0]  ;;  %v8425_v62 = vor.u32 %v12218_v55, %v8424_v48  ;;  %v8602_v45 = vld [vmem:[#allocation2 + $0x1f0] sm:$0xf0] }
  0x52   :  { %v8824_v53 = vld [vmem:[#allocation2 + $0x3a0] sm:$0xf]  ;;  %v8697_v58 = vor.u32 %v12286_v52, %v8696_v49  ;;  %v12282_v0 = vld [vmem:[#allocation2 + $0x28c] sm:$0xf0]  ;;  %v12224_v52 = vld [vmem:[#allocation2 + $0xc4] sm:$0xf] }
  0x53   :  { %8354 = vmatmul.msk.bf16.vlgmr.msra.gmra.mxu0 %vm282_vm2, %v259_v30  ;;  %8355 = vmatmul.msk.bf16.vlgmr.msra.gmra.mxu1 %vm282_vm2, %v259_v30  ;;  %v8552_v56 = vld [vmem:[#allocation2 + $0x180] sm:$0xf]  ;;  %v8825_v59 = vor.u32 %v12318_v54, %v8824_v53  ;;  %v12314_v2 = vld [vmem:[#allocation2 + $0x38c] sm:$0xf0]  ;;  %v12292_v55 = vld [vmem:[#allocation2 + $0x2e4] sm:$0xf] }
  0x54   :  { %1164 = vmatpush.bf16.msrb.mxu0 %v8473_v19  ;;  %1178 = vmatpush.bf16.msrb.mxu1 %v8601_v20  ;;  %v8408_v60 = vld [vmem:[#allocation2 + $0x60] sm:$0xf]  ;;  %v8553_v63 = vor.u32 %v12250_v57, %v8552_v56  ;;  %v12214_v3 = vld [vmem:[#allocation2 + $0x6c] sm:$0xf0]  ;;  %v8477_v56 = vor.u32 %v12228_v42, %v8474_v43  ;;  %v8605_v57 = vor.u32 %v12260_v44, %v8602_v45  ;;  %v12208_v42 = vld [vmem:[#allocation2 + $0x44] sm:$0xf] }
  0x55   :  { %8356 = vmatmul.msk.bf16.vlgmr.msra.gmra.mxu2 %vm282_vm2, %v259_v30  ;;  %8357 = vmatmul.msk.bf16.vlgmr.msra.gmra.mxu3 %vm282_vm2, %v259_v30  ;;  %v8680_v61 = vld [vmem:[#allocation2 + $0x280] sm:$0xf]  ;;  %v12246_v5 = vld [vmem:[#allocation2 + $0x16c] sm:$0xf0]  ;;  %v8409_v10 = vor.u32 %v12214_v3, %v8408_v60  ;;  %v8858_v60 = vld [vmem:[#allocation2 + $0x3f0] sm:$0xf0] }
  0x56   :  { %1192 = vmatpush.bf16.msrb.mxu2 %v8729_v34  ;;  %1206 = vmatpush.bf16.msrb.mxu3 %v8857_v35  ;;  %v8808_v1 = vld [vmem:[#allocation2 + $0x380] sm:$0xf]  ;;  %v8681_v6 = vor.u32 %v12282_v0, %v8680_v61  ;;  %v12278_v12 = vld [vmem:[#allocation2 + $0x26c] sm:$0xf0]  ;;  %v8458_v61 = vld [vmem:[#allocation2 + $0xd0] sm:$0xf0] }
  0x57   :  { %v8536_v4 = vld [vmem:[#allocation2 + $0x160] sm:$0xf]  ;;  %v8809_v7 = vor.u32 %v12314_v2, %v8808_v1  ;;  %v12310_v14 = vld [vmem:[#allocation2 + $0x36c] sm:$0xf0]  ;;  %v8394_v43 = vld [vmem:[#allocation2 + $0x50] sm:$0xf0] }
  0x58   :  { %1165 = vmatpush.bf16.msrb.mxu0 %v8457_v38  ;;  %1179 = vmatpush.bf16.msrb.mxu1 %v8585_v39  ;;  %v8392_v8 = vld [vmem:[#allocation2 + $0x40] sm:$0xf]  ;;  %v8537_v11 = vor.u32 %v12246_v5, %v8536_v4  ;;  %v12210_v15 = vld [vmem:[#allocation2 + $0x4c] sm:$0xf0]  ;;  %v12220_v4 = vld [vmem:[#allocation2 + $0xa4] sm:$0xf]  ;;  %v8397_v44 = vor.u32 %v12208_v42, %v8394_v43 }
  0x59   :  { %v8664_v9 = vld [vmem:[#allocation2 + $0x260] sm:$0xf]  ;;  %v12242_v17 = vld [vmem:[#allocation2 + $0x14c] sm:$0xf0]  ;;  %v8393_v22 = vor.u32 %v12210_v15, %v8392_v8  ;;  %v12288_v5 = vld [vmem:[#allocation2 + $0x2c4] sm:$0xf] }
  0x5a   :  { %1193 = vmatpush.bf16.msrb.mxu2 %v8713_v46  ;;  %1207 = vmatpush.bf16.msrb.mxu3 %v8841_v47  ;;  %v8792_v13 = vld [vmem:[#allocation2 + $0x360] sm:$0xf]  ;;  %v8665_v18 = vor.u32 %v12278_v12, %v8664_v9  ;;  %v12274_v24 = vld [vmem:[#allocation2 + $0x24c] sm:$0xf0]  ;;  %v8714_v8 = vld [vmem:[#allocation2 + $0x2d0] sm:$0xf0] }
  0x5b   :  { %v8520_v16 = vld [vmem:[#allocation2 + $0x140] sm:$0xf]  ;;  %v8793_v19 = vor.u32 %v12310_v14, %v8792_v13  ;;  %v12306_v26 = vld [vmem:[#allocation2 + $0x34c] sm:$0xf0]  ;;  %v12320_v9 = vld [vmem:[#allocation2 + $0x3c4] sm:$0xf]  ;;  %v8717_v14 = vor.u32 %v12288_v5, %v8714_v8 }
  0x5c   :  { %1166 = vmatpush.bf16.msrb.mxu0 %v8441_v50  ;;  %1180 = vmatpush.bf16.msrb.mxu1 %v8569_v51  ;;  %v8376_v20 = vld [vmem:[#allocation2 + $0x20] sm:$0xf]  ;;  %v8521_v23 = vor.u32 %v12242_v17, %v8520_v16  ;;  %v12206_v27 = vld [vmem:[#allocation2 + $0x2c] sm:$0xf0]  ;;  %v12252_v12 = vld [vmem:[#allocation2 + $0x1a4] sm:$0xf] }
  0x5d   :  { %v8648_v21 = vld [vmem:[#allocation2 + $0x240] sm:$0xf]  ;;  %v12238_v29 = vld [vmem:[#allocation2 + $0x12c] sm:$0xf0]  ;;  %v8377_v37 = vor.u32 %v12206_v27, %v8376_v20  ;;  %v8570_v13 = vld [vmem:[#allocation2 + $0x1b0] sm:$0xf0] }
  0x5e   :  { %1194 = vmatpush.bf16.msrb.mxu2 %v8697_v58  ;;  %1208 = vmatpush.bf16.msrb.mxu3 %v8825_v59  ;;  %v8776_v25 = vld [vmem:[#allocation2 + $0x340] sm:$0xf]  ;;  %v8649_v30 = vor.u32 %v12274_v24, %v8648_v21  ;;  %v12202_v33 = vld [vmem:[#allocation2 + $0xc] sm:$0xf0]  ;;  %v8730_v58 = vld [vmem:[#allocation2 + $0x2f0] sm:$0xf0]  ;;  %v8573_v17 = vor.u32 %v12252_v12, %v8570_v13 }
  0x5f   :  { %v8504_v28 = vld [vmem:[#allocation2 + $0x120] sm:$0xf]  ;;  %v8777_v31 = vor.u32 %v12306_v26, %v8776_v25  ;;  %v12234_v35 = vld [vmem:[#allocation2 + $0x10c] sm:$0xf0]  ;;  %v12324_v59 = vld [vmem:[#allocation2 + $0x3e4] sm:$0xf]  ;;  %v8733_v2 = vor.u32 %v12292_v55, %v8730_v58 }
  0x60   :  { %1167 = vmatpush.bf16.msrb.mxu0 %v8425_v62  ;;  %1181 = vmatpush.bf16.msrb.mxu1 %v8553_v63  ;;  %v8360_v32 = vld [vmem:[#allocation2] sm:$0xf]  ;;  %v8505_v38 = vor.u32 %v12238_v29, %v8504_v28  ;;  %v12270_v39 = vld [vmem:[#allocation2 + $0x22c] sm:$0xf0]  ;;  %v12256_v62 = vld [vmem:[#allocation2 + $0x1c4] sm:$0xf]  ;;  %v8861_v3 = vor.u32 %v12324_v59, %v8858_v60 }
  0x61   :  { %v8488_v34 = vld [vmem:[#allocation2 + $0x100] sm:$0xf]  ;;  %v12302_v41 = vld [vmem:[#allocation2 + $0x32c] sm:$0xf0]  ;;  %v8361_v50 = vor.u32 %v12202_v33, %v8360_v32  ;;  %v8586_v63 = vld [vmem:[#allocation2 + $0x1d0] sm:$0xf0] }
  0x62   :  { %1195 = vmatpush.bf16.msrb.mxu2 %v8681_v6  ;;  %1209 = vmatpush.bf16.msrb.mxu3 %v8809_v7  ;;  %v8632_v36 = vld [vmem:[#allocation2 + $0x220] sm:$0xf]  ;;  %v12266_v49 = vld [vmem:[#allocation2 + $0x20c] sm:$0xf0]  ;;  %v8489_v51 = vor.u32 %v12234_v35, %v8488_v34  ;;  %v8461_v6 = vor.u32 %v12224_v52, %v8458_v61  ;;  %v8589_v7 = vor.u32 %v12256_v62, %v8586_v63  ;;  %v12248_v20 = vld [vmem:[#allocation2 + $0x184] sm:$0xf] }
  0x63   :  { %v8760_v40 = vld [vmem:[#allocation2 + $0x320] sm:$0xf]  ;;  %v8633_v46 = vor.u32 %v12270_v39, %v8632_v36  ;;  %v12298_v54 = vld [vmem:[#allocation2 + $0x30c] sm:$0xf0]  ;;  %v8554_v21 = vld [vmem:[#allocation2 + $0x190] sm:$0xf0] }
  0x64   :  { %1168 = vmatpush.bf16.msrb.mxu0 %v8409_v10  ;;  %1182 = vmatpush.bf16.msrb.mxu1 %v8537_v11  ;;  %v8761_v47 = vor.u32 %v12302_v41, %v8760_v40  ;;  %v8616_v48 = vld [vmem:[#allocation2 + $0x200] sm:$0xf]  ;;  %v8842_v10 = vld [vmem:[#allocation2 + $0x3d0] sm:$0xf0]  ;;  %v12284_v24 = vld [vmem:[#allocation2 + $0x2a4] sm:$0xf] }
  0x65   :  { %v8744_v53 = vld [vmem:[#allocation2 + $0x300] sm:$0xf]  ;;  %v8617_v0 = vor.u32 %v12266_v49, %v8616_v48  ;;  %v8442_v11 = vld [vmem:[#allocation2 + $0xb0] sm:$0xf0]  ;;  %v8845_v15 = vor.u32 %v12320_v9, %v8842_v10  ;;  %v12316_v26 = vld [vmem:[#allocation2 + $0x3a4] sm:$0xf] }
  0x66   :  { %1196 = vmatpush.bf16.msrb.mxu2 %v8665_v18  ;;  %1210 = vmatpush.bf16.msrb.mxu3 %v8793_v19  ;;  %v8745_v1 = vor.u32 %v12298_v54, %v8744_v53  ;;  %v8445_v16 = vor.u32 %v12220_v4, %v8442_v11  ;;  %v12216_v18 = vld [vmem:[#allocation2 + $0x84] sm:$0xf]  ;;  %v8426_v19 = vld [vmem:[#allocation2 + $0x90] sm:$0xf0] }
  0x67   :  { %v8698_v25 = vld [vmem:[#allocation2 + $0x2b0] sm:$0xf0]  ;;  %v12244_v32 = vld [vmem:[#allocation2 + $0x164] sm:$0xf] }
  0x68   :  { %1169 = vmatpush.bf16.msrb.mxu0 %v8393_v22  ;;  %1183 = vmatpush.bf16.msrb.mxu1 %v8521_v23  ;;  %v8429_v22 = vor.u32 %v12216_v18, %v8426_v19  ;;  %v8557_v23 = vor.u32 %v12248_v20, %v8554_v21  ;;  %v8701_v27 = vor.u32 %v12284_v24, %v8698_v25  ;;  %v8826_v28 = vld [vmem:[#allocation2 + $0x3b0] sm:$0xf0]  ;;  %v12280_v36 = vld [vmem:[#allocation2 + $0x284] sm:$0xf]  ;;  %v262_v20 = vld [vmem:[%s14266_s25] sm:$0xf] }
  0x69   :  { %v8829_v29 = vor.u32 %v12316_v26, %v8826_v28  ;;  %v8538_v34 = vld [vmem:[#allocation2 + $0x170] sm:$0xf0]  ;;  %v12240_v45 = vld [vmem:[#allocation2 + $0x144] sm:$0xf]  ;;  %v265_v21 = vperm.slane %v262_v20, 1  ;;  %v264_v24 = vperm.slane %v262_v20, 0 }
  0x6a   :  { %1197 = vmatpush.bf16.msrb.mxu2 %v8649_v30  ;;  %1211 = vmatpush.bf16.msrb.mxu3 %v8777_v31  ;;  %v12212_v30 = vld [vmem:[#allocation2 + $0x64] sm:$0xf]  ;;  %v8410_v31 = vld [vmem:[#allocation2 + $0x70] sm:$0xf0]  ;;  %v8541_v35 = vor.u32 %v12244_v32, %v8538_v34 }
  0x6b   :  { %v8413_v33 = vor.u32 %v12212_v30, %v8410_v31  ;;  %v8810_v40 = vld [vmem:[#allocation2 + $0x390] sm:$0xf0]  ;;  %v12276_v48 = vld [vmem:[#allocation2 + $0x264] sm:$0xf]  ;;  %v266_v30 = vperm.slane %v262_v20, 2  ;;  %v267_v31 = vperm.slane %v262_v20, 3 }
  0x6c   :  { %1170 = vmatpush.bf16.msrb.mxu0 %v8377_v37  ;;  %1184 = vmatpush.bf16.msrb.mxu1 %v8505_v38  ;;  %v8682_v37 = vld [vmem:[#allocation2 + $0x290] sm:$0xf0]  ;;  %v12312_v38 = vld [vmem:[#allocation2 + $0x384] sm:$0xf] }
  0x6d   :  { %v8685_v39 = vor.u32 %v12280_v36, %v8682_v37  ;;  %v8813_v41 = vor.u32 %v12312_v38, %v8810_v40  ;;  %v8666_v49 = vld [vmem:[#allocation2 + $0x270] sm:$0xf0]  ;;  %v12204_v54 = vld [vmem:[#allocation2 + $0x24] sm:$0xf]  ;;  %v8480_v37 = vld [vmem:[#allocation2 + $0xe8] sm:$0xf] }
  0x6e   :  { %1198 = vmatpush.bf16.msrb.mxu2 %v8633_v46  ;;  %1212 = vmatpush.bf16.msrb.mxu3 %v8761_v47  ;;  %v8522_v46 = vld [vmem:[#allocation2 + $0x150] sm:$0xf0]  ;;  %v12272_v60 = vld [vmem:[#allocation2 + $0x244] sm:$0xf]  ;;  %v12231_v38 = vld [vmem:[#allocation2 + $0xf4] sm:$0xf0] }
  0x6f   :  { %v8525_v47 = vor.u32 %v12240_v45, %v8522_v46  ;;  %v8794_v52 = vld [vmem:[#allocation2 + $0x370] sm:$0xf0]  ;;  %v12304_v62 = vld [vmem:[#allocation2 + $0x344] sm:$0xf]  ;;  %v8608_v40 = vld [vmem:[#allocation2 + $0x1e8] sm:$0xf]  ;;  %v8481_v46 = vor.u32 %v12231_v38, %v8480_v37 }
  0x70   :  { %1171 = vmatpush.bf16.msrb.mxu0 %v8361_v50  ;;  %1185 = vmatpush.bf16.msrb.mxu1 %v8489_v51  ;;  %v12308_v50 = vld [vmem:[#allocation2 + $0x364] sm:$0xf]  ;;  %v8669_v51 = vor.u32 %v12276_v48, %v8666_v49  ;;  %v8378_v55 = vld [vmem:[#allocation2 + $0x30] sm:$0xf0]  ;;  %v8416_v37 = vld [vmem:[#allocation2 + $0x68] sm:$0xf] }
  0x71   :  { %v8797_v53 = vor.u32 %v12308_v50, %v8794_v52  ;;  %v8506_v58 = vld [vmem:[#allocation2 + $0x130] sm:$0xf0]  ;;  %v12232_v4 = vld [vmem:[#allocation2 + $0x104] sm:$0xf]  ;;  %v12227_v52 = vld [vmem:[#allocation2 + $0xd4] sm:$0xf0] }
  0x72   :  { %1199 = vmatpush.bf16.msrb.mxu2 %v8617_v0  ;;  %1213 = vmatpush.bf16.msrb.mxu3 %v8745_v1  ;;  %v8650_v61 = vld [vmem:[#allocation2 + $0x250] sm:$0xf0]  ;;  %v12268_v8 = vld [vmem:[#allocation2 + $0x224] sm:$0xf]  ;;  %v12215_v38 = vld [vmem:[#allocation2 + $0x74] sm:$0xf0] }
  0x73   :  { %v8653_v63 = vor.u32 %v12272_v60, %v8650_v61  ;;  %v8778_v0 = vld [vmem:[#allocation2 + $0x350] sm:$0xf0]  ;;  %v12300_v10 = vld [vmem:[#allocation2 + $0x324] sm:$0xf]  ;;  %v8864_v61 = vld [vmem:[#allocation2 + $0x3e8] sm:$0xf] }
  0x74   :  { %1220 = vmatpush.bf16.msra.mxu0 %v8477_v56  ;;  %1234 = vmatpush.bf16.msra.mxu1 %v8605_v57  ;;  %v12236_v56 = vld [vmem:[#allocation2 + $0x124] sm:$0xf]  ;;  %v8381_v57 = vor.u32 %v12204_v54, %v8378_v55  ;;  %v8781_v1 = vor.u32 %v12304_v62, %v8778_v0  ;;  %v8634_v9 = vld [vmem:[#allocation2 + $0x230] sm:$0xf0]  ;;  %v12327_v62 = vld [vmem:[#allocation2 + $0x3f4] sm:$0xf0] }
  0x75   :  { %v8509_v59 = vor.u32 %v12236_v56, %v8506_v58  ;;  %v8762_v11 = vld [vmem:[#allocation2 + $0x330] sm:$0xf0]  ;;  %v8637_v12 = vor.u32 %v12268_v8, %v8634_v9  ;;  %v12259_v56 = vld [vmem:[#allocation2 + $0x1d4] sm:$0xf0] }
  0x76   :  { %1248 = vmatpush.bf16.msra.mxu2 %v8733_v2  ;;  %1262 = vmatpush.bf16.msra.mxu3 %v8861_v3  ;;  %v12200_v2 = vld [vmem:[#allocation2 + $0x4] sm:$0xf]  ;;  %v8362_v3 = vld [vmem:[#allocation2 + $0x10] sm:$0xf0]  ;;  %v8765_v13 = vor.u32 %v12300_v10, %v8762_v11  ;;  %v12295_v58 = vld [vmem:[#allocation2 + $0x2f4] sm:$0xf0] }
  0x77   :  { %v8365_v5 = vor.u32 %v12200_v2, %v8362_v3  ;;  %v8746_v18 = vld [vmem:[#allocation2 + $0x310] sm:$0xf0]  ;;  %v12255_v8 = vld [vmem:[#allocation2 + $0x1b4] sm:$0xf0] }
  0x78   :  { %1221 = vmatpush.bf16.msra.mxu0 %v8461_v6  ;;  %1235 = vmatpush.bf16.msra.mxu1 %v8589_v7  ;;  %v8490_v6 = vld [vmem:[#allocation2 + $0x110] sm:$0xf0] }
  0x79   :  { %v8493_v7 = vor.u32 %v12232_v4, %v8490_v6  ;;  %v12223_v4 = vld [vmem:[#allocation2 + $0xb4] sm:$0xf0] }
  0x7a   :  { %1249 = vmatpush.bf16.msra.mxu2 %v8717_v14  ;;  %1263 = vmatpush.bf16.msra.mxu3 %v8845_v15  ;;  %v12264_v14 = vld [vmem:[#allocation2 + $0x204] sm:$0xf]  ;;  %v8618_v15 = vld [vmem:[#allocation2 + $0x210] sm:$0xf0] }
  0x7c   :  { %1222 = vmatpush.bf16.msra.mxu0 %v8445_v16  ;;  %1236 = vmatpush.bf16.msra.mxu1 %v8573_v17  ;;  %v8621_v16 = vor.u32 %v12264_v14, %v8618_v15  ;;  %v12296_v17 = vld [vmem:[#allocation2 + $0x304] sm:$0xf] }
  0x7d   :  { %v8749_v19 = vor.u32 %v12296_v17, %v8746_v18  ;;  %v8720_v18 = vld [vmem:[#allocation2 + $0x2c8] sm:$0xf] }
  0x7e   :  { %1250 = vmatpush.bf16.msra.mxu2 %v8701_v27  ;;  %1264 = vmatpush.bf16.msra.mxu3 %v8829_v29 }
  0x80   :  { %1223 = vmatpush.bf16.msra.mxu0 %v8429_v22  ;;  %1237 = vmatpush.bf16.msra.mxu1 %v8557_v23 }
  0x82   :  { %1251 = vmatpush.bf16.msra.mxu2 %v8685_v39  ;;  %1265 = vmatpush.bf16.msra.mxu3 %v8813_v41  ;;  %v12263_v41 = vld [vmem:[#allocation2 + $0x1f4] sm:$0xf0] }
  0x83   :  { %v8609_v50 = vor.u32 %v12263_v41, %v8608_v40  ;;  %v8544_v40 = vld [vmem:[#allocation2 + $0x168] sm:$0xf]  ;;  %v12247_v41 = vld [vmem:[#allocation2 + $0x174] sm:$0xf0] }
  0x84   :  { %1224 = vmatpush.bf16.msra.mxu0 %v8413_v33  ;;  %1238 = vmatpush.bf16.msra.mxu1 %v8541_v35 }
  0x86   :  { %1252 = vmatpush.bf16.msra.mxu2 %v8669_v51  ;;  %1266 = vmatpush.bf16.msra.mxu3 %v8797_v53  ;;  %v8464_v51 = vld [vmem:[#allocation2 + $0xc8] sm:$0xf] }
  0x87   :  { %v8592_v53 = vld [vmem:[#allocation2 + $0x1c8] sm:$0xf] }
  0x88   :  { %1225 = vmatpush.bf16.msra.mxu0 %v8397_v44  ;;  %1239 = vmatpush.bf16.msra.mxu1 %v8525_v47  ;;  %v8593_v6 = vor.u32 %v12259_v56, %v8592_v53  ;;  %v8400_v53 = vld [vmem:[#allocation2 + $0x48] sm:$0xf]  ;;  %v12211_v56 = vld [vmem:[#allocation2 + $0x54] sm:$0xf0] }
  0x8a   :  { %1253 = vmatpush.bf16.msra.mxu2 %v8653_v63  ;;  %1267 = vmatpush.bf16.msra.mxu3 %v8781_v1  ;;  %v8448_v63 = vld [vmem:[#allocation2 + $0xa8] sm:$0xf] }
  0x8c   :  { %1226 = vmatpush.bf16.msra.mxu0 %v8381_v57  ;;  %1240 = vmatpush.bf16.msra.mxu1 %v8509_v59  ;;  %v8736_v57 = vld [vmem:[#allocation2 + $0x2e8] sm:$0xf] }
  0x8d   :  { %v8737_v11 = vor.u32 %v12295_v58, %v8736_v57  ;;  %v8528_v57 = vld [vmem:[#allocation2 + $0x148] sm:$0xf]  ;;  %v12243_v58 = vld [vmem:[#allocation2 + $0x154] sm:$0xf0] }
  0x8e   :  { %1254 = vmatpush.bf16.msra.mxu2 %v8637_v12  ;;  %1268 = vmatpush.bf16.msra.mxu3 %v8765_v13  ;;  %v8865_v12 = vor.u32 %v12327_v62, %v8864_v61  ;;  %v8449_v13 = vor.u32 %v12223_v4, %v8448_v63  ;;  %v8672_v61 = vld [vmem:[#allocation2 + $0x268] sm:$0xf]  ;;  %v12279_v62 = vld [vmem:[#allocation2 + $0x274] sm:$0xf0] }
  0x8f   :  { %v8800_v63 = vld [vmem:[#allocation2 + $0x368] sm:$0xf]  ;;  %v12207_v4 = vld [vmem:[#allocation2 + $0x34] sm:$0xf0] }
  0x90   :  { %1227 = vmatpush.bf16.msra.mxu0 %v8365_v5  ;;  %1241 = vmatpush.bf16.msra.mxu1 %v8493_v7  ;;  %v8465_v5 = vor.u32 %v12227_v52, %v8464_v51  ;;  %v8576_v7 = vld [vmem:[#allocation2 + $0x1a8] sm:$0xf]  ;;  %v8417_v51 = vor.u32 %v12215_v38, %v8416_v37  ;;  %v8545_v52 = vor.u32 %v12247_v41, %v8544_v40  ;;  %v12225_v40 = vld [vmem:[#allocation2 + $0xcc] sm:$0xf]  ;;  %v8466_v41 = vld [vmem:[#allocation2 + $0xd8] sm:$0xf0] }
  0x92   :  { %1255 = vmatpush.bf16.msra.mxu2 %v8621_v16  ;;  %1269 = vmatpush.bf16.msra.mxu3 %v8749_v19  ;;  %v12291_v19 = vld [vmem:[#allocation2 + $0x2d4] sm:$0xf0] }
  0xd0   :  { %v311_v22 = vpop.f32.mrf.mxu0  ;;  %v325_v23 = vpop.f32.mrf.mxu1 }
  0xd1   :  { %v326_v25 = vadd.f32 %v325_v23, %v265_v21  ;;  %v312_v26 = vadd.f32 %v311_v22, %v264_v24  ;;  %v8577_v22 = vor.u32 %v12255_v8, %v8576_v7  ;;  %v8848_v23 = vld [vmem:[#allocation2 + $0x3c8] sm:$0xf]  ;;  %v8673_v7 = vor.u32 %v12279_v62, %v8672_v61  ;;  %v12221_v61 = vld [vmem:[#allocation2 + $0xac] sm:$0xf] }
  0xd3   :  { %v367_v27 = vmul.f32 0.01, %v326_v25  ;;  %vm359_vm3 = vcmp.gt.f32.partialorder %v326_v25, 0.0  ;;  %v366_v34 = vmul.f32 0.01, %v312_v26  ;;  %vm358_vm4 = vcmp.gt.f32.partialorder %v312_v26, 0.0 }
  0xd5   :  { %v13733_v39 = vsel %vm359_vm3, %v326_v25, %v367_v27  ;;  %v13735_v47 = vsel %vm358_vm4, %v312_v26, %v366_v34  ;;  %v8432_v25 = vld [vmem:[#allocation2 + $0x88] sm:$0xf]  ;;  %v12219_v26 = vld [vmem:[#allocation2 + $0x94] sm:$0xf0] }
  0xd6   :  { %v8560_v27 = vld [vmem:[#allocation2 + $0x188] sm:$0xf]  ;;  %v12287_v34 = vld [vmem:[#allocation2 + $0x2b4] sm:$0xf0] }
  0xd8   :  { %v339_v28 = vpop.f32.mrf.mxu2  ;;  %v353_v29 = vpop.f32.mrf.mxu3 }
  0xd9   :  { %v313_v32 = vpop.f32.mrf.mxu0  ;;  %v327_v33 = vpop.f32.mrf.mxu1  ;;  %v340_v44 = vadd.f32 %v339_v28, %v266_v30  ;;  %v354_v45 = vadd.f32 %v353_v29, %v267_v31  ;;  %v12251_v28 = vld [vmem:[#allocation2 + $0x194] sm:$0xf0]  ;;  %v8721_v29 = vor.u32 %v12291_v19, %v8720_v18  ;;  %v8368_v19 = vld [vmem:[#allocation2 + $0x8] sm:$0xf] }
  0xda   :  { %v314_v35 = vadd.f32 %v313_v32, %v264_v24  ;;  %v328_v36 = vadd.f32 %v327_v33, %v265_v21  ;;  %v12323_v24 = vld [vmem:[#allocation2 + $0x3d4] sm:$0xf0]  ;;  %v8433_v32 = vor.u32 %v12219_v26, %v8432_v25  ;;  %v8561_v33 = vor.u32 %v12251_v28, %v8560_v27  ;;  %v12229_v25 = vld [vmem:[#allocation2 + $0xec] sm:$0xf]  ;;  %v8482_v26 = vld [vmem:[#allocation2 + $0xf8] sm:$0xf0] }
  0xdb   :  { %v368_v0 = vmul.f32 0.01, %v340_v44  ;;  %v369_v1 = vmul.f32 0.01, %v354_v45  ;;  %vm360_vm7 = vcmp.gt.f32.partialorder %v340_v44, 0.0  ;;  %vm361_vm8 = vcmp.gt.f32.partialorder %v354_v45, 0.0 }
  0xdc   :  { %vm362_vm5 = vcmp.gt.f32.partialorder %v314_v35, 0.0  ;;  %v370_v42 = vmul.f32 0.01, %v314_v35  ;;  %vm363_vm6 = vcmp.gt.f32.partialorder %v328_v36, 0.0  ;;  %v371_v43 = vmul.f32 0.01, %v328_v36 }
  0xdd   :  { %v13751_v14 = vsel %vm360_vm7, %v340_v44, %v368_v0  ;;  %v13753_v15 = vsel %vm361_vm8, %v354_v45, %v369_v1  ;;  %v8688_v44 = vld [vmem:[#allocation2 + $0x288] sm:$0xf]  ;;  %v12283_v45 = vld [vmem:[#allocation2 + $0x294] sm:$0xf0]  ;;  %v8401_v1 = vor.u32 %v12211_v56, %v8400_v53  ;;  %v8485_v37 = vor.u32 %v12229_v25, %v8482_v26  ;;  %v12293_v53 = vld [vmem:[#allocation2 + $0x2ec] sm:$0xf] }
  0xde   :  { %v13737_v48 = vsel %vm362_vm5, %v314_v35, %v370_v42  ;;  %v13739_v49 = vsel %vm363_vm6, %v328_v36, %v371_v43  ;;  %v8832_v35 = vld [vmem:[#allocation2 + $0x3a8] sm:$0xf]  ;;  %v12319_v36 = vld [vmem:[#allocation2 + $0x3b4] sm:$0xf0]  ;;  %v8738_v56 = vld [vmem:[#allocation2 + $0x2f8] sm:$0xf0] }
  0xdf   :  { %v13743_v54 = vpack.c.bf16 %v13737_v48, %v13735_v47  ;;  %v13747_v55 = vpack.c.bf16 %v13739_v49, %v13733_v39  ;;  %v8833_v43 = vor.u32 %v12319_v36, %v8832_v35  ;;  %v12311_v0 = vld [vmem:[#allocation2 + $0x374] sm:$0xf0]  ;;  %v12317_v25 = vld [vmem:[#allocation2 + $0x3ac] sm:$0xf]  ;;  %v8834_v26 = vld [vmem:[#allocation2 + $0x3b8] sm:$0xf0] }
  0xe0   :  { %v341_v59 = vpop.f32.mrf.mxu2  ;;  %v355_v60 = vpop.f32.mrf.mxu3  ;;  %v8801_v8 = vor.u32 %v12311_v0, %v8800_v63  ;;  %v8450_v0 = vld [vmem:[#allocation2 + $0xb8] sm:$0xf0] }
  0xe1   :  { %v342_v2 = vadd.f32 %v341_v59, %v266_v30  ;;  %v356_v3 = vadd.f32 %v355_v60, %v267_v31  ;;  %1172 = vmatmul.bf16.vlgmr.msrb.gmra.mxu0 %v13743_v54  ;;  %1186 = vmatmul.bf16.vlgmr.msrb.gmra.mxu1 %v13747_v55  ;;  %v8849_v30 = vor.u32 %v12323_v24, %v8848_v23  ;;  %v8704_v31 = vld [vmem:[#allocation2 + $0x2a8] sm:$0xf]  ;;  %v12235_v24 = vld [vmem:[#allocation2 + $0x114] sm:$0xf0] }
  0xe2   :  { %1276 = vmatpush.bf16.msrb.mxu0 %v8481_v46  ;;  %1290 = vmatpush.bf16.msrb.mxu1 %v8609_v50  ;;  %v8705_v42 = vor.u32 %v12287_v34, %v8704_v31  ;;  %v8816_v46 = vld [vmem:[#allocation2 + $0x388] sm:$0xf]  ;;  %v12315_v50 = vld [vmem:[#allocation2 + $0x394] sm:$0xf0]  ;;  %v8689_v59 = vor.u32 %v12283_v45, %v8688_v44  ;;  %v8594_v45 = vld [vmem:[#allocation2 + $0x1d8] sm:$0xf0] }
  0xe3   :  { %vm364_vm9 = vcmp.gt.f32.partialorder %v342_v2, 0.0  ;;  %v372_v9 = vmul.f32 0.01, %v342_v2  ;;  %vm365_vm10 = vcmp.gt.f32.partialorder %v356_v3, 0.0  ;;  %v373_v10 = vmul.f32 0.01, %v356_v3 }
  0xe4   :  { %v8817_v60 = vor.u32 %v12315_v50, %v8816_v46  ;;  %v8496_v23 = vld [vmem:[#allocation2 + $0x108] sm:$0xf]  ;;  %v12303_v34 = vld [vmem:[#allocation2 + $0x334] sm:$0xf0] }
  0xe5   :  { %v13755_v16 = vsel %vm364_vm9, %v342_v2, %v372_v9  ;;  %v13757_v17 = vsel %vm365_vm10, %v356_v3, %v373_v10  ;;  %v8529_v2 = vor.u32 %v12243_v58, %v8528_v57  ;;  %v8384_v3 = vld [vmem:[#allocation2 + $0x28] sm:$0xf]  ;;  %v12275_v10 = vld [vmem:[#allocation2 + $0x254] sm:$0xf0]  ;;  %v8497_v36 = vor.u32 %v12235_v24, %v8496_v23  ;;  %v12325_v57 = vld [vmem:[#allocation2 + $0x3ec] sm:$0xf] }
  0xe6   :  { %v13761_v20 = vpack.c.bf16 %v13755_v16, %v13751_v14  ;;  %v13765_v21 = vpack.c.bf16 %v13757_v17, %v13753_v15  ;;  %1277 = vmatpush.bf16.msrb.mxu0 %v8465_v5  ;;  %1291 = vmatpush.bf16.msrb.mxu1 %v8593_v6  ;;  %v8512_v5 = vld [vmem:[#allocation2 + $0x128] sm:$0xf]  ;;  %v12239_v6 = vld [vmem:[#allocation2 + $0x134] sm:$0xf0]  ;;  %v8866_v58 = vld [vmem:[#allocation2 + $0x3f8] sm:$0xf0] }
  0xe7   :  { %v8656_v9 = vld [vmem:[#allocation2 + $0x248] sm:$0xf]  ;;  %v8513_v18 = vor.u32 %v12239_v6, %v8512_v5  ;;  %v12267_v50 = vld [vmem:[#allocation2 + $0x214] sm:$0xf0]  ;;  %v12289_v5 = vld [vmem:[#allocation2 + $0x2cc] sm:$0xf] }
  0xe8   :  { %1200 = vmatmul.bf16.vlgmr.msrb.gmra.mxu2 %v13761_v20  ;;  %1214 = vmatmul.bf16.vlgmr.msrb.gmra.mxu3 %v13765_v21  ;;  %v8657_v27 = vor.u32 %v12275_v10, %v8656_v9  ;;  %v8640_v31 = vld [vmem:[#allocation2 + $0x228] sm:$0xf]  ;;  %v8722_v6 = vld [vmem:[#allocation2 + $0x2d8] sm:$0xf0]  ;;  %v8453_v9 = vor.u32 %v12221_v61, %v8450_v0  ;;  %v12285_v23 = vld [vmem:[#allocation2 + $0x2ac] sm:$0xf] }
  0xe9   :  { %1304 = vmatpush.bf16.msrb.mxu2 %v8737_v11  ;;  %1318 = vmatpush.bf16.msrb.mxu3 %v8865_v12  ;;  %v8784_v11 = vld [vmem:[#allocation2 + $0x348] sm:$0xf]  ;;  %v12307_v12 = vld [vmem:[#allocation2 + $0x354] sm:$0xf0]  ;;  %v8706_v24 = vld [vmem:[#allocation2 + $0x2b8] sm:$0xf0] }
  0xea   :  { %1278 = vmatpush.bf16.msrb.mxu0 %v8449_v13  ;;  %1292 = vmatpush.bf16.msrb.mxu1 %v8577_v22  ;;  %v8385_v13 = vor.u32 %v12207_v4, %v8384_v3  ;;  %v12203_v22 = vld [vmem:[#allocation2 + $0x14] sm:$0xf0]  ;;  %v8785_v28 = vor.u32 %v12307_v12, %v8784_v11  ;;  %v8624_v46 = vld [vmem:[#allocation2 + $0x208] sm:$0xf]  ;;  %v8741_v3 = vor.u32 %v12293_v53, %v8738_v56  ;;  %v12217_v11 = vld [vmem:[#allocation2 + $0x8c] sm:$0xf] }
  0xeb   :  { %v8369_v35 = vor.u32 %v12203_v22, %v8368_v19  ;;  %v8625_v62 = vor.u32 %v12267_v50, %v8624_v46  ;;  %v8869_v4 = vor.u32 %v12325_v57, %v8866_v58  ;;  %v8434_v12 = vld [vmem:[#allocation2 + $0x98] sm:$0xf0]  ;;  %v8725_v19 = vor.u32 %v12289_v5, %v8722_v6  ;;  %v12309_v53 = vld [vmem:[#allocation2 + $0x36c] sm:$0xf] }
  0xec   :  { %v8802_v56 = vld [vmem:[#allocation2 + $0x378] sm:$0xf0]  ;;  %v12237_v61 = vld [vmem:[#allocation2 + $0x12c] sm:$0xf] }
  0xed   :  { %1305 = vmatpush.bf16.msrb.mxu2 %v8721_v29  ;;  %1319 = vmatpush.bf16.msrb.mxu3 %v8849_v30  ;;  %v12261_v29 = vld [vmem:[#allocation2 + $0x1ec] sm:$0xf]  ;;  %v8610_v30 = vld [vmem:[#allocation2 + $0x1f8] sm:$0xf0]  ;;  %v8805_v0 = vor.u32 %v12309_v53, %v8802_v56 }
  0xee   :  { %1279 = vmatpush.bf16.msrb.mxu0 %v8433_v32  ;;  %1293 = vmatpush.bf16.msrb.mxu1 %v8561_v33  ;;  %v12271_v32 = vld [vmem:[#allocation2 + $0x234] sm:$0xf0]  ;;  %v8768_v33 = vld [vmem:[#allocation2 + $0x328] sm:$0xf]  ;;  %v8613_v38 = vor.u32 %v12261_v29, %v8610_v30  ;;  %v12213_v29 = vld [vmem:[#allocation2 + $0x6c] sm:$0xf] }
  0xef   :  { %v8769_v44 = vor.u32 %v12303_v34, %v8768_v33  ;;  %v8418_v30 = vld [vmem:[#allocation2 + $0x78] sm:$0xf0]  ;;  %v8709_v33 = vor.u32 %v12285_v23, %v8706_v24  ;;  %v8837_v34 = vor.u32 %v12317_v25, %v8834_v26  ;;  %v12390_v23 = vld [vmem:[#allocation6 + $0x1ec] sm:$0xf0]  ;;  %v12301_v25 = vld [vmem:[#allocation2 + $0x32c] sm:$0xf] }
  0xf0   :  { %v8642_v24 = vld [vmem:[#allocation2 + $0x238] sm:$0xf0] }
  0xf1   :  { %1306 = vmatpush.bf16.msrb.mxu2 %v8705_v42  ;;  %1320 = vmatpush.bf16.msrb.mxu3 %v8833_v43  ;;  %v12257_v42 = vld [vmem:[#allocation2 + $0x1cc] sm:$0xf]  ;;  %v8641_v43 = vor.u32 %v12271_v32, %v8640_v31  ;;  %v8546_v32 = vld [vmem:[#allocation2 + $0x178] sm:$0xf0] }
  0xf2   :  { %1228 = vmatmul.bf16.vlgmr.msra.gmra.mxu0 %v13743_v54  ;;  %1242 = vmatmul.bf16.vlgmr.msra.gmra.mxu1 %v13747_v55  ;;  %v12245_v31 = vld [vmem:[#allocation2 + $0x16c] sm:$0xf]  ;;  %v8770_v26 = vld [vmem:[#allocation2 + $0x338] sm:$0xf0] }
  0xf3   :  { %1280 = vmatpush.bf16.msrb.mxu0 %v8417_v51  ;;  %1294 = vmatpush.bf16.msrb.mxu1 %v8545_v52  ;;  %v8752_v51 = vld [vmem:[#allocation2 + $0x308] sm:$0xf]  ;;  %v12299_v52 = vld [vmem:[#allocation2 + $0x314] sm:$0xf0] }
  0xf4   :  { %v8753_v63 = vor.u32 %v12299_v52, %v8752_v51  ;;  %v12277_v51 = vld [vmem:[#allocation2 + $0x26c] sm:$0xf]  ;;  %v8674_v52 = vld [vmem:[#allocation2 + $0x278] sm:$0xf0] }
  0xf5   :  { %1307 = vmatpush.bf16.msrb.mxu2 %v8689_v59  ;;  %1321 = vmatpush.bf16.msrb.mxu3 %v8817_v60  ;;  %v8469_v59 = vor.u32 %v12225_v40, %v8466_v41  ;;  %v8597_v60 = vor.u32 %v12257_v42, %v8594_v45  ;;  %v8421_v40 = vor.u32 %v12213_v29, %v8418_v30  ;;  %v12209_v42 = vld [vmem:[#allocation2 + $0x4c] sm:$0xf]  ;;  %v8530_v45 = vld [vmem:[#allocation2 + $0x158] sm:$0xf0] }
  0xf6   :  { %v8549_v41 = vor.u32 %v12245_v31, %v8546_v32  ;;  %v12265_v29 = vld [vmem:[#allocation2 + $0x20c] sm:$0xf]  ;;  %v8968_v31 = vld [vmem:[#allocation6 + $0xc0] sm:$0xf] }
  0xf7   :  { %1281 = vmatpush.bf16.msrb.mxu0 %v8401_v1  ;;  %1295 = vmatpush.bf16.msrb.mxu1 %v8529_v2  ;;  %v12253_v1 = vld [vmem:[#allocation2 + $0x1ac] sm:$0xf]  ;;  %v8578_v2 = vld [vmem:[#allocation2 + $0x1b8] sm:$0xf0] }
  0xf8   :  { %1256 = vmatmul.bf16.vlgmr.msra.gmra.mxu2 %v13761_v20  ;;  %1270 = vmatmul.bf16.vlgmr.msra.gmra.mxu3 %v13765_v21  ;;  %v8581_v10 = vor.u32 %v12253_v1, %v8578_v2  ;;  %v12273_v1 = vld [vmem:[#allocation2 + $0x24c] sm:$0xf]  ;;  %v8658_v2 = vld [vmem:[#allocation2 + $0x258] sm:$0xf0] }
  0xf9   :  { %1308 = vmatpush.bf16.msrb.mxu2 %v8673_v7  ;;  %1322 = vmatpush.bf16.msrb.mxu3 %v8801_v8  ;;  %v12321_v7 = vld [vmem:[#allocation2 + $0x3cc] sm:$0xf]  ;;  %v8850_v8 = vld [vmem:[#allocation2 + $0x3d8] sm:$0xf0] }
  0xfa   :  { %v8853_v22 = vor.u32 %v12321_v7, %v8850_v8  ;;  %v12201_v7 = vld [vmem:[#allocation2 + $0xc] sm:$0xf]  ;;  %v8370_v8 = vld [vmem:[#allocation2 + $0x18] sm:$0xf0] }
  0xfb   :  { %1282 = vmatpush.bf16.msrb.mxu0 %v8385_v13  ;;  %1296 = vmatpush.bf16.msrb.mxu1 %v8513_v18  ;;  %v12249_v13 = vld [vmem:[#allocation2 + $0x18c] sm:$0xf]  ;;  %v8562_v18 = vld [vmem:[#allocation2 + $0x198] sm:$0xf0] }
  0xfd   :  { %1309 = vmatpush.bf16.msrb.mxu2 %v8657_v27  ;;  %1323 = vmatpush.bf16.msrb.mxu3 %v8785_v28  ;;  %v8437_v27 = vor.u32 %v12217_v11, %v8434_v12  ;;  %v8565_v28 = vor.u32 %v12249_v13, %v8562_v18  ;;  %v12269_v11 = vld [vmem:[#allocation2 + $0x22c] sm:$0xf]  ;;  %v8984_v12 = vld [vmem:[#allocation6 + $0xe0] sm:$0xf]  ;;  %v8661_v13 = vor.u32 %v12273_v1, %v8658_v2  ;;  %v12334_v1 = vld [vmem:[#allocation6 + $0x2c] sm:$0xf0] }
  0xff   :  { %1283 = vmatpush.bf16.msrb.mxu0 %v8369_v35  ;;  %1297 = vmatpush.bf16.msrb.mxu1 %v8497_v36  ;;  %v12281_v35 = vld [vmem:[#allocation2 + $0x28c] sm:$0xf]  ;;  %v8690_v36 = vld [vmem:[#allocation2 + $0x298] sm:$0xf0] }
 0x100   :  { %v8693_v46 = vor.u32 %v12281_v35, %v8690_v36  ;;  %v12354_v35 = vld [vmem:[#allocation6 + $0xcc] sm:$0xf0]  ;;  %v9096_v36 = vld [vmem:[#allocation6 + $0x1c0] sm:$0xf] }
 0x101   :  { %1310 = vmatpush.bf16.msrb.mxu2 %v8641_v43  ;;  %1324 = vmatpush.bf16.msrb.mxu3 %v8769_v44  ;;  %v8402_v43 = vld [vmem:[#allocation2 + $0x58] sm:$0xf0]  ;;  %v12241_v44 = vld [vmem:[#allocation2 + $0x14c] sm:$0xf] }
 0x102   :  { %1284 = vmatmul.bf16.vlgmr.msrb.gmra.mxu0 %v13743_v54  ;;  %1298 = vmatmul.bf16.vlgmr.msrb.gmra.mxu1 %v13747_v55  ;;  %v8405_v57 = vor.u32 %v12209_v42, %v8402_v43  ;;  %v8533_v58 = vor.u32 %v12241_v44, %v8530_v45  ;;  %v8969_v42 = vor.u32 %v12354_v35, %v8968_v31  ;;  %v8954_v31 = vld [vmem:[#allocation6 + $0xb0] sm:$0xf0]  ;;  %v12366_v35 = vld [vmem:[#allocation6 + $0x12c] sm:$0xf0] }
 0x103   :  { %1332 = vmatpush.bf16.msra.mxu0 %v8485_v37  ;;  %1346 = vmatpush.bf16.msra.mxu1 %v8613_v38  ;;  %v12313_v37 = vld [vmem:[#allocation2 + $0x38c] sm:$0xf]  ;;  %v8818_v38 = vld [vmem:[#allocation2 + $0x398] sm:$0xf0] }
 0x104   :  { %v8821_v50 = vor.u32 %v12313_v37, %v8818_v38  ;;  %v12386_v37 = vld [vmem:[#allocation6 + $0x1cc] sm:$0xf0]  ;;  %v8626_v38 = vld [vmem:[#allocation2 + $0x218] sm:$0xf0] }
 0x105   :  { %1311 = vmatpush.bf16.msrb.mxu2 %v8625_v62  ;;  %1325 = vmatpush.bf16.msrb.mxu3 %v8753_v63  ;;  %v8514_v62 = vld [vmem:[#allocation2 + $0x138] sm:$0xf0]  ;;  %v8677_v63 = vor.u32 %v12277_v51, %v8674_v52  ;;  %v9097_v43 = vor.u32 %v12386_v37, %v9096_v36  ;;  %v8629_v44 = vor.u32 %v12265_v29, %v8626_v38  ;;  %v9080_v51 = vld [vmem:[#allocation6 + $0x1a0] sm:$0xf]  ;;  %v12382_v52 = vld [vmem:[#allocation6 + $0x1ac] sm:$0xf0] }
 0x106   :  { %v8517_v6 = vor.u32 %v12237_v61, %v8514_v62  ;;  %v9081_v56 = vor.u32 %v12382_v52, %v9080_v51  ;;  %v8904_v61 = vld [vmem:[#allocation6 + $0x40] sm:$0xf]  ;;  %v12338_v62 = vld [vmem:[#allocation6 + $0x4c] sm:$0xf0]  ;;  %v12340_v52 = vld [vmem:[#allocation6 + $0x64] sm:$0xf] }
 0x107   :  { %1333 = vmatpush.bf16.msra.mxu0 %v8469_v59  ;;  %1347 = vmatpush.bf16.msra.mxu1 %v8597_v60  ;;  %v12205_v59 = vld [vmem:[#allocation2 + $0x2c] sm:$0xf]  ;;  %v8386_v60 = vld [vmem:[#allocation2 + $0x38] sm:$0xf0]  ;;  %v12418_v29 = vld [vmem:[#allocation6 + $0x2cc] sm:$0xf0] }
 0x108   :  { %1312 = vmatmul.bf16.vlgmr.msrb.gmra.mxu2 %v13761_v20  ;;  %1326 = vmatmul.bf16.vlgmr.msrb.gmra.mxu3 %v13765_v21  ;;  %v8389_v5 = vor.u32 %v12205_v59, %v8386_v60  ;;  %v9208_v36 = vld [vmem:[#allocation6 + $0x2a0] sm:$0xf]  ;;  %v12414_v38 = vld [vmem:[#allocation6 + $0x2ac] sm:$0xf0] }
 0x109   :  { %1360 = vmatpush.bf16.msra.mxu2 %v8741_v3  ;;  %1374 = vmatpush.bf16.msra.mxu3 %v8869_v4  ;;  %v12305_v3 = vld [vmem:[#allocation2 + $0x34c] sm:$0xf]  ;;  %v8786_v4 = vld [vmem:[#allocation2 + $0x358] sm:$0xf0]  ;;  %v12410_v51 = vld [vmem:[#allocation6 + $0x28c] sm:$0xf0] }
 0x10a   :  { %v8789_v18 = vor.u32 %v12305_v3, %v8786_v4  ;;  %v8872_v3 = vld [vmem:[#allocation6] sm:$0xf] }
 0x10b   :  { %1334 = vmatpush.bf16.msra.mxu0 %v8453_v9  ;;  %1348 = vmatpush.bf16.msra.mxu1 %v8581_v10  ;;  %v12233_v9 = vld [vmem:[#allocation2 + $0x10c] sm:$0xf]  ;;  %v8498_v10 = vld [vmem:[#allocation2 + $0x118] sm:$0xf0]  ;;  %v9064_v4 = vld [vmem:[#allocation6 + $0x180] sm:$0xf] }
 0x10d   :  { %1361 = vmatpush.bf16.msra.mxu2 %v8725_v19  ;;  %1375 = vmatpush.bf16.msra.mxu3 %v8853_v22  ;;  %v12358_v19 = vld [vmem:[#allocation6 + $0xec] sm:$0xf0]  ;;  %v9112_v22 = vld [vmem:[#allocation6 + $0x1e0] sm:$0xf] }
 0x10e   :  { %v8985_v30 = vor.u32 %v12358_v19, %v8984_v12  ;;  %v9113_v32 = vor.u32 %v12390_v23, %v9112_v22  ;;  %v9240_v12 = vld [vmem:[#allocation6 + $0x2e0] sm:$0xf]  ;;  %v8970_v19 = vld [vmem:[#allocation6 + $0xd0] sm:$0xf0] }
 0x10f   :  { %1335 = vmatpush.bf16.msra.mxu0 %v8437_v27  ;;  %1349 = vmatpush.bf16.msra.mxu1 %v8565_v28  ;;  %v8373_v27 = vor.u32 %v12201_v7, %v8370_v8  ;;  %v8501_v28 = vor.u32 %v12233_v9, %v8498_v10  ;;  %v8986_v7 = vld [vmem:[#allocation6 + $0xf0] sm:$0xf0]  ;;  %v9048_v10 = vld [vmem:[#allocation6 + $0x160] sm:$0xf] }
 0x111   :  { %1362 = vmatpush.bf16.msra.mxu2 %v8709_v33  ;;  %1376 = vmatpush.bf16.msra.mxu3 %v8837_v34  ;;  %v8645_v33 = vor.u32 %v12269_v11, %v8642_v24  ;;  %v8773_v34 = vor.u32 %v12301_v25, %v8770_v26  ;;  %v12374_v11 = vld [vmem:[#allocation6 + $0x16c] sm:$0xf0]  ;;  %v9032_v25 = vld [vmem:[#allocation6 + $0x140] sm:$0xf] }
 0x112   :  { %v9049_v22 = vor.u32 %v12374_v11, %v9048_v10  ;;  %v12370_v26 = vld [vmem:[#allocation6 + $0x14c] sm:$0xf0]  ;;  %v9144_v11 = vld [vmem:[#allocation6 + $0x220] sm:$0xf] }
 0x113   :  { %1336 = vmatpush.bf16.msra.mxu0 %v8421_v40  ;;  %1350 = vmatpush.bf16.msra.mxu1 %v8549_v41  ;;  %v12297_v40 = vld [vmem:[#allocation2 + $0x30c] sm:$0xf]  ;;  %v8754_v41 = vld [vmem:[#allocation2 + $0x318] sm:$0xf0] }
 0x114   :  { %v8757_v45 = vor.u32 %v12297_v40, %v8754_v41  ;;  %v12344_v40 = vld [vmem:[#allocation6 + $0x84] sm:$0xf]  ;;  %v8938_v41 = vld [vmem:[#allocation6 + $0x90] sm:$0xf0] }
 0x115   :  { %1363 = vmatpush.bf16.msra.mxu2 %v8693_v46  ;;  %1377 = vmatpush.bf16.msra.mxu3 %v8821_v50  ;;  %v8952_v46 = vld [vmem:[#allocation6 + $0xa0] sm:$0xf]  ;;  %v12350_v50 = vld [vmem:[#allocation6 + $0xac] sm:$0xf0] }
 0x116   :  { %v8953_v53 = vor.u32 %v12350_v50, %v8952_v46  ;;  %v9192_v50 = vld [vmem:[#allocation6 + $0x280] sm:$0xf] }
 0x117   :  { %1337 = vmatpush.bf16.msra.mxu0 %v8405_v57  ;;  %1351 = vmatpush.bf16.msra.mxu1 %v8533_v58  ;;  %v8936_v57 = vld [vmem:[#allocation6 + $0x80] sm:$0xf]  ;;  %v12346_v58 = vld [vmem:[#allocation6 + $0x8c] sm:$0xf0] }
 0x118   :  { %v8937_v59 = vor.u32 %v12346_v58, %v8936_v57  ;;  %v12388_v57 = vld [vmem:[#allocation6 + $0x1e4] sm:$0xf]  ;;  %v9114_v58 = vld [vmem:[#allocation6 + $0x1f0] sm:$0xf0] }
 0x119   :  { %1364 = vmatpush.bf16.msra.mxu2 %v8677_v63  ;;  %1378 = vmatpush.bf16.msra.mxu3 %v8805_v0  ;;  %v8905_v63 = vor.u32 %v12338_v62, %v8904_v61  ;;  %v8888_v0 = vld [vmem:[#allocation6 + $0x20] sm:$0xf]  ;;  %v12336_v62 = vld [vmem:[#allocation6 + $0x44] sm:$0xf] }
 0x11a   :  { %v8889_v2 = vor.u32 %v12334_v1, %v8888_v0  ;;  %v12384_v0 = vld [vmem:[#allocation6 + $0x1c4] sm:$0xf] }
 0x11b   :  { %1338 = vmatpush.bf16.msra.mxu0 %v8389_v5  ;;  %1352 = vmatpush.bf16.msra.mxu1 %v8517_v6  ;;  %v12378_v5 = vld [vmem:[#allocation6 + $0x18c] sm:$0xf0]  ;;  %v12356_v6 = vld [vmem:[#allocation6 + $0xe4] sm:$0xf] }
 0x11c   :  { %v9065_v8 = vor.u32 %v12378_v5, %v9064_v4  ;;  %v8989_v9 = vor.u32 %v12356_v6, %v8986_v7  ;;  %v12402_v4 = vld [vmem:[#allocation6 + $0x24c] sm:$0xf0]  ;;  %v12332_v5 = vld [vmem:[#allocation6 + $0x24] sm:$0xf]  ;;  %v8890_v6 = vld [vmem:[#allocation6 + $0x30] sm:$0xf0] }
 0x11d   :  { %1365 = vmatpush.bf16.msra.mxu2 %v8661_v13  ;;  %1379 = vmatpush.bf16.msra.mxu3 %v8789_v18  ;;  %v12422_v13 = vld [vmem:[#allocation6 + $0x2ec] sm:$0xf0]  ;;  %v12352_v18 = vld [vmem:[#allocation6 + $0xc4] sm:$0xf] }
 0x11e   :  { %v9241_v23 = vor.u32 %v12422_v13, %v9240_v12  ;;  %v8973_v24 = vor.u32 %v12352_v18, %v8970_v19  ;;  %v12380_v7 = vld [vmem:[#allocation6 + $0x1a4] sm:$0xf]  ;;  %v12398_v12 = vld [vmem:[#allocation6 + $0x22c] sm:$0xf0]  ;;  %v8874_v19 = vld [vmem:[#allocation6 + $0x10] sm:$0xf0] }
 0x11f   :  { %1339 = vmatpush.bf16.msra.mxu0 %v8373_v27  ;;  %1353 = vmatpush.bf16.msra.mxu1 %v8501_v28  ;;  %v9224_v27 = vld [vmem:[#allocation6 + $0x2c0] sm:$0xf]  ;;  %v9033_v28 = vor.u32 %v12370_v26, %v9032_v25  ;;  %v9145_v13 = vor.u32 %v12398_v12, %v9144_v11  ;;  %v12328_v18 = vld [vmem:[#allocation6 + $0x4] sm:$0xf]  ;;  %v9194_v12 = vld [vmem:[#allocation6 + $0x290] sm:$0xf0] }
 0x121   :  { %1366 = vmatpush.bf16.msra.mxu2 %v8645_v33  ;;  %1380 = vmatpush.bf16.msra.mxu3 %v8773_v34  ;;  %v9016_v34 = vld [vmem:[#allocation6 + $0x120] sm:$0xf] }
 0x122   :  { %1340 = vmatmul.bf16.vlgmr.msra.gmra.mxu0 %v13743_v54  ;;  %1354 = vmatmul.bf16.vlgmr.msra.gmra.mxu1 %v13747_v55  ;;  %v8920_v54 = vld [vmem:[#allocation6 + $0x60] sm:$0xf]  ;;  %v12342_v55 = vld [vmem:[#allocation6 + $0x6c] sm:$0xf0]  ;;  %v9017_v37 = vor.u32 %v12366_v35, %v9016_v34  ;;  %v12372_v34 = vld [vmem:[#allocation6 + $0x164] sm:$0xf] }
 0x123   :  { %2202 = vmatpush.bf16.msrb.mxu0 %v8985_v30  ;;  %2216 = vmatpush.bf16.msrb.mxu1 %v9113_v32  ;;  %v8921_v60 = vor.u32 %v12342_v55, %v8920_v54  ;;  %v12348_v30 = vld [vmem:[#allocation6 + $0xa4] sm:$0xf]  ;;  %v9225_v32 = vor.u32 %v12418_v29, %v9224_v27  ;;  %v9117_v54 = vor.u32 %v12388_v57, %v9114_v58  ;;  %v9176_v55 = vld [vmem:[#allocation6 + $0x260] sm:$0xf]  ;;  %v13781_v27 = vld [vmem:[#allocation4] sm:$0xf] }
 0x124   :  { %v8957_v33 = vor.u32 %v12348_v30, %v8954_v31  ;;  %v12394_v29 = vld [vmem:[#allocation6 + $0x20c] sm:$0xf0] }
 0x125   :  { %1367 = vmatpush.bf16.msra.mxu2 %v8629_v44  ;;  %1381 = vmatpush.bf16.msra.mxu3 %v8757_v45  ;;  %v9000_v44 = vld [vmem:[#allocation6 + $0x100] sm:$0xf]  ;;  %v12362_v45 = vld [vmem:[#allocation6 + $0x10c] sm:$0xf0] }
 0x126   :  { %v9001_v46 = vor.u32 %v12362_v45, %v9000_v44  ;;  %v12450_v44 = vld [vmem:[#allocation6 + $0x3cc] sm:$0xf0] }
 0x127   :  { %2203 = vmatpush.bf16.msrb.mxu0 %v8969_v42  ;;  %2217 = vmatpush.bf16.msrb.mxu1 %v9097_v43  ;;  %v9209_v42 = vor.u32 %v12414_v38, %v9208_v36  ;;  %v8941_v43 = vor.u32 %v12344_v40, %v8938_v41  ;;  %v9050_v36 = vld [vmem:[#allocation6 + $0x170] sm:$0xf0]  ;;  %v516_v40 = vperm.slane %v13781_v27, 0 }
 0x128   :  { %1368 = vmatmul.bf16.vlgmr.msra.gmra.mxu2 %v13761_v20  ;;  %1382 = vmatmul.bf16.vlgmr.msra.gmra.mxu3 %v13765_v21  ;;  %v12330_v20 = vld [vmem:[#allocation6 + $0xc] sm:$0xf0]  ;;  %v9242_v38 = vld [vmem:[#allocation6 + $0x2f0] sm:$0xf0]  ;;  %v9053_v41 = vor.u32 %v12372_v34, %v9050_v36  ;;  %v9288_v34 = vld [vmem:[#allocation6 + $0x340] sm:$0xf] }
 0x129   :  { %v8873_v21 = vor.u32 %v12330_v20, %v8872_v3  ;;  %2230 = vmatpush.bf16.msrb.mxu2 %v9241_v23  ;;  %v9160_v20 = vld [vmem:[#allocation6 + $0x240] sm:$0xf]  ;;  %v8877_v23 = vor.u32 %v12328_v18, %v8874_v19 }
 0x12b   :  { %2204 = vmatpush.bf16.msrb.mxu0 %v8953_v53  ;;  %2218 = vmatpush.bf16.msrb.mxu1 %v9081_v56  ;;  %v9193_v53 = vor.u32 %v12410_v51, %v9192_v50  ;;  %v8922_v56 = vld [vmem:[#allocation6 + $0x70] sm:$0xf0]  ;;  %v12416_v51 = vld [vmem:[#allocation6 + $0x2c4] sm:$0xf] }
 0x12c   :  { %v9034_v50 = vld [vmem:[#allocation6 + $0x150] sm:$0xf0] }
 0x12d   :  { %2231 = vmatpush.bf16.msrb.mxu2 %v9225_v32  ;;  %v9368_v32 = vld [vmem:[#allocation6 + $0x3e0] sm:$0xf] }
 0x12f   :  { %2205 = vmatpush.bf16.msrb.mxu0 %v8937_v59  ;;  %2219 = vmatpush.bf16.msrb.mxu1 %v9065_v8  ;;  %v8925_v59 = vor.u32 %v12340_v52, %v8922_v56  ;;  %v8893_v8 = vor.u32 %v12332_v5, %v8890_v6  ;;  %v12442_v5 = vld [vmem:[#allocation6 + $0x38c] sm:$0xf0] }
 0x131   :  { %2232 = vmatpush.bf16.msrb.mxu2 %v9209_v42 }
 0x133   :  { %2206 = vmatpush.bf16.msrb.mxu0 %v8921_v60  ;;  %2220 = vmatpush.bf16.msrb.mxu1 %v9049_v22  ;;  %v12406_v60 = vld [vmem:[#allocation6 + $0x26c] sm:$0xf0]  ;;  %v12376_v22 = vld [vmem:[#allocation6 + $0x184] sm:$0xf] }
 0x134   :  { %v9177_v61 = vor.u32 %v12406_v60, %v9176_v55  ;;  %v12364_v60 = vld [vmem:[#allocation6 + $0x124] sm:$0xf] }
 0x135   :  { %2233 = vmatpush.bf16.msrb.mxu2 %v9193_v53  ;;  %v9226_v53 = vld [vmem:[#allocation6 + $0x2d0] sm:$0xf0] }
 0x136   :  { %v9229_v58 = vor.u32 %v12416_v51, %v9226_v53  ;;  %v12430_v51 = vld [vmem:[#allocation6 + $0x32c] sm:$0xf0] }
 0x137   :  { %2207 = vmatpush.bf16.msrb.mxu0 %v8905_v63  ;;  %2221 = vmatpush.bf16.msrb.mxu1 %v9033_v28  ;;  %v8906_v63 = vld [vmem:[#allocation6 + $0x50] sm:$0xf0]  ;;  %v9128_v28 = vld [vmem:[#allocation6 + $0x200] sm:$0xf] }
 0x138   :  { %v8909_v1 = vor.u32 %v12336_v62, %v8906_v63  ;;  %v9129_v31 = vor.u32 %v12394_v29, %v9128_v28  ;;  %v12412_v62 = vld [vmem:[#allocation6 + $0x2a4] sm:$0xf]  ;;  %v9178_v28 = vld [vmem:[#allocation6 + $0x270] sm:$0xf0] }
 0x139   :  { %2234 = vmatpush.bf16.msrb.mxu2 %v9177_v61  ;;  %v9018_v61 = vld [vmem:[#allocation6 + $0x130] sm:$0xf0] }
 0x13a   :  { %v9021_v63 = vor.u32 %v12364_v60, %v9018_v61 }
 0x13b   :  { %2208 = vmatpush.bf16.msrb.mxu0 %v8889_v2  ;;  %2222 = vmatpush.bf16.msrb.mxu1 %v9017_v37  ;;  %v9098_v2 = vld [vmem:[#allocation6 + $0x1d0] sm:$0xf0]  ;;  %v12420_v37 = vld [vmem:[#allocation6 + $0x2e4] sm:$0xf] }
 0x13c   :  { %v9101_v3 = vor.u32 %v12384_v0, %v9098_v2  ;;  %v9245_v42 = vor.u32 %v12420_v37, %v9242_v38  ;;  %v9210_v0 = vld [vmem:[#allocation6 + $0x2b0] sm:$0xf0] }
 0x13f   :  { %2209 = vmatpush.bf16.msrb.mxu0 %v8873_v21  ;;  %2223 = vmatpush.bf16.msrb.mxu1 %v9001_v46  ;;  %v9161_v21 = vor.u32 %v12402_v4, %v9160_v20  ;;  %v12368_v46 = vld [vmem:[#allocation6 + $0x144] sm:$0xf] }
 0x140   :  { %v9037_v52 = vor.u32 %v12368_v46, %v9034_v50  ;;  %v9272_v50 = vld [vmem:[#allocation6 + $0x320] sm:$0xf] }
 0x141   :  { %2235 = vmatpush.bf16.msrb.mxu2 %v9161_v21  ;;  %v9320_v21 = vld [vmem:[#allocation6 + $0x380] sm:$0xf] }
 0x143   :  { %2258 = vmatpush.bf16.msra.mxu0 %v8989_v9  ;;  %2272 = vmatpush.bf16.msra.mxu1 %v9117_v54  ;;  %v9082_v9 = vld [vmem:[#allocation6 + $0x1b0] sm:$0xf0]  ;;  %v12446_v54 = vld [vmem:[#allocation6 + $0x3ac] sm:$0xf0] }
 0x144   :  { %v9085_v10 = vor.u32 %v12380_v7, %v9082_v9  ;;  %v9321_v7 = vor.u32 %v12442_v5, %v9320_v21  ;;  %v9002_v9 = vld [vmem:[#allocation6 + $0x110] sm:$0xf0]  ;;  %v12392_v21 = vld [vmem:[#allocation6 + $0x204] sm:$0xf] }
 0x145   :  { %2236 = vmatpush.bf16.msrb.mxu2 %v9145_v13 }
 0x147   :  { %2259 = vmatpush.bf16.msra.mxu0 %v8973_v24  ;;  %2273 = vmatpush.bf16.msra.mxu1 %v9101_v3  ;;  %v9066_v24 = vld [vmem:[#allocation6 + $0x190] sm:$0xf0]  ;;  %v9213_v3 = vor.u32 %v12412_v62, %v9210_v0  ;;  %v12355_v0 = vld [vmem:[#allocation6 + $0xd4] sm:$0xf0] }
 0x148   :  { %v9069_v26 = vor.u32 %v12376_v22, %v9066_v24  ;;  %v9304_v22 = vld [vmem:[#allocation6 + $0x360] sm:$0xf] }
 0x149   :  { %2237 = vmatpush.bf16.msrb.mxu2 %v9129_v31  ;;  %v517_v31 = vperm.slane %v13781_v27, 1 }
 0x14b   :  { %2260 = vmatpush.bf16.msra.mxu0 %v8957_v33  ;;  %2274 = vmatpush.bf16.msra.mxu1 %v9085_v10  ;;  %v12454_v33 = vld [vmem:[#allocation6 + $0x3ec] sm:$0xf0]  ;;  %v12408_v10 = vld [vmem:[#allocation6 + $0x284] sm:$0xf] }
 0x14c   :  { %v9369_v35 = vor.u32 %v12454_v33, %v9368_v32  ;;  %v9197_v18 = vor.u32 %v12408_v10, %v9194_v12 }
 0x14d   :  { %2286 = vmatpush.bf16.msra.mxu2 %v9245_v42  ;;  %v9162_v42 = vld [vmem:[#allocation6 + $0x250] sm:$0xf0] }
 0x14e   :  { %2244 = vmatpush.bf16.msrb.mxu3 %v9369_v35  ;;  %v12434_v35 = vld [vmem:[#allocation6 + $0x34c] sm:$0xf0] }
 0x14f   :  { %2261 = vmatpush.bf16.msra.mxu0 %v8941_v43  ;;  %2275 = vmatpush.bf16.msra.mxu1 %v9069_v26  ;;  %v9352_v43 = vld [vmem:[#allocation6 + $0x3c0] sm:$0xf]  ;;  %v12404_v26 = vld [vmem:[#allocation6 + $0x264] sm:$0xf] }
 0x150   :  { %v9353_v45 = vor.u32 %v12450_v44, %v9352_v43  ;;  %v9181_v29 = vor.u32 %v12404_v26, %v9178_v28  ;;  %v9354_v26 = vld [vmem:[#allocation6 + $0x3d0] sm:$0xf0] }
 0x151   :  { %2287 = vmatpush.bf16.msra.mxu2 %v9229_v58  ;;  %v8992_v58 = vld [vmem:[#allocation6 + $0xe8] sm:$0xf] }
 0x152   :  { %2245 = vmatpush.bf16.msrb.mxu3 %v9353_v45 }
 0x153   :  { %2262 = vmatpush.bf16.msra.mxu0 %v8925_v59  ;;  %2276 = vmatpush.bf16.msra.mxu1 %v9053_v41  ;;  %v9336_v59 = vld [vmem:[#allocation6 + $0x3a0] sm:$0xf]  ;;  %v12400_v41 = vld [vmem:[#allocation6 + $0x244] sm:$0xf] }
 0x154   :  { %v9337_v55 = vor.u32 %v12446_v54, %v9336_v59  ;;  %v9165_v43 = vor.u32 %v12400_v41, %v9162_v42  ;;  %v12359_v59 = vld [vmem:[#allocation6 + $0xf4] sm:$0xf0] }
 0x155   :  { %2288 = vmatpush.bf16.msra.mxu2 %v9213_v3  ;;  %v8993_v3 = vor.u32 %v12359_v59, %v8992_v58 }
 0x156   :  { %2246 = vmatpush.bf16.msrb.mxu3 %v9337_v55 }
 0x157   :  { %2263 = vmatpush.bf16.msra.mxu0 %v8909_v1  ;;  %2277 = vmatpush.bf16.msra.mxu1 %v9037_v52 }
 0x159   :  { %2289 = vmatpush.bf16.msra.mxu2 %v9197_v18 }
 0x15a   :  { %2247 = vmatpush.bf16.msrb.mxu3 %v9321_v7  ;;  %v9130_v7 = vld [vmem:[#allocation6 + $0x210] sm:$0xf0] }
 0x15b   :  { %2264 = vmatpush.bf16.msra.mxu0 %v8893_v8  ;;  %2278 = vmatpush.bf16.msra.mxu1 %v9021_v63  ;;  %v12360_v8 = vld [vmem:[#allocation6 + $0x104] sm:$0xf]  ;;  %v8976_v63 = vld [vmem:[#allocation6 + $0xc8] sm:$0xf]  ;;  %v9133_v12 = vor.u32 %v12392_v21, %v9130_v7  ;;  %v12387_v21 = vld [vmem:[#allocation6 + $0x1d4] sm:$0xf0] }
 0x15c   :  { %v9005_v11 = vor.u32 %v12360_v8, %v9002_v9  ;;  %v12452_v8 = vld [vmem:[#allocation6 + $0x3e4] sm:$0xf]  ;;  %v9370_v9 = vld [vmem:[#allocation6 + $0x3f0] sm:$0xf0] }
 0x15d   :  { %2290 = vmatpush.bf16.msra.mxu2 %v9181_v29  ;;  %v9306_v7 = vld [vmem:[#allocation6 + $0x370] sm:$0xf0] }
 0x15e   :  { %v1173_v25 = vpop.f32.mrf.mxu0  ;;  %v1187_v30 = vpop.f32.mrf.mxu1 }
 0x15f   :  { %2265 = vmatpush.bf16.msra.mxu0 %v8877_v23  ;;  %v1174_v56 = vadd.f32 %v1173_v25, %v516_v40  ;;  %v12438_v23 = vld [vmem:[#allocation6 + $0x36c] sm:$0xf0]  ;;  %2279 = vmatpush.bf16.msra.mxu1 %v9005_v11 }
 0x160   :  { %v9305_v25 = vor.u32 %v12438_v23, %v9304_v22  ;;  %v8960_v22 = vld [vmem:[#allocation6 + $0xa8] sm:$0xf] }
 0x161   :  { %v1188_v1 = vadd.f32 %v1187_v30, %v1174_v56  ;;  %2291 = vmatpush.bf16.msra.mxu2 %v9165_v43  ;;  %v9273_v56 = vor.u32 %v12430_v51, %v9272_v50 }
 0x162   :  { %2248 = vmatpush.bf16.msrb.mxu3 %v9305_v25  ;;  %v12448_v25 = vld [vmem:[#allocation6 + $0x3c4] sm:$0xf] }
 0x163   :  { %v9357_v29 = vor.u32 %v12448_v25, %v9354_v26 }
 0x166   :  { %v1175_v57 = vpop.f32.mrf.mxu0  ;;  %v1189_v2 = vpop.f32.mrf.mxu1 }
 0x167   :  { %v1176_v13 = vadd.f32 %v1175_v57, %v516_v40  ;;  %v9289_v40 = vor.u32 %v12434_v35, %v9288_v34  ;;  %v12396_v57 = vld [vmem:[#allocation6 + $0x224] sm:$0xf] }
 0x169   :  { %v1190_v30 = vadd.f32 %v1189_v2, %v1176_v13  ;;  %2249 = vmatpush.bf16.msrb.mxu3 %v9289_v40  ;;  %v9373_v13 = vor.u32 %v12452_v8, %v9370_v9  ;;  %v9338_v40 = vld [vmem:[#allocation6 + $0x3b0] sm:$0xf0] }
 0x16b   :  { %v1201_v20 = vpop.f32.mrf.mxu2  ;;  %v1215_v4 = vpop.f32.mrf.mxu3 }
 0x16c   :  { %v1202_v6 = vadd.f32 %v1201_v20, %v1188_v1  ;;  %v9256_v20 = vld [vmem:[#allocation6 + $0x300] sm:$0xf] }
 0x16d   :  { %2250 = vmatpush.bf16.msrb.mxu3 %v9273_v56  ;;  %v12440_v56 = vld [vmem:[#allocation6 + $0x384] sm:$0xf] }
 0x16e   :  { %v1216_v24 = vadd.f32 %v1215_v4, %v1202_v6  ;;  %v12426_v4 = vld [vmem:[#allocation6 + $0x30c] sm:$0xf0] }
 0x16f   :  { %v1229_v19 = vpop.f32.mrf.mxu0  ;;  %v1243_v37 = vpop.f32.mrf.mxu1  ;;  %v9257_v6 = vor.u32 %v12426_v4, %v9256_v20 }
 0x170   :  { %v1388_v36 = vadd.f32 %v1216_v24, %v13735_v47  ;;  %v1230_v44 = vadd.f32 %v1229_v19, %v517_v31  ;;  %v9146_v47 = vld [vmem:[#allocation6 + $0x230] sm:$0xf0]  ;;  %v8977_v19 = vor.u32 %v12355_v0, %v8976_v63  ;;  %v12351_v24 = vld [vmem:[#allocation6 + $0xb4] sm:$0xf0]  ;;  %v8912_v0 = vld [vmem:[#allocation6 + $0x48] sm:$0xf] }
 0x171   :  { %v9149_v54 = vor.u32 %v12396_v57, %v9146_v47  ;;  %2251 = vmatpush.bf16.msrb.mxu3 %v9257_v6  ;;  %v8961_v35 = vor.u32 %v12351_v24, %v8960_v22  ;;  %v9322_v57 = vld [vmem:[#allocation6 + $0x390] sm:$0xf0]  ;;  %v12436_v6 = vld [vmem:[#allocation6 + $0x364] sm:$0xf]  ;;  %v12383_v22 = vld [vmem:[#allocation6 + $0x1b4] sm:$0xf0] }
 0x172   :  { %v1404_v52 = vmul.f32 0.01, %v1388_v36  ;;  %vm1396_vm11 = vcmp.gt.f32.partialorder %v1388_v36, 0.0  ;;  %v1244_v55 = vadd.f32 %v1243_v37, %v1230_v44  ;;  %v12347_v37 = vld [vmem:[#allocation6 + $0x94] sm:$0xf0]  ;;  %v9325_v58 = vor.u32 %v12440_v56, %v9322_v57 }
 0x173   :  { %v1203_v32 = vpop.f32.mrf.mxu2  ;;  %v1217_v33 = vpop.f32.mrf.mxu3  ;;  %2292 = vmatpush.bf16.msra.mxu2 %v9149_v54  ;;  %v8928_v44 = vld [vmem:[#allocation6 + $0x68] sm:$0xf]  ;;  %v9309_v8 = vor.u32 %v12436_v6, %v9306_v7  ;;  %v9290_v24 = vld [vmem:[#allocation6 + $0x350] sm:$0xf0] }
 0x174   :  { %v1204_v38 = vadd.f32 %v1203_v32, %v1190_v30  ;;  %v13787_v1 = vsel %vm1396_vm11, %v1388_v36, %v1404_v52  ;;  %v518_v30 = vperm.slane %v13781_v27, 2  ;;  %v8944_v36 = vld [vmem:[#allocation6 + $0x88] sm:$0xf] }
 0x175   :  { %2300 = vmatpush.bf16.msra.mxu3 %v9373_v13  ;;  %v8945_v52 = vor.u32 %v12347_v37, %v8944_v36  ;;  %v12335_v13 = vld [vmem:[#allocation6 + $0x34] sm:$0xf0]  ;;  %v9232_v6 = vld [vmem:[#allocation6 + $0x2c8] sm:$0xf] }
 0x176   :  { %v1218_v45 = vadd.f32 %v1217_v33, %v1204_v38  ;;  %v12444_v38 = vld [vmem:[#allocation6 + $0x3a4] sm:$0xf]  ;;  %v12379_v37 = vld [vmem:[#allocation6 + $0x194] sm:$0xf0] }
 0x177   :  { %v1231_v46 = vpop.f32.mrf.mxu0  ;;  %v1245_v11 = vpop.f32.mrf.mxu1  ;;  %2293 = vmatpush.bf16.msra.mxu2 %v9133_v12  ;;  %v9341_v42 = vor.u32 %v12444_v38, %v9338_v40  ;;  %v8896_v12 = vld [vmem:[#allocation6 + $0x28] sm:$0xf]  ;;  %v12428_v38 = vld [vmem:[#allocation6 + $0x324] sm:$0xf]  ;;  %v9274_v40 = vld [vmem:[#allocation6 + $0x330] sm:$0xf0] }
 0x178   :  { %v1392_v53 = vadd.f32 %v1218_v45, %v13737_v48  ;;  %v1232_v10 = vadd.f32 %v1231_v46, %v517_v31  ;;  %v12343_v45 = vld [vmem:[#allocation6 + $0x74] sm:$0xf0] }
 0x179   :  { %2301 = vmatpush.bf16.msra.mxu3 %v9357_v29 }
 0x17a   :  { %vm1400_vm12 = vcmp.gt.f32.partialorder %v1392_v53, 0.0  ;;  %v1408_v60 = vmul.f32 0.01, %v1392_v53  ;;  %v1246_v28 = vadd.f32 %v1245_v11, %v1232_v10 }
 0x17b   :  { %v1257_v61 = vpop.f32.mrf.mxu2  ;;  %v1271_v62 = vpop.f32.mrf.mxu3 }
 0x17c   :  { %v13789_v2 = vsel %vm1400_vm12, %v1392_v53, %v1408_v60  ;;  %v1258_v48 = vadd.f32 %v1257_v61, %v1244_v55  ;;  %v12391_v53 = vld [vmem:[#allocation6 + $0x1f4] sm:$0xf0] }
 0x17d   :  { %v13793_v5 = vpack.c.bf16 %v13789_v2, %v13787_v1  ;;  %2302 = vmatpush.bf16.msra.mxu3 %v9341_v42  ;;  %v12357_v42 = vld [vmem:[#allocation6 + $0xec] sm:$0xf] }
 0x17e   :  { %v1272_v18 = vadd.f32 %v1271_v62, %v1258_v48  ;;  %v12339_v48 = vld [vmem:[#allocation6 + $0x54] sm:$0xf0] }
 0x17f   :  { %2210 = vmatmul.bf16.vlgmr.msrb.gmra.mxu0 %v13793_v5  ;;  %v1285_v23 = vpop.f32.mrf.mxu0  ;;  %v1299_v50 = vpop.f32.mrf.mxu1  ;;  %v8913_v10 = vor.u32 %v12339_v48, %v8912_v0 }
 0x180   :  { %2314 = vmatpush.bf16.msrb.mxu0 %v8993_v3  ;;  %v1389_v33 = vadd.f32 %v1272_v18, %v13733_v39  ;;  %v1286_v43 = vadd.f32 %v1285_v23, %v518_v30  ;;  %v9120_v39 = vld [vmem:[#allocation6 + $0x1e8] sm:$0xf]  ;;  %v12432_v23 = vld [vmem:[#allocation6 + $0x344] sm:$0xf] }
 0x181   :  { %v9121_v63 = vor.u32 %v12391_v53, %v9120_v39  ;;  %v9104_v3 = vld [vmem:[#allocation6 + $0x1c8] sm:$0xf]  ;;  %2303 = vmatpush.bf16.msra.mxu3 %v9325_v58  ;;  %v9293_v26 = vor.u32 %v12432_v23, %v9290_v24  ;;  %v12423_v53 = vld [vmem:[#allocation6 + $0x2f4] sm:$0xf0]  ;;  %v9258_v58 = vld [vmem:[#allocation6 + $0x310] sm:$0xf0] }
 0x182   :  { %v1405_v46 = vmul.f32 0.01, %v1389_v33  ;;  %vm1397_vm13 = vcmp.gt.f32.partialorder %v1389_v33, 0.0  ;;  %v1300_v59 = vadd.f32 %v1299_v50, %v1286_v43  ;;  %v9105_v11 = vor.u32 %v12387_v21, %v9104_v3  ;;  %v9088_v18 = vld [vmem:[#allocation6 + $0x1a8] sm:$0xf] }
 0x183   :  { %v1259_v31 = vpop.f32.mrf.mxu2  ;;  %v1273_v32 = vpop.f32.mrf.mxu3  ;;  %v8994_v43 = vld [vmem:[#allocation6 + $0xf8] sm:$0xf0]  ;;  %v9248_v39 = vld [vmem:[#allocation6 + $0x2e8] sm:$0xf]  ;;  %v12371_v21 = vld [vmem:[#allocation6 + $0x154] sm:$0xf0] }
 0x184   :  { %v1260_v34 = vadd.f32 %v1259_v31, %v1246_v28  ;;  %2315 = vmatpush.bf16.msrb.mxu0 %v8977_v19  ;;  %v13799_v55 = vsel %vm1397_vm13, %v1389_v33, %v1405_v46  ;;  %v9089_v31 = vor.u32 %v12383_v22, %v9088_v18  ;;  %v12331_v33 = vld [vmem:[#allocation6 + $0x14] sm:$0xf0]  ;;  %v9056_v46 = vld [vmem:[#allocation6 + $0x168] sm:$0xf]  ;;  %v8997_v57 = vor.u32 %v12357_v42, %v8994_v43  ;;  %v9122_v42 = vld [vmem:[#allocation6 + $0x1f8] sm:$0xf0] }
 0x185   :  { %2304 = vmatpush.bf16.msra.mxu3 %v9309_v8  ;;  %v12419_v8 = vld [vmem:[#allocation6 + $0x2d4] sm:$0xf0]  ;;  %v9216_v23 = vld [vmem:[#allocation6 + $0x2a8] sm:$0xf] }
 0x186   :  { %v1274_v41 = vadd.f32 %v1273_v32, %v1260_v34  ;;  %v8880_v32 = vld [vmem:[#allocation6 + $0x8] sm:$0xf]  ;;  %v12367_v22 = vld [vmem:[#allocation6 + $0x134] sm:$0xf0] }
 0x187   :  { %v1287_v54 = vpop.f32.mrf.mxu0  ;;  %v1301_v25 = vpop.f32.mrf.mxu1  ;;  %v9072_v34 = vld [vmem:[#allocation6 + $0x188] sm:$0xf]  ;;  %v8881_v50 = vor.u32 %v12331_v33, %v8880_v32  ;;  %v12415_v24 = vld [vmem:[#allocation6 + $0x2b4] sm:$0xf0] }
 0x188   :  { %v1393_v51 = vadd.f32 %v1274_v41, %v13739_v49  ;;  %2316 = vmatpush.bf16.msrb.mxu0 %v8961_v35  ;;  %v8929_v49 = vor.u32 %v12343_v45, %v8928_v44  ;;  %v1288_v9 = vadd.f32 %v1287_v54, %v518_v30  ;;  %v8897_v30 = vor.u32 %v12335_v13, %v8896_v12  ;;  %v8978_v54 = vld [vmem:[#allocation6 + $0xd8] sm:$0xf0]  ;;  %v9008_v32 = vld [vmem:[#allocation6 + $0x108] sm:$0xf]  ;;  %v12363_v33 = vld [vmem:[#allocation6 + $0x114] sm:$0xf0] }
 0x189   :  { %2305 = vmatpush.bf16.msra.mxu3 %v9293_v26  ;;  %v9277_v44 = vor.u32 %v12428_v38, %v9274_v40  ;;  %v9233_v13 = vor.u32 %v12419_v8, %v9232_v6  ;;  %v8946_v26 = vld [vmem:[#allocation6 + $0x98] sm:$0xf0]  ;;  %v12381_v6 = vld [vmem:[#allocation6 + $0x1ac] sm:$0xf] }
 0x18a   :  { %vm1401_vm14 = vcmp.gt.f32.partialorder %v1393_v51, 0.0  ;;  %v1409_v47 = vmul.f32 0.01, %v1393_v51  ;;  %v1302_v28 = vadd.f32 %v1301_v25, %v1288_v9  ;;  %v12349_v9 = vld [vmem:[#allocation6 + $0xac] sm:$0xf] }
 0x18b   :  { %v1313_v61 = vpop.f32.mrf.mxu2  ;;  %v1327_v62 = vpop.f32.mrf.mxu3  ;;  %v12345_v25 = vld [vmem:[#allocation6 + $0x8c] sm:$0xf]  ;;  %v9090_v8 = vld [vmem:[#allocation6 + $0x1b8] sm:$0xf0] }
 0x18c   :  { %v13801_v60 = vsel %vm1401_vm14, %v1393_v51, %v1409_v47  ;;  %2317 = vmatpush.bf16.msrb.mxu0 %v8945_v52  ;;  %v1314_v20 = vadd.f32 %v1313_v61, %v1300_v59  ;;  %v9073_v51 = vor.u32 %v12379_v37, %v9072_v34  ;;  %v12375_v52 = vld [vmem:[#allocation6 + $0x174] sm:$0xf0]  ;;  %v12424_v47 = vld [vmem:[#allocation6 + $0x304] sm:$0xf]  ;;  %v12353_v59 = vld [vmem:[#allocation6 + $0xcc] sm:$0xf] }
 0x18d   :  { %v13805_v4 = vpack.c.bf16 %v13801_v60, %v13799_v55  ;;  %2306 = vmatpush.bf16.msra.mxu3 %v9277_v44  ;;  %v9261_v61 = vor.u32 %v12424_v47, %v9258_v58  ;;  %v9200_v34 = vld [vmem:[#allocation6 + $0x288] sm:$0xf]  ;;  %v8930_v37 = vld [vmem:[#allocation6 + $0x78] sm:$0xf0]  ;;  %v12385_v47 = vld [vmem:[#allocation6 + $0x1cc] sm:$0xf] }
 0x18e   :  { %v1328_v19 = vadd.f32 %v1327_v62, %v1314_v20  ;;  %v9040_v20 = vld [vmem:[#allocation6 + $0x148] sm:$0xf]  ;;  %v9106_v58 = vld [vmem:[#allocation6 + $0x1d8] sm:$0xf0] }
 0x18f   :  { %2224 = vmatmul.bf16.vlgmr.msrb.gmra.mxu1 %v13805_v4  ;;  %2266 = vmatmul.bf16.vlgmr.msra.gmra.mxu0 %v13793_v5  ;;  %v9041_v12 = vor.u32 %v12371_v21, %v9040_v20  ;;  %v8898_v20 = vld [vmem:[#allocation6 + $0x38] sm:$0xf0] }
 0x190   :  { %2318 = vmatpush.bf16.msrb.mxu0 %v8929_v49  ;;  %2328 = vmatpush.bf16.msrb.mxu1 %v9121_v63  ;;  %v1390_v35 = vadd.f32 %v1328_v19, %v13751_v14  ;;  %v9057_v49 = vor.u32 %v12375_v52, %v9056_v46  ;;  %v9249_v63 = vor.u32 %v12423_v53, %v9248_v39  ;;  %v9024_v19 = vld [vmem:[#allocation6 + $0x128] sm:$0xf]  ;;  %v12407_v53 = vld [vmem:[#allocation6 + $0x274] sm:$0xf0] }
 0x191   :  { %2307 = vmatpush.bf16.msra.mxu3 %v9261_v61  ;;  %v9184_v52 = vld [vmem:[#allocation6 + $0x268] sm:$0xf] }
 0x192   :  { %v1406_v56 = vmul.f32 0.01, %v1390_v35  ;;  %vm1398_vm15 = vcmp.gt.f32.partialorder %v1390_v35, 0.0 }
 0x193   :  { %v1315_v29 = vpop.f32.mrf.mxu2  ;;  %v1329_v41 = vpop.f32.mrf.mxu3 }
 0x194   :  { %2319 = vmatpush.bf16.msrb.mxu0 %v8913_v10  ;;  %2329 = vmatpush.bf16.msrb.mxu1 %v9105_v11  ;;  %v1316_v36 = vadd.f32 %v1315_v29, %v1302_v28  ;;  %v13811_v0 = vsel %vm1398_vm15, %v1390_v35, %v1406_v56  ;;  %v8962_v10 = vld [vmem:[#allocation6 + $0xb8] sm:$0xf0]  ;;  %v519_v11 = vperm.slane %v13781_v27, 3  ;;  %v9025_v29 = vor.u32 %v12367_v22, %v9024_v19  ;;  %v12411_v35 = vld [vmem:[#allocation6 + $0x294] sm:$0xf0] }
 0x195   :  { %v8965_v18 = vor.u32 %v12349_v9, %v8962_v10  ;;  %v12337_v56 = vld [vmem:[#allocation6 + $0x4c] sm:$0xf]  ;;  %v9093_v22 = vor.u32 %v12381_v6, %v9090_v8  ;;  %v12443_v6 = vld [vmem:[#allocation6 + $0x394] sm:$0xf0] }
 0x196   :  { %v1330_v45 = vadd.f32 %v1329_v41, %v1316_v36  ;;  %v12341_v36 = vld [vmem:[#allocation6 + $0x6c] sm:$0xf] }
 0x197   :  { %v12389_v41 = vld [vmem:[#allocation6 + $0x1ec] sm:$0xf] }
 0x198   :  { %2320 = vmatpush.bf16.msrb.mxu0 %v8897_v30  ;;  %2330 = vmatpush.bf16.msrb.mxu1 %v9089_v31  ;;  %v1394_v14 = vadd.f32 %v1330_v45, %v13755_v16  ;;  %v8981_v16 = vor.u32 %v12353_v59, %v8978_v54  ;;  %v9217_v30 = vor.u32 %v12415_v24, %v9216_v23  ;;  %v12399_v23 = vld [vmem:[#allocation6 + $0x234] sm:$0xf0]  ;;  %v12329_v24 = vld [vmem:[#allocation6 + $0xc] sm:$0xf] }
 0x199   :  { %v8949_v31 = vor.u32 %v12345_v25, %v8946_v26  ;;  %v9009_v45 = vor.u32 %v12363_v33, %v9008_v32  ;;  %v9125_v39 = vor.u32 %v12389_v41, %v9122_v42  ;;  %v9185_v54 = vor.u32 %v12407_v53, %v9184_v52  ;;  %v8882_v25 = vld [vmem:[#allocation6 + $0x18] sm:$0xf0]  ;;  %v9360_v52 = vld [vmem:[#allocation6 + $0x3c8] sm:$0xf]  ;;  %v12369_v53 = vld [vmem:[#allocation6 + $0x14c] sm:$0xf] }
 0x19a   :  { %vm1402_vm0 = vcmp.gt.f32.partialorder %v1394_v14, 0.0  ;;  %v1410_v62 = vmul.f32 0.01, %v1394_v14  ;;  %v9250_v42 = vld [vmem:[#allocation6 + $0x2f8] sm:$0xf0] }
 0x19b   :  { %v12361_v8 = vld [vmem:[#allocation6 + $0x10c] sm:$0xf] }
 0x19c   :  { %2321 = vmatpush.bf16.msrb.mxu0 %v8881_v50  ;;  %2331 = vmatpush.bf16.msrb.mxu1 %v9073_v51  ;;  %v13813_v48 = vsel %vm1402_vm0, %v1394_v14, %v1410_v62  ;;  %v9201_v50 = vor.u32 %v12411_v35, %v9200_v34  ;;  %v8933_v51 = vor.u32 %v12341_v36, %v8930_v37  ;;  %v8914_v14 = vld [vmem:[#allocation6 + $0x58] sm:$0xf0]  ;;  %v9168_v62 = vld [vmem:[#allocation6 + $0x248] sm:$0xf]  ;;  %v12455_v35 = vld [vmem:[#allocation6 + $0x3f4] sm:$0xf0] }
 0x19d   :  { %v13817_v7 = vpack.c.bf16 %v13813_v48, %v13811_v0  ;;  %v8917_v61 = vor.u32 %v12337_v56, %v8914_v14  ;;  %v8885_v34 = vor.u32 %v12329_v24, %v8882_v25  ;;  %v12373_v36 = vld [vmem:[#allocation6 + $0x16c] sm:$0xf]  ;;  %v9042_v56 = vld [vmem:[#allocation6 + $0x158] sm:$0xf0] }
 0x19e   :  { %v12417_v14 = vld [vmem:[#allocation6 + $0x2cc] sm:$0xf]  ;;  %v9186_v24 = vld [vmem:[#allocation6 + $0x278] sm:$0xf0] }
 0x19f   :  { %v1341_v3 = vpop.f32.mrf.mxu0  ;;  %2280 = vmatmul.bf16.vlgmr.msra.gmra.mxu1 %v13805_v4  ;;  %2322 = vmatmul.bf16.vlgmr.msrb.gmra.mxu0 %v13793_v5  ;;  %v1355_v27 = vpop.f32.mrf.mxu1 }
 0x1a0   :  { %2370 = vmatpush.bf16.msra.mxu0 %v8997_v57  ;;  %2238 = vmatmul.bf16.vlgmr.msrb.gmra.mxu2 %v13817_v7  ;;  %v1342_v28 = vadd.f32 %v1341_v3, %v519_v11  ;;  %v9109_v3 = vor.u32 %v12385_v47, %v9106_v58  ;;  %v9045_v58 = vor.u32 %v12369_v53, %v9042_v56  ;;  %v12445_v56 = vld [vmem:[#allocation6 + $0x3ac] sm:$0xf] }
 0x1a1   :  { %2332 = vmatpush.bf16.msrb.mxu1 %v9057_v49  ;;  %2342 = vmatpush.bf16.msrb.mxu2 %v9249_v63  ;;  %v12403_v49 = vld [vmem:[#allocation6 + $0x254] sm:$0xf0] }
 0x1a2   :  { %v1356_v38 = vadd.f32 %v1355_v27, %v1342_v28  ;;  %v9169_v10 = vor.u32 %v12403_v49, %v9168_v62  ;;  %v12377_v28 = vld [vmem:[#allocation6 + $0x18c] sm:$0xf]  ;;  %v9074_v27 = vld [vmem:[#allocation6 + $0x198] sm:$0xf0] }
 0x1a3   :  { %v9077_v37 = vor.u32 %v12377_v28, %v9074_v27  ;;  %v12365_v62 = vld [vmem:[#allocation6 + $0x12c] sm:$0xf]  ;;  %v9026_v49 = vld [vmem:[#allocation6 + $0x138] sm:$0xf0]  ;;  %v9296_v28 = vld [vmem:[#allocation6 + $0x348] sm:$0xf] }
 0x1a4   :  { %2371 = vmatpush.bf16.msra.mxu0 %v8981_v16  ;;  %v12333_v16 = vld [vmem:[#allocation6 + $0x2c] sm:$0xf]  ;;  %v12435_v27 = vld [vmem:[#allocation6 + $0x354] sm:$0xf0] }
 0x1a5   :  { %2333 = vmatpush.bf16.msrb.mxu1 %v9041_v12  ;;  %2343 = vmatpush.bf16.msrb.mxu2 %v9233_v13  ;;  %v8901_v13 = vor.u32 %v12333_v16, %v8898_v20 }
 0x1a7   :  { %v1343_v40 = vpop.f32.mrf.mxu0  ;;  %v1357_v63 = vpop.f32.mrf.mxu1 }
 0x1a8   :  { %2372 = vmatpush.bf16.msra.mxu0 %v8965_v18  ;;  %v1344_v57 = vadd.f32 %v1343_v40, %v519_v11  ;;  %v9152_v18 = vld [vmem:[#allocation6 + $0x228] sm:$0xf]  ;;  %v12421_v40 = vld [vmem:[#allocation6 + $0x2ec] sm:$0xf] }
 0x1a9   :  { %2334 = vmatpush.bf16.msrb.mxu1 %v9025_v29  ;;  %2344 = vmatpush.bf16.msrb.mxu2 %v9217_v30  ;;  %v9136_v29 = vld [vmem:[#allocation6 + $0x208] sm:$0xf]  ;;  %v12395_v30 = vld [vmem:[#allocation6 + $0x214] sm:$0xf0]  ;;  %v9153_v33 = vor.u32 %v12399_v23, %v9152_v18  ;;  %v12405_v23 = vld [vmem:[#allocation6 + $0x26c] sm:$0xf] }
 0x1aa   :  { %v1358_v21 = vadd.f32 %v1357_v63, %v1344_v57  ;;  %v9234_v57 = vld [vmem:[#allocation6 + $0x2d8] sm:$0xf0]  ;;  %v12413_v63 = vld [vmem:[#allocation6 + $0x2ac] sm:$0xf] }
 0x1ab   :  { %v1369_v43 = vpop.f32.mrf.mxu2  ;;  %v1383_v44 = vpop.f32.mrf.mxu3 }
 0x1ac   :  { %v1370_v46 = vadd.f32 %v1369_v43, %v1356_v38  ;;  %2373 = vmatpush.bf16.msra.mxu0 %v8949_v31  ;;  %v9376_v31 = vld [vmem:[#allocation6 + $0x3e8] sm:$0xf]  ;;  %v9058_v38 = vld [vmem:[#allocation6 + $0x178] sm:$0xf0]  ;;  %v9137_v43 = vor.u32 %v12395_v30, %v9136_v29  ;;  %v12401_v29 = vld [vmem:[#allocation6 + $0x24c] sm:$0xf] }
 0x1ad   :  { %2335 = vmatpush.bf16.msrb.mxu1 %v9009_v45  ;;  %2345 = vmatpush.bf16.msrb.mxu2 %v9201_v50  ;;  %v9061_v50 = vor.u32 %v12373_v36, %v9058_v38  ;;  %v9170_v30 = vld [vmem:[#allocation6 + $0x258] sm:$0xf0]  ;;  %v9264_v38 = vld [vmem:[#allocation6 + $0x308] sm:$0xf] }
 0x1ae   :  { %v1384_v59 = vadd.f32 %v1383_v44, %v1370_v46 }
 0x1b0   :  { %2374 = vmatpush.bf16.msra.mxu0 %v8933_v51  ;;  %2336 = vmatmul.bf16.vlgmr.msrb.gmra.mxu1 %v13805_v4  ;;  %v1391_v11 = vadd.f32 %v1384_v59, %v13753_v15  ;;  %v9253_v51 = vor.u32 %v12421_v40, %v9250_v42  ;;  %v9237_v59 = vor.u32 %v12417_v14, %v9234_v57  ;;  %v12427_v40 = vld [vmem:[#allocation6 + $0x314] sm:$0xf0]  ;;  %v9138_v42 = vld [vmem:[#allocation6 + $0x218] sm:$0xf0] }
 0x1b1   :  { %2384 = vmatpush.bf16.msra.mxu1 %v9125_v39  ;;  %2294 = vmatmul.bf16.vlgmr.msra.gmra.mxu2 %v13817_v7  ;;  %v12451_v39 = vld [vmem:[#allocation6 + $0x3d4] sm:$0xf0]  ;;  %v9346_v14 = vld [vmem:[#allocation6 + $0x3b8] sm:$0xf0] }
 0x1b2   :  { %2346 = vmatpush.bf16.msrb.mxu2 %v9185_v54  ;;  %v1407_v32 = vmul.f32 0.01, %v1391_v11  ;;  %vm1399_vm1 = vcmp.gt.f32.partialorder %v1391_v11, 0.0  ;;  %v9361_v47 = vor.u32 %v12451_v39, %v9360_v52  ;;  %v9344_v54 = vld [vmem:[#allocation6 + $0x3a8] sm:$0xf]  ;;  %v9349_v57 = vor.u32 %v12445_v56, %v9346_v14 }
 0x1b3   :  { %v1371_v9 = vpop.f32.mrf.mxu2  ;;  %v1385_v19 = vpop.f32.mrf.mxu3  ;;  %v12449_v52 = vld [vmem:[#allocation6 + $0x3cc] sm:$0xf]  ;;  %v9362_v39 = vld [vmem:[#allocation6 + $0x3d8] sm:$0xf0]  ;;  %v9560_v14 = vld [vmem:[#allocation9 + $0x160] sm:$0xf] }
 0x1b4   :  { %v1372_v12 = vadd.f32 %v1371_v9, %v1358_v21  ;;  %2375 = vmatpush.bf16.msra.mxu0 %v8917_v61  ;;  %v13827_v44 = vsel %vm1399_vm1, %v1391_v11, %v1407_v32  ;;  %v12447_v61 = vld [vmem:[#allocation6 + $0x3b4] sm:$0xf0]  ;;  %v9328_v21 = vld [vmem:[#allocation6 + $0x388] sm:$0xf]  ;;  %v9010_v9 = vld [vmem:[#allocation6 + $0x118] sm:$0xf0]  ;;  %v9173_v32 = vor.u32 %v12401_v29, %v9170_v30  ;;  %v9365_v53 = vor.u32 %v12449_v52, %v9362_v39 }
 0x1b5   :  { %2385 = vmatpush.bf16.msra.mxu1 %v9109_v3  ;;  %v9218_v3 = vld [vmem:[#allocation6 + $0x2b8] sm:$0xf0]  ;;  %v9345_v16 = vor.u32 %v12447_v61, %v9344_v54  ;;  %v12437_v54 = vld [vmem:[#allocation6 + $0x36c] sm:$0xf]  ;;  %v12518_v30 = vld [vmem:[#allocation9 + $0x1ec] sm:$0xf0] }
 0x1b6   :  { %v1386_v26 = vadd.f32 %v1385_v19, %v1372_v12  ;;  %2347 = vmatpush.bf16.msrb.mxu2 %v9169_v10  ;;  %v9221_v20 = vor.u32 %v12413_v63, %v9218_v3  ;;  %v12409_v10 = vld [vmem:[#allocation6 + $0x28c] sm:$0xf]  ;;  %v9202_v11 = vld [vmem:[#allocation6 + $0x298] sm:$0xf0]  ;;  %v9329_v12 = vor.u32 %v12443_v6, %v9328_v21  ;;  %v9312_v19 = vld [vmem:[#allocation6 + $0x368] sm:$0xf] }
 0x1b7   :  { %v9205_v18 = vor.u32 %v12409_v10, %v9202_v11  ;;  %v9314_v61 = vld [vmem:[#allocation6 + $0x378] sm:$0xf0]  ;;  %v12425_v21 = vld [vmem:[#allocation6 + $0x30c] sm:$0xf]  ;;  %v9480_v10 = vld [vmem:[#allocation9 + $0xc0] sm:$0xf] }
 0x1b8   :  { %v1395_v15 = vadd.f32 %v1386_v26, %v13757_v17  ;;  %2376 = vmatpush.bf16.msra.mxu0 %v8901_v13  ;;  %v9377_v17 = vor.u32 %v12455_v35, %v9376_v31  ;;  %v9013_v13 = vor.u32 %v12361_v8, %v9010_v9  ;;  %v9189_v26 = vor.u32 %v12405_v23, %v9186_v24  ;;  %v9154_v35 = vld [vmem:[#allocation6 + $0x238] sm:$0xf0]  ;;  %v9496_v8 = vld [vmem:[#allocation9 + $0xe0] sm:$0xf]  ;;  %v12486_v9 = vld [vmem:[#allocation9 + $0xec] sm:$0xf0] }
 0x1b9   :  { %2386 = vmatpush.bf16.msra.mxu1 %v9093_v22  ;;  %v12439_v22 = vld [vmem:[#allocation6 + $0x374] sm:$0xf0]  ;;  %v9297_v31 = vor.u32 %v12435_v27, %v9296_v28  ;;  %v9298_v63 = vld [vmem:[#allocation6 + $0x358] sm:$0xf0]  ;;  %v9497_v11 = vor.u32 %v12486_v9, %v9496_v8  ;;  %v9448_v23 = vld [vmem:[#allocation9 + $0x80] sm:$0xf] }
 0x1ba   :  { %vm1403_vm2 = vcmp.gt.f32.partialorder %v1395_v15, 0.0  ;;  %v1411_v41 = vmul.f32 0.01, %v1395_v15  ;;  %2348 = vmatpush.bf16.msrb.mxu2 %v9153_v33  ;;  %v9313_v25 = vor.u32 %v12439_v22, %v9312_v19  ;;  %v12431_v33 = vld [vmem:[#allocation6 + $0x334] sm:$0xf0] }
 0x1bb   :  { %v12478_v19 = vld [vmem:[#allocation9 + $0xac] sm:$0xf0]  ;;  %v9624_v27 = vld [vmem:[#allocation9 + $0x1e0] sm:$0xf]  ;;  %v12484_v52 = vld [vmem:[#allocation9 + $0xe4] sm:$0xf] }
 0x1bc   :  { %v13829_v45 = vsel %vm1403_vm2, %v1395_v15, %v1411_v41  ;;  %2377 = vmatpush.bf16.msra.mxu0 %v8885_v34  ;;  %v9280_v15 = vld [vmem:[#allocation6 + $0x328] sm:$0xf]  ;;  %v12397_v34 = vld [vmem:[#allocation6 + $0x22c] sm:$0xf]  ;;  %v12474_v24 = vld [vmem:[#allocation9 + $0x8c] sm:$0xf0] }
 0x1bd   :  { %2387 = vmatpush.bf16.msra.mxu1 %v9077_v37  ;;  %v13833_v46 = vpack.c.bf16 %v13829_v45, %v13827_v44  ;;  %v9281_v36 = vor.u32 %v12431_v33, %v9280_v15  ;;  %v9157_v37 = vor.u32 %v12397_v34, %v9154_v35  ;;  %v12393_v41 = vld [vmem:[#allocation6 + $0x20c] sm:$0xf]  ;;  %v12470_v28 = vld [vmem:[#allocation9 + $0x6c] sm:$0xf0]  ;;  %v9498_v39 = vld [vmem:[#allocation9 + $0xf0] sm:$0xf0] }
 0x1be   :  { %2349 = vmatpush.bf16.msrb.mxu2 %v9137_v43  ;;  %v12453_v43 = vld [vmem:[#allocation6 + $0x3ec] sm:$0xf]  ;;  %v12466_v15 = vld [vmem:[#allocation9 + $0x4c] sm:$0xf0]  ;;  %v9501_v56 = vor.u32 %v12484_v52, %v9498_v39  ;;  %v9528_v9 = vld [vmem:[#allocation9 + $0x120] sm:$0xf] }
 0x1bf   :  { %2252 = vmatmul.bf16.vlgmr.msrb.gmra.mxu3 %v13833_v46  ;;  %2378 = vmatmul.bf16.vlgmr.msra.gmra.mxu0 %v13793_v5  ;;  %v9029_v5 = vor.u32 %v12365_v62, %v9026_v49  ;;  %v9317_v62 = vor.u32 %v12437_v54, %v9314_v61  ;;  %v12433_v49 = vld [vmem:[#allocation6 + $0x34c] sm:$0xf]  ;;  %v12514_v34 = vld [vmem:[#allocation9 + $0x1cc] sm:$0xf0]  ;;  %v12480_v54 = vld [vmem:[#allocation9 + $0xc4] sm:$0xf] }
 0x1c0   :  { %2356 = vmatpush.bf16.msrb.mxu3 %v9377_v17  ;;  %v9378_v17 = vld [vmem:[#allocation6 + $0x3f8] sm:$0xf0]  ;;  %v9301_v3 = vor.u32 %v12433_v49, %v9298_v63  ;;  %3240 = vmatpush.bf16.msrb.mxu0 %v9497_v11  ;;  %v9482_v61 = vld [vmem:[#allocation9 + $0xd0] sm:$0xf0]  ;;  %v9544_v63 = vld [vmem:[#allocation9 + $0x140] sm:$0xf] }
 0x1c1   :  { %2388 = vmatpush.bf16.msra.mxu1 %v9061_v50  ;;  %2350 = vmatmul.bf16.vlgmr.msrb.gmra.mxu2 %v13817_v7  ;;  %v9265_v50 = vor.u32 %v12427_v40, %v9264_v38  ;;  %v9592_v38 = vld [vmem:[#allocation9 + $0x1a0] sm:$0xf]  ;;  %v9485_v49 = vor.u32 %v12480_v54, %v9482_v61  ;;  %v9402_v52 = vld [vmem:[#allocation9 + $0x30] sm:$0xf0]  ;;  %v12508_v39 = vld [vmem:[#allocation9 + $0x1a4] sm:$0xf] }
 0x1c2   :  { %2398 = vmatpush.bf16.msra.mxu2 %v9253_v51  ;;  %v9381_v51 = vor.u32 %v12453_v43, %v9378_v17  ;;  %v9384_v43 = vld [vmem:[#allocation9] sm:$0xf]  ;;  %v12458_v17 = vld [vmem:[#allocation9 + $0xc] sm:$0xf0]  ;;  %v12456_v54 = vld [vmem:[#allocation9 + $0x4] sm:$0xf] }
 0x1c3   :  { %v9720_v11 = vld [vmem:[#allocation9 + $0x2a0] sm:$0xf]  ;;  %v9386_v61 = vld [vmem:[#allocation9 + $0x10] sm:$0xf0] }
 0x1c4   :  { %2357 = vmatpush.bf16.msrb.mxu3 %v9361_v47  ;;  %v12441_v47 = vld [vmem:[#allocation6 + $0x38c] sm:$0xf] }
 0x1c5   :  { %2389 = vmatpush.bf16.msra.mxu1 %v9045_v58  ;;  %v9330_v58 = vld [vmem:[#allocation6 + $0x398] sm:$0xf0] }
 0x1c6   :  { %2399 = vmatpush.bf16.msra.mxu2 %v9237_v59  ;;  %v9333_v59 = vor.u32 %v12441_v47, %v9330_v58  ;;  %v9752_v47 = vld [vmem:[#allocation9 + $0x2e0] sm:$0xf] }
 0x1c8   :  { %2358 = vmatpush.bf16.msrb.mxu3 %v9345_v16  ;;  %v12429_v16 = vld [vmem:[#allocation6 + $0x32c] sm:$0xf] }
 0x1c9   :  { %2390 = vmatpush.bf16.msra.mxu1 %v9029_v5  ;;  %v9282_v5 = vld [vmem:[#allocation6 + $0x338] sm:$0xf0] }
 0x1ca   :  { %2400 = vmatpush.bf16.msra.mxu2 %v9221_v20  ;;  %v9285_v20 = vor.u32 %v12429_v16, %v9282_v5  ;;  %v9736_v16 = vld [vmem:[#allocation9 + $0x2c0] sm:$0xf] }
 0x1cc   :  { %2359 = vmatpush.bf16.msrb.mxu3 %v9329_v12  ;;  %v12482_v12 = vld [vmem:[#allocation9 + $0xcc] sm:$0xf0] }
 0x1cd   :  { %2391 = vmatpush.bf16.msra.mxu1 %v9013_v13  ;;  %v9481_v13 = vor.u32 %v12482_v12, %v9480_v10  ;;  %v12494_v10 = vld [vmem:[#allocation9 + $0x12c] sm:$0xf0] }
 0x1ce   :  { %2401 = vmatpush.bf16.msra.mxu2 %v9205_v18  ;;  %v9464_v18 = vld [vmem:[#allocation9 + $0xa0] sm:$0xf]  ;;  %v9529_v12 = vor.u32 %v12494_v10, %v9528_v9  ;;  %v12500_v9 = vld [vmem:[#allocation9 + $0x164] sm:$0xf]  ;;  %v9562_v10 = vld [vmem:[#allocation9 + $0x170] sm:$0xf0] }
 0x1cf   :  { %2308 = vmatmul.bf16.vlgmr.msra.gmra.mxu3 %v13833_v46  ;;  %3241 = vmatpush.bf16.msrb.mxu0 %v9481_v13  ;;  %v9465_v22 = vor.u32 %v12478_v19, %v9464_v18  ;;  %v12542_v13 = vld [vmem:[#allocation9 + $0x2ac] sm:$0xf0]  ;;  %v12472_v18 = vld [vmem:[#allocation9 + $0x84] sm:$0xf]  ;;  %v9450_v19 = vld [vmem:[#allocation9 + $0x90] sm:$0xf0] }
 0x1d0   :  { %2360 = vmatpush.bf16.msrb.mxu3 %v9313_v25  ;;  %2392 = vmatmul.bf16.vlgmr.msra.gmra.mxu1 %v13805_v4  ;;  %v9141_v4 = vor.u32 %v12393_v41, %v9138_v42  ;;  %v9449_v25 = vor.u32 %v12474_v24, %v9448_v23  ;;  %v12510_v41 = vld [vmem:[#allocation9 + $0x1ac] sm:$0xf0]  ;;  %v9453_v23 = vor.u32 %v12472_v18, %v9450_v19  ;;  %v9512_v24 = vld [vmem:[#allocation9 + $0x100] sm:$0xf]  ;;  %v9754_v18 = vld [vmem:[#allocation9 + $0x2f0] sm:$0xf0] }
 0x1d1   :  { %v9593_v42 = vor.u32 %v12510_v41, %v9592_v38  ;;  %v9418_v38 = vld [vmem:[#allocation9 + $0x50] sm:$0xf0] }
 0x1d2   :  { %2402 = vmatpush.bf16.msra.mxu2 %v9189_v26  ;;  %v9432_v26 = vld [vmem:[#allocation9 + $0x60] sm:$0xf] }
 0x1d3   :  { %3242 = vmatpush.bf16.msrb.mxu0 %v9465_v22  ;;  %v9433_v29 = vor.u32 %v12470_v28, %v9432_v26  ;;  %v9721_v22 = vor.u32 %v12542_v13, %v9720_v11  ;;  %v9704_v26 = vld [vmem:[#allocation9 + $0x280] sm:$0xf]  ;;  %v12548_v13 = vld [vmem:[#allocation9 + $0x2e4] sm:$0xf] }
 0x1d4   :  { %2361 = vmatpush.bf16.msrb.mxu3 %v9297_v31  ;;  %v9625_v31 = vor.u32 %v12518_v30, %v9624_v27  ;;  %v12538_v27 = vld [vmem:[#allocation9 + $0x28c] sm:$0xf0]  ;;  %v9434_v30 = vld [vmem:[#allocation9 + $0x70] sm:$0xf0]  ;;  %v9757_v19 = vor.u32 %v12548_v13, %v9754_v18  ;;  %v12528_v13 = vld [vmem:[#allocation9 + $0x244] sm:$0xf] }
 0x1d5   :  { %v9674_v18 = vld [vmem:[#allocation9 + $0x250] sm:$0xf0] }
 0x1d6   :  { %2403 = vmatpush.bf16.msra.mxu2 %v9173_v32  ;;  %3254 = vmatpush.bf16.msrb.mxu1 %v9625_v31  ;;  %v9416_v32 = vld [vmem:[#allocation9 + $0x40] sm:$0xf]  ;;  %v9705_v31 = vor.u32 %v12538_v27, %v9704_v26  ;;  %v9546_v27 = vld [vmem:[#allocation9 + $0x150] sm:$0xf0] }
 0x1d7   :  { %3243 = vmatpush.bf16.msrb.mxu0 %v9449_v25  ;;  %v9417_v33 = vor.u32 %v12466_v15, %v9416_v32  ;;  %v12490_v25 = vld [vmem:[#allocation9 + $0x10c] sm:$0xf0]  ;;  %v12516_v15 = vld [vmem:[#allocation9 + $0x1e4] sm:$0xf] }
 0x1d8   :  { %2362 = vmatpush.bf16.msrb.mxu3 %v9281_v36  ;;  %v9400_v36 = vld [vmem:[#allocation9 + $0x20] sm:$0xf]  ;;  %v9513_v28 = vor.u32 %v12490_v25, %v9512_v24  ;;  %v12578_v24 = vld [vmem:[#allocation9 + $0x3cc] sm:$0xf0] }
 0x1da   :  { %2404 = vmatpush.bf16.msra.mxu2 %v9157_v37  ;;  %v12462_v37 = vld [vmem:[#allocation9 + $0x2c] sm:$0xf0] }
 0x1db   :  { %3244 = vmatpush.bf16.msrb.mxu0 %v9433_v29  ;;  %v9401_v40 = vor.u32 %v12462_v37, %v9400_v36  ;;  %v12468_v29 = vld [vmem:[#allocation9 + $0x64] sm:$0xf] }
 0x1dc   :  { %2363 = vmatpush.bf16.msrb.mxu3 %v9265_v50  ;;  %v9576_v50 = vld [vmem:[#allocation9 + $0x180] sm:$0xf]  ;;  %v9437_v32 = vor.u32 %v12468_v29, %v9434_v30  ;;  %v12464_v37 = vld [vmem:[#allocation9 + $0x44] sm:$0xf] }
 0x1dd   :  { %v9421_v41 = vor.u32 %v12464_v37, %v9418_v38  ;;  %v12544_v29 = vld [vmem:[#allocation9 + $0x2c4] sm:$0xf]  ;;  %v9530_v37 = vld [vmem:[#allocation9 + $0x130] sm:$0xf0] }
 0x1de   :  { %2405 = vmatpush.bf16.msra.mxu2 %v9141_v4  ;;  %v9385_v4 = vor.u32 %v12458_v17, %v9384_v43  ;;  %v9672_v17 = vld [vmem:[#allocation9 + $0x240] sm:$0xf]  ;;  %v12540_v38 = vld [vmem:[#allocation9 + $0x2a4] sm:$0xf] }
 0x1df   :  { %2364 = vmatmul.bf16.vlgmr.msrb.gmra.mxu3 %v13833_v46  ;;  %3245 = vmatpush.bf16.msrb.mxu0 %v9417_v33 }
 0x1e0   :  { %2412 = vmatpush.bf16.msra.mxu3 %v9381_v51  ;;  %v12506_v51 = vld [vmem:[#allocation9 + $0x18c] sm:$0xf0] }
 0x1e1   :  { %2406 = vmatmul.bf16.vlgmr.msra.gmra.mxu2 %v13817_v7  ;;  %v9266_v7 = vld [vmem:[#allocation6 + $0x318] sm:$0xf0] }
 0x1e2   :  { %v9269_v6 = vor.u32 %v12425_v21, %v9266_v7  ;;  %v12476_v21 = vld [vmem:[#allocation9 + $0xa4] sm:$0xf]  ;;  %v9466_v7 = vld [vmem:[#allocation9 + $0xb0] sm:$0xf0] }
 0x1e3   :  { %3246 = vmatpush.bf16.msrb.mxu0 %v9401_v40  ;;  %v9469_v8 = vor.u32 %v12476_v21, %v9466_v7  ;;  %v12512_v40 = vld [vmem:[#allocation9 + $0x1c4] sm:$0xf]  ;;  %v12522_v21 = vld [vmem:[#allocation9 + $0x20c] sm:$0xf0]  ;;  %v9880_v7 = vld [vmem:[#allocation9 + $0x3e0] sm:$0xf] }
 0x1e4   :  { %2413 = vmatpush.bf16.msra.mxu3 %v9365_v53  ;;  %v9577_v53 = vor.u32 %v12506_v51, %v9576_v50  ;;  %v12530_v50 = vld [vmem:[#allocation9 + $0x24c] sm:$0xf0]  ;;  %v12460_v51 = vld [vmem:[#allocation9 + $0x24] sm:$0xf] }
 0x1e7   :  { %3247 = vmatpush.bf16.msrb.mxu0 %v9385_v4  ;;  %v9673_v4 = vor.u32 %v12530_v50, %v9672_v17  ;;  %v9832_v50 = vld [vmem:[#allocation9 + $0x380] sm:$0xf] }
 0x1e8   :  { %2414 = vmatpush.bf16.msra.mxu3 %v9349_v57  ;;  %v12502_v57 = vld [vmem:[#allocation9 + $0x16c] sm:$0xf0] }
 0x1e9   :  { %v9561_v58 = vor.u32 %v12502_v57, %v9560_v14 }
 0x1eb   :  { %3296 = vmatpush.bf16.msra.mxu0 %v9501_v56  ;;  %v9594_v56 = vld [vmem:[#allocation9 + $0x1b0] sm:$0xf0] }
 0x1ec   :  { %2415 = vmatpush.bf16.msra.mxu3 %v9333_v59  ;;  %v12550_v59 = vld [vmem:[#allocation9 + $0x2ec] sm:$0xf0]  ;;  %v9597_v57 = vor.u32 %v12508_v39, %v9594_v56  ;;  %v12488_v39 = vld [vmem:[#allocation9 + $0x104] sm:$0xf] }
 0x1ed   :  { %v12536_v56 = vld [vmem:[#allocation9 + $0x284] sm:$0xf] }
 0x1ef   :  { %3297 = vmatpush.bf16.msra.mxu0 %v9485_v49 }
 0x1f0   :  { %2416 = vmatpush.bf16.msra.mxu3 %v9317_v62  ;;  %v9753_v62 = vor.u32 %v12550_v59, %v9752_v47  ;;  %v9656_v47 = vld [vmem:[#allocation9 + $0x220] sm:$0xf] }
 0x1f2   :  { %3268 = vmatpush.bf16.msrb.mxu2 %v9753_v62  ;;  %v12504_v62 = vld [vmem:[#allocation9 + $0x184] sm:$0xf] }
 0x1f3   :  { %3298 = vmatpush.bf16.msra.mxu0 %v9469_v8  ;;  %v12582_v8 = vld [vmem:[#allocation9 + $0x3ec] sm:$0xf0] }
 0x1f4   :  { %2417 = vmatpush.bf16.msra.mxu3 %v9301_v3  ;;  %v12498_v3 = vld [vmem:[#allocation9 + $0x14c] sm:$0xf0]  ;;  %v9881_v11 = vor.u32 %v12582_v8, %v9880_v7 }
 0x1f5   :  { %v9545_v5 = vor.u32 %v12498_v3, %v9544_v63  ;;  %v9389_v63 = vor.u32 %v12456_v54, %v9386_v61  ;;  %v9578_v3 = vld [vmem:[#allocation9 + $0x190] sm:$0xf0] }
 0x1f7   :  { %3299 = vmatpush.bf16.msra.mxu0 %v9453_v23  ;;  %v9864_v23 = vld [vmem:[#allocation9 + $0x3c0] sm:$0xf] }
 0x1f8   :  { %2418 = vmatpush.bf16.msra.mxu3 %v9285_v20  ;;  %v12546_v20 = vld [vmem:[#allocation9 + $0x2cc] sm:$0xf0]  ;;  %v9865_v26 = vor.u32 %v12578_v24, %v9864_v23  ;;  %v9677_v23 = vor.u32 %v12528_v13, %v9674_v18  ;;  %v12572_v13 = vld [vmem:[#allocation9 + $0x3a4] sm:$0xf]  ;;  %v9850_v18 = vld [vmem:[#allocation9 + $0x3b0] sm:$0xf0] }
 0x1fb   :  { %3300 = vmatpush.bf16.msra.mxu0 %v9437_v32 }
 0x1fc   :  { %2419 = vmatpush.bf16.msra.mxu3 %v9269_v6  ;;  %v9737_v6 = vor.u32 %v12546_v20, %v9736_v16  ;;  %v2211_v14 = vpop.f32.mrf.mxu0  ;;  %v9581_v16 = vor.u32 %v12504_v62, %v9578_v3  ;;  %v9640_v20 = vld [vmem:[#allocation9 + $0x200] sm:$0xf] }
 0x1fd   :  { %v9816_v62 = vld [vmem:[#allocation9 + $0x360] sm:$0xf] }
 0x1fe   :  { %3269 = vmatpush.bf16.msrb.mxu2 %v9737_v6  ;;  %v9641_v6 = vor.u32 %v12522_v21, %v9640_v20  ;;  %v9690_v20 = vld [vmem:[#allocation9 + $0x270] sm:$0xf0] }
 0x1ff   :  { %2420 = vmatmul.bf16.vlgmr.msra.gmra.mxu3 %v13833_v46  ;;  %v9608_v46 = vld [vmem:[#allocation9 + $0x1c0] sm:$0xf]  ;;  %3301 = vmatpush.bf16.msra.mxu0 %v9421_v41 }
 0x200   :  { %v9609_v35 = vor.u32 %v12514_v34, %v9608_v46  ;;  %v9626_v46 = vld [vmem:[#allocation9 + $0x1f0] sm:$0xf0]  ;;  %v9688_v34 = vld [vmem:[#allocation9 + $0x260] sm:$0xf]  ;;  %3282 = vmatpush.bf16.msrb.mxu3 %v9881_v11 }
 0x201   :  { %v9629_v33 = vor.u32 %v12516_v15, %v9626_v46 }
 0x202   :  { %3255 = vmatpush.bf16.msrb.mxu1 %v9609_v35  ;;  %3270 = vmatpush.bf16.msrb.mxu2 %v9721_v22  ;;  %v12534_v35 = vld [vmem:[#allocation9 + $0x26c] sm:$0xf0]  ;;  %v13843_v22 = vld [vmem:[#allocation7] sm:$0xf] }
 0x203   :  { %v9689_v36 = vor.u32 %v12534_v35, %v9688_v34  ;;  %v1554_v32 = vperm.slane %v13843_v22, 0  ;;  %v12574_v34 = vld [vmem:[#allocation9 + $0x3ac] sm:$0xf0]  ;;  %v1555_v24 = vperm.slane %v13843_v22, 1 }
 0x204   :  { %v2213_v25 = vpop.f32.mrf.mxu0  ;;  %3283 = vmatpush.bf16.msrb.mxu3 %v9865_v26  ;;  %v9784_v26 = vld [vmem:[#allocation9 + $0x320] sm:$0xf] }
 0x206   :  { %3256 = vmatpush.bf16.msrb.mxu1 %v9593_v42  ;;  %3271 = vmatpush.bf16.msrb.mxu2 %v9705_v31  ;;  %v9610_v42 = vld [vmem:[#allocation9 + $0x1d0] sm:$0xf0] }
 0x207   :  { %v9613_v43 = vor.u32 %v12512_v40, %v9610_v42  ;;  %v9738_v31 = vld [vmem:[#allocation9 + $0x2d0] sm:$0xf0] }
 0x208   :  { %v9741_v15 = vor.u32 %v12544_v29, %v9738_v31  ;;  %v9722_v42 = vld [vmem:[#allocation9 + $0x2b0] sm:$0xf0] }
 0x209   :  { %v9725_v17 = vor.u32 %v12540_v38, %v9722_v42  ;;  %v9768_v38 = vld [vmem:[#allocation9 + $0x300] sm:$0xf] }
 0x20a   :  { %3257 = vmatpush.bf16.msrb.mxu1 %v9577_v53  ;;  %3272 = vmatpush.bf16.msrb.mxu2 %v9689_v36  ;;  %v9405_v53 = vor.u32 %v12460_v51, %v9402_v52  ;;  %v12492_v36 = vld [vmem:[#allocation9 + $0x124] sm:$0xf] }
 0x20b   :  { %v9533_v41 = vor.u32 %v12492_v36, %v9530_v37  ;;  %v9488_v37 = vld [vmem:[#allocation9 + $0xc8] sm:$0xf] }
 0x20c   :  { %3302 = vmatpush.bf16.msra.mxu0 %v9405_v53  ;;  %v2225_v49 = vpop.f32.mrf.mxu1  ;;  %v9514_v53 = vld [vmem:[#allocation9 + $0x110] sm:$0xf0] }
 0x20e   :  { %3258 = vmatpush.bf16.msrb.mxu1 %v9561_v58  ;;  %3273 = vmatpush.bf16.msrb.mxu2 %v9673_v4  ;;  %v12526_v58 = vld [vmem:[#allocation9 + $0x22c] sm:$0xf0] }
 0x20f   :  { %v9657_v59 = vor.u32 %v12526_v58, %v9656_v47  ;;  %v12570_v4 = vld [vmem:[#allocation9 + $0x38c] sm:$0xf0]  ;;  %v9517_v47 = vor.u32 %v12488_v39, %v9514_v53  ;;  %v9706_v58 = vld [vmem:[#allocation9 + $0x290] sm:$0xf0]  ;;  %v12483_v39 = vld [vmem:[#allocation9 + $0xd4] sm:$0xf0] }
 0x210   :  { %3303 = vmatpush.bf16.msra.mxu0 %v9389_v63  ;;  %v9833_v52 = vor.u32 %v12570_v4, %v9832_v50  ;;  %v9709_v61 = vor.u32 %v12536_v56, %v9706_v58  ;;  %v2214_v63 = vadd.f32 %v2213_v25, %v1554_v32  ;;  %v9642_v50 = vld [vmem:[#allocation9 + $0x210] sm:$0xf0] }
 0x212   :  { %3259 = vmatpush.bf16.msrb.mxu1 %v9545_v5  ;;  %3274 = vmatpush.bf16.msrb.mxu2 %v9657_v59  ;;  %v2267_v59 = vpop.f32.mrf.mxu0 }
 0x214   :  { %v2227_v46 = vpop.f32.mrf.mxu1 }
 0x216   :  { %3260 = vmatpush.bf16.msrb.mxu1 %v9529_v12  ;;  %v9565_v12 = vor.u32 %v12500_v9, %v9562_v10  ;;  %3275 = vmatpush.bf16.msrb.mxu2 %v9641_v6  ;;  %v2228_v6 = vadd.f32 %v2227_v46, %v2214_v63  ;;  %v9800_v9 = vld [vmem:[#allocation9 + $0x340] sm:$0xf]  ;;  %v12562_v10 = vld [vmem:[#allocation9 + $0x34c] sm:$0xf0]  ;;  %v12487_v46 = vld [vmem:[#allocation9 + $0xf4] sm:$0xf0] }
 0x217   :  { %v12479_v63 = vld [vmem:[#allocation9 + $0xb4] sm:$0xf0] }
 0x21a   :  { %3261 = vmatpush.bf16.msrb.mxu1 %v9513_v28  ;;  %3324 = vmatpush.bf16.msra.mxu2 %v9757_v19  ;;  %v12496_v28 = vld [vmem:[#allocation9 + $0x144] sm:$0xf] }
 0x21b   :  { %v9549_v30 = vor.u32 %v12496_v28, %v9546_v27  ;;  %v12558_v28 = vld [vmem:[#allocation9 + $0x32c] sm:$0xf0]  ;;  %v2269_v27 = vpop.f32.mrf.mxu0 }
 0x21c   :  { %v2281_v21 = vpop.f32.mrf.mxu1  ;;  %v9785_v31 = vor.u32 %v12558_v28, %v9784_v26  ;;  %v12471_v26 = vld [vmem:[#allocation9 + $0x74] sm:$0xf0] }
 0x21e   :  { %3310 = vmatpush.bf16.msra.mxu1 %v9629_v33  ;;  %v9848_v33 = vld [vmem:[#allocation9 + $0x3a0] sm:$0xf]  ;;  %3325 = vmatpush.bf16.msra.mxu2 %v9741_v15  ;;  %v9504_v15 = vld [vmem:[#allocation9 + $0xe8] sm:$0xf] }
 0x21f   :  { %v9849_v35 = vor.u32 %v12574_v34, %v9848_v33  ;;  %v2268_v34 = vadd.f32 %v2267_v59, %v1555_v24 }
 0x221   :  { %3284 = vmatpush.bf16.msrb.mxu3 %v9849_v35 }
 0x222   :  { %3311 = vmatpush.bf16.msra.mxu1 %v9613_v43  ;;  %v2212_v43 = vadd.f32 %v2211_v14, %v1554_v32  ;;  %3326 = vmatpush.bf16.msra.mxu2 %v9725_v17  ;;  %v12566_v14 = vld [vmem:[#allocation9 + $0x36c] sm:$0xf0]  ;;  %v12524_v32 = vld [vmem:[#allocation9 + $0x224] sm:$0xf] }
 0x223   :  { %v2239_v5 = vpop.f32.mrf.mxu2  ;;  %v12520_v17 = vld [vmem:[#allocation9 + $0x204] sm:$0xf] }
 0x224   :  { %v2226_v51 = vadd.f32 %v2225_v49, %v2212_v43  ;;  %v9817_v49 = vor.u32 %v12566_v14, %v9816_v62  ;;  %v2283_v36 = vpop.f32.mrf.mxu1  ;;  %v9505_v43 = vor.u32 %v12487_v46, %v9504_v15  ;;  %v9645_v56 = vor.u32 %v12520_v17, %v9642_v50  ;;  %v9472_v14 = vld [vmem:[#allocation9 + $0xa8] sm:$0xf]  ;;  %v12564_v17 = vld [vmem:[#allocation9 + $0x364] sm:$0xf]  ;;  %v9818_v50 = vld [vmem:[#allocation9 + $0x370] sm:$0xf0] }
 0x225   :  { %3285 = vmatpush.bf16.msrb.mxu3 %v9833_v52  ;;  %v9489_v62 = vor.u32 %v12483_v39, %v9488_v37 }
 0x226   :  { %3312 = vmatpush.bf16.msra.mxu1 %v9597_v57  ;;  %v2240_v54 = vadd.f32 %v2239_v5, %v2226_v51  ;;  %3327 = vmatpush.bf16.msra.mxu2 %v9709_v61 }
 0x229   :  { %3286 = vmatpush.bf16.msrb.mxu3 %v9817_v49  ;;  %v9866_v49 = vld [vmem:[#allocation9 + $0x3d0] sm:$0xf0] }
 0x22a   :  { %3313 = vmatpush.bf16.msra.mxu1 %v9581_v16  ;;  %v12532_v16 = vld [vmem:[#allocation9 + $0x264] sm:$0xf] }
 0x22b   :  { %v2241_v40 = vpop.f32.mrf.mxu2  ;;  %v9693_v7 = vor.u32 %v12532_v16, %v9690_v20  ;;  %v2323_v16 = vpop.f32.mrf.mxu0 }
 0x22c   :  { %v2242_v11 = vadd.f32 %v2241_v40, %v2228_v6  ;;  %v2282_v40 = vadd.f32 %v2281_v21, %v2268_v34 }
 0x22d   :  { %3328 = vmatpush.bf16.msra.mxu2 %v9693_v7  ;;  %v1556_v7 = vperm.slane %v13843_v22, 2 }
 0x22e   :  { %3314 = vmatpush.bf16.msra.mxu1 %v9565_v12  ;;  %v9801_v12 = vor.u32 %v12562_v10, %v9800_v9  ;;  %v9473_v9 = vor.u32 %v12479_v63, %v9472_v14  ;;  %v9456_v10 = vld [vmem:[#allocation9 + $0x88] sm:$0xf]  ;;  %v12560_v14 = vld [vmem:[#allocation9 + $0x344] sm:$0xf]  ;;  %v9802_v63 = vld [vmem:[#allocation9 + $0x350] sm:$0xf0] }
 0x230   :  { %3287 = vmatpush.bf16.msrb.mxu3 %v9801_v12  ;;  %v12475_v12 = vld [vmem:[#allocation9 + $0x94] sm:$0xf0] }
 0x231   :  { %3329 = vmatpush.bf16.msra.mxu2 %v9677_v23  ;;  %v9853_v23 = vor.u32 %v12572_v13, %v9850_v18  ;;  %v12485_v18 = vld [vmem:[#allocation9 + $0xec] sm:$0xf] }
 0x232   :  { %3315 = vmatpush.bf16.msra.mxu1 %v9549_v30 }
 0x233   :  { %v2325_v34 = vpop.f32.mrf.mxu0 }
 0x234   :  { %v2295_v8 = vpop.f32.mrf.mxu2  ;;  %3288 = vmatpush.bf16.msrb.mxu3 %v9785_v31  ;;  %v2324_v31 = vadd.f32 %v2323_v16, %v1556_v7  ;;  %v2326_v39 = vadd.f32 %v2325_v34, %v1556_v7 }
 0x235   :  { %v2296_v58 = vadd.f32 %v2295_v8, %v2282_v40  ;;  %v12467_v40 = vld [vmem:[#allocation9 + $0x54] sm:$0xf0] }
 0x236   :  { %3316 = vmatpush.bf16.msra.mxu1 %v9533_v41 }
 0x23a   :  { %3317 = vmatpush.bf16.msra.mxu1 %v9517_v47  ;;  %v9882_v47 = vld [vmem:[#allocation9 + $0x3f0] sm:$0xf0] }
 0x23c   :  { %v2297_v4 = vpop.f32.mrf.mxu2 }
 0x242   :  { %v2253_v57 = vpop.f32.mrf.mxu3 }
 0x243   :  { %v2254_v3 = vadd.f32 %v2253_v57, %v2240_v54  ;;  %v12580_v57 = vld [vmem:[#allocation9 + $0x3e4] sm:$0xf]  ;;  %v2270_v54 = vadd.f32 %v2269_v27, %v1555_v24 }
 0x244   :  { %v9885_v59 = vor.u32 %v12580_v57, %v9882_v47  ;;  %v2351_v24 = vpop.f32.mrf.mxu2 }
 0x245   :  { %v2426_v5 = vadd.f32 %v2254_v3, %v13787_v1  ;;  %v9658_v1 = vld [vmem:[#allocation9 + $0x230] sm:$0xf0]  ;;  %v12576_v3 = vld [vmem:[#allocation9 + $0x3c4] sm:$0xf]  ;;  %v2284_v20 = vadd.f32 %v2283_v36, %v2270_v54  ;;  %v9600_v54 = vld [vmem:[#allocation9 + $0x1a8] sm:$0xf] }
 0x246   :  { %v9661_v33 = vor.u32 %v12524_v32, %v9658_v1  ;;  %v9869_v21 = vor.u32 %v12576_v3, %v9866_v49  ;;  %v12568_v32 = vld [vmem:[#allocation9 + $0x384] sm:$0xf]  ;;  %v9834_v1 = vld [vmem:[#allocation9 + $0x390] sm:$0xf0]  ;;  %v9805_v49 = vor.u32 %v12560_v14, %v9802_v63 }
 0x247   :  { %v2442_v29 = vmul.f32 0.01, %v2426_v5  ;;  %vm2434_vm3 = vcmp.gt.f32.partialorder %v2426_v5, 0.0  ;;  %v2298_v6 = vadd.f32 %v2297_v4, %v2284_v20  ;;  %v9837_v46 = vor.u32 %v12568_v32, %v9834_v1  ;;  %v12552_v32 = vld [vmem:[#allocation9 + $0x304] sm:$0xf] }
 0x248   :  { %3330 = vmatpush.bf16.msra.mxu2 %v9661_v33  ;;  %v9770_v1 = vld [vmem:[#allocation9 + $0x310] sm:$0xf0] }
 0x249   :  { %v2450_v41 = vsel %vm2434_vm3, %v2426_v5, %v2442_v29  ;;  %v9457_v29 = vor.u32 %v12475_v12, %v9456_v10  ;;  %v9786_v12 = vld [vmem:[#allocation9 + $0x330] sm:$0xf0] }
 0x24a   :  { %v2255_v19 = vpop.f32.mrf.mxu3 }
 0x24b   :  { %v2256_v25 = vadd.f32 %v2255_v19, %v2242_v11  ;;  %v2337_v11 = vpop.f32.mrf.mxu1 }
 0x24c   :  { %3331 = vmatpush.bf16.msra.mxu2 %v9645_v56  ;;  %v2338_v33 = vadd.f32 %v2337_v11, %v2324_v31  ;;  %v12507_v11 = vld [vmem:[#allocation9 + $0x194] sm:$0xf0] }
 0x24d   :  { %v2430_v30 = vadd.f32 %v2256_v25, %v13789_v2  ;;  %v12554_v2 = vld [vmem:[#allocation9 + $0x30c] sm:$0xf0]  ;;  %v9440_v25 = vld [vmem:[#allocation9 + $0x68] sm:$0xf] }
 0x24e   :  { %v9769_v53 = vor.u32 %v12554_v2, %v9768_v38  ;;  %v9441_v37 = vor.u32 %v12471_v26, %v9440_v25  ;;  %v12515_v2 = vld [vmem:[#allocation9 + $0x1d4] sm:$0xf0]  ;;  %v2352_v4 = vadd.f32 %v2351_v24, %v2338_v33  ;;  %v9568_v24 = vld [vmem:[#allocation9 + $0x168] sm:$0xf]  ;;  %v9773_v33 = vor.u32 %v12552_v32, %v9770_v1 }
 0x24f   :  { %vm2438_vm4 = vcmp.gt.f32.partialorder %v2430_v30, 0.0  ;;  %v2446_v35 = vmul.f32 0.01, %v2430_v30  ;;  %v12503_v25 = vld [vmem:[#allocation9 + $0x174] sm:$0xf0] }
 0x250   :  { %3289 = vmatpush.bf16.msrb.mxu3 %v9769_v53  ;;  %v9680_v1 = vld [vmem:[#allocation9 + $0x248] sm:$0xf] }
 0x251   :  { %v2454_v42 = vsel %vm2438_vm4, %v2430_v30, %v2446_v35  ;;  %v12519_v30 = vld [vmem:[#allocation9 + $0x1f4] sm:$0xf0] }
 0x252   :  { %v2309_v51 = vpop.f32.mrf.mxu3  ;;  %v13849_v52 = vpack.c.bf16 %v2454_v42, %v2450_v41  ;;  %v9616_v41 = vld [vmem:[#allocation9 + $0x1c8] sm:$0xf] }
 0x253   :  { %v2310_v61 = vadd.f32 %v2309_v51, %v2296_v58  ;;  %v9821_v51 = vor.u32 %v12564_v17, %v9818_v50  ;;  %v2339_v53 = vpop.f32.mrf.mxu1  ;;  %v9617_v47 = vor.u32 %v12515_v2, %v9616_v41  ;;  %v9408_v58 = vld [vmem:[#allocation9 + $0x28] sm:$0xf]  ;;  %v12477_v2 = vld [vmem:[#allocation9 + $0xac] sm:$0xf]  ;;  %v9474_v17 = vld [vmem:[#allocation9 + $0xb8] sm:$0xf0]  ;;  %v2379_v50 = vpop.f32.mrf.mxu0 }
 0x254   :  { %3248 = vmatmul.bf16.vlgmr.msrb.gmra.mxu0 %v13849_v52  ;;  %3338 = vmatpush.bf16.msra.mxu3 %v9885_v59  ;;  %v12463_v59 = vld [vmem:[#allocation9 + $0x34] sm:$0xf0]  ;;  %v2340_v3 = vadd.f32 %v2339_v53, %v2326_v39  ;;  %v9744_v41 = vld [vmem:[#allocation9 + $0x2c8] sm:$0xf]  ;;  %v9477_v39 = vor.u32 %v12477_v2, %v9474_v17 }
 0x255   :  { %3352 = vmatpush.bf16.msrb.mxu0 %v9505_v43  ;;  %v2427_v8 = vadd.f32 %v2310_v61, %v13799_v55  ;;  %v9632_v55 = vld [vmem:[#allocation9 + $0x1e8] sm:$0xf]  ;;  %v2353_v61 = vpop.f32.mrf.mxu2  ;;  %v9409_v16 = vor.u32 %v12463_v59, %v9408_v58  ;;  %v12543_v58 = vld [vmem:[#allocation9 + $0x2b4] sm:$0xf0]  ;;  %v12473_v59 = vld [vmem:[#allocation9 + $0x8c] sm:$0xf] }
 0x256   :  { %v9633_v38 = vor.u32 %v12519_v30, %v9632_v55  ;;  %v2354_v20 = vadd.f32 %v2353_v61, %v2340_v3  ;;  %v12551_v55 = vld [vmem:[#allocation9 + $0x2f4] sm:$0xf0]  ;;  %v12481_v30 = vld [vmem:[#allocation9 + $0xcc] sm:$0xf]  ;;  %v9536_v53 = vld [vmem:[#allocation9 + $0x128] sm:$0xf] }
 0x257   :  { %v2443_v28 = vmul.f32 0.01, %v2427_v8  ;;  %vm2435_vm5 = vcmp.gt.f32.partialorder %v2427_v8, 0.0  ;;  %v1557_v61 = vperm.slane %v13843_v22, 3  ;;  %v9664_v2 = vld [vmem:[#allocation9 + $0x228] sm:$0xf] }
 0x258   :  { %3339 = vmatpush.bf16.msra.mxu3 %v9869_v21 }
 0x259   :  { %3353 = vmatpush.bf16.msrb.mxu0 %v9489_v62  ;;  %v2451_v35 = vsel %vm2435_vm5, %v2427_v8, %v2443_v28  ;;  %v12511_v62 = vld [vmem:[#allocation9 + $0x1b4] sm:$0xf0] }
 0x25a   :  { %v2311_v5 = vpop.f32.mrf.mxu3  ;;  %v9601_v7 = vor.u32 %v12511_v62, %v9600_v54  ;;  %v12459_v8 = vld [vmem:[#allocation9 + $0x14] sm:$0xf0]  ;;  %v9458_v54 = vld [vmem:[#allocation9 + $0x98] sm:$0xf0] }
 0x25b   :  { %v2312_v19 = vadd.f32 %v2311_v5, %v2298_v6  ;;  %v9392_v6 = vld [vmem:[#allocation9 + $0x8] sm:$0xf]  ;;  %v12556_v5 = vld [vmem:[#allocation9 + $0x324] sm:$0xf]  ;;  %v9461_v3 = vor.u32 %v12473_v59, %v9458_v54 }
 0x25c   :  { %3340 = vmatpush.bf16.msra.mxu3 %v9853_v23  ;;  %v9789_v23 = vor.u32 %v12556_v5, %v9786_v12  ;;  %v9393_v28 = vor.u32 %v12459_v8, %v9392_v6  ;;  %v9442_v6 = vld [vmem:[#allocation9 + $0x78] sm:$0xf0]  ;;  %v2380_v8 = vadd.f32 %v2379_v50, %v1557_v61  ;;  %v2381_v5 = vpop.f32.mrf.mxu0  ;;  %v9888_v59 = vld [vmem:[#allocation9 + $0x3e8] sm:$0xf] }
 0x25d   :  { %v2431_v27 = vadd.f32 %v2312_v19, %v13801_v60  ;;  %3354 = vmatpush.bf16.msrb.mxu0 %v9473_v9  ;;  %v9424_v60 = vld [vmem:[#allocation9 + $0x48] sm:$0xf]  ;;  %v9506_v19 = vld [vmem:[#allocation9 + $0xf8] sm:$0xf0] }
 0x25e   :  { %v9425_v57 = vor.u32 %v12467_v40, %v9424_v60  ;;  %v9584_v9 = vld [vmem:[#allocation9 + $0x188] sm:$0xf]  ;;  %v9509_v31 = vor.u32 %v12485_v18, %v9506_v19  ;;  %v12499_v40 = vld [vmem:[#allocation9 + $0x154] sm:$0xf0] }
 0x25f   :  { %vm2439_vm6 = vcmp.gt.f32.partialorder %v2431_v27, 0.0  ;;  %v2447_v15 = vmul.f32 0.01, %v2431_v27  ;;  %v9552_v60 = vld [vmem:[#allocation9 + $0x148] sm:$0xf] }
 0x260   :  { %3341 = vmatpush.bf16.msra.mxu3 %v9837_v46  ;;  %v9490_v46 = vld [vmem:[#allocation9 + $0xd8] sm:$0xf0]  ;;  %v9696_v18 = vld [vmem:[#allocation9 + $0x268] sm:$0xf] }
 0x261   :  { %v2455_v36 = vsel %vm2439_vm6, %v2431_v27, %v2447_v15  ;;  %3355 = vmatpush.bf16.msrb.mxu0 %v9457_v29  ;;  %v9585_v27 = vor.u32 %v12507_v11, %v9584_v9  ;;  %v9760_v29 = vld [vmem:[#allocation9 + $0x2e8] sm:$0xf]  ;;  %v12517_v9 = vld [vmem:[#allocation9 + $0x1ec] sm:$0xf] }
 0x262   :  { %v2365_v42 = vpop.f32.mrf.mxu3  ;;  %v13855_v43 = vpack.c.bf16 %v2455_v36, %v2451_v35 }
 0x263   :  { %v2366_v56 = vadd.f32 %v2365_v42, %v2352_v4  ;;  %v12547_v42 = vld [vmem:[#allocation9 + $0x2d4] sm:$0xf0]  ;;  %v9553_v4 = vor.u32 %v12499_v40, %v9552_v60 }
 0x264   :  { %3262 = vmatmul.bf16.vlgmr.msrb.gmra.mxu1 %v13855_v43  ;;  %3304 = vmatmul.bf16.vlgmr.msra.gmra.mxu0 %v13849_v52  ;;  %v2407_v62 = vpop.f32.mrf.mxu2 }
 0x265   :  { %3356 = vmatpush.bf16.msrb.mxu0 %v9441_v37  ;;  %3366 = vmatpush.bf16.msrb.mxu1 %v9633_v38  ;;  %v2428_v21 = vadd.f32 %v2366_v56, %v13811_v0  ;;  %v9761_v37 = vor.u32 %v12551_v55, %v9760_v29  ;;  %v9493_v38 = vor.u32 %v12481_v30, %v9490_v46  ;;  %v12495_v56 = vld [vmem:[#allocation9 + $0x134] sm:$0xf0] }
 0x266   :  { %3342 = vmatpush.bf16.msra.mxu3 %v9821_v51  ;;  %v9745_v51 = vor.u32 %v12547_v42, %v9744_v41  ;;  %v9537_v14 = vor.u32 %v12495_v56, %v9536_v53  ;;  %v2382_v29 = vadd.f32 %v2381_v5, %v1557_v61  ;;  %v12505_v56 = vld [vmem:[#allocation9 + $0x18c] sm:$0xf]  ;;  %v9872_v5 = vld [vmem:[#allocation9 + $0x3c8] sm:$0xf] }
 0x267   :  { %v2444_v26 = vmul.f32 0.01, %v2428_v21  ;;  %vm2436_vm7 = vcmp.gt.f32.partialorder %v2428_v21, 0.0 }
 0x269   :  { %3357 = vmatpush.bf16.msrb.mxu0 %v9425_v57  ;;  %3367 = vmatpush.bf16.msrb.mxu1 %v9617_v47  ;;  %v2452_v34 = vsel %vm2436_vm7, %v2428_v21, %v2444_v26  ;;  %v9728_v57 = vld [vmem:[#allocation9 + $0x2a8] sm:$0xf]  ;;  %v2393_v47 = vpop.f32.mrf.mxu1  ;;  %v12539_v21 = vld [vmem:[#allocation9 + $0x294] sm:$0xf0]  ;;  %v9426_v26 = vld [vmem:[#allocation9 + $0x58] sm:$0xf0] }
 0x26a   :  { %v2367_v10 = vpop.f32.mrf.mxu3  ;;  %3343 = vmatpush.bf16.msra.mxu3 %v9805_v49  ;;  %v9729_v63 = vor.u32 %v12543_v58, %v9728_v57  ;;  %v9520_v49 = vld [vmem:[#allocation9 + $0x108] sm:$0xf]  ;;  %v2394_v22 = vadd.f32 %v2393_v47, %v2380_v8  ;;  %v9586_v57 = vld [vmem:[#allocation9 + $0x198] sm:$0xf0]  ;;  %v12523_v58 = vld [vmem:[#allocation9 + $0x214] sm:$0xf0] }
 0x26b   :  { %v2368_v13 = vadd.f32 %v2367_v10, %v2354_v20  ;;  %v9712_v20 = vld [vmem:[#allocation9 + $0x288] sm:$0xf]  ;;  %v9634_v10 = vld [vmem:[#allocation9 + $0x1f8] sm:$0xf0] }
 0x26c   :  { %v9713_v12 = vor.u32 %v12539_v21, %v9712_v20  ;;  %v2409_v46 = vpop.f32.mrf.mxu2  ;;  %v9648_v47 = vld [vmem:[#allocation9 + $0x208] sm:$0xf]  ;;  %v9762_v21 = vld [vmem:[#allocation9 + $0x2f8] sm:$0xf0] }
 0x26d   :  { %v2432_v0 = vadd.f32 %v2368_v13, %v13813_v48  ;;  %3358 = vmatpush.bf16.msrb.mxu0 %v9409_v16  ;;  %3368 = vmatpush.bf16.msrb.mxu1 %v9601_v7  ;;  %v9569_v48 = vor.u32 %v12503_v25, %v9568_v24  ;;  %v12491_v16 = vld [vmem:[#allocation9 + $0x114] sm:$0xf0]  ;;  %v12469_v7 = vld [vmem:[#allocation9 + $0x6c] sm:$0xf] }
 0x26e   :  { %3344 = vmatpush.bf16.msra.mxu3 %v9789_v23  ;;  %v9521_v11 = vor.u32 %v12491_v16, %v9520_v49  ;;  %v9445_v13 = vor.u32 %v12469_v7, %v9442_v6  ;;  %v9637_v23 = vor.u32 %v12517_v9, %v9634_v10  ;;  %v12535_v24 = vld [vmem:[#allocation9 + $0x274] sm:$0xf0]  ;;  %v12465_v25 = vld [vmem:[#allocation9 + $0x4c] sm:$0xf]  ;;  %v9570_v49 = vld [vmem:[#allocation9 + $0x178] sm:$0xf0]  ;;  %v9649_v7 = vor.u32 %v12523_v58, %v9648_v47 }
 0x26f   :  { %vm2440_vm8 = vcmp.gt.f32.partialorder %v2432_v0, 0.0  ;;  %v2448_v15 = vmul.f32 0.01, %v2432_v0  ;;  %v9429_v32 = vor.u32 %v12465_v25, %v9426_v26  ;;  %v12549_v16 = vld [vmem:[#allocation9 + $0x2ec] sm:$0xf] }
 0x270   :  { %v9856_v26 = vld [vmem:[#allocation9 + $0x3a8] sm:$0xf]  ;;  %v12525_v47 = vld [vmem:[#allocation9 + $0x22c] sm:$0xf]  ;;  %v9666_v58 = vld [vmem:[#allocation9 + $0x238] sm:$0xf0] }
 0x271   :  { %v2456_v35 = vsel %vm2440_vm8, %v2432_v0, %v2448_v15  ;;  %3359 = vmatpush.bf16.msrb.mxu0 %v9393_v28  ;;  %3369 = vmatpush.bf16.msrb.mxu1 %v9585_v27  ;;  %v2408_v0 = vadd.f32 %v2407_v62, %v2394_v22  ;;  %v12513_v28 = vld [vmem:[#allocation9 + $0x1cc] sm:$0xf]  ;;  %v9618_v27 = vld [vmem:[#allocation9 + $0x1d8] sm:$0xf0]  ;;  %v2395_v55 = vpop.f32.mrf.mxu1  ;;  %v12531_v15 = vld [vmem:[#allocation9 + $0x254] sm:$0xf0] }
 0x272   :  { %v13861_v36 = vpack.c.bf16 %v2456_v35, %v2452_v34  ;;  %3345 = vmatpush.bf16.msra.mxu3 %v9773_v33  ;;  %v9621_v33 = vor.u32 %v12513_v28, %v9618_v27  ;;  %v12461_v34 = vld [vmem:[#allocation9 + $0x2c] sm:$0xf]  ;;  %v9410_v35 = vld [vmem:[#allocation9 + $0x38] sm:$0xf0]  ;;  %v9681_v60 = vor.u32 %v12531_v15, %v9680_v1  ;;  %v12579_v22 = vld [vmem:[#allocation9 + $0x3d4] sm:$0xf0] }
 0x273   :  { %v9413_v42 = vor.u32 %v12461_v34, %v9410_v35  ;;  %v12493_v28 = vld [vmem:[#allocation9 + $0x12c] sm:$0xf]  ;;  %v9538_v27 = vld [vmem:[#allocation9 + $0x138] sm:$0xf0]  ;;  %v12571_v1 = vld [vmem:[#allocation9 + $0x394] sm:$0xf0] }
 0x274   :  { %3276 = vmatmul.bf16.vlgmr.msrb.gmra.mxu2 %v13861_v36  ;;  %3318 = vmatmul.bf16.vlgmr.msra.gmra.mxu1 %v13855_v43  ;;  %v12489_v15 = vld [vmem:[#allocation9 + $0x10c] sm:$0xf]  ;;  %v9714_v34 = vld [vmem:[#allocation9 + $0x298] sm:$0xf0] }
 0x275   :  { %3408 = vmatpush.bf16.msra.mxu0 %v9509_v31  ;;  %3370 = vmatpush.bf16.msrb.mxu1 %v9569_v48  ;;  %v9697_v31 = vor.u32 %v12535_v24, %v9696_v18  ;;  %v2396_v48 = vadd.f32 %v2395_v55, %v2382_v29  ;;  %v12545_v18 = vld [vmem:[#allocation9 + $0x2cc] sm:$0xf]  ;;  %v9730_v55 = vld [vmem:[#allocation9 + $0x2b8] sm:$0xf0] }
 0x276   :  { %3360 = vmatmul.bf16.vlgmr.msrb.gmra.mxu0 %v13849_v52  ;;  %3380 = vmatpush.bf16.msrb.mxu2 %v9761_v37  ;;  %v12509_v37 = vld [vmem:[#allocation9 + $0x1ac] sm:$0xf] }
 0x277   :  { %v2410_v40 = vadd.f32 %v2409_v46, %v2396_v48  ;;  %v12541_v29 = vld [vmem:[#allocation9 + $0x2ac] sm:$0xf]  ;;  %v9522_v46 = vld [vmem:[#allocation9 + $0x118] sm:$0xf0] }
 0x278   :  { %v9525_v48 = vor.u32 %v12489_v15, %v9522_v46  ;;  %v10024_v46 = vld [vmem:[#allocation12 + $0x100] sm:$0xf] }
 0x279   :  { %3409 = vmatpush.bf16.msra.mxu0 %v9493_v38  ;;  %3371 = vmatpush.bf16.msrb.mxu1 %v9553_v4  ;;  %v9602_v38 = vld [vmem:[#allocation9 + $0x1b8] sm:$0xf0]  ;;  %v12527_v4 = vld [vmem:[#allocation9 + $0x234] sm:$0xf0] }
 0x27a   :  { %3381 = vmatpush.bf16.msrb.mxu2 %v9745_v51  ;;  %v9605_v50 = vor.u32 %v12509_v37, %v9602_v38  ;;  %v12457_v51 = vld [vmem:[#allocation9 + $0xc] sm:$0xf]  ;;  %v9824_v38 = vld [vmem:[#allocation9 + $0x368] sm:$0xf] }
 0x27d   :  { %3410 = vmatpush.bf16.msra.mxu0 %v9477_v39  ;;  %3372 = vmatpush.bf16.msrb.mxu1 %v9537_v14  ;;  %v9394_v39 = vld [vmem:[#allocation9 + $0x18] sm:$0xf0]  ;;  %v12583_v14 = vld [vmem:[#allocation9 + $0x3f4] sm:$0xf0] }
 0x27e   :  { %3382 = vmatpush.bf16.msrb.mxu2 %v9729_v63  ;;  %v9397_v62 = vor.u32 %v12457_v51, %v9394_v39  ;;  %v12501_v63 = vld [vmem:[#allocation9 + $0x16c] sm:$0xf]  ;;  %v9682_v51 = vld [vmem:[#allocation9 + $0x258] sm:$0xf0] }
 0x27f   :  { %v9573_v10 = vor.u32 %v12501_v63, %v9570_v49  ;;  %v12581_v63 = vld [vmem:[#allocation9 + $0x3ec] sm:$0xf] }
 0x281   :  { %3411 = vmatpush.bf16.msra.mxu0 %v9461_v3  ;;  %3373 = vmatpush.bf16.msrb.mxu1 %v9521_v11  ;;  %v9589_v3 = vor.u32 %v12505_v56, %v9586_v57  ;;  %v9765_v11 = vor.u32 %v12549_v16, %v9762_v21  ;;  %v9792_v56 = vld [vmem:[#allocation9 + $0x328] sm:$0xf]  ;;  %v12559_v57 = vld [vmem:[#allocation9 + $0x334] sm:$0xf0]  ;;  %v9874_v21 = vld [vmem:[#allocation9 + $0x3d8] sm:$0xf0] }
 0x282   :  { %v2421_v19 = vpop.f32.mrf.mxu3  ;;  %3383 = vmatpush.bf16.msrb.mxu2 %v9713_v12  ;;  %v12497_v12 = vld [vmem:[#allocation9 + $0x14c] sm:$0xf] }
 0x283   :  { %v2422_v30 = vadd.f32 %v2421_v19, %v2408_v0  ;;  %v9746_v19 = vld [vmem:[#allocation9 + $0x2d8] sm:$0xf0]  ;;  %v12575_v0 = vld [vmem:[#allocation9 + $0x3b4] sm:$0xf0] }
 0x284   :  { %3332 = vmatmul.bf16.vlgmr.msra.gmra.mxu2 %v13861_v36  ;;  %3374 = vmatmul.bf16.vlgmr.msrb.gmra.mxu1 %v13855_v43  ;;  %v9749_v25 = vor.u32 %v12545_v18, %v9746_v19  ;;  %v12561_v18 = vld [vmem:[#allocation9 + $0x34c] sm:$0xf]  ;;  %v9810_v19 = vld [vmem:[#allocation9 + $0x358] sm:$0xf0] }
 0x285   :  { %3412 = vmatpush.bf16.msra.mxu0 %v9445_v13  ;;  %3422 = vmatpush.bf16.msra.mxu1 %v9637_v23  ;;  %v2429_v41 = vadd.f32 %v2422_v30, %v13827_v44  ;;  %v9665_v44 = vor.u32 %v12527_v4, %v9664_v2  ;;  %v9554_v13 = vld [vmem:[#allocation9 + $0x158] sm:$0xf0]  ;;  %v9873_v23 = vor.u32 %v12579_v22, %v9872_v5  ;;  %v12529_v4 = vld [vmem:[#allocation9 + $0x24c] sm:$0xf] }
 0x286   :  { %3384 = vmatpush.bf16.msrb.mxu2 %v9697_v31  ;;  %v9557_v24 = vor.u32 %v12497_v12, %v9554_v13  ;;  %v9857_v30 = vor.u32 %v12575_v0, %v9856_v26  ;;  %v9733_v31 = vor.u32 %v12541_v29, %v9730_v55  ;;  %v12565_v22 = vld [vmem:[#allocation9 + $0x36c] sm:$0xf]  ;;  %v9826_v12 = vld [vmem:[#allocation9 + $0x378] sm:$0xf0]  ;;  %v10120_v26 = vld [vmem:[#allocation12 + $0x1c0] sm:$0xf] }
 0x287   :  { %v2445_v54 = vmul.f32 0.01, %v2429_v41  ;;  %vm2437_vm9 = vcmp.gt.f32.partialorder %v2429_v41, 0.0  ;;  %v9829_v13 = vor.u32 %v12565_v22, %v9826_v12  ;;  %v12644_v0 = vld [vmem:[#allocation12 + $0x1dc] sm:$0xf0] }
 0x288   :  { %v9778_v29 = vld [vmem:[#allocation9 + $0x318] sm:$0xf0]  ;;  %v12764_v22 = vld [vmem:[#allocation12 + $0x59c] sm:$0xf0]  ;;  %v12624_v12 = vld [vmem:[#allocation12 + $0x144] sm:$0xf] }
 0x289   :  { %3413 = vmatpush.bf16.msra.mxu0 %v9429_v32  ;;  %3423 = vmatpush.bf16.msra.mxu1 %v9621_v33  ;;  %v2453_v6 = vsel %vm2437_vm9, %v2429_v41, %v2445_v54  ;;  %v9840_v32 = vld [vmem:[#allocation9 + $0x388] sm:$0xf]  ;;  %v12537_v33 = vld [vmem:[#allocation9 + $0x28c] sm:$0xf]  ;;  %v9698_v41 = vld [vmem:[#allocation9 + $0x278] sm:$0xf0]  ;;  %v9669_v54 = vor.u32 %v12525_v47, %v9666_v58 }
 0x28a   :  { %v2423_v17 = vpop.f32.mrf.mxu3  ;;  %3385 = vmatpush.bf16.msrb.mxu2 %v9681_v60  ;;  %v9841_v35 = vor.u32 %v12571_v1, %v9840_v32  ;;  %v9717_v37 = vor.u32 %v12537_v33, %v9714_v34  ;;  %v12567_v60 = vld [vmem:[#allocation9 + $0x374] sm:$0xf0]  ;;  %v10056_v32 = vld [vmem:[#allocation12 + $0x140] sm:$0xf] }
 0x28b   :  { %v2424_v53 = vadd.f32 %v2423_v17, %v2410_v40  ;;  %v12533_v40 = vld [vmem:[#allocation9 + $0x26c] sm:$0xf]  ;;  %v9808_v17 = vld [vmem:[#allocation9 + $0x348] sm:$0xf]  ;;  %v12628_v1 = vld [vmem:[#allocation12 + $0x15c] sm:$0xf0] }
 0x28c   :  { %v9701_v2 = vor.u32 %v12533_v40, %v9698_v41  ;;  %v10057_v15 = vor.u32 %v12628_v1, %v10056_v32  ;;  %v12620_v33 = vld [vmem:[#allocation12 + $0x11c] sm:$0xf0] }
 0x28d   :  { %v2433_v61 = vadd.f32 %v2424_v53, %v13829_v45  ;;  %3414 = vmatpush.bf16.msra.mxu0 %v9413_v42  ;;  %3424 = vmatpush.bf16.msra.mxu1 %v9605_v50  ;;  %v9889_v45 = vor.u32 %v12583_v14, %v9888_v59  ;;  %v9825_v42 = vor.u32 %v12567_v60, %v9824_v38  ;;  %v12563_v50 = vld [vmem:[#allocation9 + $0x354] sm:$0xf0]  ;;  %v9650_v14 = vld [vmem:[#allocation9 + $0x218] sm:$0xf0]  ;;  %v12708_v60 = vld [vmem:[#allocation12 + $0x3dc] sm:$0xf0] }
 0x28e   :  { %3386 = vmatpush.bf16.msrb.mxu2 %v9665_v44  ;;  %v9809_v39 = vor.u32 %v12563_v50, %v9808_v17  ;;  %v9685_v53 = vor.u32 %v12529_v4, %v9682_v51  ;;  %v9793_v59 = vor.u32 %v12559_v57, %v9792_v56  ;;  %v12555_v44 = vld [vmem:[#allocation9 + $0x314] sm:$0xf0]  ;;  %v10025_v34 = vor.u32 %v12620_v33, %v10024_v46  ;;  %v9960_v41 = vld [vmem:[#allocation12 + $0x80] sm:$0xf]  ;;  %v9994_v46 = vld [vmem:[#allocation12 + $0xe0] sm:$0xf0] }
 0x28f   :  { %vm2441_vm10 = vcmp.gt.f32.partialorder %v2433_v61, 0.0  ;;  %v2449_v20 = vmul.f32 0.01, %v2433_v61  ;;  %v12700_v50 = vld [vmem:[#allocation12 + $0x39c] sm:$0xf0] }
 0x290   :  { %v12596_v51 = vld [vmem:[#allocation12 + $0x5c] sm:$0xf0]  ;;  %v12704_v33 = vld [vmem:[#allocation12 + $0x3c4] sm:$0xf] }
 0x291   :  { %v2457_v8 = vsel %vm2441_vm10, %v2433_v61, %v2449_v20  ;;  %3415 = vmatpush.bf16.msra.mxu0 %v9397_v62  ;;  %3425 = vmatpush.bf16.msra.mxu1 %v9589_v3  ;;  %v9776_v61 = vld [vmem:[#allocation9 + $0x308] sm:$0xf]  ;;  %v12521_v62 = vld [vmem:[#allocation9 + $0x20c] sm:$0xf]  ;;  %v9890_v3 = vld [vmem:[#allocation9 + $0x3f8] sm:$0xf0] }
 0x292   :  { %v13871_v9 = vpack.c.bf16 %v2457_v8, %v2453_v6  ;;  %3387 = vmatpush.bf16.msrb.mxu2 %v9649_v7  ;;  %v9777_v49 = vor.u32 %v12555_v44, %v9776_v61  ;;  %v9893_v16 = vor.u32 %v12581_v63, %v9890_v3  ;;  %v12577_v20 = vld [vmem:[#allocation9 + $0x3cc] sm:$0xf]  ;;  %v9858_v8 = vld [vmem:[#allocation9 + $0x3b8] sm:$0xf0]  ;;  %v12692_v56 = vld [vmem:[#allocation12 + $0x35c] sm:$0xf0] }
 0x293   :  { %v9877_v7 = vor.u32 %v12577_v20, %v9874_v21  ;;  %v12573_v6 = vld [vmem:[#allocation9 + $0x3ac] sm:$0xf]  ;;  %v9896_v47 = vld [vmem:[#allocation12] sm:$0xf]  ;;  %v12640_v44 = vld [vmem:[#allocation12 + $0x1c4] sm:$0xf] }
 0x294   :  { %3290 = vmatmul.bf16.vlgmr.msrb.gmra.mxu3 %v13871_v9  ;;  %3416 = vmatmul.bf16.vlgmr.msra.gmra.mxu0 %v13849_v52  ;;  %v9541_v52 = vor.u32 %v12493_v28, %v9538_v27  ;;  %v10121_v28 = vor.u32 %v12644_v0, %v10120_v26  ;;  %v12553_v27 = vld [vmem:[#allocation9 + $0x30c] sm:$0xf]  ;;  %v12588_v58 = vld [vmem:[#allocation12 + $0x1c] sm:$0xf0] }
 0x295   :  { %3394 = vmatpush.bf16.msrb.mxu3 %v9889_v45  ;;  %3426 = vmatpush.bf16.msra.mxu1 %v9573_v10  ;;  %v9861_v45 = vor.u32 %v12573_v6, %v9858_v8  ;;  %v12569_v10 = vld [vmem:[#allocation9 + $0x38c] sm:$0xf]  ;;  %v9781_v55 = vor.u32 %v12553_v27, %v9778_v29  ;;  %v12684_v61 = vld [vmem:[#allocation12 + $0x31c] sm:$0xf0]  ;;  %v10090_v6 = vld [vmem:[#allocation12 + $0x1a0] sm:$0xf0] }
 0x296   :  { %3436 = vmatpush.bf16.msra.mxu2 %v9765_v11  ;;  %v9842_v11 = vld [vmem:[#allocation9 + $0x398] sm:$0xf0]  ;;  %5022 = vmatpush.bf16.msrb.mxu0 %v10121_v28  ;;  %v10248_v3 = vld [vmem:[#allocation12 + $0x2c0] sm:$0xf]  ;;  %v10026_v28 = vld [vmem:[#allocation12 + $0x120] sm:$0xf0] }
 0x297   :  { %3388 = vmatmul.bf16.vlgmr.msrb.gmra.mxu2 %v13861_v36  ;;  %v9845_v5 = vor.u32 %v12569_v10, %v9842_v11  ;;  %v12668_v10 = vld [vmem:[#allocation12 + $0x29c] sm:$0xf0] }
 0x298   :  { %v10600_v11 = vld [vmem:[#allocation12 + $0x580] sm:$0xf] }
 0x299   :  { %3395 = vmatpush.bf16.msrb.mxu3 %v9873_v23  ;;  %3427 = vmatpush.bf16.msra.mxu1 %v9557_v24  ;;  %v9813_v23 = vor.u32 %v12561_v18, %v9810_v19  ;;  %v12557_v24 = vld [vmem:[#allocation9 + $0x32c] sm:$0xf]  ;;  %v10601_v18 = vor.u32 %v12764_v22, %v10600_v11  ;;  %v12756_v0 = vld [vmem:[#allocation12 + $0x55c] sm:$0xf0]  ;;  %v10634_v22 = vld [vmem:[#allocation12 + $0x5e0] sm:$0xf0] }
 0x29a   :  { %3437 = vmatpush.bf16.msra.mxu2 %v9749_v25  ;;  %v9794_v25 = vld [vmem:[#allocation9 + $0x338] sm:$0xf0]  ;;  %v12748_v32 = vld [vmem:[#allocation12 + $0x51c] sm:$0xf0] }
 0x29d   :  { %3396 = vmatpush.bf16.msrb.mxu3 %v9857_v30  ;;  %3428 = vmatpush.bf16.msra.mxu1 %v9541_v52  ;;  %v10088_v30 = vld [vmem:[#allocation12 + $0x180] sm:$0xf] }
 0x29e   :  { %3438 = vmatpush.bf16.msra.mxu2 %v9733_v31  ;;  %v12636_v52 = vld [vmem:[#allocation12 + $0x19c] sm:$0xf0] }
 0x29f   :  { %v10089_v31 = vor.u32 %v12636_v52, %v10088_v30  ;;  %v12652_v30 = vld [vmem:[#allocation12 + $0x21c] sm:$0xf0] }
 0x2a0   :  { %v10536_v52 = vld [vmem:[#allocation12 + $0x500] sm:$0xf] }
 0x2a1   :  { %3397 = vmatpush.bf16.msrb.mxu3 %v9841_v35  ;;  %3429 = vmatpush.bf16.msra.mxu1 %v9525_v48  ;;  %v9992_v35 = vld [vmem:[#allocation12 + $0xc0] sm:$0xf]  ;;  %v10537_v1 = vor.u32 %v12748_v32, %v10536_v52  ;;  %v12656_v52 = vld [vmem:[#allocation12 + $0x244] sm:$0xf] }
 0x2a2   :  { %3439 = vmatpush.bf16.msra.mxu2 %v9717_v37  ;;  %5023 = vmatpush.bf16.msrb.mxu0 %v10089_v31  ;;  %v12612_v48 = vld [vmem:[#allocation12 + $0xdc] sm:$0xf0]  ;;  %v12752_v32 = vld [vmem:[#allocation12 + $0x544] sm:$0xf] }
 0x2a3   :  { %v10376_v37 = vld [vmem:[#allocation12 + $0x3c0] sm:$0xf]  ;;  %v9993_v38 = vor.u32 %v12612_v48, %v9992_v35  ;;  %v10378_v35 = vld [vmem:[#allocation12 + $0x3e0] sm:$0xf0] }
 0x2a4   :  { %3346 = vmatmul.bf16.vlgmr.msra.gmra.mxu3 %v13871_v9  ;;  %3430 = vmatmul.bf16.vlgmr.msra.gmra.mxu1 %v13855_v43  ;;  %v9653_v43 = vor.u32 %v12521_v62, %v9650_v14  ;;  %v10377_v40 = vor.u32 %v12708_v60, %v10376_v37  ;;  %v10122_v62 = vld [vmem:[#allocation12 + $0x1e0] sm:$0xf0]  ;;  %v10381_v48 = vor.u32 %v12704_v33, %v10378_v35  ;;  %v10504_v37 = vld [vmem:[#allocation12 + $0x4c0] sm:$0xf] }
 0x2a5   :  { %3398 = vmatpush.bf16.msrb.mxu3 %v9825_v42  ;;  %v12604_v42 = vld [vmem:[#allocation12 + $0x9c] sm:$0xf0]  ;;  %v10125_v63 = vor.u32 %v12640_v44, %v10122_v62  ;;  %v12584_v44 = vld [vmem:[#allocation12 + $0x4] sm:$0xf] }
 0x2a6   :  { %3440 = vmatpush.bf16.msra.mxu2 %v9701_v2  ;;  %5024 = vmatpush.bf16.msrb.mxu0 %v10057_v15  ;;  %v10344_v2 = vld [vmem:[#allocation12 + $0x380] sm:$0xf]  ;;  %v9961_v17 = vor.u32 %v12604_v42, %v9960_v41  ;;  %v12608_v15 = vld [vmem:[#allocation12 + $0xc4] sm:$0xf] }
 0x2a7   :  { %5036 = vmatpush.bf16.msrb.mxu1 %v10377_v40  ;;  %v10345_v4 = vor.u32 %v12700_v50, %v10344_v2  ;;  %v12600_v40 = vld [vmem:[#allocation12 + $0x84] sm:$0xf]  ;;  %v12812_v35 = vld [vmem:[#allocation12 + $0x71c] sm:$0xf0] }
 0x2a8   :  { %v9962_v41 = vld [vmem:[#allocation12 + $0xa0] sm:$0xf0] }
 0x2a9   :  { %3399 = vmatpush.bf16.msrb.mxu3 %v9809_v39  ;;  %v10312_v39 = vld [vmem:[#allocation12 + $0x340] sm:$0xf]  ;;  %v12696_v42 = vld [vmem:[#allocation12 + $0x384] sm:$0xf]  ;;  %v9965_v2 = vor.u32 %v12600_v40, %v9962_v41 }
 0x2aa   :  { %3441 = vmatpush.bf16.msra.mxu2 %v9685_v53  ;;  %5025 = vmatpush.bf16.msrb.mxu0 %v10025_v34  ;;  %v10313_v57 = vor.u32 %v12692_v56, %v10312_v39  ;;  %v9997_v34 = vor.u32 %v12608_v15, %v9994_v46  ;;  %v12592_v39 = vld [vmem:[#allocation12 + $0x44] sm:$0xf] }
 0x2ab   :  { %5037 = vmatpush.bf16.msrb.mxu1 %v10345_v4  ;;  %v10472_v4 = vld [vmem:[#allocation12 + $0x480] sm:$0xf]  ;;  %v12688_v56 = vld [vmem:[#allocation12 + $0x344] sm:$0xf] }
 0x2ac   :  { %v9898_v62 = vld [vmem:[#allocation12 + $0x20] sm:$0xf0] }
 0x2ad   :  { %3400 = vmatpush.bf16.msrb.mxu3 %v9793_v59  ;;  %v10280_v59 = vld [vmem:[#allocation12 + $0x300] sm:$0xf]  ;;  %v10570_v15 = vld [vmem:[#allocation12 + $0x560] sm:$0xf0] }
 0x2ae   :  { %3442 = vmatpush.bf16.msra.mxu2 %v9669_v54  ;;  %5026 = vmatpush.bf16.msrb.mxu0 %v9993_v38  ;;  %v9897_v54 = vor.u32 %v12588_v58, %v9896_v47  ;;  %v10281_v14 = vor.u32 %v12684_v61, %v10280_v59  ;;  %v12740_v38 = vld [vmem:[#allocation12 + $0x4dc] sm:$0xf0]  ;;  %v10314_v47 = vld [vmem:[#allocation12 + $0x360] sm:$0xf0]  ;;  %v10573_v33 = vor.u32 %v12752_v32, %v10570_v15 }
 0x2af   :  { %5038 = vmatpush.bf16.msrb.mxu1 %v10313_v57  ;;  %v10505_v60 = vor.u32 %v12740_v38, %v10504_v37  ;;  %v10317_v58 = vor.u32 %v12688_v56, %v10314_v47  ;;  %v10440_v59 = vld [vmem:[#allocation12 + $0x440] sm:$0xf]  ;;  %v12648_v38 = vld [vmem:[#allocation12 + $0x204] sm:$0xf] }
 0x2b0   :  { %v12744_v40 = vld [vmem:[#allocation12 + $0x504] sm:$0xf] }
 0x2b1   :  { %3401 = vmatpush.bf16.msrb.mxu3 %v9777_v49  ;;  %v12676_v49 = vld [vmem:[#allocation12 + $0x2dc] sm:$0xf0] }
 0x2b2   :  { %3443 = vmatpush.bf16.msra.mxu2 %v9653_v43  ;;  %5027 = vmatpush.bf16.msrb.mxu0 %v9961_v17  ;;  %v10632_v43 = vld [vmem:[#allocation12 + $0x5c0] sm:$0xf]  ;;  %v10249_v20 = vor.u32 %v12676_v49, %v10248_v3  ;;  %v10346_v17 = vld [vmem:[#allocation12 + $0x3a0] sm:$0xf0] }
 0x2b3   :  { %5039 = vmatpush.bf16.msrb.mxu1 %v10281_v14  ;;  %v10349_v50 = vor.u32 %v12696_v42, %v10346_v17  ;;  %v12680_v14 = vld [vmem:[#allocation12 + $0x304] sm:$0xf] }
 0x2b4   :  { %3402 = vmatmul.bf16.vlgmr.msrb.gmra.mxu3 %v13871_v9  ;;  %v10282_v3 = vld [vmem:[#allocation12 + $0x320] sm:$0xf0] }
 0x2b5   :  { %3450 = vmatpush.bf16.msra.mxu3 %v9893_v16  ;;  %3444 = vmatmul.bf16.vlgmr.msra.gmra.mxu2 %v13861_v36  ;;  %v9797_v36 = vor.u32 %v12557_v24, %v9794_v25  ;;  %v12772_v16 = vld [vmem:[#allocation12 + $0x5dc] sm:$0xf0]  ;;  %v10285_v49 = vor.u32 %v12680_v14, %v10282_v3  ;;  %v10538_v42 = vld [vmem:[#allocation12 + $0x520] sm:$0xf0] }
 0x2b6   :  { %v10633_v21 = vor.u32 %v12772_v16, %v10632_v43  ;;  %v12660_v24 = vld [vmem:[#allocation12 + $0x25c] sm:$0xf0] }
 0x2b7   :  { %5040 = vmatpush.bf16.msrb.mxu1 %v10249_v20  ;;  %v10568_v25 = vld [vmem:[#allocation12 + $0x540] sm:$0xf] }
 0x2b8   :  { %5050 = vmatpush.bf16.msrb.mxu2 %v10633_v21  ;;  %v10569_v27 = vor.u32 %v12756_v0, %v10568_v25  ;;  %v10408_v43 = vld [vmem:[#allocation12 + $0x400] sm:$0xf]  ;;  %v12664_v25 = vld [vmem:[#allocation12 + $0x284] sm:$0xf] }
 0x2b9   :  { %3451 = vmatpush.bf16.msra.mxu3 %v9877_v7  ;;  %v12632_v7 = vld [vmem:[#allocation12 + $0x184] sm:$0xf]  ;;  %v12716_v16 = vld [vmem:[#allocation12 + $0x41c] sm:$0xf0] }
 0x2ba   :  { %v10093_v8 = vor.u32 %v12632_v7, %v10090_v6  ;;  %v10888_v20 = vld [vmem:[#allocation12 + $0x7c0] sm:$0xf]  ;;  %v10409_v7 = vor.u32 %v12716_v16, %v10408_v43  ;;  %v12760_v0 = vld [vmem:[#allocation12 + $0x584] sm:$0xf] }
 0x2bb   :  { %v12836_v6 = vld [vmem:[#allocation12 + $0x7dc] sm:$0xf0] }
 0x2bc   :  { %5051 = vmatpush.bf16.msrb.mxu2 %v10601_v18  ;;  %v10856_v18 = vld [vmem:[#allocation12 + $0x780] sm:$0xf] }
 0x2bd   :  { %3452 = vmatpush.bf16.msra.mxu3 %v9861_v45  ;;  %v10216_v45 = vld [vmem:[#allocation12 + $0x280] sm:$0xf] }
 0x2c0   :  { %5052 = vmatpush.bf16.msrb.mxu2 %v10569_v27 }
 0x2c1   :  { %3453 = vmatpush.bf16.msra.mxu3 %v9845_v5  ;;  %v10217_v5 = vor.u32 %v12668_v10, %v10216_v45  ;;  %v10250_v45 = vld [vmem:[#allocation12 + $0x2e0] sm:$0xf0]  ;;  %v10889_v10 = vor.u32 %v12836_v6, %v10888_v20  ;;  %v10696_v20 = vld [vmem:[#allocation12 + $0x640] sm:$0xf] }
 0x2c3   :  { %5041 = vmatpush.bf16.msrb.mxu1 %v10217_v5  ;;  %v12768_v5 = vld [vmem:[#allocation12 + $0x5c4] sm:$0xf] }
 0x2c4   :  { %5053 = vmatpush.bf16.msrb.mxu2 %v10537_v1 }
 0x2c5   :  { %3454 = vmatpush.bf16.msra.mxu3 %v9829_v13  ;;  %v10058_v13 = vld [vmem:[#allocation12 + $0x160] sm:$0xf0] }
 0x2c6   :  { %v10061_v19 = vor.u32 %v12624_v12, %v10058_v13  ;;  %v10637_v13 = vor.u32 %v12768_v5, %v10634_v22  ;;  %v10128_v22 = vld [vmem:[#allocation12 + $0x1c8] sm:$0xf] }
 0x2c8   :  { %5054 = vmatpush.bf16.msrb.mxu2 %v10505_v60  ;;  %v10154_v60 = vld [vmem:[#allocation12 + $0x220] sm:$0xf0] }
 0x2c9   :  { %3455 = vmatpush.bf16.msra.mxu3 %v9813_v23  ;;  %v10184_v23 = vld [vmem:[#allocation12 + $0x240] sm:$0xf]  ;;  %v10157_v41 = vor.u32 %v12648_v38, %v10154_v60 }
 0x2ca   :  { %v10185_v26 = vor.u32 %v12660_v24, %v10184_v23 }
 0x2cc   :  { %5042 = vmatpush.bf16.msrb.mxu1 %v10185_v26  ;;  %v10218_v26 = vld [vmem:[#allocation12 + $0x2a0] sm:$0xf0] }
 0x2cd   :  { %3456 = vmatpush.bf16.msra.mxu3 %v9797_v36  ;;  %v12616_v36 = vld [vmem:[#allocation12 + $0x104] sm:$0xf] }
 0x2ce   :  { %v10029_v29 = vor.u32 %v12616_v36, %v10026_v28  ;;  %v10221_v36 = vor.u32 %v12664_v25, %v10218_v26  ;;  %v10602_v28 = vld [vmem:[#allocation12 + $0x5a0] sm:$0xf0]  ;;  %v12780_v25 = vld [vmem:[#allocation12 + $0x61c] sm:$0xf0] }
 0x2cf   :  { %v10605_v27 = vor.u32 %v12760_v0, %v10602_v28  ;;  %v10410_v28 = vld [vmem:[#allocation12 + $0x420] sm:$0xf0] }
 0x2d1   :  { %3457 = vmatpush.bf16.msra.mxu3 %v9781_v55  ;;  %v10152_v55 = vld [vmem:[#allocation12 + $0x200] sm:$0xf]  ;;  %v13881_v21 = vpop.f32.mrf.mxu0 }
 0x2d2   :  { %v10153_v31 = vor.u32 %v12652_v30, %v10152_v55  ;;  %v12820_v55 = vld [vmem:[#allocation12 + $0x75c] sm:$0xf0] }
 0x2d4   :  { %3458 = vmatmul.bf16.vlgmr.msra.gmra.mxu3 %v13871_v9  ;;  %v9928_v9 = vld [vmem:[#allocation12 + $0x40] sm:$0xf]  ;;  %5043 = vmatpush.bf16.msrb.mxu1 %v10153_v31  ;;  %v10186_v31 = vld [vmem:[#allocation12 + $0x260] sm:$0xf0] }
 0x2d5   :  { %v9929_v53 = vor.u32 %v12596_v51, %v9928_v9  ;;  %v12732_v9 = vld [vmem:[#allocation12 + $0x49c] sm:$0xf0]  ;;  %5064 = vmatpush.bf16.msrb.mxu3 %v10889_v10  ;;  %v10189_v1 = vor.u32 %v12656_v52, %v10186_v31  ;;  %v10442_v10 = vld [vmem:[#allocation12 + $0x460] sm:$0xf0] }
 0x2d6   :  { %v10473_v51 = vor.u32 %v12732_v9, %v10472_v4  ;;  %v10760_v4 = vld [vmem:[#allocation12 + $0x6c0] sm:$0xf]  ;;  %v10890_v52 = vld [vmem:[#allocation12 + $0x7e0] sm:$0xf0] }
 0x2d7   :  { %5028 = vmatpush.bf16.msrb.mxu0 %v9929_v53  ;;  %v9930_v53 = vld [vmem:[#allocation12 + $0x60] sm:$0xf0]  ;;  %v12804_v9 = vld [vmem:[#allocation12 + $0x6dc] sm:$0xf0] }
 0x2d8   :  { %5092 = vmatpush.bf16.msra.mxu1 %v10381_v48  ;;  %v9933_v57 = vor.u32 %v12592_v39, %v9930_v53  ;;  %5055 = vmatpush.bf16.msrb.mxu2 %v10473_v51  ;;  %v10761_v51 = vor.u32 %v12804_v9, %v10760_v4  ;;  %v12736_v39 = vld [vmem:[#allocation12 + $0x4c4] sm:$0xf] }
 0x2d9   :  { %v3251_v46 = vpop.f32.mrf.mxu0  ;;  %v10506_v53 = vld [vmem:[#allocation12 + $0x4e0] sm:$0xf0] }
 0x2da   :  { %v12816_v4 = vld [vmem:[#allocation12 + $0x744] sm:$0xf] }
 0x2db   :  { %5029 = vmatpush.bf16.msrb.mxu0 %v9897_v54  ;;  %v12724_v54 = vld [vmem:[#allocation12 + $0x45c] sm:$0xf0]  ;;  %v10826_v9 = vld [vmem:[#allocation12 + $0x760] sm:$0xf0] }
 0x2dc   :  { %5093 = vmatpush.bf16.msra.mxu1 %v10349_v50  ;;  %v10441_v61 = vor.u32 %v12724_v54, %v10440_v59  ;;  %v10541_v50 = vor.u32 %v12744_v40, %v10538_v42  ;;  %v12796_v59 = vld [vmem:[#allocation12 + $0x69c] sm:$0xf0] }
 0x2de   :  { %5056 = vmatpush.bf16.msrb.mxu2 %v10441_v61 }
 0x2df   :  { %5078 = vmatpush.bf16.msra.mxu0 %v10125_v63  ;;  %v9901_v63 = vor.u32 %v12584_v44, %v9898_v62  ;;  %v12728_v44 = vld [vmem:[#allocation12 + $0x484] sm:$0xf] }
 0x2e0   :  { %5094 = vmatpush.bf16.msra.mxu1 %v10317_v58  ;;  %v10728_v58 = vld [vmem:[#allocation12 + $0x680] sm:$0xf]  ;;  %v10474_v62 = vld [vmem:[#allocation12 + $0x4a0] sm:$0xf0] }
 0x2e1   :  { %v13883_v12 = vpop.f32.mrf.mxu1  ;;  %v3305_v54 = vpop.f32.mrf.mxu0  ;;  %v10729_v61 = vor.u32 %v12796_v59, %v10728_v58  ;;  %v10477_v3 = vor.u32 %v12728_v44, %v10474_v62  ;;  %v12613_v58 = vld [vmem:[#allocation12 + $0xe4] sm:$0xf0] }
 0x2e2   :  { %5057 = vmatpush.bf16.msrb.mxu2 %v10409_v7  ;;  %v12788_v7 = vld [vmem:[#allocation12 + $0x65c] sm:$0xf0]  ;;  %v10384_v59 = vld [vmem:[#allocation12 + $0x3c8] sm:$0xf] }
 0x2e3   :  { %5079 = vmatpush.bf16.msra.mxu0 %v10093_v8  ;;  %v12672_v8 = vld [vmem:[#allocation12 + $0x2c4] sm:$0xf]  ;;  %v12709_v62 = vld [vmem:[#allocation12 + $0x3e4] sm:$0xf0] }
 0x2e4   :  { %5095 = vmatpush.bf16.msra.mxu1 %v10285_v49  ;;  %v10253_v11 = vor.u32 %v12672_v8, %v10250_v45  ;;  %v10697_v8 = vor.u32 %v12788_v7, %v10696_v20  ;;  %v12720_v45 = vld [vmem:[#allocation12 + $0x444] sm:$0xf] }
 0x2e6   :  { %5106 = vmatpush.bf16.msra.mxu2 %v10637_v13  ;;  %v12645_v13 = vld [vmem:[#allocation12 + $0x1e4] sm:$0xf0] }
 0x2e7   :  { %5080 = vmatpush.bf16.msra.mxu0 %v10061_v19  ;;  %v12828_v19 = vld [vmem:[#allocation12 + $0x79c] sm:$0xf0]  ;;  %v10129_v26 = vor.u32 %v12645_v13, %v10128_v22  ;;  %v12800_v22 = vld [vmem:[#allocation12 + $0x6c4] sm:$0xf] }
 0x2e8   :  { %5096 = vmatpush.bf16.msra.mxu1 %v10253_v11  ;;  %v10857_v24 = vor.u32 %v12828_v19, %v10856_v18  ;;  %v10762_v13 = vld [vmem:[#allocation12 + $0x6e0] sm:$0xf0] }
 0x2e9   :  { %v3265_v48 = vpop.f32.mrf.mxu1  ;;  %v3307_v31 = vpop.f32.mrf.mxu0 }
 0x2ea   :  { %5065 = vmatpush.bf16.msrb.mxu3 %v10857_v24  ;;  %5107 = vmatpush.bf16.msra.mxu2 %v10605_v27  ;;  %v12832_v27 = vld [vmem:[#allocation12 + $0x7c4] sm:$0xf] }
 0x2eb   :  { %5081 = vmatpush.bf16.msra.mxu0 %v10029_v29  ;;  %v10824_v29 = vld [vmem:[#allocation12 + $0x740] sm:$0xf]  ;;  %v10893_v32 = vor.u32 %v12832_v27, %v10890_v52  ;;  %v12792_v27 = vld [vmem:[#allocation12 + $0x684] sm:$0xf] }
 0x2ec   :  { %5097 = vmatpush.bf16.msra.mxu1 %v10221_v36  ;;  %v10825_v30 = vor.u32 %v12820_v55, %v10824_v29  ;;  %v12712_v36 = vld [vmem:[#allocation12 + $0x404] sm:$0xf]  ;;  %v10096_v29 = vld [vmem:[#allocation12 + $0x188] sm:$0xf] }
 0x2ed   :  { %v12637_v55 = vld [vmem:[#allocation12 + $0x1a4] sm:$0xf0] }
 0x2ee   :  { %5066 = vmatpush.bf16.msrb.mxu3 %v10825_v30  ;;  %5108 = vmatpush.bf16.msra.mxu2 %v10573_v33  ;;  %v10413_v30 = vor.u32 %v12712_v36, %v10410_v28  ;;  %v10064_v33 = vld [vmem:[#allocation12 + $0x148] sm:$0xf] }
 0x2ef   :  { %5082 = vmatpush.bf16.msra.mxu0 %v9997_v34  ;;  %v10792_v34 = vld [vmem:[#allocation12 + $0x700] sm:$0xf]  ;;  %v10320_v36 = vld [vmem:[#allocation12 + $0x348] sm:$0xf] }
 0x2f0   :  { %5098 = vmatpush.bf16.msra.mxu1 %v10189_v1  ;;  %v10793_v37 = vor.u32 %v12812_v35, %v10792_v34  ;;  %v12629_v34 = vld [vmem:[#allocation12 + $0x164] sm:$0xf0]  ;;  %v12824_v35 = vld [vmem:[#allocation12 + $0x784] sm:$0xf] }
 0x2f1   :  { %v3319_v49 = vpop.f32.mrf.mxu1  ;;  %v10065_v40 = vor.u32 %v12629_v34, %v10064_v33  ;;  %v12693_v28 = vld [vmem:[#allocation12 + $0x364] sm:$0xf0] }
 0x2f2   :  { %5067 = vmatpush.bf16.msrb.mxu3 %v10793_v37  ;;  %5109 = vmatpush.bf16.msra.mxu2 %v10541_v50  ;;  %v12621_v50 = vld [vmem:[#allocation12 + $0x124] sm:$0xf0] }
 0x2f3   :  { %5083 = vmatpush.bf16.msra.mxu0 %v9965_v2  ;;  %v13887_v2 = vld [vmem:[#allocation10] sm:$0xf]  ;;  %v10288_v33 = vld [vmem:[#allocation12 + $0x308] sm:$0xf] }
 0x2f4   :  { %5099 = vmatpush.bf16.msra.mxu1 %v10157_v41  ;;  %v2592_v56 = vperm.slane %v13887_v2, 0  ;;  %v2593_v1 = vperm.slane %v13887_v2, 1  ;;  %v10032_v41 = vld [vmem:[#allocation12 + $0x108] sm:$0xf] }
 0x2f6   :  { %5068 = vmatpush.bf16.msrb.mxu3 %v10761_v51  ;;  %v3250_v14 = vadd.f32 %v13881_v21, %v2592_v56  ;;  %v10445_v21 = vor.u32 %v12720_v45, %v10442_v10  ;;  %v3306_v42 = vadd.f32 %v3305_v54, %v2593_v1  ;;  %v10829_v51 = vor.u32 %v12816_v4, %v10826_v9  ;;  %v10794_v54 = vld [vmem:[#allocation12 + $0x720] sm:$0xf0]  ;;  %v9968_v45 = vld [vmem:[#allocation12 + $0x88] sm:$0xf] }
 0x2f7   :  { %5084 = vmatpush.bf16.msra.mxu0 %v9933_v57  ;;  %v13885_v23 = vpop.f32.mrf.mxu2  ;;  %v10509_v57 = vor.u32 %v12736_v39, %v10506_v53  ;;  %v12605_v10 = vld [vmem:[#allocation12 + $0xa4] sm:$0xf0] }
 0x2f8   :  { %v3264_v43 = vadd.f32 %v13883_v12, %v3250_v14  ;;  %v10664_v12 = vld [vmem:[#allocation12 + $0x600] sm:$0xf]  ;;  %v3320_v39 = vadd.f32 %v3319_v49, %v3306_v42  ;;  %v12808_v14 = vld [vmem:[#allocation12 + $0x704] sm:$0xf] }
 0x2f9   :  { %5110 = vmatpush.bf16.msra.mxu2 %v10509_v57  ;;  %v10665_v0 = vor.u32 %v12780_v25, %v10664_v12  ;;  %v3321_v15 = vpop.f32.mrf.mxu1  ;;  %v10033_v57 = vor.u32 %v12621_v50, %v10032_v41  ;;  %v9969_v12 = vor.u32 %v12605_v10, %v9968_v45  ;;  %v10130_v41 = vld [vmem:[#allocation12 + $0x1e8] sm:$0xf0]  ;;  %v10224_v45 = vld [vmem:[#allocation12 + $0x288] sm:$0xf] }
 0x2fa   :  { %5069 = vmatpush.bf16.msrb.mxu3 %v10729_v61  ;;  %v3278_v11 = vadd.f32 %v13885_v23, %v3264_v43  ;;  %v10797_v43 = vor.u32 %v12808_v14, %v10794_v54  ;;  %v10098_v14 = vld [vmem:[#allocation12 + $0x1a8] sm:$0xf0]  ;;  %v12669_v10 = vld [vmem:[#allocation12 + $0x2a4] sm:$0xf0] }
 0x2fb   :  { %5085 = vmatpush.bf16.msra.mxu0 %v9901_v63  ;;  %v3252_v63 = vadd.f32 %v3251_v46, %v2592_v56  ;;  %v10097_v46 = vor.u32 %v12637_v55, %v10096_v29  ;;  %v3361_v56 = vpop.f32.mrf.mxu0  ;;  %v10730_v29 = vld [vmem:[#allocation12 + $0x6a0] sm:$0xf0] }
 0x2fc   :  { %v10733_v52 = vor.u32 %v12792_v27, %v10730_v29  ;;  %v10034_v27 = vld [vmem:[#allocation12 + $0x128] sm:$0xf0] }
 0x2fd   :  { %v3266_v16 = vadd.f32 %v3265_v48, %v3252_v63  ;;  %5111 = vmatpush.bf16.msra.mxu2 %v10477_v3  ;;  %v10858_v48 = vld [vmem:[#allocation12 + $0x7a0] sm:$0xf0] }
 0x2fe   :  { %5070 = vmatpush.bf16.msrb.mxu3 %v10697_v8  ;;  %v10861_v60 = vor.u32 %v12824_v35, %v10858_v48  ;;  %v10385_v8 = vor.u32 %v12709_v62, %v10384_v59  ;;  %v12685_v48 = vld [vmem:[#allocation12 + $0x324] sm:$0xf0]  ;;  %v10666_v59 = vld [vmem:[#allocation12 + $0x620] sm:$0xf0]  ;;  %v12633_v62 = vld [vmem:[#allocation12 + $0x18c] sm:$0xf] }
 0x2ff   :  { %v3279_v17 = vpop.f32.mrf.mxu2  ;;  %v10289_v9 = vor.u32 %v12685_v48, %v10288_v33  ;;  %v10002_v33 = vld [vmem:[#allocation12 + $0xe8] sm:$0xf0] }
 0x300   :  { %v3280_v5 = vadd.f32 %v3279_v17, %v3266_v16  ;;  %v3308_v17 = vadd.f32 %v3307_v31, %v2593_v1  ;;  %v10321_v1 = vor.u32 %v12693_v28, %v10320_v36  ;;  %v12757_v36 = vld [vmem:[#allocation12 + $0x564] sm:$0xf0]  ;;  %v12617_v28 = vld [vmem:[#allocation12 + $0x10c] sm:$0xf] }
 0x301   :  { %5112 = vmatpush.bf16.msra.mxu2 %v10445_v21  ;;  %v3375_v63 = vpop.f32.mrf.mxu1  ;;  %v10765_v21 = vor.u32 %v12800_v22, %v10762_v13  ;;  %v12625_v22 = vld [vmem:[#allocation12 + $0x14c] sm:$0xf] }
 0x302   :  { %5071 = vmatpush.bf16.msrb.mxu3 %v10665_v0  ;;  %v3322_v53 = vadd.f32 %v3321_v15, %v3308_v17  ;;  %v12597_v0 = vld [vmem:[#allocation12 + $0x64] sm:$0xf0]  ;;  %v10066_v13 = vld [vmem:[#allocation12 + $0x168] sm:$0xf0] }
 0x303   :  { %v3363_v55 = vpop.f32.mrf.mxu0  ;;  %v9904_v15 = vld [vmem:[#allocation12 + $0x8] sm:$0xf]  ;;  %v10386_v48 = vld [vmem:[#allocation12 + $0x3e8] sm:$0xf0] }
 0x305   :  { %5113 = vmatpush.bf16.msra.mxu2 %v10413_v30 }
 0x306   :  { %5120 = vmatpush.bf16.msra.mxu3 %v10893_v32 }
 0x307   :  { %v3333_v6 = vpop.f32.mrf.mxu2 }
 0x308   :  { %v3334_v61 = vadd.f32 %v3333_v6, %v3320_v39  ;;  %v12677_v39 = vld [vmem:[#allocation12 + $0x2e4] sm:$0xf0] }
 0x309   :  { %v3377_v31 = vpop.f32.mrf.mxu1 }
 0x30a   :  { %5121 = vmatpush.bf16.msra.mxu3 %v10861_v60 }
 0x30e   :  { %5122 = vmatpush.bf16.msra.mxu3 %v10829_v51  ;;  %v10256_v51 = vld [vmem:[#allocation12 + $0x2c8] sm:$0xf] }
 0x30f   :  { %v3335_v37 = vpop.f32.mrf.mxu2 }
 0x310   :  { %v3336_v44 = vadd.f32 %v3335_v37, %v3322_v53  ;;  %v12784_v37 = vld [vmem:[#allocation12 + $0x644] sm:$0xf] }
 0x312   :  { %5123 = vmatpush.bf16.msra.mxu3 %v10797_v43  ;;  %v10257_v43 = vor.u32 %v12677_v39, %v10256_v51  ;;  %v10354_v51 = vld [vmem:[#allocation12 + $0x3a8] sm:$0xf0]  ;;  %v2595_v39 = vperm.slane %v13887_v2, 3 }
 0x316   :  { %5124 = vmatpush.bf16.msra.mxu3 %v10765_v21  ;;  %v10225_v21 = vor.u32 %v12669_v10, %v10224_v45  ;;  %v12725_v45 = vld [vmem:[#allocation12 + $0x464] sm:$0xf0] }
 0x317   :  { %v3291_v47 = vpop.f32.mrf.mxu3 }
 0x318   :  { %v13893_v19 = vadd.f32 %v3291_v47, %v3278_v11  ;;  %v10000_v47 = vld [vmem:[#allocation12 + $0xc8] sm:$0xf] }
 0x319   :  { %v10001_v7 = vor.u32 %v12613_v58, %v10000_v47  ;;  %v10352_v11 = vld [vmem:[#allocation12 + $0x388] sm:$0xf]  ;;  %v12776_v58 = vld [vmem:[#allocation12 + $0x604] sm:$0xf] }
 0x31a   :  { %v3389_v49 = vpop.f32.mrf.mxu2  ;;  %5125 = vmatpush.bf16.msra.mxu3 %v10733_v52  ;;  %v10640_v47 = vld [vmem:[#allocation12 + $0x5c8] sm:$0xf]  ;;  %v10669_v54 = vor.u32 %v12776_v58, %v10666_v59  ;;  %v10037_v52 = vor.u32 %v12617_v28, %v10034_v27  ;;  %v12593_v59 = vld [vmem:[#allocation12 + $0x4c] sm:$0xf] }
 0x31b   :  { %v12733_v58 = vld [vmem:[#allocation12 + $0x4a4] sm:$0xf0] }
 0x31f   :  { %v3293_v18 = vpop.f32.mrf.mxu3 }
 0x320   :  { %v13895_v24 = vadd.f32 %v3293_v18, %v3280_v5  ;;  %v12701_v5 = vld [vmem:[#allocation12 + $0x3a4] sm:$0xf0]  ;;  %v2594_v18 = vperm.slane %v13887_v2, 2 }
 0x321   :  { %v10353_v25 = vor.u32 %v12701_v5, %v10352_v11  ;;  %v10608_v11 = vld [vmem:[#allocation12 + $0x588] sm:$0xf] }
 0x322   :  { %v13899_v23 = vpack.c.bf16 %v13895_v24, %v13893_v19  ;;  %v3362_v34 = vadd.f32 %v3361_v56, %v2594_v18  ;;  %v3364_v35 = vadd.f32 %v3363_v55, %v2594_v18  ;;  %v3391_v60 = vpop.f32.mrf.mxu2  ;;  %v12765_v5 = vld [vmem:[#allocation12 + $0x5a4] sm:$0xf0]  ;;  %v3417_v55 = vpop.f32.mrf.mxu0 }
 0x323   :  { %v10609_v18 = vor.u32 %v12765_v5, %v10608_v11  ;;  %v3418_v10 = vadd.f32 %v3417_v55, %v2595_v39 }
 0x324   :  { %5030 = vmatmul.bf16.vlgmr.msrb.gmra.mxu0 %v13899_v23  ;;  %v3376_v17 = vadd.f32 %v3375_v63, %v3362_v34  ;;  %v3378_v50 = vadd.f32 %v3377_v31, %v3364_v35  ;;  %v10160_v31 = vld [vmem:[#allocation12 + $0x208] sm:$0xf]  ;;  %v3431_v34 = vpop.f32.mrf.mxu1  ;;  %v12705_v35 = vld [vmem:[#allocation12 + $0x3cc] sm:$0xf] }
 0x325   :  { %5134 = vmatpush.bf16.msrb.mxu0 %v10129_v26  ;;  %v9936_v26 = vld [vmem:[#allocation12 + $0x48] sm:$0xf] }
 0x326   :  { %v9937_v32 = vor.u32 %v12597_v0, %v9936_v26  ;;  %v3390_v53 = vadd.f32 %v3389_v49, %v3376_v17  ;;  %v12661_v26 = vld [vmem:[#allocation12 + $0x264] sm:$0xf0] }
 0x327   :  { %v3347_v38 = vpop.f32.mrf.mxu3  ;;  %v10576_v0 = vld [vmem:[#allocation12 + $0x548] sm:$0xf] }
 0x328   :  { %v13903_v16 = vadd.f32 %v3347_v38, %v3334_v61  ;;  %v10698_v38 = vld [vmem:[#allocation12 + $0x660] sm:$0xf0]  ;;  %v12741_v17 = vld [vmem:[#allocation12 + $0x4e4] sm:$0xf0] }
 0x329   :  { %5135 = vmatpush.bf16.msrb.mxu0 %v10097_v46  ;;  %v12589_v46 = vld [vmem:[#allocation12 + $0x24] sm:$0xf0]  ;;  %v10701_v42 = vor.u32 %v12784_v37, %v10698_v38 }
 0x32a   :  { %v9905_v4 = vor.u32 %v12589_v46, %v9904_v15  ;;  %v12749_v15 = vld [vmem:[#allocation12 + $0x524] sm:$0xf0]  ;;  %v12609_v46 = vld [vmem:[#allocation12 + $0xcc] sm:$0xf] }
 0x32b   :  { %5126 = vmatpush.bf16.msra.mxu3 %v10701_v42  ;;  %v10389_v42 = vor.u32 %v12705_v35, %v10386_v48  ;;  %v10258_v35 = vld [vmem:[#allocation12 + $0x2e8] sm:$0xf0] }
 0x32c   :  { %v12769_v48 = vld [vmem:[#allocation12 + $0x5cc] sm:$0xf] }
 0x32d   :  { %5136 = vmatpush.bf16.msrb.mxu0 %v10065_v40  ;;  %v12641_v40 = vld [vmem:[#allocation12 + $0x1cc] sm:$0xf] }
 0x32e   :  { %v10133_v56 = vor.u32 %v12641_v40, %v10130_v41  ;;  %v10005_v40 = vor.u32 %v12609_v46, %v10002_v33  ;;  %v10512_v41 = vld [vmem:[#allocation12 + $0x4c8] sm:$0xf]  ;;  %v12673_v46 = vld [vmem:[#allocation12 + $0x2cc] sm:$0xf] }
 0x32f   :  { %v3349_v3 = vpop.f32.mrf.mxu3  ;;  %5127 = vmatpush.bf16.msra.mxu3 %v10669_v54  ;;  %v10322_v54 = vld [vmem:[#allocation12 + $0x368] sm:$0xf0] }
 0x330   :  { %v13905_v20 = vadd.f32 %v3349_v3, %v3336_v44  ;;  %v12773_v44 = vld [vmem:[#allocation12 + $0x5e4] sm:$0xf0] }
 0x331   :  { %5137 = vmatpush.bf16.msrb.mxu0 %v10033_v57  ;;  %v3392_v57 = vadd.f32 %v3391_v60, %v3378_v50  ;;  %v12601_v50 = vld [vmem:[#allocation12 + $0x8c] sm:$0xf] }
 0x332   :  { %v13909_v6 = vpack.c.bf16 %v13905_v20, %v13903_v16 }
 0x334   :  { %5044 = vmatmul.bf16.vlgmr.msrb.gmra.mxu1 %v13909_v6  ;;  %5086 = vmatmul.bf16.vlgmr.msra.gmra.mxu0 %v13899_v23 }
 0x335   :  { %5138 = vmatpush.bf16.msrb.mxu0 %v10001_v7  ;;  %5148 = vmatpush.bf16.msrb.mxu1 %v10385_v8  ;;  %v10641_v7 = vor.u32 %v12773_v44, %v10640_v47  ;;  %v10101_v8 = vor.u32 %v12633_v62, %v10098_v14  ;;  %v3419_v44 = vpop.f32.mrf.mxu0  ;;  %v12689_v14 = vld [vmem:[#allocation12 + $0x34c] sm:$0xf] }
 0x336   :  { %v3420_v11 = vadd.f32 %v3419_v44, %v2595_v39  ;;  %v10325_v5 = vor.u32 %v12689_v14, %v10322_v54  ;;  %v12665_v39 = vld [vmem:[#allocation12 + $0x28c] sm:$0xf]  ;;  %v10832_v14 = vld [vmem:[#allocation12 + $0x748] sm:$0xf] }
 0x337   :  { %v3403_v30 = vpop.f32.mrf.mxu3  ;;  %v12821_v54 = vld [vmem:[#allocation12 + $0x764] sm:$0xf0] }
 0x338   :  { %v13914_v63 = vadd.f32 %v3403_v30, %v3390_v53  ;;  %v10577_v30 = vor.u32 %v12757_v36, %v10576_v0  ;;  %v3445_v38 = vpop.f32.mrf.mxu2  ;;  %v10513_v53 = vor.u32 %v12741_v17, %v10512_v41  ;;  %v3432_v0 = vadd.f32 %v3431_v34, %v3418_v10  ;;  %v12638_v41 = vld [vmem:[#allocation12 + $0x1ac] sm:$0xf0] }
 0x339   :  { %5139 = vmatpush.bf16.msrb.mxu0 %v9969_v12  ;;  %5149 = vmatpush.bf16.msrb.mxu1 %v10353_v25  ;;  %v10069_v12 = vor.u32 %v12625_v22, %v10066_v13  ;;  %v10192_v25 = vld [vmem:[#allocation12 + $0x248] sm:$0xf]  ;;  %v12585_v22 = vld [vmem:[#allocation12 + $0xc] sm:$0xf]  ;;  %v10040_v10 = vld [vmem:[#allocation12 + $0x110] sm:$0xf] }
 0x33a   :  { %v10193_v29 = vor.u32 %v12661_v26, %v10192_v25  ;;  %v9906_v13 = vld [vmem:[#allocation12 + $0x28] sm:$0xf0]  ;;  %v10136_v25 = vld [vmem:[#allocation12 + $0x1d0] sm:$0xf] }
 0x33b   :  { %v12646_v26 = vld [vmem:[#allocation12 + $0x1ec] sm:$0xf0]  ;;  %v9909_v27 = vor.u32 %v12585_v22, %v9906_v13  ;;  %v10800_v22 = vld [vmem:[#allocation12 + $0x708] sm:$0xf] }
 0x33d   :  { %5140 = vmatpush.bf16.msrb.mxu0 %v9937_v32  ;;  %5150 = vmatpush.bf16.msrb.mxu1 %v10321_v1  ;;  %v12653_v32 = vld [vmem:[#allocation12 + $0x224] sm:$0xf0] }
 0x33e   :  { %v10544_v1 = vld [vmem:[#allocation12 + $0x508] sm:$0xf]  ;;  %v10161_v37 = vor.u32 %v12653_v32, %v10160_v31  ;;  %v10137_v32 = vor.u32 %v12646_v26, %v10136_v25  ;;  %v10162_v25 = vld [vmem:[#allocation12 + $0x228] sm:$0xf0] }
 0x33f   :  { %v3405_v61 = vpop.f32.mrf.mxu3  ;;  %v10545_v60 = vor.u32 %v12749_v15, %v10544_v1  ;;  %v10896_v1 = vld [vmem:[#allocation12 + $0x7c8] sm:$0xf] }
 0x340   :  { %v13916_v3 = vadd.f32 %v3405_v61, %v3392_v57  ;;  %v9938_v61 = vld [vmem:[#allocation12 + $0x68] sm:$0xf0]  ;;  %v12837_v15 = vld [vmem:[#allocation12 + $0x7e4] sm:$0xf0] }
 0x341   :  { %5141 = vmatpush.bf16.msrb.mxu0 %v9905_v4  ;;  %5151 = vmatpush.bf16.msrb.mxu1 %v10289_v9  ;;  %v9970_v4 = vld [vmem:[#allocation12 + $0xa8] sm:$0xf0] }
 0x342   :  { %v13920_v49 = vpack.c.bf16 %v13916_v3, %v13914_v63  ;;  %v12697_v9 = vld [vmem:[#allocation12 + $0x38c] sm:$0xf]  ;;  %v9973_v57 = vor.u32 %v12601_v50, %v9970_v4  ;;  %v10261_v50 = vor.u32 %v12673_v46, %v10258_v35 }
 0x343   :  { %v10357_v47 = vor.u32 %v12697_v9, %v10354_v51  ;;  %v10864_v9 = vld [vmem:[#allocation12 + $0x788] sm:$0xf]  ;;  %v10514_v35 = vld [vmem:[#allocation12 + $0x4e8] sm:$0xf0] }
 0x344   :  { %5058 = vmatmul.bf16.vlgmr.msrb.gmra.mxu2 %v13920_v49  ;;  %5100 = vmatmul.bf16.vlgmr.msra.gmra.mxu1 %v13909_v6  ;;  %v12829_v51 = vld [vmem:[#allocation12 + $0x7a4] sm:$0xf0] }
 0x345   :  { %5190 = vmatpush.bf16.msra.mxu0 %v10133_v56  ;;  %5152 = vmatpush.bf16.msrb.mxu1 %v10257_v43  ;;  %v10480_v56 = vld [vmem:[#allocation12 + $0x488] sm:$0xf]  ;;  %v3433_v43 = vpop.f32.mrf.mxu1 }
 0x346   :  { %5142 = vmatmul.bf16.vlgmr.msrb.gmra.mxu0 %v13899_v23  ;;  %5162 = vmatpush.bf16.msrb.mxu2 %v10641_v7  ;;  %v10481_v2 = vor.u32 %v12733_v58, %v10480_v56  ;;  %v9941_v7 = vor.u32 %v12593_v59, %v9938_v61  ;;  %v3434_v36 = vadd.f32 %v3433_v43, %v3420_v11  ;;  %v12761_v56 = vld [vmem:[#allocation12 + $0x58c] sm:$0xf]  ;;  %v10072_v58 = vld [vmem:[#allocation12 + $0x150] sm:$0xf] }
 0x347   :  { %v12630_v59 = vld [vmem:[#allocation12 + $0x16c] sm:$0xf0]  ;;  %v10865_v61 = vor.u32 %v12829_v51, %v10864_v9  ;;  %v12657_v43 = vld [vmem:[#allocation12 + $0x24c] sm:$0xf] }
 0x348   :  { %v12622_v11 = vld [vmem:[#allocation12 + $0x12c] sm:$0xf0] }
 0x349   :  { %5191 = vmatpush.bf16.msra.mxu0 %v10101_v8  ;;  %5153 = vmatpush.bf16.msrb.mxu1 %v10225_v21  ;;  %v10448_v8 = vld [vmem:[#allocation12 + $0x448] sm:$0xf]  ;;  %v12681_v21 = vld [vmem:[#allocation12 + $0x30c] sm:$0xf]  ;;  %v10041_v26 = vor.u32 %v12622_v11, %v10040_v10  ;;  %v12686_v10 = vld [vmem:[#allocation12 + $0x32c] sm:$0xf0] }
 0x34a   :  { %5163 = vmatpush.bf16.msrb.mxu2 %v10609_v18  ;;  %v3447_v18 = vpop.f32.mrf.mxu2  ;;  %v10449_v28 = vor.u32 %v12725_v45, %v10448_v8  ;;  %v12753_v8 = vld [vmem:[#allocation12 + $0x54c] sm:$0xf] }
 0x34b   :  { %v3448_v55 = vadd.f32 %v3447_v18, %v3434_v36  ;;  %v10578_v45 = vld [vmem:[#allocation12 + $0x568] sm:$0xf0]  ;;  %v12813_v18 = vld [vmem:[#allocation12 + $0x724] sm:$0xf0] }
 0x34c   :  { %v10546_v36 = vld [vmem:[#allocation12 + $0x528] sm:$0xf0] }
 0x34d   :  { %5192 = vmatpush.bf16.msra.mxu0 %v10069_v12  ;;  %5154 = vmatpush.bf16.msrb.mxu1 %v10193_v29  ;;  %v10290_v12 = vld [vmem:[#allocation12 + $0x328] sm:$0xf0]  ;;  %v10416_v29 = vld [vmem:[#allocation12 + $0x408] sm:$0xf] }
 0x34e   :  { %5164 = vmatpush.bf16.msrb.mxu2 %v10577_v30  ;;  %v12717_v30 = vld [vmem:[#allocation12 + $0x424] sm:$0xf0]  ;;  %v10293_v31 = vor.u32 %v12681_v21, %v10290_v12  ;;  %v10581_v21 = vor.u32 %v12753_v8, %v10578_v45  ;;  %v12649_v12 = vld [vmem:[#allocation12 + $0x20c] sm:$0xf]  ;;  %v12590_v8 = vld [vmem:[#allocation12 + $0x2c] sm:$0xf0] }
 0x34f   :  { %v10296_v45 = vld [vmem:[#allocation12 + $0x310] sm:$0xf] }
 0x351   :  { %5193 = vmatpush.bf16.msra.mxu0 %v10037_v52  ;;  %5155 = vmatpush.bf16.msrb.mxu1 %v10161_v37  ;;  %v3446_v52 = vadd.f32 %v3445_v38, %v3432_v0  ;;  %v10642_v37 = vld [vmem:[#allocation12 + $0x5e8] sm:$0xf0]  ;;  %v10417_v38 = vor.u32 %v12717_v30, %v10416_v29  ;;  %v10392_v29 = vld [vmem:[#allocation12 + $0x3d0] sm:$0xf] }
 0x352   :  { %5165 = vmatpush.bf16.msrb.mxu2 %v10545_v60  ;;  %v10645_v4 = vor.u32 %v12769_v48, %v10642_v37  ;;  %v12745_v0 = vld [vmem:[#allocation12 + $0x50c] sm:$0xf]  ;;  %v12710_v30 = vld [vmem:[#allocation12 + $0x3ec] sm:$0xf0] }
 0x353   :  { %v10393_v46 = vor.u32 %v12710_v30, %v10392_v29  ;;  %v9976_v48 = vld [vmem:[#allocation12 + $0x90] sm:$0xf] }
 0x354   :  { %5114 = vmatmul.bf16.vlgmr.msra.gmra.mxu2 %v13920_v49  ;;  %5156 = vmatmul.bf16.vlgmr.msrb.gmra.mxu1 %v13909_v6  ;;  %v12606_v37 = vld [vmem:[#allocation12 + $0xac] sm:$0xf0] }
 0x355   :  { %5194 = vmatpush.bf16.msra.mxu0 %v10005_v40  ;;  %5204 = vmatpush.bf16.msra.mxu1 %v10389_v42  ;;  %v10104_v40 = vld [vmem:[#allocation12 + $0x190] sm:$0xf]  ;;  %v10897_v42 = vor.u32 %v12837_v15, %v10896_v1  ;;  %v12805_v1 = vld [vmem:[#allocation12 + $0x6e4] sm:$0xf0]  ;;  %v9977_v9 = vor.u32 %v12606_v37, %v9976_v48  ;;  %v10866_v48 = vld [vmem:[#allocation12 + $0x7a8] sm:$0xf0] }
 0x356   :  { %5166 = vmatpush.bf16.msrb.mxu2 %v10513_v53  ;;  %v10105_v53 = vor.u32 %v12638_v41, %v10104_v40  ;;  %v10360_v40 = vld [vmem:[#allocation12 + $0x390] sm:$0xf] }
 0x357   :  { %v3459_v62 = vpop.f32.mrf.mxu3  ;;  %v12702_v41 = vld [vmem:[#allocation12 + $0x3ac] sm:$0xf0] }
 0x358   :  { %v13928_v34 = vadd.f32 %v3459_v62, %v3446_v52  ;;  %v10801_v52 = vor.u32 %v12813_v18, %v10800_v22  ;;  %v10361_v51 = vor.u32 %v12702_v41, %v10360_v40  ;;  %v10138_v22 = vld [vmem:[#allocation12 + $0x1f0] sm:$0xf0]  ;;  %v12781_v18 = vld [vmem:[#allocation12 + $0x624] sm:$0xf0]  ;;  %v10264_v29 = vld [vmem:[#allocation12 + $0x2d0] sm:$0xf] }
 0x359   :  { %5195 = vmatpush.bf16.msra.mxu0 %v9973_v57  ;;  %5205 = vmatpush.bf16.msra.mxu1 %v10357_v47  ;;  %v10226_v57 = vld [vmem:[#allocation12 + $0x2a8] sm:$0xf0]  ;;  %v12678_v30 = vld [vmem:[#allocation12 + $0x2ec] sm:$0xf0] }
 0x35a   :  { %5167 = vmatpush.bf16.msrb.mxu2 %v10481_v2  ;;  %v10610_v47 = vld [vmem:[#allocation12 + $0x5a8] sm:$0xf0]  ;;  %v10229_v44 = vor.u32 %v12665_v39, %v10226_v57  ;;  %v10073_v2 = vor.u32 %v12630_v59, %v10072_v58  ;;  %v9944_v57 = vld [vmem:[#allocation12 + $0x50] sm:$0xf] }
 0x35b   :  { %v10613_v62 = vor.u32 %v12761_v56, %v10610_v47  ;;  %v12729_v39 = vld [vmem:[#allocation12 + $0x48c] sm:$0xf]  ;;  %v12598_v56 = vld [vmem:[#allocation12 + $0x6c] sm:$0xf0] }
 0x35c   :  { %v10328_v47 = vld [vmem:[#allocation12 + $0x350] sm:$0xf] }
 0x35d   :  { %5196 = vmatpush.bf16.msra.mxu0 %v9941_v7  ;;  %5206 = vmatpush.bf16.msra.mxu1 %v10325_v5  ;;  %v10194_v7 = vld [vmem:[#allocation12 + $0x268] sm:$0xf0]  ;;  %v10833_v5 = vor.u32 %v12821_v54, %v10832_v14  ;;  %v12694_v58 = vld [vmem:[#allocation12 + $0x36c] sm:$0xf0]  ;;  %v9945_v14 = vor.u32 %v12598_v56, %v9944_v57 }
 0x35e   :  { %5168 = vmatpush.bf16.msrb.mxu2 %v10449_v28  ;;  %v10197_v13 = vor.u32 %v12657_v43, %v10194_v7  ;;  %v10008_v28 = vld [vmem:[#allocation12 + $0xd0] sm:$0xf]  ;;  %v10329_v54 = vor.u32 %v12694_v58, %v10328_v47  ;;  %v12721_v43 = vld [vmem:[#allocation12 + $0x44c] sm:$0xf] }
 0x35f   :  { %v3461_v33 = vpop.f32.mrf.mxu3  ;;  %v9912_v7 = vld [vmem:[#allocation12 + $0x10] sm:$0xf]  ;;  %v10834_v57 = vld [vmem:[#allocation12 + $0x768] sm:$0xf0] }
 0x360   :  { %v13930_v60 = vadd.f32 %v3461_v33, %v3448_v55  ;;  %v10165_v55 = vor.u32 %v12649_v12, %v10162_v25  ;;  %v12737_v33 = vld [vmem:[#allocation12 + $0x4cc] sm:$0xf]  ;;  %v9913_v25 = vor.u32 %v12590_v8, %v9912_v7  ;;  %v10232_v41 = vld [vmem:[#allocation12 + $0x290] sm:$0xf] }
 0x361   :  { %5197 = vmatpush.bf16.msra.mxu0 %v9909_v27  ;;  %5207 = vmatpush.bf16.msra.mxu1 %v10293_v31  ;;  %v12614_v27 = vld [vmem:[#allocation12 + $0xec] sm:$0xf0]  ;;  %v10549_v31 = vor.u32 %v12745_v0, %v10546_v36  ;;  %v12713_v12 = vld [vmem:[#allocation12 + $0x40c] sm:$0xf] }
 0x362   :  { %v13934_v17 = vpack.c.bf16 %v13930_v60, %v13928_v34  ;;  %5169 = vmatpush.bf16.msrb.mxu2 %v10417_v38  ;;  %v10009_v15 = vor.u32 %v12614_v27, %v10008_v28  ;;  %v10418_v0 = vld [vmem:[#allocation12 + $0x428] sm:$0xf0]  ;;  %v10200_v58 = vld [vmem:[#allocation12 + $0x250] sm:$0xf] }
 0x363   :  { %v12833_v36 = vld [vmem:[#allocation12 + $0x7cc] sm:$0xf] }
 0x364   :  { %5072 = vmatmul.bf16.vlgmr.msrb.gmra.mxu3 %v13934_v17  ;;  %5198 = vmatmul.bf16.vlgmr.msra.gmra.mxu0 %v13899_v23  ;;  %v10898_v28 = vld [vmem:[#allocation12 + $0x7e8] sm:$0xf0] }
 0x365   :  { %5246 = vmatpush.bf16.msrb.mxu0 %v10137_v32  ;;  %5176 = vmatpush.bf16.msrb.mxu3 %v10897_v42  ;;  %v10768_v32 = vld [vmem:[#allocation12 + $0x6c8] sm:$0xf]  ;;  %v10517_v42 = vor.u32 %v12737_v33, %v10514_v35  ;;  %v10265_v33 = vor.u32 %v12678_v30, %v10264_v29  ;;  %v12825_v35 = vld [vmem:[#allocation12 + $0x78c] sm:$0xf]  ;;  %v10520_v29 = vld [vmem:[#allocation12 + $0x4d0] sm:$0xf] }
 0x366   :  { %5208 = vmatpush.bf16.msra.mxu1 %v10261_v50  ;;  %5218 = vmatpush.bf16.msra.mxu2 %v10645_v4  ;;  %v10769_v38 = vor.u32 %v12805_v1, %v10768_v32  ;;  %v10736_v50 = vld [vmem:[#allocation12 + $0x688] sm:$0xf]  ;;  %v12634_v32 = vld [vmem:[#allocation12 + $0x194] sm:$0xf]  ;;  %v10802_v7 = vld [vmem:[#allocation12 + $0x728] sm:$0xf0] }
 0x367   :  { %5170 = vmatmul.bf16.vlgmr.msrb.gmra.mxu2 %v13920_v49  ;;  %v12797_v4 = vld [vmem:[#allocation12 + $0x6a4] sm:$0xf0]  ;;  %v10106_v1 = vld [vmem:[#allocation12 + $0x1b0] sm:$0xf0] }
 0x368   :  { %v10737_v59 = vor.u32 %v12797_v4, %v10736_v50  ;;  %v10109_v40 = vor.u32 %v12634_v32, %v10106_v1  ;;  %v12766_v50 = vld [vmem:[#allocation12 + $0x5ac] sm:$0xf0]  ;;  %v12626_v4 = vld [vmem:[#allocation12 + $0x154] sm:$0xf] }
 0x369   :  { %5247 = vmatpush.bf16.msrb.mxu0 %v10105_v53  ;;  %5177 = vmatpush.bf16.msrb.mxu3 %v10865_v61  ;;  %v10482_v53 = vld [vmem:[#allocation12 + $0x4a8] sm:$0xf0]  ;;  %v12698_v1 = vld [vmem:[#allocation12 + $0x394] sm:$0xf] }
 0x36a   :  { %5209 = vmatpush.bf16.msra.mxu1 %v10229_v44  ;;  %5219 = vmatpush.bf16.msra.mxu2 %v10613_v62  ;;  %v10485_v61 = vor.u32 %v12729_v39, %v10482_v53  ;;  %v10704_v44 = vld [vmem:[#allocation12 + $0x648] sm:$0xf]  ;;  %v12817_v53 = vld [vmem:[#allocation12 + $0x74c] sm:$0xf] }
 0x36b   :  { %v12789_v62 = vld [vmem:[#allocation12 + $0x664] sm:$0xf0] }
 0x36c   :  { %v10705_v11 = vor.u32 %v12789_v62, %v10704_v44  ;;  %v12758_v44 = vld [vmem:[#allocation12 + $0x56c] sm:$0xf0]  ;;  %v12618_v62 = vld [vmem:[#allocation12 + $0x114] sm:$0xf] }
 0x36d   :  { %5248 = vmatpush.bf16.msrb.mxu0 %v10073_v2  ;;  %5178 = vmatpush.bf16.msrb.mxu3 %v10833_v5  ;;  %v10450_v2 = vld [vmem:[#allocation12 + $0x468] sm:$0xf0]  ;;  %v12642_v5 = vld [vmem:[#allocation12 + $0x1d4] sm:$0xf] }
 0x36e   :  { %5210 = vmatpush.bf16.msra.mxu1 %v10197_v13  ;;  %5220 = vmatpush.bf16.msra.mxu2 %v10581_v21  ;;  %v10453_v13 = vor.u32 %v12721_v43, %v10450_v2  ;;  %v10672_v21 = vld [vmem:[#allocation12 + $0x608] sm:$0xf]  ;;  %v10141_v27 = vor.u32 %v12642_v5, %v10138_v22  ;;  %v12809_v2 = vld [vmem:[#allocation12 + $0x70c] sm:$0xf]  ;;  %v10552_v5 = vld [vmem:[#allocation12 + $0x510] sm:$0xf] }
 0x36f   :  { %v12750_v22 = vld [vmem:[#allocation12 + $0x52c] sm:$0xf0] }
 0x371   :  { %5249 = vmatpush.bf16.msrb.mxu0 %v10041_v26  ;;  %5179 = vmatpush.bf16.msrb.mxu3 %v10801_v52  ;;  %v10297_v26 = vor.u32 %v12686_v10, %v10296_v45  ;;  %v10648_v52 = vld [vmem:[#allocation12 + $0x5d0] sm:$0xf] }
 0x372   :  { %5211 = vmatpush.bf16.msra.mxu1 %v10165_v55  ;;  %5221 = vmatpush.bf16.msra.mxu2 %v10549_v31  ;;  %v10673_v55 = vor.u32 %v12781_v18, %v10672_v21  ;;  %v12774_v31 = vld [vmem:[#allocation12 + $0x5ec] sm:$0xf0]  ;;  %v10010_v21 = vld [vmem:[#allocation12 + $0xf0] sm:$0xf0]  ;;  %v10805_v18 = vor.u32 %v12809_v2, %v10802_v7  ;;  %v12777_v2 = vld [vmem:[#allocation12 + $0x60c] sm:$0xf] }
 0x373   :  { %v10649_v37 = vor.u32 %v12774_v31, %v10648_v52  ;;  %v10168_v10 = vld [vmem:[#allocation12 + $0x210] sm:$0xf]  ;;  %v9978_v31 = vld [vmem:[#allocation12 + $0xb0] sm:$0xf0]  ;;  %v10674_v7 = vld [vmem:[#allocation12 + $0x628] sm:$0xf0] }
 0x374   :  { %5128 = vmatmul.bf16.vlgmr.msra.gmra.mxu3 %v13934_v17  ;;  %v12742_v52 = vld [vmem:[#allocation12 + $0x4ec] sm:$0xf0] }
 0x375   :  { %5250 = vmatpush.bf16.msrb.mxu0 %v10009_v15  ;;  %5180 = vmatpush.bf16.msrb.mxu3 %v10769_v38  ;;  %v10421_v15 = vor.u32 %v12713_v12, %v10418_v0  ;;  %v12670_v38 = vld [vmem:[#allocation12 + $0x2ac] sm:$0xf0]  ;;  %v12706_v12 = vld [vmem:[#allocation12 + $0x3d4] sm:$0xf]  ;;  %v12801_v0 = vld [vmem:[#allocation12 + $0x6cc] sm:$0xf] }
 0x376   :  { %5260 = vmatpush.bf16.msrb.mxu1 %v10393_v46  ;;  %5222 = vmatpush.bf16.msra.mxu2 %v10517_v42  ;;  %v10901_v46 = vor.u32 %v12833_v36, %v10898_v28  ;;  %v10616_v42 = vld [vmem:[#allocation12 + $0x590] sm:$0xf]  ;;  %v10233_v39 = vor.u32 %v12670_v38, %v10232_v41  ;;  %v10770_v36 = vld [vmem:[#allocation12 + $0x6e8] sm:$0xf0]  ;;  %v10553_v28 = vor.u32 %v12750_v22, %v10552_v5  ;;  %v12594_v38 = vld [vmem:[#allocation12 + $0x54] sm:$0xf] }
 0x377   :  { %5212 = vmatmul.bf16.vlgmr.msra.gmra.mxu1 %v13909_v6  ;;  %v10617_v56 = vor.u32 %v12766_v50, %v10616_v42  ;;  %v10773_v32 = vor.u32 %v12801_v0, %v10770_v36  ;;  %v12734_v41 = vld [vmem:[#allocation12 + $0x4ac] sm:$0xf0]  ;;  %v9946_v42 = vld [vmem:[#allocation12 + $0x70] sm:$0xf0] }
 0x378   :  { %v10650_v0 = vld [vmem:[#allocation12 + $0x5f0] sm:$0xf0] }
 0x379   :  { %5251 = vmatpush.bf16.msrb.mxu0 %v9977_v9  ;;  %5181 = vmatpush.bf16.msrb.mxu3 %v10737_v59  ;;  %v10074_v9 = vld [vmem:[#allocation12 + $0x170] sm:$0xf0]  ;;  %v12662_v59 = vld [vmem:[#allocation12 + $0x26c] sm:$0xf0] }
 0x37a   :  { %5261 = vmatpush.bf16.msrb.mxu1 %v10361_v51  ;;  %5223 = vmatpush.bf16.msra.mxu2 %v10485_v61  ;;  %v10869_v51 = vor.u32 %v12825_v35, %v10866_v48  ;;  %v10077_v47 = vor.u32 %v12626_v4, %v10074_v9  ;;  %v10584_v61 = vld [vmem:[#allocation12 + $0x550] sm:$0xf]  ;;  %v10201_v43 = vor.u32 %v12662_v59, %v10200_v58  ;;  %v12690_v4 = vld [vmem:[#allocation12 + $0x354] sm:$0xf] }
 0x37b   :  { %v10585_v8 = vor.u32 %v12758_v44, %v10584_v61  ;;  %v10521_v35 = vor.u32 %v12742_v52, %v10520_v29  ;;  %v10330_v9 = vld [vmem:[#allocation12 + $0x370] sm:$0xf0]  ;;  %v12830_v52 = vld [vmem:[#allocation12 + $0x7ac] sm:$0xf0] }
 0x37c   :  { %v10333_v58 = vor.u32 %v12690_v4, %v10330_v9  ;;  %v12586_v59 = vld [vmem:[#allocation12 + $0x14] sm:$0xf] }
 0x37d   :  { %5252 = vmatpush.bf16.msrb.mxu0 %v9945_v14  ;;  %5182 = vmatpush.bf16.msrb.mxu3 %v10705_v11  ;;  %v10042_v14 = vld [vmem:[#allocation12 + $0x130] sm:$0xf0]  ;;  %v12654_v11 = vld [vmem:[#allocation12 + $0x22c] sm:$0xf0] }
 0x37e   :  { %5262 = vmatpush.bf16.msrb.mxu1 %v10329_v54  ;;  %5224 = vmatpush.bf16.msra.mxu2 %v10453_v13  ;;  %v10837_v54 = vor.u32 %v12817_v53, %v10834_v57  ;;  %v10045_v45 = vor.u32 %v12618_v62, %v10042_v14  ;;  %v12610_v13 = vld [vmem:[#allocation12 + $0xd4] sm:$0xf]  ;;  %v9949_v57 = vor.u32 %v12594_v38, %v9946_v42 }
 0x37f   :  { %v9914_v61 = vld [vmem:[#allocation12 + $0x30] sm:$0xf0] }
 0x380   :  { %v12682_v44 = vld [vmem:[#allocation12 + $0x314] sm:$0xf] }
 0x381   :  { %5253 = vmatpush.bf16.msrb.mxu0 %v9913_v25  ;;  %5183 = vmatpush.bf16.msrb.mxu3 %v10673_v55  ;;  %v10394_v25 = vld [vmem:[#allocation12 + $0x3f0] sm:$0xf0] }
 0x382   :  { %5263 = vmatpush.bf16.msrb.mxu1 %v10297_v26  ;;  %5225 = vmatpush.bf16.msra.mxu2 %v10421_v15  ;;  %v10169_v26 = vor.u32 %v12654_v11, %v10168_v10  ;;  %v10397_v30 = vor.u32 %v12706_v12, %v10394_v25  ;;  %v12602_v55 = vld [vmem:[#allocation12 + $0x94] sm:$0xf]  ;;  %v10904_v10 = vld [vmem:[#allocation12 + $0x7d0] sm:$0xf]  ;;  %v10677_v12 = vor.u32 %v12777_v2, %v10674_v7  ;;  %v10016_v2 = vld [vmem:[#allocation12 + $0xd8] sm:$0xf] }
 0x383   :  { %v10362_v15 = vld [vmem:[#allocation12 + $0x3b0] sm:$0xf0]  ;;  %v9981_v48 = vor.u32 %v12602_v55, %v9978_v31  ;;  %v12838_v11 = vld [vmem:[#allocation12 + $0x7ec] sm:$0xf0] }
 0x384   :  { %5254 = vmatmul.bf16.vlgmr.msrb.gmra.mxu0 %v13899_v23  ;;  %5184 = vmatmul.bf16.vlgmr.msrb.gmra.mxu3 %v13934_v17  ;;  %v10298_v14 = vld [vmem:[#allocation12 + $0x330] sm:$0xf0]  ;;  %v10905_v36 = vor.u32 %v12838_v11, %v10904_v10  ;;  %v12711_v10 = vld [vmem:[#allocation12 + $0x3f4] sm:$0xf0]  ;;  %v10776_v11 = vld [vmem:[#allocation12 + $0x6d0] sm:$0xf] }
 0x385   :  { %5302 = vmatpush.bf16.msra.mxu0 %v10141_v27  ;;  %5232 = vmatpush.bf16.msra.mxu3 %v10901_v46  ;;  %v10013_v27 = vor.u32 %v12610_v13, %v10010_v21  ;;  %v12793_v46 = vld [vmem:[#allocation12 + $0x68c] sm:$0xf]  ;;  %v10301_v5 = vor.u32 %v12682_v44, %v10298_v14  ;;  %v10424_v13 = vld [vmem:[#allocation12 + $0x410] sm:$0xf]  ;;  %v10266_v25 = vld [vmem:[#allocation12 + $0x2f0] sm:$0xf0] }
 0x386   :  { %5264 = vmatpush.bf16.msrb.mxu1 %v10265_v33  ;;  %5274 = vmatpush.bf16.msrb.mxu2 %v10649_v37  ;;  %v10738_v33 = vld [vmem:[#allocation12 + $0x6a8] sm:$0xf0]  ;;  %v10488_v37 = vld [vmem:[#allocation12 + $0x490] sm:$0xf]  ;;  %v10202_v9 = vld [vmem:[#allocation12 + $0x270] sm:$0xf0] }
 0x387   :  { %5226 = vmatmul.bf16.vlgmr.msra.gmra.mxu2 %v13920_v49  ;;  %v10741_v50 = vor.u32 %v12793_v46, %v10738_v33  ;;  %v10489_v53 = vor.u32 %v12734_v41, %v10488_v37  ;;  %v12718_v21 = vld [vmem:[#allocation12 + $0x42c] sm:$0xf0]  ;;  %v12762_v46 = vld [vmem:[#allocation12 + $0x594] sm:$0xf]  ;;  %v12631_v37 = vld [vmem:[#allocation12 + $0x174] sm:$0xf0] }
 0x388   :  { %v10425_v29 = vor.u32 %v12718_v21, %v10424_v13  ;;  %v10618_v33 = vld [vmem:[#allocation12 + $0x5b0] sm:$0xf0]  ;;  %v12822_v41 = vld [vmem:[#allocation12 + $0x76c] sm:$0xf0] }
 0x389   :  { %5303 = vmatpush.bf16.msra.mxu0 %v10109_v40  ;;  %5233 = vmatpush.bf16.msra.mxu3 %v10869_v51  ;;  %v10365_v40 = vor.u32 %v12698_v1, %v10362_v15  ;;  %v12785_v51 = vld [vmem:[#allocation12 + $0x64c] sm:$0xf]  ;;  %v10234_v15 = vld [vmem:[#allocation12 + $0x2b0] sm:$0xf0]  ;;  %v10621_v42 = vor.u32 %v12762_v46, %v10618_v33  ;;  %v12599_v33 = vld [vmem:[#allocation12 + $0x74] sm:$0xf0] }
 0x38a   :  { %5265 = vmatpush.bf16.msrb.mxu1 %v10233_v39  ;;  %5275 = vmatpush.bf16.msrb.mxu2 %v10617_v56  ;;  %v10706_v39 = vld [vmem:[#allocation12 + $0x668] sm:$0xf0]  ;;  %v10456_v56 = vld [vmem:[#allocation12 + $0x450] sm:$0xf]  ;;  %v12650_v44 = vld [vmem:[#allocation12 + $0x214] sm:$0xf] }
 0x38b   :  { %v10709_v62 = vor.u32 %v12785_v51, %v10706_v39  ;;  %v12754_v51 = vld [vmem:[#allocation12 + $0x554] sm:$0xf] }
 0x38c   :  { %v10586_v39 = vld [vmem:[#allocation12 + $0x570] sm:$0xf0] }
 0x38d   :  { %5304 = vmatpush.bf16.msra.mxu0 %v10077_v47  ;;  %5234 = vmatpush.bf16.msra.mxu3 %v10837_v54  ;;  %v12726_v47 = vld [vmem:[#allocation12 + $0x46c] sm:$0xf0]  ;;  %v10144_v54 = vld [vmem:[#allocation12 + $0x1d8] sm:$0xf] }
 0x38e   :  { %5266 = vmatpush.bf16.msrb.mxu1 %v10201_v43  ;;  %5276 = vmatpush.bf16.msrb.mxu2 %v10585_v8  ;;  %v12647_v43 = vld [vmem:[#allocation12 + $0x1f4] sm:$0xf0]  ;;  %v10457_v8 = vor.u32 %v12726_v47, %v10456_v56  ;;  %v10808_v47 = vld [vmem:[#allocation12 + $0x710] sm:$0xf] }
 0x38f   :  { %v10145_v22 = vor.u32 %v12647_v43, %v10144_v54  ;;  %v12623_v56 = vld [vmem:[#allocation12 + $0x134] sm:$0xf0]  ;;  %v12746_v54 = vld [vmem:[#allocation12 + $0x514] sm:$0xf] }
 0x390   :  { %v10554_v43 = vld [vmem:[#allocation12 + $0x530] sm:$0xf0] }
 0x391   :  { %5305 = vmatpush.bf16.msra.mxu0 %v10045_v45  ;;  %5235 = vmatpush.bf16.msra.mxu3 %v10805_v18  ;;  %v9917_v45 = vor.u32 %v12586_v59, %v9914_v61  ;;  %v12674_v18 = vld [vmem:[#allocation12 + $0x2d4] sm:$0xf]  ;;  %v10589_v61 = vor.u32 %v12754_v51, %v10586_v39  ;;  %v10557_v13 = vor.u32 %v12746_v54, %v10554_v43  ;;  %v12591_v51 = vld [vmem:[#allocation12 + $0x34] sm:$0xf0] }
 0x392   :  { %5267 = vmatpush.bf16.msrb.mxu1 %v10169_v26  ;;  %5277 = vmatpush.bf16.msrb.mxu2 %v10553_v28  ;;  %v12770_v26 = vld [vmem:[#allocation12 + $0x5d4] sm:$0xf]  ;;  %v10112_v28 = vld [vmem:[#allocation12 + $0x198] sm:$0xf]  ;;  %v10269_v55 = vor.u32 %v12674_v18, %v10266_v25 }
 0x393   :  { %v10653_v31 = vor.u32 %v12770_v26, %v10650_v0  ;;  %v10522_v25 = vld [vmem:[#allocation12 + $0x4f0] sm:$0xf0]  ;;  %v9984_v26 = vld [vmem:[#allocation12 + $0x98] sm:$0xf] }
 0x394   :  { %v12714_v43 = vld [vmem:[#allocation12 + $0x414] sm:$0xf] }
 0x395   :  { %5306 = vmatpush.bf16.msra.mxu0 %v10013_v27  ;;  %5236 = vmatpush.bf16.msra.mxu3 %v10773_v32  ;;  %v12639_v27 = vld [vmem:[#allocation12 + $0x1b4] sm:$0xf0]  ;;  %v12666_v32 = vld [vmem:[#allocation12 + $0x294] sm:$0xf] }
 0x396   :  { %5316 = vmatpush.bf16.msra.mxu1 %v10397_v30  ;;  %5278 = vmatpush.bf16.msrb.mxu2 %v10521_v35  ;;  %v10872_v30 = vld [vmem:[#allocation12 + $0x790] sm:$0xf]  ;;  %v10113_v1 = vor.u32 %v12639_v27, %v10112_v28  ;;  %v10237_v38 = vor.u32 %v12666_v32, %v10234_v15  ;;  %v10368_v28 = vld [vmem:[#allocation12 + $0x398] sm:$0xf]  ;;  %v12730_v32 = vld [vmem:[#allocation12 + $0x494] sm:$0xf] }
 0x397   :  { %5268 = vmatmul.bf16.vlgmr.msrb.gmra.mxu1 %v13909_v6  ;;  %v10873_v35 = vor.u32 %v12830_v52, %v10872_v30  ;;  %v12703_v27 = vld [vmem:[#allocation12 + $0x3b4] sm:$0xf0]  ;;  %v12798_v30 = vld [vmem:[#allocation12 + $0x6ac] sm:$0xf0] }
 0x398   :  { %v9952_v15 = vld [vmem:[#allocation12 + $0x58] sm:$0xf] }
 0x399   :  { %5307 = vmatpush.bf16.msra.mxu0 %v9981_v48  ;;  %5237 = vmatpush.bf16.msra.mxu3 %v10741_v50  ;;  %v10080_v48 = vld [vmem:[#allocation12 + $0x158] sm:$0xf]  ;;  %v12658_v50 = vld [vmem:[#allocation12 + $0x254] sm:$0xf] }
 0x39a   :  { %5317 = vmatpush.bf16.msra.mxu1 %v10365_v40  ;;  %5279 = vmatpush.bf16.msrb.mxu2 %v10489_v53  ;;  %v10840_v40 = vld [vmem:[#allocation12 + $0x750] sm:$0xf]  ;;  %v10081_v4 = vor.u32 %v12631_v37, %v10080_v48  ;;  %v10205_v59 = vor.u32 %v12658_v50, %v10202_v9  ;;  %v12695_v48 = vld [vmem:[#allocation12 + $0x374] sm:$0xf0] }
 0x39b   :  { %v10841_v53 = vor.u32 %v12822_v41, %v10840_v40  ;;  %v10712_v37 = vld [vmem:[#allocation12 + $0x650] sm:$0xf]  ;;  %v9920_v9 = vld [vmem:[#allocation12 + $0x18] sm:$0xf] }
 0x39c   :  { %v12790_v40 = vld [vmem:[#allocation12 + $0x66c] sm:$0xf0] }
 0x39d   :  { %5308 = vmatpush.bf16.msra.mxu0 %v9949_v57  ;;  %5238 = vmatpush.bf16.msra.mxu3 %v10709_v62  ;;  %v10048_v57 = vld [vmem:[#allocation12 + $0x118] sm:$0xf]  ;;  %v10170_v62 = vld [vmem:[#allocation12 + $0x230] sm:$0xf0]  ;;  %v10713_v39 = vor.u32 %v12790_v40, %v10712_v37 }
 0x39e   :  { %5318 = vmatpush.bf16.msra.mxu1 %v10333_v58  ;;  %5280 = vmatpush.bf16.msrb.mxu2 %v10457_v8  ;;  %v12814_v58 = vld [vmem:[#allocation12 + $0x72c] sm:$0xf0]  ;;  %v10049_v14 = vor.u32 %v12623_v56, %v10048_v57  ;;  %v12615_v8 = vld [vmem:[#allocation12 + $0xf4] sm:$0xf0]  ;;  %v12643_v56 = vld [vmem:[#allocation12 + $0x1dc] sm:$0xf] }
 0x39f   :  { %v10809_v7 = vor.u32 %v12814_v58, %v10808_v47  ;;  %v10017_v21 = vor.u32 %v12615_v8, %v10016_v2  ;;  %v12687_v57 = vld [vmem:[#allocation12 + $0x334] sm:$0xf0]  ;;  %v10146_v47 = vld [vmem:[#allocation12 + $0x1f8] sm:$0xf0]  ;;  %v10680_v58 = vld [vmem:[#allocation12 + $0x610] sm:$0xf] }
 0x3a0   :  { %v10426_v2 = vld [vmem:[#allocation12 + $0x430] sm:$0xf0]  ;;  %v10149_v8 = vor.u32 %v12643_v56, %v10146_v47  ;;  %v10592_v37 = vld [vmem:[#allocation12 + $0x558] sm:$0xf] }
 0x3a1   :  { %5309 = vmatpush.bf16.msra.mxu0 %v9917_v45  ;;  %5239 = vmatpush.bf16.msra.mxu3 %v10677_v12  ;;  %v10400_v45 = vld [vmem:[#allocation12 + $0x3d8] sm:$0xf]  ;;  %v12738_v12 = vld [vmem:[#allocation12 + $0x4d4] sm:$0xf] }
 0x3a2   :  { %5319 = vmatpush.bf16.msra.mxu1 %v10301_v5  ;;  %5281 = vmatpush.bf16.msrb.mxu2 %v10425_v29  ;;  %v12806_v5 = vld [vmem:[#allocation12 + $0x6ec] sm:$0xf0]  ;;  %v10401_v18 = vor.u32 %v12711_v10, %v10400_v45  ;;  %v10525_v52 = vor.u32 %v12738_v12, %v10522_v25  ;;  %v12679_v10 = vld [vmem:[#allocation12 + $0x2f4] sm:$0xf0]  ;;  %v12826_v12 = vld [vmem:[#allocation12 + $0x794] sm:$0xf] }
 0x3a3   :  { %v10777_v0 = vor.u32 %v12806_v5, %v10776_v11  ;;  %v10744_v29 = vld [vmem:[#allocation12 + $0x690] sm:$0xf]  ;;  %v10656_v11 = vld [vmem:[#allocation12 + $0x5d8] sm:$0xf]  ;;  %v10874_v25 = vld [vmem:[#allocation12 + $0x7b0] sm:$0xf0] }
 0x3a4   :  { %5310 = vmatmul.bf16.vlgmr.msra.gmra.mxu0 %v13899_v23  ;;  %5240 = vmatmul.bf16.vlgmr.msra.gmra.mxu3 %v13934_v17  ;;  %v10745_v46 = vor.u32 %v12798_v30, %v10744_v29  ;;  %v12775_v5 = vld [vmem:[#allocation12 + $0x5f4] sm:$0xf0] }
 0x3a5   :  { %5358 = vmatpush.bf16.msrb.mxu0 %v10145_v22  ;;  %5288 = vmatpush.bf16.msrb.mxu3 %v10905_v36  ;;  %v10173_v22 = vor.u32 %v12650_v44, %v10170_v62  ;;  %v12607_v36 = vld [vmem:[#allocation12 + $0xb4] sm:$0xf0]  ;;  %v12834_v44 = vld [vmem:[#allocation12 + $0x7d4] sm:$0xf] }
 0x3a6   :  { %5320 = vmatpush.bf16.msra.mxu1 %v10269_v55  ;;  %5330 = vmatpush.bf16.msra.mxu2 %v10653_v31  ;;  %v9985_v55 = vor.u32 %v12607_v36, %v9984_v26  ;;  %v10369_v31 = vor.u32 %v12703_v27, %v10368_v28  ;;  %v10906_v62 = vld [vmem:[#allocation12 + $0x7f0] sm:$0xf0]  ;;  %v10240_v36 = vld [vmem:[#allocation12 + $0x298] sm:$0xf] }
 0x3a7   :  { %5282 = vmatmul.bf16.vlgmr.msrb.gmra.mxu2 %v13920_v49  ;;  %v12671_v27 = vld [vmem:[#allocation12 + $0x2b4] sm:$0xf0] }
 0x3a8   :  { %v10624_v29 = vld [vmem:[#allocation12 + $0x598] sm:$0xf] }
 0x3a9   :  { %5359 = vmatpush.bf16.msrb.mxu0 %v10113_v1  ;;  %5289 = vmatpush.bf16.msrb.mxu3 %v10873_v35  ;;  %v10490_v1 = vld [vmem:[#allocation12 + $0x4b0] sm:$0xf0]  ;;  %v10336_v35 = vld [vmem:[#allocation12 + $0x358] sm:$0xf] }
 0x3aa   :  { %5321 = vmatpush.bf16.msra.mxu1 %v10237_v38  ;;  %5331 = vmatpush.bf16.msra.mxu2 %v10621_v42  ;;  %v10493_v41 = vor.u32 %v12730_v32, %v10490_v1  ;;  %v12722_v38 = vld [vmem:[#allocation12 + $0x454] sm:$0xf]  ;;  %v9953_v42 = vor.u32 %v12599_v33, %v9952_v15  ;;  %v10337_v50 = vor.u32 %v12695_v48, %v10336_v35  ;;  %v12767_v30 = vld [vmem:[#allocation12 + $0x5b4] sm:$0xf0] }
 0x3ab   :  { %v12818_v32 = vld [vmem:[#allocation12 + $0x754] sm:$0xf]  ;;  %v10241_v15 = vor.u32 %v12671_v27, %v10240_v36  ;;  %v10208_v33 = vld [vmem:[#allocation12 + $0x258] sm:$0xf]  ;;  %v12595_v27 = vld [vmem:[#allocation12 + $0x5c] sm:$0xf] }
 0x3ac   :  { %v10842_v1 = vld [vmem:[#allocation12 + $0x770] sm:$0xf0]  ;;  %v12663_v48 = vld [vmem:[#allocation12 + $0x274] sm:$0xf0] }
 0x3ad   :  { %5360 = vmatpush.bf16.msrb.mxu0 %v10081_v4  ;;  %5290 = vmatpush.bf16.msrb.mxu3 %v10841_v53  ;;  %v10458_v4 = vld [vmem:[#allocation12 + $0x470] sm:$0xf0]  ;;  %v10304_v53 = vld [vmem:[#allocation12 + $0x318] sm:$0xf] }
 0x3ae   :  { %5322 = vmatpush.bf16.msra.mxu1 %v10205_v59  ;;  %5332 = vmatpush.bf16.msra.mxu2 %v10589_v61  ;;  %v12782_v59 = vld [vmem:[#allocation12 + $0x62c] sm:$0xf0]  ;;  %v10461_v61 = vor.u32 %v12722_v38, %v10458_v4  ;;  %v10305_v54 = vor.u32 %v12687_v57, %v10304_v53  ;;  %v12759_v40 = vld [vmem:[#allocation12 + $0x574] sm:$0xf0]  ;;  %v12619_v38 = vld [vmem:[#allocation12 + $0x11c] sm:$0xf] }
 0x3af   :  { %v10681_v45 = vor.u32 %v12782_v59, %v10680_v58  ;;  %v10810_v4 = vld [vmem:[#allocation12 + $0x730] sm:$0xf0]  ;;  %v12655_v53 = vld [vmem:[#allocation12 + $0x234] sm:$0xf0]  ;;  %v12611_v58 = vld [vmem:[#allocation12 + $0xdc] sm:$0xf] }
 0x3b0   :  { %v10560_v56 = vld [vmem:[#allocation12 + $0x518] sm:$0xf] }
 0x3b1   :  { %5361 = vmatpush.bf16.msrb.mxu0 %v10049_v14  ;;  %5291 = vmatpush.bf16.msrb.mxu3 %v10809_v7  ;;  %v9921_v14 = vor.u32 %v12591_v51, %v9920_v9  ;;  %v10272_v7 = vld [vmem:[#allocation12 + $0x2d8] sm:$0xf]  ;;  %v10209_v9 = vor.u32 %v12663_v48, %v10208_v33  ;;  %v10593_v51 = vor.u32 %v12759_v40, %v10592_v37  ;;  %v12587_v48 = vld [vmem:[#allocation12 + $0x1c] sm:$0xf] }
 0x3b2   :  { %5323 = vmatpush.bf16.msra.mxu1 %v10173_v22  ;;  %5333 = vmatpush.bf16.msra.mxu2 %v10557_v13  ;;  %v10909_v22 = vor.u32 %v12834_v44, %v10906_v62  ;;  %v12635_v13 = vld [vmem:[#allocation12 + $0x19c] sm:$0xf]  ;;  %v10273_v26 = vor.u32 %v12679_v10, %v10272_v7  ;;  %v12751_v47 = vld [vmem:[#allocation12 + $0x534] sm:$0xf0] }
 0x3b3   :  { %v12707_v44 = vld [vmem:[#allocation12 + $0x3dc] sm:$0xf]  ;;  %v12743_v10 = vld [vmem:[#allocation12 + $0x4f4] sm:$0xf0] }
 0x3b4   :  { %v10402_v62 = vld [vmem:[#allocation12 + $0x3f8] sm:$0xf0]  ;;  %v10496_v36 = vld [vmem:[#allocation12 + $0x498] sm:$0xf] }
 0x3b5   :  { %5362 = vmatpush.bf16.msrb.mxu0 %v10017_v21  ;;  %5292 = vmatpush.bf16.msrb.mxu3 %v10777_v0  ;;  %v10114_v21 = vld [vmem:[#allocation12 + $0x1b8] sm:$0xf0]  ;;  %v10657_v0 = vor.u32 %v12775_v5, %v10656_v11 }
 0x3b6   :  { %5372 = vmatpush.bf16.msrb.mxu1 %v10401_v18  ;;  %5334 = vmatpush.bf16.msra.mxu2 %v10525_v52  ;;  %v10429_v18 = vor.u32 %v12714_v43, %v10426_v2  ;;  %v10117_v28 = vor.u32 %v12635_v13, %v10114_v21  ;;  %v10877_v52 = vor.u32 %v12826_v12, %v10874_v25  ;;  %v12603_v11 = vld [vmem:[#allocation12 + $0x9c] sm:$0xf]  ;;  %v10746_v12 = vld [vmem:[#allocation12 + $0x6b0] sm:$0xf0] }
 0x3b7   :  { %5324 = vmatmul.bf16.vlgmr.msra.gmra.mxu1 %v13909_v6  ;;  %v10561_v2 = vor.u32 %v12751_v47, %v10560_v56  ;;  %v12699_v13 = vld [vmem:[#allocation12 + $0x39c] sm:$0xf]  ;;  %v10432_v47 = vld [vmem:[#allocation12 + $0x418] sm:$0xf] }
 0x3b8   :  { %v10370_v21 = vld [vmem:[#allocation12 + $0x3b8] sm:$0xf0] }
 0x3b9   :  { %5363 = vmatpush.bf16.msrb.mxu0 %v9985_v55  ;;  %5293 = vmatpush.bf16.msrb.mxu3 %v10745_v46  ;;  %v12627_v55 = vld [vmem:[#allocation12 + $0x15c] sm:$0xf]  ;;  %v10625_v46 = vor.u32 %v12767_v30, %v10624_v29 }
 0x3ba   :  { %5373 = vmatpush.bf16.msrb.mxu1 %v10369_v31  ;;  %5335 = vmatpush.bf16.msra.mxu2 %v10493_v41  ;;  %v10082_v31 = vld [vmem:[#allocation12 + $0x178] sm:$0xf0]  ;;  %v10845_v41 = vor.u32 %v12818_v32, %v10842_v1  ;;  %v10714_v32 = vld [vmem:[#allocation12 + $0x670] sm:$0xf0] }
 0x3bb   :  { %v10085_v35 = vor.u32 %v12627_v55, %v10082_v31  ;;  %v9954_v30 = vld [vmem:[#allocation12 + $0x78] sm:$0xf0]  ;;  %v12786_v31 = vld [vmem:[#allocation12 + $0x654] sm:$0xf] }
 0x3bc   :  { %v10338_v55 = vld [vmem:[#allocation12 + $0x378] sm:$0xf0]  ;;  %v10717_v40 = vor.u32 %v12786_v31, %v10714_v32 }
 0x3bd   :  { %5364 = vmatpush.bf16.msrb.mxu0 %v9953_v42  ;;  %5294 = vmatpush.bf16.msrb.mxu3 %v10713_v39  ;;  %v10050_v42 = vld [vmem:[#allocation12 + $0x138] sm:$0xf0]  ;;  %v10176_v39 = vld [vmem:[#allocation12 + $0x218] sm:$0xf] }
 0x3be   :  { %5374 = vmatpush.bf16.msrb.mxu1 %v10337_v50  ;;  %5336 = vmatpush.bf16.msra.mxu2 %v10461_v61  ;;  %v12810_v50 = vld [vmem:[#allocation12 + $0x714] sm:$0xf]  ;;  %v10053_v57 = vor.u32 %v12619_v38, %v10050_v42  ;;  %v10018_v61 = vld [vmem:[#allocation12 + $0xf8] sm:$0xf0]  ;;  %v10177_v43 = vor.u32 %v12655_v53, %v10176_v39  ;;  %v11032_v42 = vld [vmem:[#allocation13 + $0xe0] sm:$0xf] }
 0x3bf   :  { %v10813_v59 = vor.u32 %v12810_v50, %v10810_v4  ;;  %v10021_v7 = vor.u32 %v12611_v58, %v10018_v61  ;;  %v9922_v37 = vld [vmem:[#allocation12 + $0x38] sm:$0xf0]  ;;  %v12870_v50 = vld [vmem:[#allocation13 + $0xec] sm:$0xf0]  ;;  %v12778_v4 = vld [vmem:[#allocation12 + $0x614] sm:$0xf] }
 0x3c0   :  { %v10306_v38 = vld [vmem:[#allocation12 + $0x338] sm:$0xf0]  ;;  %v10912_v39 = vld [vmem:[#allocation12 + $0x7d8] sm:$0xf]  ;;  %v11033_v61 = vor.u32 %v12870_v50, %v11032_v42 }
 0x3c1   :  { %5365 = vmatpush.bf16.msrb.mxu0 %v9921_v14  ;;  %5295 = vmatpush.bf16.msrb.mxu3 %v10681_v45  ;;  %v12802_v14 = vld [vmem:[#allocation12 + $0x6d4] sm:$0xf]  ;;  %v10528_v45 = vld [vmem:[#allocation12 + $0x4d8] sm:$0xf]  ;;  %v12659_v32 = vld [vmem:[#allocation12 + $0x25c] sm:$0xf] }
 0x3c2   :  { %5375 = vmatpush.bf16.msrb.mxu1 %v10305_v54  ;;  %5337 = vmatpush.bf16.msra.mxu2 %v10429_v18  ;;  %v10778_v54 = vld [vmem:[#allocation12 + $0x6f0] sm:$0xf0]  ;;  %v10529_v25 = vor.u32 %v12743_v10, %v10528_v45  ;;  %v12839_v53 = vld [vmem:[#allocation12 + $0x7f4] sm:$0xf0]  ;;  %v12651_v50 = vld [vmem:[#allocation12 + $0x21c] sm:$0xf] }
 0x3c3   :  { %v10781_v5 = vor.u32 %v12802_v14, %v10778_v54  ;;  %v12794_v18 = vld [vmem:[#allocation12 + $0x694] sm:$0xf]  ;;  %v12719_v58 = vld [vmem:[#allocation12 + $0x434] sm:$0xf0]  ;;  %v12771_v14 = vld [vmem:[#allocation12 + $0x5dc] sm:$0xf] }
 0x3c4   :  { %5366 = vmatmul.bf16.vlgmr.msrb.gmra.mxu0 %v13899_v23  ;;  %5296 = vmatmul.bf16.vlgmr.msrb.gmra.mxu3 %v13934_v17  ;;  %v10749_v29 = vor.u32 %v12794_v18, %v10746_v12  ;;  %v10658_v54 = vld [vmem:[#allocation12 + $0x5f8] sm:$0xf0]  ;;  %v10433_v45 = vor.u32 %v12719_v58, %v10432_v47  ;;  %v10880_v10 = vld [vmem:[#allocation12 + $0x798] sm:$0xf]  ;;  %v12854_v47 = vld [vmem:[#allocation13 + $0x6c] sm:$0xf0] }
 0x3c5   :  { %5414 = vmatpush.bf16.msra.mxu0 %v10149_v8  ;;  %5344 = vmatpush.bf16.msra.mxu3 %v10909_v22  ;;  %v10405_v8 = vor.u32 %v12707_v44, %v10402_v62  ;;  %v9986_v22 = vld [vmem:[#allocation12 + $0xb8] sm:$0xf0]  ;;  %v11160_v58 = vld [vmem:[#allocation13 + $0x1e0] sm:$0xf] }
 0x3c6   :  { %5376 = vmatpush.bf16.msrb.mxu1 %v10273_v26  ;;  %5386 = vmatpush.bf16.msrb.mxu2 %v10657_v0  ;;  %v9989_v26 = vor.u32 %v12603_v11, %v9986_v22  ;;  %v10373_v0 = vor.u32 %v12699_v13, %v10370_v21  ;;  %v10274_v62 = vld [vmem:[#allocation12 + $0x2f8] sm:$0xf0]  ;;  %v12831_v11 = vld [vmem:[#allocation12 + $0x7b4] sm:$0xf0]  ;;  %v10661_v22 = vor.u32 %v12771_v14, %v10658_v54  ;;  %v13955_v21 = vpop.f32.mrf.mxu1 }
 0x3c7   :  { %5338 = vmatmul.bf16.vlgmr.msra.gmra.mxu2 %v13920_v49  ;;  %v12667_v13 = vld [vmem:[#allocation12 + $0x29c] sm:$0xf] }
 0x3c8   :  { %v10242_v12 = vld [vmem:[#allocation12 + $0x2b8] sm:$0xf0] }
 0x3c9   :  { %5415 = vmatpush.bf16.msra.mxu0 %v10117_v28  ;;  %5345 = vmatpush.bf16.msra.mxu3 %v10877_v52  ;;  %v12735_v28 = vld [vmem:[#allocation12 + $0x4b4] sm:$0xf0]  ;;  %v12691_v52 = vld [vmem:[#allocation12 + $0x35c] sm:$0xf] }
 0x3ca   :  { %5377 = vmatpush.bf16.msrb.mxu1 %v10241_v15  ;;  %5387 = vmatpush.bf16.msrb.mxu2 %v10625_v46  ;;  %v10497_v1 = vor.u32 %v12735_v28, %v10496_v36  ;;  %v10464_v15 = vld [vmem:[#allocation12 + $0x458] sm:$0xf]  ;;  %v9957_v46 = vor.u32 %v12595_v27, %v9954_v30  ;;  %v10341_v33 = vor.u32 %v12691_v52, %v10338_v55  ;;  %v11000_v36 = vld [vmem:[#allocation13 + $0xa0] sm:$0xf]  ;;  %v12862_v28 = vld [vmem:[#allocation13 + $0xac] sm:$0xf0]  ;;  %v13957_v27 = vpop.f32.mrf.mxu2 }
 0x3cb   :  { %v12823_v30 = vld [vmem:[#allocation12 + $0x774] sm:$0xf0]  ;;  %v10245_v55 = vor.u32 %v12667_v13, %v10242_v12  ;;  %v12850_v13 = vld [vmem:[#allocation13 + $0x4c] sm:$0xf0] }
 0x3cc   :  { %v13963_v52 = vld [vmem:[%s14244_s10] sm:$0xff]  ;;  %v12898_v12 = vld [vmem:[#allocation13 + $0x1cc] sm:$0xf0] }
 0x3cd   :  { %5416 = vmatpush.bf16.msra.mxu0 %v10085_v35  ;;  %5346 = vmatpush.bf16.msra.mxu3 %v10845_v41  ;;  %v12727_v35 = vld [vmem:[#allocation12 + $0x474] sm:$0xf0]  ;;  %v12683_v41 = vld [vmem:[#allocation12 + $0x31c] sm:$0xf] }
 0x3ce   :  { %5378 = vmatpush.bf16.msrb.mxu1 %v10209_v9  ;;  %5388 = vmatpush.bf16.msrb.mxu2 %v10593_v51  ;;  %v10682_v9 = vld [vmem:[#allocation12 + $0x630] sm:$0xf0]  ;;  %v10465_v51 = vor.u32 %v12727_v35, %v10464_v15  ;;  %v10309_v56 = vor.u32 %v12683_v41, %v10306_v38  ;;  %v10210_v15 = vld [vmem:[#allocation12 + $0x278] sm:$0xf0]  ;;  %v10984_v35 = vld [vmem:[#allocation13 + $0x80] sm:$0xf] }
 0x3cf   :  { %v10685_v44 = vor.u32 %v12778_v4, %v10682_v9  ;;  %v3726_v41 = vperm.slane %v13963_v52, 0  ;;  %v10213_v38 = vor.u32 %v12659_v32, %v10210_v15  ;;  %v10178_v4 = vld [vmem:[#allocation12 + $0x238] sm:$0xf0]  ;;  %v10936_v32 = vld [vmem:[#allocation13 + $0x20] sm:$0xf] }
 0x3d0   :  { %v10181_v14 = vor.u32 %v12651_v50, %v10178_v4  ;;  %v12846_v15 = vld [vmem:[#allocation13 + $0x2c] sm:$0xf0] }
 0x3d1   :  { %5417 = vmatpush.bf16.msra.mxu0 %v10053_v57  ;;  %5347 = vmatpush.bf16.msra.mxu3 %v10813_v59  ;;  %v9925_v57 = vor.u32 %v12587_v48, %v9922_v37  ;;  %v12675_v59 = vld [vmem:[#allocation12 + $0x2dc] sm:$0xf]  ;;  %v12858_v48 = vld [vmem:[#allocation13 + $0x8c] sm:$0xf0]  ;;  %v10816_v37 = vld [vmem:[#allocation12 + $0x718] sm:$0xf]  ;;  %v10937_v50 = vor.u32 %v12846_v15, %v10936_v32 }
 0x3d2   :  { %5379 = vmatpush.bf16.msrb.mxu1 %v10177_v43  ;;  %5389 = vmatpush.bf16.msrb.mxu2 %v10561_v2  ;;  %v10913_v43 = vor.u32 %v12839_v53, %v10912_v39  ;;  %v11016_v2 = vld [vmem:[#allocation13 + $0xc0] sm:$0xf]  ;;  %v12747_v39 = vld [vmem:[#allocation12 + $0x51c] sm:$0xf] }
 0x3d3   :  { %v10562_v53 = vld [vmem:[#allocation12 + $0x538] sm:$0xf0] }
 0x3d4   :  { %v10565_v54 = vor.u32 %v12747_v39, %v10562_v53  ;;  %v10920_v39 = vld [vmem:[#allocation13] sm:$0xf]  ;;  %v12842_v53 = vld [vmem:[#allocation13 + $0xc] sm:$0xf0]  ;;  %v10882_v32 = vld [vmem:[#allocation12 + $0x7b8] sm:$0xf0] }
 0x3d5   :  { %5418 = vmatpush.bf16.msra.mxu0 %v10021_v7  ;;  %5348 = vmatpush.bf16.msra.mxu3 %v10781_v5  ;;  %v12866_v7 = vld [vmem:[#allocation13 + $0xcc] sm:$0xf0]  ;;  %v10277_v5 = vor.u32 %v12675_v59, %v10274_v62  ;;  %v12807_v62 = vld [vmem:[#allocation12 + $0x6f4] sm:$0xf0] }
 0x3d6   :  { %5428 = vmatpush.bf16.msra.mxu1 %v10405_v8  ;;  %5390 = vmatpush.bf16.msrb.mxu2 %v10529_v25  ;;  %v13953_v8 = vpop.f32.mrf.mxu0  ;;  %v11017_v18 = vor.u32 %v12866_v7, %v11016_v2  ;;  %v12763_v25 = vld [vmem:[#allocation12 + $0x59c] sm:$0xf]  ;;  %v12902_v59 = vld [vmem:[#allocation13 + $0x1ec] sm:$0xf0]  ;;  %v5061_v2 = vpop.f32.mrf.mxu2 }
 0x3d7   :  { %5380 = vmatmul.bf16.vlgmr.msrb.gmra.mxu1 %v13909_v6 }
 0x3d9   :  { %5419 = vmatpush.bf16.msra.mxu0 %v9989_v26  ;;  %5349 = vmatpush.bf16.msra.mxu3 %v10749_v29  ;;  %v10626_v26 = vld [vmem:[#allocation12 + $0x5b8] sm:$0xf0]  ;;  %v10848_v29 = vld [vmem:[#allocation12 + $0x758] sm:$0xf] }
 0x3da   :  { %5429 = vmatpush.bf16.msra.mxu1 %v10373_v0  ;;  %5391 = vmatpush.bf16.msrb.mxu2 %v10497_v1  ;;  %v10881_v0 = vor.u32 %v12831_v11, %v10880_v10  ;;  %v10629_v31 = vor.u32 %v12763_v25, %v10626_v26  ;;  %v11001_v1 = vor.u32 %v12862_v28, %v11000_v36  ;;  %v12739_v10 = vld [vmem:[#allocation12 + $0x4dc] sm:$0xf]  ;;  %v10752_v26 = vld [vmem:[#allocation12 + $0x698] sm:$0xf] }
 0x3db   :  { %v10530_v11 = vld [vmem:[#allocation12 + $0x4f8] sm:$0xf0] }
 0x3dd   :  { %5420 = vmatpush.bf16.msra.mxu0 %v9957_v46  ;;  %5350 = vmatpush.bf16.msra.mxu3 %v10717_v40  ;;  %v12755_v46 = vld [vmem:[#allocation12 + $0x55c] sm:$0xf]  ;;  %v12815_v40 = vld [vmem:[#allocation12 + $0x734] sm:$0xf0] }
 0x3de   :  { %5430 = vmatpush.bf16.msra.mxu1 %v10341_v33  ;;  %5392 = vmatpush.bf16.msrb.mxu2 %v10465_v51  ;;  %v10594_v33 = vld [vmem:[#allocation12 + $0x578] sm:$0xf0]  ;;  %v5033_v9 = vpop.f32.mrf.mxu0  ;;  %v10985_v51 = vor.u32 %v12858_v48, %v10984_v35  ;;  %v10720_v48 = vld [vmem:[#allocation12 + $0x658] sm:$0xf] }
 0x3df   :  { %v10597_v42 = vor.u32 %v12755_v46, %v10594_v33  ;;  %v11128_v46 = vld [vmem:[#allocation13 + $0x1a0] sm:$0xf]  ;;  %v5034_v33 = vadd.f32 %v5033_v9, %v3726_v41 }
 0x3e0   :  { %v11112_v9 = vld [vmem:[#allocation13 + $0x180] sm:$0xf] }
 0x3e1   :  { %5421 = vmatpush.bf16.msra.mxu0 %v9925_v57  ;;  %5351 = vmatpush.bf16.msra.mxu3 %v10685_v44  ;;  %v10968_v57 = vld [vmem:[#allocation13 + $0x60] sm:$0xf]  ;;  %v10784_v44 = vld [vmem:[#allocation12 + $0x6d8] sm:$0xf] }
 0x3e2   :  { %5431 = vmatpush.bf16.msra.mxu1 %v10309_v56  ;;  %5393 = vmatpush.bf16.msrb.mxu2 %v10433_v45  ;;  %v10817_v56 = vor.u32 %v12815_v40, %v10816_v37  ;;  %v10969_v7 = vor.u32 %v12854_v47, %v10968_v57  ;;  %v11161_v45 = vor.u32 %v12902_v59, %v11160_v58  ;;  %v12791_v37 = vld [vmem:[#allocation12 + $0x674] sm:$0xf0]  ;;  %v12723_v40 = vld [vmem:[#allocation12 + $0x45c] sm:$0xf]  ;;  %v12890_v57 = vld [vmem:[#allocation13 + $0x18c] sm:$0xf0]  ;;  %v13974_v47 = vpop.f32.mrf.mxu2 }
 0x3e3   :  { %v11034_v59 = vld [vmem:[#allocation13 + $0xf0] sm:$0xf0] }
 0x3e4   :  { %5422 = vmatmul.bf16.vlgmr.msra.gmra.mxu0 %v13899_v23  ;;  %5352 = vmatmul.bf16.vlgmr.msra.gmra.mxu3 %v13934_v17  ;;  %v10849_v23 = vor.u32 %v12823_v30, %v10848_v29 }
 0x3e5   :  { %6316 = vmatpush.bf16.msrb.mxu0 %v11033_v61  ;;  %5400 = vmatpush.bf16.msrb.mxu3 %v10913_v43  ;;  %v5047_v61 = vpop.f32.mrf.mxu1  ;;  %v5032_v43 = vadd.f32 %v13953_v8, %v3726_v41  ;;  %v10533_v8 = vor.u32 %v12739_v10, %v10530_v11  ;;  %v10721_v41 = vor.u32 %v12791_v37, %v10720_v48  ;;  %v12882_v48 = vld [vmem:[#allocation13 + $0x14c] sm:$0xf0]  ;;  %v11272_v37 = vld [vmem:[#allocation13 + $0x2c0] sm:$0xf] }
 0x3e6   :  { %5432 = vmatpush.bf16.msra.mxu1 %v10277_v5  ;;  %5442 = vmatpush.bf16.msra.mxu2 %v10661_v22  ;;  %v10952_v5 = vld [vmem:[#allocation13 + $0x40] sm:$0xf]  ;;  %v10785_v22 = vor.u32 %v12807_v62, %v10784_v44  ;;  %v12783_v44 = vld [vmem:[#allocation12 + $0x634] sm:$0xf0]  ;;  %v3727_v62 = vperm.slane %v13963_v52, 1  ;;  %v10921_v10 = vor.u32 %v12842_v53, %v10920_v39  ;;  %v11113_v11 = vor.u32 %v12890_v57, %v11112_v9 }
 0x3e7   :  { %5394 = vmatmul.bf16.vlgmr.msrb.gmra.mxu2 %v13920_v49  ;;  %v5046_v25 = vadd.f32 %v13955_v21, %v5032_v43  ;;  %v5073_v36 = vpop.f32.mrf.mxu3  ;;  %v10953_v29 = vor.u32 %v12850_v13, %v10952_v5  ;;  %v12894_v21 = vld [vmem:[#allocation13 + $0x1ac] sm:$0xf0]  ;;  %v12835_v43 = vld [vmem:[#allocation12 + $0x7dc] sm:$0xf]  ;;  %v11002_v39 = vld [vmem:[#allocation13 + $0xb0] sm:$0xf0] }
 0x3e8   :  { %v11129_v4 = vor.u32 %v12894_v21, %v11128_v46  ;;  %v10434_v5 = vld [vmem:[#allocation12 + $0x438] sm:$0xf0] }
 0x3e9   :  { %6317 = vmatpush.bf16.msrb.mxu0 %v11017_v18  ;;  %5401 = vmatpush.bf16.msrb.mxu3 %v10881_v0  ;;  %v11144_v18 = vld [vmem:[#allocation13 + $0x1c0] sm:$0xf]  ;;  %v12799_v0 = vld [vmem:[#allocation12 + $0x6b4] sm:$0xf0]  ;;  %v5060_v28 = vadd.f32 %v13957_v27, %v5046_v25  ;;  %v12819_v9 = vld [vmem:[#allocation12 + $0x75c] sm:$0xf] }
 0x3ea   :  { %5433 = vmatpush.bf16.msra.mxu1 %v10245_v55  ;;  %5443 = vmatpush.bf16.msra.mxu2 %v10629_v31  ;;  %v11145_v30 = vor.u32 %v12898_v12, %v11144_v18  ;;  %v12731_v55 = vld [vmem:[#allocation12 + $0x49c] sm:$0xf]  ;;  %v12886_v12 = vld [vmem:[#allocation13 + $0x16c] sm:$0xf0]  ;;  %v11288_v25 = vld [vmem:[#allocation13 + $0x2e0] sm:$0xf] }
 0x3eb   :  { %v10498_v31 = vld [vmem:[#allocation12 + $0x4b8] sm:$0xf0]  ;;  %v5074_v35 = vadd.f32 %v5073_v36, %v5060_v28  ;;  %v12864_v28 = vld [vmem:[#allocation13 + $0xc4] sm:$0xf] }
 0x3ec   :  { %v10501_v27 = vor.u32 %v12731_v55, %v10498_v31  ;;  %v12827_v31 = vld [vmem:[#allocation12 + $0x79c] sm:$0xf] }
 0x3ed   :  { %6318 = vmatpush.bf16.msrb.mxu0 %v11001_v1  ;;  %5402 = vmatpush.bf16.msrb.mxu3 %v10849_v23  ;;  %v10753_v1 = vor.u32 %v12799_v0, %v10752_v26  ;;  %v5087_v23 = vpop.f32.mrf.mxu0  ;;  %v5470_v58 = vadd.f32 %v5074_v35, %v13893_v19  ;;  %v12934_v26 = vld [vmem:[#allocation13 + $0x2ec] sm:$0xf0]  ;;  %v10850_v57 = vld [vmem:[#allocation12 + $0x778] sm:$0xf0] }
 0x3ee   :  { %5434 = vmatpush.bf16.msra.mxu1 %v10213_v38  ;;  %5444 = vmatpush.bf16.msra.mxu2 %v10597_v42  ;;  %v5048_v38 = vadd.f32 %v5047_v61, %v5034_v33  ;;  %v13972_v42 = vpop.f32.mrf.mxu1  ;;  %v10688_v61 = vld [vmem:[#allocation12 + $0x618] sm:$0xf]  ;;  %v11289_v21 = vor.u32 %v12934_v26, %v11288_v25  ;;  %v11080_v33 = vld [vmem:[#allocation13 + $0x140] sm:$0xf]  ;;  %v12922_v26 = vld [vmem:[#allocation13 + $0x28c] sm:$0xf0] }
 0x3ef   :  { %v10689_v18 = vor.u32 %v12783_v44, %v10688_v61  ;;  %v5486_v0 = vmul.f32 0.01, %v5470_v58  ;;  %vm5478_vm11 = vcmp.gt.f32.partialorder %v5470_v58, 0.0  ;;  %v12878_v44 = vld [vmem:[#allocation13 + $0x12c] sm:$0xf0] }
 0x3f0   :  { %v11240_v25 = vld [vmem:[#allocation13 + $0x280] sm:$0xf] }
 0x3f1   :  { %6319 = vmatpush.bf16.msrb.mxu0 %v10985_v51  ;;  %5403 = vmatpush.bf16.msrb.mxu3 %v10817_v56  ;;  %v10466_v51 = vld [vmem:[#allocation12 + $0x478] sm:$0xf0]  ;;  %v5062_v56 = vadd.f32 %v5061_v2, %v5048_v38  ;;  %v13983_v38 = vsel %vm5478_vm11, %v5470_v58, %v5486_v0 }
 0x3f2   :  { %5435 = vmatpush.bf16.msra.mxu1 %v10181_v14  ;;  %5445 = vmatpush.bf16.msra.mxu2 %v10565_v54  ;;  %v5075_v14 = vpop.f32.mrf.mxu3  ;;  %v10469_v54 = vor.u32 %v12723_v40, %v10466_v51  ;;  %v12715_v2 = vld [vmem:[#allocation12 + $0x41c] sm:$0xf]  ;;  %v12860_v51 = vld [vmem:[#allocation13 + $0xa4] sm:$0xf] }
 0x3f3   :  { %v10437_v55 = vor.u32 %v12715_v2, %v10434_v5  ;;  %v11005_v61 = vor.u32 %v12860_v51, %v11002_v39  ;;  %v10818_v2 = vld [vmem:[#allocation12 + $0x738] sm:$0xf0] }
 0x3f5   :  { %6320 = vmatpush.bf16.msrb.mxu0 %v10969_v7  ;;  %5404 = vmatpush.bf16.msrb.mxu3 %v10785_v22  ;;  %v10914_v7 = vld [vmem:[#allocation12 + $0x7f8] sm:$0xf0]  ;;  %v11096_v22 = vld [vmem:[#allocation13 + $0x160] sm:$0xf] }
 0x3f6   :  { %6330 = vmatpush.bf16.msrb.mxu1 %v11161_v45  ;;  %5446 = vmatpush.bf16.msra.mxu2 %v10533_v8  ;;  %v5076_v45 = vadd.f32 %v5075_v14, %v5062_v56  ;;  %v10917_v8 = vor.u32 %v12835_v43, %v10914_v7  ;;  %v11097_v46 = vor.u32 %v12886_v12, %v11096_v22  ;;  %v5103_v40 = vpop.f32.mrf.mxu1  ;;  %v11256_v14 = vld [vmem:[#allocation13 + $0x2a0] sm:$0xf]  ;;  %v12874_v12 = vld [vmem:[#allocation13 + $0x10c] sm:$0xf0] }
 0x3f7   :  { %5436 = vmatmul.bf16.vlgmr.msra.gmra.mxu1 %v13909_v6  ;;  %v12868_v6 = vld [vmem:[#allocation13 + $0xe4] sm:$0xf]  ;;  %v11081_v56 = vor.u32 %v12882_v48, %v11080_v33  ;;  %v11224_v48 = vld [vmem:[#allocation13 + $0x260] sm:$0xf] }
 0x3f8   :  { %v11037_v13 = vor.u32 %v12868_v6, %v11034_v59  ;;  %v5474_v36 = vadd.f32 %v5076_v45, %v13895_v24  ;;  %v5117_v6 = vpop.f32.mrf.mxu2  ;;  %v11064_v59 = vld [vmem:[#allocation13 + $0x120] sm:$0xf]  ;;  %v12856_v45 = vld [vmem:[#allocation13 + $0x84] sm:$0xf] }
 0x3f9   :  { %6321 = vmatpush.bf16.msrb.mxu0 %v10953_v29  ;;  %5405 = vmatpush.bf16.msrb.mxu3 %v10753_v1  ;;  %v11018_v29 = vld [vmem:[#allocation13 + $0xd0] sm:$0xf0]  ;;  %v5089_v1 = vpop.f32.mrf.mxu0  ;;  %v11065_v22 = vor.u32 %v12878_v44, %v11064_v59 }
 0x3fa   :  { %6331 = vmatpush.bf16.msrb.mxu1 %v11145_v30  ;;  %5447 = vmatpush.bf16.msra.mxu2 %v10501_v27  ;;  %v5088_v30 = vadd.f32 %v5087_v23, %v3727_v62  ;;  %vm5482_vm12 = vcmp.gt.f32.partialorder %v5474_v36, 0.0  ;;  %v5490_v15 = vmul.f32 0.01, %v5474_v36  ;;  %v11021_v35 = vor.u32 %v12864_v28, %v11018_v29  ;;  %v12930_v27 = vld [vmem:[#allocation13 + $0x2cc] sm:$0xf0] }
 0x3fb   :  { %v11273_v58 = vor.u32 %v12930_v27, %v11272_v37  ;;  %v5090_v43 = vadd.f32 %v5089_v1, %v3727_v62  ;;  %v10970_v29 = vld [vmem:[#allocation13 + $0x70] sm:$0xf0]  ;;  %v10786_v1 = vld [vmem:[#allocation12 + $0x6f8] sm:$0xf0] }
 0x3fc   :  { %v5102_v23 = vadd.f32 %v13972_v42, %v5088_v30  ;;  %v12900_v30 = vld [vmem:[#allocation13 + $0x1e4] sm:$0xf] }
 0x3fd   :  { %6322 = vmatpush.bf16.msrb.mxu0 %v10937_v50  ;;  %5406 = vmatpush.bf16.msrb.mxu3 %v10721_v41  ;;  %v13986_v50 = vsel %vm5482_vm12, %v5474_v36, %v5490_v15  ;;  %v5129_v41 = vpop.f32.mrf.mxu3  ;;  %v5104_v5 = vadd.f32 %v5103_v40, %v5090_v43  ;;  %v3728_v15 = vperm.slane %v13963_v52, 2  ;;  %v12848_v40 = vld [vmem:[#allocation13 + $0x44] sm:$0xf]  ;;  %v12914_v43 = vld [vmem:[#allocation13 + $0x24c] sm:$0xf0] }
 0x3fe   :  { %6332 = vmatpush.bf16.msrb.mxu1 %v11129_v4  ;;  %5448 = vmatpush.bf16.msra.mxu2 %v10469_v54  ;;  %v10885_v4 = vor.u32 %v12827_v31, %v10882_v32  ;;  %v13990_v53 = vpack.c.bf16 %v13986_v50, %v13983_v38  ;;  %v5116_v42 = vadd.f32 %v13974_v47, %v5102_v23  ;;  %v12926_v54 = vld [vmem:[#allocation13 + $0x2ac] sm:$0xf0]  ;;  %v12803_v32 = vld [vmem:[#allocation12 + $0x6dc] sm:$0xf] }
 0x3ff   :  { %v10853_v47 = vor.u32 %v12819_v9, %v10850_v57  ;;  %v5118_v36 = vadd.f32 %v5117_v6, %v5104_v5  ;;  %v12918_v23 = vld [vmem:[#allocation13 + $0x26c] sm:$0xf0]  ;;  %v10789_v9 = vor.u32 %v12803_v32, %v10786_v1  ;;  %v12896_v57 = vld [vmem:[#allocation13 + $0x1c4] sm:$0xf]  ;;  %v12795_v6 = vld [vmem:[#allocation12 + $0x69c] sm:$0xf] }
 0x400   :  { %v5130_v7 = vadd.f32 %v5129_v41, %v5116_v42  ;;  %v5171_v51 = vpop.f32.mrf.mxu2  ;;  %v11146_v42 = vld [vmem:[#allocation13 + $0x1d0] sm:$0xf0]  ;;  %v11225_v59 = vor.u32 %v12918_v23, %v11224_v48  ;;  %v12888_v32 = vld [vmem:[#allocation13 + $0x184] sm:$0xf]  ;;  %v12779_v48 = vld [vmem:[#allocation12 + $0x61c] sm:$0xf] }
 0x401   :  { %6323 = vmatpush.bf16.msrb.mxu0 %v10921_v10  ;;  %5407 = vmatpush.bf16.msrb.mxu3 %v10689_v18  ;;  %v10986_v10 = vld [vmem:[#allocation13 + $0x90] sm:$0xf0]  ;;  %v11048_v18 = vld [vmem:[#allocation13 + $0x100] sm:$0xf]  ;;  %v5143_v0 = vpop.f32.mrf.mxu0 }
 0x402   :  { %6333 = vmatpush.bf16.msrb.mxu1 %v11113_v11  ;;  %5449 = vmatpush.bf16.msra.mxu2 %v10437_v55  ;;  %v12811_v11 = vld [vmem:[#allocation12 + $0x71c] sm:$0xf]  ;;  %v10989_v62 = vor.u32 %v12856_v45, %v10986_v10  ;;  %v11162_v55 = vld [vmem:[#allocation13 + $0x1f0] sm:$0xf0]  ;;  %v11049_v33 = vor.u32 %v12874_v12, %v11048_v18 }
 0x403   :  { %v10821_v28 = vor.u32 %v12811_v11, %v10818_v2  ;;  %v11165_v27 = vor.u32 %v12900_v30, %v11162_v55  ;;  %v10938_v11 = vld [vmem:[#allocation13 + $0x30] sm:$0xf0]  ;;  %v12892_v2 = vld [vmem:[#allocation13 + $0x1a4] sm:$0xf]  ;;  %v12787_v18 = vld [vmem:[#allocation12 + $0x65c] sm:$0xf] }
 0x404   :  { %5408 = vmatmul.bf16.vlgmr.msrb.gmra.mxu3 %v13934_v17  ;;  %6324 = vmatmul.bf16.vlgmr.msrb.gmra.mxu0 %v13990_v53  ;;  %v11130_v5 = vld [vmem:[#allocation13 + $0x1b0] sm:$0xf0]  ;;  %v10722_v12 = vld [vmem:[#allocation12 + $0x678] sm:$0xf0] }
 0x405   :  { %6372 = vmatpush.bf16.msra.mxu0 %v11037_v13  ;;  %5456 = vmatpush.bf16.msra.mxu3 %v10917_v8  ;;  %v11257_v13 = vor.u32 %v12926_v54, %v11256_v14  ;;  %v5471_v8 = vadd.f32 %v5130_v7, %v13903_v16  ;;  %v5131_v31 = vpop.f32.mrf.mxu3  ;;  %v11149_v14 = vor.u32 %v12896_v57, %v11146_v42  ;;  %v11208_v54 = vld [vmem:[#allocation13 + $0x240] sm:$0xf]  ;;  %v12844_v7 = vld [vmem:[#allocation13 + $0x24] sm:$0xf]  ;;  %v10922_v30 = vld [vmem:[#allocation13 + $0x10] sm:$0xf0] }
 0x406   :  { %6334 = vmatpush.bf16.msrb.mxu1 %v11097_v46  ;;  %6344 = vmatpush.bf16.msrb.mxu2 %v11289_v21  ;;  %v5157_v46 = vpop.f32.mrf.mxu1  ;;  %v5132_v21 = vadd.f32 %v5131_v31, %v5118_v36  ;;  %v10941_v36 = vor.u32 %v12844_v7, %v10938_v11  ;;  %v10725_v31 = vor.u32 %v12787_v18, %v10722_v12  ;;  %v11114_v1 = vld [vmem:[#allocation13 + $0x190] sm:$0xf0]  ;;  %v12906_v57 = vld [vmem:[#allocation13 + $0x20c] sm:$0xf0]  ;;  %v12884_v42 = vld [vmem:[#allocation13 + $0x164] sm:$0xf] }
 0x407   :  { %5450 = vmatmul.bf16.vlgmr.msra.gmra.mxu2 %v13920_v49  ;;  %v12852_v49 = vld [vmem:[#allocation13 + $0x64] sm:$0xf]  ;;  %v5487_v39 = vmul.f32 0.01, %v5471_v8  ;;  %vm5479_vm13 = vcmp.gt.f32.partialorder %v5471_v8, 0.0 }
 0x408   :  { %v10973_v37 = vor.u32 %v12852_v49, %v10970_v29  ;;  %v5475_v41 = vadd.f32 %v5132_v21, %v13905_v20  ;;  %v11192_v49 = vld [vmem:[#allocation13 + $0x220] sm:$0xf]  ;;  %v12840_v29 = vld [vmem:[#allocation13 + $0x4] sm:$0xf] }
 0x409   :  { %6373 = vmatpush.bf16.msra.mxu0 %v11021_v35  ;;  %5457 = vmatpush.bf16.msra.mxu3 %v10885_v4  ;;  %v11241_v35 = vor.u32 %v12922_v26, %v11240_v25  ;;  %v10954_v4 = vld [vmem:[#allocation13 + $0x50] sm:$0xf0]  ;;  %v11209_v26 = vor.u32 %v12914_v43, %v11208_v54  ;;  %v11024_v54 = vld [vmem:[#allocation13 + $0xc8] sm:$0xf]  ;;  %v12867_v43 = vld [vmem:[#allocation13 + $0xd4] sm:$0xf0] }
 0x40a   :  { %6335 = vmatpush.bf16.msrb.mxu1 %v11081_v56  ;;  %6345 = vmatpush.bf16.msrb.mxu2 %v11273_v58  ;;  %v10754_v56 = vld [vmem:[#allocation12 + $0x6b8] sm:$0xf0]  ;;  %vm5483_vm14 = vcmp.gt.f32.partialorder %v5475_v41, 0.0  ;;  %v5491_v58 = vmul.f32 0.01, %v5475_v41  ;;  %v10957_v44 = vor.u32 %v12848_v40, %v10954_v4 }
 0x40b   :  { %v10757_v10 = vor.u32 %v12795_v6, %v10754_v56  ;;  %v11416_v40 = vld [vmem:[#allocation13 + $0x3e0] sm:$0xf]  ;;  %v12966_v4 = vld [vmem:[#allocation13 + $0x3ec] sm:$0xf0]  ;;  %v11098_v56 = vld [vmem:[#allocation13 + $0x170] sm:$0xf0] }
 0x40c   :  { %v14006_v45 = vsel %vm5483_vm14, %v5475_v41, %v5491_v58  ;;  %v11117_v41 = vor.u32 %v12888_v32, %v11114_v1  ;;  %v12932_v58 = vld [vmem:[#allocation13 + $0x2e4] sm:$0xf]  ;;  %v11400_v11 = vld [vmem:[#allocation13 + $0x3c0] sm:$0xf] }
 0x40d   :  { %6374 = vmatpush.bf16.msra.mxu0 %v11005_v61  ;;  %5458 = vmatpush.bf16.msra.mxu3 %v10853_v47  ;;  %v5144_v61 = vadd.f32 %v5143_v0, %v3728_v15  ;;  %v14004_v47 = vsel %vm5479_vm13, %v5471_v8, %v5487_v39  ;;  %v5185_v25 = vpop.f32.mrf.mxu3  ;;  %v11133_v8 = vor.u32 %v12892_v2, %v11130_v5  ;;  %v12962_v2 = vld [vmem:[#allocation13 + $0x3cc] sm:$0xf0]  ;;  %v12880_v12 = vld [vmem:[#allocation13 + $0x144] sm:$0xf] }
 0x40e   :  { %6336 = vmatpush.bf16.msrb.mxu1 %v11065_v22  ;;  %6346 = vmatpush.bf16.msrb.mxu2 %v11257_v13  ;;  %v14010_v13 = vpack.c.bf16 %v14006_v45, %v14004_v47  ;;  %v5159_v55 = vpop.f32.mrf.mxu1  ;;  %v10925_v39 = vor.u32 %v12840_v29, %v10922_v30  ;;  %v12863_v29 = vld [vmem:[#allocation13 + $0xb4] sm:$0xf0]  ;;  %v11384_v30 = vld [vmem:[#allocation13 + $0x3a0] sm:$0xf] }
 0x40f   :  { %v5158_v22 = vadd.f32 %v5157_v46, %v5144_v61  ;;  %v11040_v46 = vld [vmem:[#allocation13 + $0xe8] sm:$0xf] }
 0x411   :  { %6375 = vmatpush.bf16.msra.mxu0 %v10989_v62  ;;  %5459 = vmatpush.bf16.msra.mxu3 %v10821_v28  ;;  %v5145_v62 = vpop.f32.mrf.mxu0  ;;  %v5172_v0 = vadd.f32 %v5171_v51, %v5158_v22  ;;  %v12910_v28 = vld [vmem:[#allocation13 + $0x22c] sm:$0xf0]  ;;  %v11101_v22 = vor.u32 %v12884_v42, %v11098_v56  ;;  %v11050_v42 = vld [vmem:[#allocation13 + $0x110] sm:$0xf0] }
 0x412   :  { %6337 = vmatpush.bf16.msrb.mxu1 %v11049_v33  ;;  %6347 = vmatpush.bf16.msrb.mxu2 %v11241_v35  ;;  %v5146_v21 = vadd.f32 %v5145_v62, %v3728_v15  ;;  %v12871_v35 = vld [vmem:[#allocation13 + $0xf4] sm:$0xf0]  ;;  %v11193_v23 = vor.u32 %v12910_v28, %v11192_v49  ;;  %v11025_v62 = vor.u32 %v12867_v43, %v11024_v54  ;;  %v11274_v49 = vld [vmem:[#allocation13 + $0x2d0] sm:$0xf0]  ;;  %v11008_v28 = vld [vmem:[#allocation13 + $0xa8] sm:$0xf] }
 0x413   :  { %v5186_v33 = vadd.f32 %v5185_v25, %v5172_v0  ;;  %v11041_v6 = vor.u32 %v12871_v35, %v11040_v46  ;;  %v11082_v25 = vld [vmem:[#allocation13 + $0x150] sm:$0xf0]  ;;  %v12876_v46 = vld [vmem:[#allocation13 + $0x124] sm:$0xf]  ;;  %v12903_v54 = vld [vmem:[#allocation13 + $0x1f4] sm:$0xf0] }
 0x414   :  { %v5160_v51 = vadd.f32 %v5159_v55, %v5146_v21  ;;  %v12958_v55 = vld [vmem:[#allocation13 + $0x3ac] sm:$0xf0]  ;;  %v11085_v32 = vor.u32 %v12880_v12, %v11082_v25  ;;  %v11009_v21 = vor.u32 %v12863_v29, %v11008_v28  ;;  %v12924_v35 = vld [vmem:[#allocation13 + $0x2a4] sm:$0xf]  ;;  %v11242_v56 = vld [vmem:[#allocation13 + $0x290] sm:$0xf0] }
 0x415   :  { %6376 = vmatpush.bf16.msra.mxu0 %v10973_v37  ;;  %5460 = vmatpush.bf16.msra.mxu3 %v10789_v9  ;;  %v10690_v37 = vld [vmem:[#allocation12 + $0x638] sm:$0xf0]  ;;  %v11176_v9 = vld [vmem:[#allocation13 + $0x200] sm:$0xf]  ;;  %v5187_v7 = vpop.f32.mrf.mxu3  ;;  %v12916_v12 = vld [vmem:[#allocation13 + $0x264] sm:$0xf] }
 0x416   :  { %6386 = vmatpush.bf16.msra.mxu1 %v11165_v27  ;;  %6348 = vmatpush.bf16.msrb.mxu2 %v11225_v59  ;;  %v5173_v27 = vpop.f32.mrf.mxu2  ;;  %v10693_v15 = vor.u32 %v12779_v48, %v10690_v37  ;;  %v11290_v59 = vld [vmem:[#allocation13 + $0x2f0] sm:$0xf0]  ;;  %v11352_v43 = vld [vmem:[#allocation13 + $0x360] sm:$0xf]  ;;  %v10960_v25 = vld [vmem:[#allocation13 + $0x48] sm:$0xf] }
 0x417   :  { %6338 = vmatmul.bf16.vlgmr.msrb.gmra.mxu1 %v14010_v13  ;;  %v5174_v61 = vadd.f32 %v5173_v27, %v5160_v51  ;;  %v11293_v18 = vor.u32 %v12932_v58, %v11290_v59  ;;  %v11258_v48 = vld [vmem:[#allocation13 + $0x2b0] sm:$0xf0]  ;;  %v10976_v58 = vld [vmem:[#allocation13 + $0x68] sm:$0xf]  ;;  %v11336_v28 = vld [vmem:[#allocation13 + $0x340] sm:$0xf] }
 0x418   :  { %v12946_v29 = vld [vmem:[#allocation13 + $0x34c] sm:$0xf0] }
 0x419   :  { %6377 = vmatpush.bf16.msra.mxu0 %v10957_v44  ;;  %5461 = vmatpush.bf16.msra.mxu3 %v10757_v10  ;;  %v5472_v44 = vadd.f32 %v5186_v33, %v13914_v63  ;;  %v11177_v10 = vor.u32 %v12906_v57, %v11176_v9  ;;  %v5188_v5 = vadd.f32 %v5187_v7, %v5174_v61  ;;  %v11066_v33 = vld [vmem:[#allocation13 + $0x130] sm:$0xf0]  ;;  %v12872_v57 = vld [vmem:[#allocation13 + $0x104] sm:$0xf]  ;;  %v5199_v59 = vpop.f32.mrf.mxu0  ;;  %v12950_v7 = vld [vmem:[#allocation13 + $0x36c] sm:$0xf0] }
 0x41a   :  { %6387 = vmatpush.bf16.msra.mxu1 %v11149_v14  ;;  %6349 = vmatpush.bf16.msrb.mxu2 %v11209_v26  ;;  %v11417_v14 = vor.u32 %v12966_v4, %v11416_v40  ;;  %v12928_v26 = vld [vmem:[#allocation13 + $0x2c4] sm:$0xf]  ;;  %v10992_v40 = vld [vmem:[#allocation13 + $0x88] sm:$0xf]  ;;  %v12859_v4 = vld [vmem:[#allocation13 + $0x94] sm:$0xf0]  ;;  %v11261_v9 = vor.u32 %v12924_v35, %v11258_v48 }
 0x41b   :  { %v5488_v0 = vmul.f32 0.01, %v5472_v44  ;;  %vm5480_vm15 = vcmp.gt.f32.partialorder %v5472_v44, 0.0  ;;  %v11277_v1 = vor.u32 %v12928_v26, %v11274_v49  ;;  %v11353_v49 = vor.u32 %v12950_v7, %v11352_v43  ;;  %v11136_v35 = vld [vmem:[#allocation13 + $0x1a8] sm:$0xf] }
 0x41c   :  { %v12895_v48 = vld [vmem:[#allocation13 + $0x1b4] sm:$0xf0] }
 0x41d   :  { %6378 = vmatpush.bf16.msra.mxu0 %v10941_v36  ;;  %5462 = vmatpush.bf16.msra.mxu3 %v10725_v31  ;;  %v5476_v36 = vadd.f32 %v5188_v5, %v13916_v3  ;;  %v14020_v37 = vsel %vm5480_vm15, %v5472_v44, %v5488_v0  ;;  %v12855_v44 = vld [vmem:[#allocation13 + $0x74] sm:$0xf0] }
 0x41e   :  { %6388 = vmatpush.bf16.msra.mxu1 %v11133_v8  ;;  %6350 = vmatpush.bf16.msrb.mxu2 %v11193_v23  ;;  %v11401_v8 = vor.u32 %v12962_v2, %v11400_v11  ;;  %v11385_v23 = vor.u32 %v12958_v55, %v11384_v30  ;;  %v5213_v11 = vpop.f32.mrf.mxu1  ;;  %v11053_v2 = vor.u32 %v12872_v57, %v11050_v42  ;;  %v5227_v26 = vpop.f32.mrf.mxu2  ;;  %v12851_v0 = vld [vmem:[#allocation13 + $0x54] sm:$0xf0] }
 0x41f   :  { %vm5484_vm0 = vcmp.gt.f32.partialorder %v5476_v36, 0.0  ;;  %v5492_v31 = vmul.f32 0.01, %v5476_v36  ;;  %v10961_v55 = vor.u32 %v12851_v0, %v10960_v25  ;;  %v12904_v0 = vld [vmem:[#allocation13 + $0x204] sm:$0xf] }
 0x421   :  { %6379 = vmatpush.bf16.msra.mxu0 %v10925_v39  ;;  %5463 = vmatpush.bf16.msra.mxu3 %v10693_v15  ;;  %v14022_v27 = vsel %vm5484_vm0, %v5476_v36, %v5492_v31  ;;  %v11368_v39 = vld [vmem:[#allocation13 + $0x380] sm:$0xf]  ;;  %v12920_v15 = vld [vmem:[#allocation13 + $0x284] sm:$0xf]  ;;  %v11152_v36 = vld [vmem:[#allocation13 + $0x1c8] sm:$0xf] }
 0x422   :  { %6389 = vmatpush.bf16.msra.mxu1 %v11117_v41  ;;  %6351 = vmatpush.bf16.msrb.mxu2 %v11177_v10  ;;  %v14026_v51 = vpack.c.bf16 %v14022_v27, %v14020_v37  ;;  %v11069_v41 = vor.u32 %v12876_v46, %v11066_v33  ;;  %v3729_v10 = vperm.slane %v13963_v52, 3  ;;  %v11245_v5 = vor.u32 %v12920_v15, %v11242_v56  ;;  %v10944_v46 = vld [vmem:[#allocation13 + $0x28] sm:$0xf]  ;;  %v12847_v33 = vld [vmem:[#allocation13 + $0x34] sm:$0xf0] }
 0x423   :  { %v10945_v42 = vor.u32 %v12847_v33, %v10944_v46  ;;  %v11194_v15 = vld [vmem:[#allocation13 + $0x230] sm:$0xf0]  ;;  %v10928_v56 = vld [vmem:[#allocation13 + $0x8] sm:$0xf]  ;;  %v11026_v46 = vld [vmem:[#allocation13 + $0xd8] sm:$0xf0] }
 0x424   :  { %6380 = vmatmul.bf16.vlgmr.msra.gmra.mxu0 %v13990_v53  ;;  %5464 = vmatmul.bf16.vlgmr.msra.gmra.mxu3 %v13934_v17  ;;  %v12954_v17 = vld [vmem:[#allocation13 + $0x38c] sm:$0xf0]  ;;  %v5200_v30 = vadd.f32 %v5199_v59, %v3729_v10 }
 0x425   :  { %6428 = vmatpush.bf16.msrb.mxu0 %v11041_v6  ;;  %6358 = vmatpush.bf16.msrb.mxu3 %v11417_v14  ;;  %v10993_v6 = vor.u32 %v12859_v4, %v10992_v40  ;;  %v11369_v61 = vor.u32 %v12954_v17, %v11368_v39  ;;  %v11168_v14 = vld [vmem:[#allocation13 + $0x1e8] sm:$0xf]  ;;  %v11320_v40 = vld [vmem:[#allocation13 + $0x320] sm:$0xf]  ;;  %v12942_v4 = vld [vmem:[#allocation13 + $0x32c] sm:$0xf0]  ;;  %v5201_v39 = vpop.f32.mrf.mxu0 }
 0x426   :  { %6390 = vmatpush.bf16.msra.mxu1 %v11101_v22  ;;  %6400 = vmatpush.bf16.msra.mxu2 %v11293_v18  ;;  %v10977_v22 = vor.u32 %v12855_v44, %v10976_v58  ;;  %v11169_v18 = vor.u32 %v12903_v54, %v11168_v14  ;;  %v12843_v58 = vld [vmem:[#allocation13 + $0x14] sm:$0xf0]  ;;  %v5215_v59 = vpop.f32.mrf.mxu1  ;;  %v11120_v44 = vld [vmem:[#allocation13 + $0x188] sm:$0xf]  ;;  %v12869_v54 = vld [vmem:[#allocation13 + $0xec] sm:$0xf]  ;;  %v5202_v43 = vadd.f32 %v5201_v39, %v3729_v10 }
 0x427   :  { %6352 = vmatmul.bf16.vlgmr.msrb.gmra.mxu2 %v14026_v51  ;;  %v5241_v17 = vpop.f32.mrf.mxu3  ;;  %v12891_v14 = vld [vmem:[#allocation13 + $0x194] sm:$0xf0]  ;;  %v11088_v39 = vld [vmem:[#allocation13 + $0x148] sm:$0xf] }
 0x428   :  { %v5216_v25 = vadd.f32 %v5215_v59, %v5202_v43  ;;  %v12956_v59 = vld [vmem:[#allocation13 + $0x3a4] sm:$0xf]  ;;  %v11072_v43 = vld [vmem:[#allocation13 + $0x128] sm:$0xf] }
 0x429   :  { %6429 = vmatpush.bf16.msrb.mxu0 %v11025_v62  ;;  %6359 = vmatpush.bf16.msrb.mxu3 %v11401_v8  ;;  %v11226_v62 = vld [vmem:[#allocation13 + $0x270] sm:$0xf0]  ;;  %v12899_v8 = vld [vmem:[#allocation13 + $0x1d4] sm:$0xf0] }
 0x42a   :  { %6391 = vmatpush.bf16.msra.mxu1 %v11085_v32  ;;  %6401 = vmatpush.bf16.msra.mxu2 %v11277_v1  ;;  %v11229_v52 = vor.u32 %v12916_v12, %v11226_v62  ;;  %v11153_v31 = vor.u32 %v12899_v8, %v11152_v36  ;;  %v12912_v32 = vld [vmem:[#allocation13 + $0x244] sm:$0xf]  ;;  %v11210_v1 = vld [vmem:[#allocation13 + $0x250] sm:$0xf0]  ;;  %v11104_v8 = vld [vmem:[#allocation13 + $0x168] sm:$0xf] }
 0x42b   :  { %v12964_v12 = vld [vmem:[#allocation13 + $0x3e4] sm:$0xf]  ;;  %v11418_v62 = vld [vmem:[#allocation13 + $0x3f0] sm:$0xf0] }
 0x42c   :  { %v11178_v36 = vld [vmem:[#allocation13 + $0x210] sm:$0xf0] }
 0x42d   :  { %6430 = vmatpush.bf16.msrb.mxu0 %v11009_v21  ;;  %6360 = vmatpush.bf16.msrb.mxu3 %v11385_v23  ;;  %v11337_v21 = vor.u32 %v12946_v29, %v11336_v28  ;;  %v5214_v23 = vadd.f32 %v5213_v11, %v5200_v30  ;;  %v11042_v11 = vld [vmem:[#allocation13 + $0xf8] sm:$0xf0]  ;;  %v12887_v29 = vld [vmem:[#allocation13 + $0x174] sm:$0xf0]  ;;  %v11181_v33 = vor.u32 %v12904_v0, %v11178_v36  ;;  %v11370_v0 = vld [vmem:[#allocation13 + $0x390] sm:$0xf0] }
 0x42e   :  { %6392 = vmatpush.bf16.msra.mxu1 %v11069_v41  ;;  %6402 = vmatpush.bf16.msra.mxu2 %v11261_v9  ;;  %v11213_v41 = vor.u32 %v12912_v32, %v11210_v1  ;;  %v12908_v9 = vld [vmem:[#allocation13 + $0x224] sm:$0xf]  ;;  %v11045_v28 = vor.u32 %v12869_v54, %v11042_v11  ;;  %v12935_v30 = vld [vmem:[#allocation13 + $0x2f4] sm:$0xf0]  ;;  %v11421_v32 = vor.u32 %v12964_v12, %v11418_v62  ;;  %v12865_v1 = vld [vmem:[#allocation13 + $0xcc] sm:$0xf] }
 0x42f   :  { %v5228_v57 = vadd.f32 %v5227_v26, %v5214_v23  ;;  %v10929_v26 = vor.u32 %v12843_v58, %v10928_v56  ;;  %v12861_v56 = vld [vmem:[#allocation13 + $0xac] sm:$0xf]  ;;  %v11010_v58 = vld [vmem:[#allocation13 + $0xb8] sm:$0xf0]  ;;  %v12879_v11 = vld [vmem:[#allocation13 + $0x134] sm:$0xf0] }
 0x430   :  { %v12857_v62 = vld [vmem:[#allocation13 + $0x8c] sm:$0xf]  ;;  %v11073_v36 = vor.u32 %v12879_v11, %v11072_v43  ;;  %v10946_v43 = vld [vmem:[#allocation13 + $0x38] sm:$0xf0] }
 0x431   :  { %6431 = vmatpush.bf16.msrb.mxu0 %v10993_v6  ;;  %6361 = vmatpush.bf16.msrb.mxu3 %v11369_v61  ;;  %v11137_v6 = vor.u32 %v12895_v48, %v11136_v35  ;;  %v11321_v61 = vor.u32 %v12942_v4, %v11320_v40  ;;  %v5242_v7 = vadd.f32 %v5241_v17, %v5228_v57  ;;  %v12960_v35 = vld [vmem:[#allocation13 + $0x3c4] sm:$0xf]  ;;  %v11402_v48 = vld [vmem:[#allocation13 + $0x3d0] sm:$0xf0]  ;;  %v12931_v57 = vld [vmem:[#allocation13 + $0x2d4] sm:$0xf0] }
 0x432   :  { %6393 = vmatpush.bf16.msra.mxu1 %v11053_v2  ;;  %6403 = vmatpush.bf16.msra.mxu2 %v11245_v5  ;;  %v11304_v2 = vld [vmem:[#allocation13 + $0x300] sm:$0xf]  ;;  %v12938_v5 = vld [vmem:[#allocation13 + $0x30c] sm:$0xf0]  ;;  %v11105_v40 = vor.u32 %v12887_v29, %v11104_v8  ;;  %v11029_v17 = vor.u32 %v12865_v1, %v11026_v46  ;;  %v12901_v1 = vld [vmem:[#allocation13 + $0x1ec] sm:$0xf] }
 0x433   :  { %v11305_v10 = vor.u32 %v12938_v5, %v11304_v2  ;;  %v11264_v2 = vld [vmem:[#allocation13 + $0x2a8] sm:$0xf]  ;;  %v12927_v5 = vld [vmem:[#allocation13 + $0x2b4] sm:$0xf0]  ;;  %v11170_v46 = vld [vmem:[#allocation13 + $0x1f8] sm:$0xf0] }
 0x434   :  { %v11265_v8 = vor.u32 %v12927_v5, %v11264_v2  ;;  %v11138_v11 = vld [vmem:[#allocation13 + $0x1b8] sm:$0xf0]  ;;  %v12940_v2 = vld [vmem:[#allocation13 + $0x324] sm:$0xf]  ;;  %v11322_v5 = vld [vmem:[#allocation13 + $0x330] sm:$0xf0] }
 0x435   :  { %6432 = vmatpush.bf16.msrb.mxu0 %v10977_v22  ;;  %6362 = vmatpush.bf16.msrb.mxu3 %v11353_v49  ;;  %v5229_v22 = vpop.f32.mrf.mxu2  ;;  %v11121_v49 = vor.u32 %v12891_v14, %v11120_v44 }
 0x436   :  { %6442 = vmatpush.bf16.msrb.mxu1 %v11169_v18  ;;  %6404 = vmatpush.bf16.msra.mxu2 %v11229_v52  ;;  %v11197_v18 = vor.u32 %v12908_v9, %v11194_v15  ;;  %v11296_v52 = vld [vmem:[#allocation13 + $0x2e8] sm:$0xf]  ;;  %v11405_v15 = vor.u32 %v12960_v35, %v11402_v48 }
 0x437   :  { %6394 = vmatmul.bf16.vlgmr.msra.gmra.mxu1 %v14010_v13  ;;  %v11297_v4 = vor.u32 %v12935_v30, %v11296_v52  ;;  %v11280_v9 = vld [vmem:[#allocation13 + $0x2c8] sm:$0xf]  ;;  %v12923_v30 = vld [vmem:[#allocation13 + $0x294] sm:$0xf0] }
 0x438   :  { %v11281_v54 = vor.u32 %v12931_v57, %v11280_v9  ;;  %v11248_v52 = vld [vmem:[#allocation13 + $0x288] sm:$0xf]  ;;  %v10962_v9 = vld [vmem:[#allocation13 + $0x58] sm:$0xf0]  ;;  %v12897_v57 = vld [vmem:[#allocation13 + $0x1cc] sm:$0xf] }
 0x439   :  { %6433 = vmatpush.bf16.msrb.mxu0 %v10961_v55  ;;  %6363 = vmatpush.bf16.msrb.mxu3 %v11337_v21  ;;  %v5230_v55 = vadd.f32 %v5229_v22, %v5216_v25  ;;  %v5243_v21 = vpop.f32.mrf.mxu3  ;;  %v10994_v25 = vld [vmem:[#allocation13 + $0x98] sm:$0xf0]  ;;  %v11249_v48 = vor.u32 %v12923_v30, %v11248_v52  ;;  %v11544_v52 = vld [vmem:[#allocation16 + $0xe0] sm:$0xf]  ;;  %v14046_v30 = vpop.f32.mrf.mxu0 }
 0x43a   :  { %6443 = vmatpush.bf16.msrb.mxu1 %v11153_v31  ;;  %6405 = vmatpush.bf16.msra.mxu2 %v11213_v41  ;;  %v5473_v31 = vadd.f32 %v5242_v7, %v13928_v34  ;;  %v12883_v41 = vld [vmem:[#allocation13 + $0x154] sm:$0xf0]  ;;  %v11013_v7 = vor.u32 %v12861_v56, %v11010_v58  ;;  %v10997_v29 = vor.u32 %v12857_v62, %v10994_v25  ;;  %v11200_v62 = vld [vmem:[#allocation13 + $0x228] sm:$0xf] }
 0x43b   :  { %v5244_v23 = vadd.f32 %v5243_v21, %v5230_v55  ;;  %v11089_v14 = vor.u32 %v12883_v41, %v11088_v39  ;;  %v12853_v55 = vld [vmem:[#allocation13 + $0x6c] sm:$0xf]  ;;  %v12948_v21 = vld [vmem:[#allocation13 + $0x364] sm:$0xf]  ;;  %v12919_v39 = vld [vmem:[#allocation13 + $0x274] sm:$0xf0] }
 0x43c   :  { %vm5481_vm1 = vcmp.gt.f32.partialorder %v5473_v31, 0.0 }
 0x43d   :  { %6434 = vmatpush.bf16.msrb.mxu0 %v10945_v42  ;;  %6364 = vmatpush.bf16.msrb.mxu3 %v11321_v61  ;;  %v5489_v42 = vmul.f32 0.01, %v5473_v31  ;;  %v11386_v61 = vld [vmem:[#allocation13 + $0x3b0] sm:$0xf0] }
 0x43e   :  { %6444 = vmatpush.bf16.msrb.mxu1 %v11137_v6  ;;  %6406 = vmatpush.bf16.msra.mxu2 %v11197_v18  ;;  %v5477_v6 = vadd.f32 %v5244_v23, %v13930_v60  ;;  %v11389_v12 = vor.u32 %v12956_v59, %v11386_v61  ;;  %v11216_v61 = vld [vmem:[#allocation13 + $0x248] sm:$0xf] }
 0x43f   :  { %v14035_v22 = vsel %vm5481_vm1, %v5473_v31, %v5489_v42  ;;  %v11154_v42 = vld [vmem:[#allocation13 + $0x1d8] sm:$0xf0] }
 0x440   :  { %vm5485_vm2 = vcmp.gt.f32.partialorder %v5477_v6, 0.0  ;;  %v5493_v44 = vmul.f32 0.01, %v5477_v6  ;;  %v11157_v59 = vor.u32 %v12897_v57, %v11154_v42  ;;  %v11298_v57 = vld [vmem:[#allocation13 + $0x2f8] sm:$0xf0]  ;;  %v14050_v42 = vpop.f32.mrf.mxu2 }
 0x441   :  { %6435 = vmatpush.bf16.msrb.mxu0 %v10929_v26  ;;  %6365 = vmatpush.bf16.msrb.mxu3 %v11305_v10  ;;  %v12875_v10 = vld [vmem:[#allocation13 + $0x114] sm:$0xf0] }
 0x442   :  { %6445 = vmatpush.bf16.msrb.mxu1 %v11121_v49  ;;  %6407 = vmatpush.bf16.msra.mxu2 %v11181_v33  ;;  %v14037_v18 = vsel %vm5485_vm2, %v5477_v6, %v5493_v44  ;;  %v12952_v49 = vld [vmem:[#allocation13 + $0x384] sm:$0xf]  ;;  %v11354_v33 = vld [vmem:[#allocation13 + $0x370] sm:$0xf0]  ;;  %v12915_v44 = vld [vmem:[#allocation13 + $0x254] sm:$0xf0] }
 0x443   :  { %v14042_v26 = vpack.c.bf16 %v14037_v18, %v14035_v22  ;;  %v11373_v31 = vor.u32 %v12952_v49, %v11370_v0  ;;  %v11357_v41 = vor.u32 %v12948_v21, %v11354_v33  ;;  %v12944_v6 = vld [vmem:[#allocation13 + $0x344] sm:$0xf]  ;;  %v12911_v0 = vld [vmem:[#allocation13 + $0x234] sm:$0xf0]  ;;  %v14048_v33 = vpop.f32.mrf.mxu1 }
 0x444   :  { %6436 = vmatmul.bf16.vlgmr.msrb.gmra.mxu0 %v13990_v53  ;;  %v12967_v21 = vld [vmem:[#allocation13 + $0x3f4] sm:$0xf0] }
 0x445   :  { %6484 = vmatpush.bf16.msra.mxu0 %v11045_v28  ;;  %6414 = vmatpush.bf16.msra.mxu3 %v11421_v32  ;;  %v11056_v28 = vld [vmem:[#allocation13 + $0x108] sm:$0xf]  ;;  %v10978_v32 = vld [vmem:[#allocation13 + $0x78] sm:$0xf0] }
 0x446   :  { %6446 = vmatpush.bf16.msrb.mxu1 %v11105_v40  ;;  %6456 = vmatpush.bf16.msrb.mxu2 %v11297_v4  ;;  %v11057_v35 = vor.u32 %v12875_v10, %v11056_v28  ;;  %v10981_v23 = vor.u32 %v12853_v55, %v10978_v32  ;;  %v11173_v40 = vor.u32 %v12901_v1, %v11170_v46  ;;  %v11232_v4 = vld [vmem:[#allocation13 + $0x268] sm:$0xf]  ;;  %v12889_v10 = vld [vmem:[#allocation13 + $0x18c] sm:$0xf]  ;;  %v12998_v55 = vld [vmem:[#allocation16 + $0xec] sm:$0xf0] }
 0x447   :  { %6408 = vmatmul.bf16.vlgmr.msra.gmra.mxu2 %v14026_v51  ;;  %6366 = vmatmul.bf16.vlgmr.msrb.gmra.mxu3 %v14042_v26  ;;  %v11233_v56 = vor.u32 %v12919_v39, %v11232_v4  ;;  %v11325_v28 = vor.u32 %v12940_v2, %v11322_v5  ;;  %v11306_v32 = vld [vmem:[#allocation13 + $0x310] sm:$0xf0]  ;;  %v11201_v1 = vor.u32 %v12911_v0, %v11200_v62  ;;  %v11424_v46 = vld [vmem:[#allocation13 + $0x3e8] sm:$0xf]  ;;  %v12885_v4 = vld [vmem:[#allocation13 + $0x16c] sm:$0xf]  ;;  %v14052_v5 = vpop.f32.mrf.mxu3 }
 0x448   :  { %v11545_v39 = vor.u32 %v12998_v55, %v11544_v52  ;;  %v11282_v2 = vld [vmem:[#allocation13 + $0x2d8] sm:$0xf0]  ;;  %v11512_v62 = vld [vmem:[#allocation16 + $0xa0] sm:$0xf]  ;;  %v12959_v0 = vld [vmem:[#allocation13 + $0x3b4] sm:$0xf0] }
 0x449   :  { %6485 = vmatpush.bf16.msra.mxu0 %v11029_v17  ;;  %6415 = vmatpush.bf16.msra.mxu3 %v11405_v15  ;;  %v12849_v17 = vld [vmem:[#allocation13 + $0x4c] sm:$0xf]  ;;  %v11338_v15 = vld [vmem:[#allocation13 + $0x350] sm:$0xf0] }
 0x44a   :  { %6447 = vmatpush.bf16.msrb.mxu1 %v11089_v14  ;;  %6457 = vmatpush.bf16.msrb.mxu2 %v11281_v54  ;;  %v10965_v58 = vor.u32 %v12849_v17, %v10962_v9  ;;  %v12845_v14 = vld [vmem:[#allocation13 + $0x2c] sm:$0xf]  ;;  %v11341_v54 = vor.u32 %v12944_v6, %v11338_v15  ;;  %v11425_v6 = vor.u32 %v12967_v21, %v11424_v46  ;;  %v11528_v15 = vld [vmem:[#allocation16 + $0xc0] sm:$0xf] }
 0x44b   :  { %v10949_v25 = vor.u32 %v12845_v14, %v10946_v43  ;;  %v12933_v9 = vld [vmem:[#allocation13 + $0x2ec] sm:$0xf]  ;;  %v11496_v21 = vld [vmem:[#allocation16 + $0x80] sm:$0xf] }
 0x44c   :  { %v11301_v14 = vor.u32 %v12933_v9, %v11298_v57  ;;  %v12877_v52 = vld [vmem:[#allocation13 + $0x12c] sm:$0xf]  ;;  %v11058_v9 = vld [vmem:[#allocation13 + $0x118] sm:$0xf0] }
 0x44d   :  { %6486 = vmatpush.bf16.msra.mxu0 %v11013_v7  ;;  %6416 = vmatpush.bf16.msra.mxu3 %v11389_v12  ;;  %v12893_v7 = vld [vmem:[#allocation13 + $0x1ac] sm:$0xf]  ;;  %v11217_v12 = vor.u32 %v12915_v44, %v11216_v61  ;;  %v12963_v61 = vld [vmem:[#allocation13 + $0x3d4] sm:$0xf0] }
 0x44e   :  { %6448 = vmatpush.bf16.msrb.mxu1 %v11073_v36  ;;  %6458 = vmatpush.bf16.msrb.mxu2 %v11265_v8  ;;  %v11141_v49 = vor.u32 %v12893_v7, %v11138_v11  ;;  %v12841_v36 = vld [vmem:[#allocation13 + $0xc] sm:$0xf]  ;;  %v10930_v8 = vld [vmem:[#allocation13 + $0x18] sm:$0xf0] }
 0x44f   :  { %v11090_v7 = vld [vmem:[#allocation13 + $0x158] sm:$0xf0]  ;;  %v12929_v11 = vld [vmem:[#allocation13 + $0x2cc] sm:$0xf] }
 0x451   :  { %6487 = vmatpush.bf16.msra.mxu0 %v10997_v29  ;;  %6417 = vmatpush.bf16.msra.mxu3 %v11373_v31  ;;  %v11122_v29 = vld [vmem:[#allocation13 + $0x198] sm:$0xf0]  ;;  %v12936_v31 = vld [vmem:[#allocation13 + $0x304] sm:$0xf] }
 0x452   :  { %6449 = vmatpush.bf16.msrb.mxu1 %v11057_v35  ;;  %6459 = vmatpush.bf16.msrb.mxu2 %v11249_v48  ;;  %v10933_v35 = vor.u32 %v12841_v36, %v10930_v8  ;;  %v11125_v48 = vor.u32 %v12889_v10, %v11122_v29  ;;  %v11309_v17 = vor.u32 %v12936_v31, %v11306_v32  ;;  %v14058_v36 = vld [vmem:[%s14244_s10] sm:$0xff]  ;;  %v12925_v31 = vld [vmem:[#allocation13 + $0x2ac] sm:$0xf]  ;;  %v11266_v32 = vld [vmem:[#allocation13 + $0x2b8] sm:$0xf0] }
 0x453   :  { %v3730_v8 = vperm.slane %v14058_v36, 4  ;;  %v11285_v29 = vor.u32 %v12929_v11, %v11282_v2 }
 0x455   :  { %6488 = vmatpush.bf16.msra.mxu0 %v10981_v23  ;;  %6418 = vmatpush.bf16.msra.mxu3 %v11357_v41  ;;  %v11184_v23 = vld [vmem:[#allocation13 + $0x208] sm:$0xf]  ;;  %v11106_v41 = vld [vmem:[#allocation13 + $0x178] sm:$0xf0] }
 0x456   :  { %6498 = vmatpush.bf16.msra.mxu1 %v11173_v40  ;;  %6460 = vmatpush.bf16.msrb.mxu2 %v11233_v56  ;;  %v12907_v40 = vld [vmem:[#allocation13 + $0x214] sm:$0xf0]  ;;  %v12994_v56 = vld [vmem:[#allocation16 + $0xcc] sm:$0xf0]  ;;  %v11109_v44 = vor.u32 %v12885_v4, %v11106_v41  ;;  %v5285_v4 = vpop.f32.mrf.mxu2  ;;  %v12873_v41 = vld [vmem:[#allocation13 + $0x10c] sm:$0xf] }
 0x457   :  { %6450 = vmatmul.bf16.vlgmr.msrb.gmra.mxu1 %v14010_v13  ;;  %v11529_v43 = vor.u32 %v12994_v56, %v11528_v15  ;;  %v12921_v15 = vld [vmem:[#allocation13 + $0x28c] sm:$0xf]  ;;  %v11250_v56 = vld [vmem:[#allocation13 + $0x298] sm:$0xf0] }
 0x459   :  { %6489 = vmatpush.bf16.msra.mxu0 %v10965_v58  ;;  %6419 = vmatpush.bf16.msra.mxu3 %v11341_v54  ;;  %v11185_v58 = vor.u32 %v12907_v40, %v11184_v23  ;;  %v12881_v54 = vld [vmem:[#allocation13 + $0x14c] sm:$0xf]  ;;  %v12955_v23 = vld [vmem:[#allocation13 + $0x394] sm:$0xf0]  ;;  %v5256_v40 = vadd.f32 %v14046_v30, %v3730_v8  ;;  %v13030_v30 = vld [vmem:[#allocation16 + $0x1ec] sm:$0xf0] }
 0x45a   :  { %6499 = vmatpush.bf16.msra.mxu1 %v11157_v59  ;;  %6461 = vmatpush.bf16.msrb.mxu2 %v11217_v12  ;;  %v11408_v59 = vld [vmem:[#allocation13 + $0x3c8] sm:$0xf]  ;;  %v11093_v10 = vor.u32 %v12881_v54, %v11090_v7  ;;  %v12951_v7 = vld [vmem:[#allocation13 + $0x374] sm:$0xf0] }
 0x45b   :  { %v11409_v12 = vor.u32 %v12963_v61, %v11408_v59  ;;  %v5270_v59 = vadd.f32 %v14048_v33, %v5256_v40  ;;  %v12913_v40 = vld [vmem:[#allocation13 + $0x24c] sm:$0xf] }
 0x45d   :  { %6490 = vmatpush.bf16.msra.mxu0 %v10949_v25  ;;  %6420 = vmatpush.bf16.msra.mxu3 %v11325_v28  ;;  %v12990_v25 = vld [vmem:[#allocation16 + $0xac] sm:$0xf0]  ;;  %v5257_v28 = vpop.f32.mrf.mxu0  ;;  %v5284_v2 = vadd.f32 %v14050_v42, %v5270_v59  ;;  %v11656_v42 = vld [vmem:[#allocation16 + $0x1c0] sm:$0xf] }
 0x45e   :  { %6500 = vmatpush.bf16.msra.mxu1 %v11141_v49  ;;  %6462 = vmatpush.bf16.msrb.mxu2 %v11201_v1  ;;  %v11392_v49 = vld [vmem:[#allocation13 + $0x3a8] sm:$0xf]  ;;  %v11513_v55 = vor.u32 %v12990_v25, %v11512_v62  ;;  %v5271_v1 = vpop.f32.mrf.mxu1  ;;  %v5258_v57 = vadd.f32 %v5257_v28, %v3730_v8  ;;  %v11061_v62 = vor.u32 %v12873_v41, %v11058_v9  ;;  %v12917_v8 = vld [vmem:[#allocation13 + $0x26c] sm:$0xf]  ;;  %v11234_v28 = vld [vmem:[#allocation13 + $0x278] sm:$0xf0] }
 0x45f   :  { %v11393_v46 = vor.u32 %v12959_v0, %v11392_v49  ;;  %v11253_v25 = vor.u32 %v12921_v15, %v11250_v56  ;;  %v12974_v41 = vld [vmem:[#allocation16 + $0x2c] sm:$0xf0]  ;;  %v11640_v9 = vld [vmem:[#allocation16 + $0x1a0] sm:$0xf]  ;;  %v11328_v56 = vld [vmem:[#allocation13 + $0x328] sm:$0xf] }
 0x460   :  { %v5272_v54 = vadd.f32 %v5271_v1, %v5258_v57  ;;  %v11344_v1 = vld [vmem:[#allocation13 + $0x348] sm:$0xf]  ;;  %v13022_v57 = vld [vmem:[#allocation16 + $0x1ac] sm:$0xf0] }
 0x461   :  { %6491 = vmatpush.bf16.msra.mxu0 %v10933_v35  ;;  %6421 = vmatpush.bf16.msra.mxu3 %v11309_v17  ;;  %v12986_v35 = vld [vmem:[#allocation16 + $0x8c] sm:$0xf0]  ;;  %v11269_v17 = vor.u32 %v12925_v31, %v11266_v32 }
 0x462   :  { %6501 = vmatpush.bf16.msra.mxu1 %v11125_v48  ;;  %6463 = vmatpush.bf16.msrb.mxu2 %v11185_v58  ;;  %v11376_v48 = vld [vmem:[#allocation13 + $0x388] sm:$0xf]  ;;  %v11480_v58 = vld [vmem:[#allocation16 + $0x60] sm:$0xf]  ;;  %v5286_v49 = vadd.f32 %v5285_v4, %v5272_v54  ;;  %v13026_v31 = vld [vmem:[#allocation16 + $0x1cc] sm:$0xf0]  ;;  %v11641_v54 = vor.u32 %v13022_v57, %v11640_v9 }
 0x463   :  { %v11377_v61 = vor.u32 %v12955_v23, %v11376_v48  ;;  %v11657_v23 = vor.u32 %v13026_v31, %v11656_v42  ;;  %v11218_v4 = vld [vmem:[#allocation13 + $0x258] sm:$0xf0]  ;;  %v12905_v31 = vld [vmem:[#allocation13 + $0x20c] sm:$0xf]  ;;  %v12992_v57 = vld [vmem:[#allocation16 + $0xc4] sm:$0xf] }
 0x464   :  { %6492 = vmatmul.bf16.vlgmr.msra.gmra.mxu0 %v13990_v53  ;;  %6422 = vmatmul.bf16.vlgmr.msra.gmra.mxu3 %v14042_v26  ;;  %v11074_v53 = vld [vmem:[#allocation13 + $0x138] sm:$0xf0] }
 0x465   :  { %7354 = vmatpush.bf16.msrb.mxu0 %v11545_v39  ;;  %6470 = vmatpush.bf16.msrb.mxu3 %v11425_v6  ;;  %v11077_v39 = vor.u32 %v12877_v52, %v11074_v53  ;;  %v11497_v6 = vor.u32 %v12986_v35, %v11496_v21  ;;  %v14065_v11 = vpop.f32.mrf.mxu0  ;;  %v5298_v52 = vadd.f32 %v14052_v5, %v5284_v2  ;;  %v12978_v53 = vld [vmem:[#allocation16 + $0x4c] sm:$0xf0]  ;;  %v14071_v21 = vpop.f32.mrf.mxu2  ;;  %v11448_v5 = vld [vmem:[#allocation16 + $0x20] sm:$0xf] }
 0x466   :  { %6502 = vmatpush.bf16.msra.mxu1 %v11109_v44  ;;  %6512 = vmatpush.bf16.msra.mxu2 %v11301_v14  ;;  %v12982_v44 = vld [vmem:[#allocation16 + $0x6c] sm:$0xf0]  ;;  %v11672_v14 = vld [vmem:[#allocation16 + $0x1e0] sm:$0xf]  ;;  %v11237_v35 = vor.u32 %v12917_v8, %v11234_v28 }
 0x467   :  { %6464 = vmatmul.bf16.vlgmr.msrb.gmra.mxu2 %v14026_v51  ;;  %v11481_v33 = vor.u32 %v12982_v44, %v11480_v58  ;;  %v11673_v0 = vor.u32 %v13030_v30, %v11672_v14  ;;  %v12943_v58 = vld [vmem:[#allocation13 + $0x334] sm:$0xf0]  ;;  %v12909_v44 = vld [vmem:[#allocation13 + $0x22c] sm:$0xf]  ;;  %v11432_v14 = vld [vmem:[#allocation16] sm:$0xf]  ;;  %v11449_v30 = vor.u32 %v12974_v41, %v11448_v5 }
 0x468   :  { %v13018_v2 = vld [vmem:[#allocation16 + $0x18c] sm:$0xf0] }
 0x469   :  { %7355 = vmatpush.bf16.msrb.mxu0 %v11529_v43  ;;  %6471 = vmatpush.bf16.msrb.mxu3 %v11409_v12  ;;  %v11360_v43 = vld [vmem:[#allocation13 + $0x368] sm:$0xf]  ;;  %v5299_v12 = vpop.f32.mrf.mxu3  ;;  %v13062_v5 = vld [vmem:[#allocation16 + $0x2ec] sm:$0xf0] }
 0x46a   :  { %6503 = vmatpush.bf16.msra.mxu1 %v11093_v10  ;;  %6513 = vmatpush.bf16.msra.mxu2 %v11285_v29  ;;  %v11464_v10 = vld [vmem:[#allocation16 + $0x40] sm:$0xf]  ;;  %v14068_v29 = vpop.f32.mrf.mxu1  ;;  %v5300_v32 = vadd.f32 %v5299_v12, %v5286_v49 }
 0x46b   :  { %v11465_v48 = vor.u32 %v12978_v53, %v11464_v10  ;;  %v12965_v10 = vld [vmem:[#allocation13 + $0x3ec] sm:$0xf] }
 0x46c   :  { %v5506_v15 = vadd.f32 %v5300_v32, %v13895_v24  ;;  %v11186_v32 = vld [vmem:[#allocation13 + $0x218] sm:$0xf0] }
 0x46d   :  { %7356 = vmatpush.bf16.msrb.mxu0 %v11513_v55  ;;  %6472 = vmatpush.bf16.msrb.mxu3 %v11393_v46  ;;  %v11361_v55 = vor.u32 %v12951_v7, %v11360_v43  ;;  %v12947_v46 = vld [vmem:[#allocation13 + $0x354] sm:$0xf0]  ;;  %v12970_v43 = vld [vmem:[#allocation16 + $0xc] sm:$0xf0]  ;;  %v11624_v7 = vld [vmem:[#allocation16 + $0x180] sm:$0xf]  ;;  %v5313_v12 = vpop.f32.mrf.mxu0 }
 0x46e   :  { %6504 = vmatpush.bf16.msra.mxu1 %v11077_v39  ;;  %6514 = vmatpush.bf16.msra.mxu2 %v11269_v17  ;;  %v14074_v39 = vadd.f32 %v5298_v52, %v13893_v19  ;;  %v11345_v17 = vor.u32 %v12947_v46, %v11344_v1  ;;  %v11202_v19 = vld [vmem:[#allocation13 + $0x238] sm:$0xf0]  ;;  %v5522_v49 = vmul.f32 0.01, %v5506_v15  ;;  %vm5514_vm4 = vcmp.gt.f32.partialorder %v5506_v15, 0.0 }
 0x46f   :  { %v11205_v28 = vor.u32 %v12909_v44, %v11202_v19  ;;  %v11426_v52 = vld [vmem:[#allocation13 + $0x3f8] sm:$0xf0]  ;;  %v11433_v53 = vor.u32 %v12970_v43, %v11432_v14  ;;  %v11625_v42 = vor.u32 %v13018_v2, %v11624_v7  ;;  %v11608_v1 = vld [vmem:[#allocation16 + $0x160] sm:$0xf]  ;;  %v12961_v44 = vld [vmem:[#allocation13 + $0x3cc] sm:$0xf] }
 0x470   :  { %v5518_v24 = vmul.f32 0.01, %v14074_v39  ;;  %vm5510_vm3 = vcmp.gt.f32.partialorder %v14074_v39, 0.0  ;;  %v14085_v41 = vsel %vm5514_vm4, %v5506_v15, %v5522_v49  ;;  %v11429_v9 = vor.u32 %v12965_v10, %v11426_v52  ;;  %v11410_v19 = vld [vmem:[#allocation13 + $0x3d8] sm:$0xf0] }
 0x471   :  { %7357 = vmatpush.bf16.msrb.mxu0 %v11497_v6  ;;  %6473 = vmatpush.bf16.msrb.mxu3 %v11377_v61  ;;  %v3731_v6 = vperm.slane %v14058_v36, 5  ;;  %v14079_v59 = vpop.f32.mrf.mxu3  ;;  %v11221_v61 = vor.u32 %v12913_v40, %v11218_v4  ;;  %v13014_v40 = vld [vmem:[#allocation16 + $0x16c] sm:$0xf0]  ;;  %v11800_v4 = vld [vmem:[#allocation16 + $0x2e0] sm:$0xf] }
 0x472   :  { %6505 = vmatpush.bf16.msra.mxu1 %v11061_v62  ;;  %6515 = vmatpush.bf16.msra.mxu2 %v11253_v25  ;;  %v12996_v62 = vld [vmem:[#allocation16 + $0xe4] sm:$0xf]  ;;  %v11546_v25 = vld [vmem:[#allocation16 + $0xf0] sm:$0xf0]  ;;  %v5327_v8 = vpop.f32.mrf.mxu1  ;;  %v11609_v15 = vor.u32 %v13014_v40, %v11608_v1  ;;  %v11784_v7 = vld [vmem:[#allocation16 + $0x2c0] sm:$0xf] }
 0x473   :  { %v5312_v46 = vadd.f32 %v14065_v11, %v3731_v6  ;;  %v14091_v11 = vsel %vm5510_vm3, %v14074_v39, %v5518_v24  ;;  %v13010_v39 = vld [vmem:[#allocation16 + $0x14c] sm:$0xf0]  ;;  %v12957_v49 = vld [vmem:[#allocation13 + $0x3ac] sm:$0xf]  ;;  %v11576_v10 = vld [vmem:[#allocation16 + $0x120] sm:$0xf] }
 0x474   :  { %v14095_v43 = vpack.c.bf16 %v14085_v41, %v14091_v11  ;;  %v13058_v2 = vld [vmem:[#allocation16 + $0x2cc] sm:$0xf0]  ;;  %v12953_v1 = vld [vmem:[#allocation13 + $0x38c] sm:$0xf]  ;;  %v11560_v40 = vld [vmem:[#allocation16 + $0x100] sm:$0xf] }
 0x475   :  { %7358 = vmatpush.bf16.msrb.mxu0 %v11481_v33  ;;  %6474 = vmatpush.bf16.msrb.mxu3 %v11361_v55  ;;  %v11312_v33 = vld [vmem:[#allocation13 + $0x308] sm:$0xf]  ;;  %v5314_v55 = vadd.f32 %v5313_v12, %v3731_v6  ;;  %v13006_v52 = vld [vmem:[#allocation16 + $0x12c] sm:$0xf0] }
 0x476   :  { %7368 = vmatpush.bf16.msrb.mxu1 %v11673_v0  ;;  %6516 = vmatpush.bf16.msra.mxu2 %v11237_v35  ;;  %v12939_v0 = vld [vmem:[#allocation13 + $0x314] sm:$0xf0]  ;;  %v5341_v35 = vpop.f32.mrf.mxu2 }
 0x477   :  { %6506 = vmatmul.bf16.vlgmr.msra.gmra.mxu1 %v14010_v13  ;;  %v11329_v13 = vor.u32 %v12943_v58, %v11328_v56  ;;  %v11530_v56 = vld [vmem:[#allocation16 + $0xd0] sm:$0xf0]  ;;  %v5326_v58 = vadd.f32 %v14068_v29, %v5312_v46  ;;  %v11378_v46 = vld [vmem:[#allocation13 + $0x398] sm:$0xf0] }
 0x478   :  { %v11533_v29 = vor.u32 %v12992_v57, %v11530_v56  ;;  %v5367_v57 = vpop.f32.mrf.mxu0 }
 0x479   :  { %7359 = vmatpush.bf16.msrb.mxu0 %v11465_v48  ;;  %6475 = vmatpush.bf16.msrb.mxu3 %v11345_v17  ;;  %v11549_v48 = vor.u32 %v12996_v62, %v11546_v25  ;;  %v5328_v17 = vadd.f32 %v5327_v8, %v5314_v55  ;;  %v5355_v6 = vpop.f32.mrf.mxu3  ;;  %v5340_v12 = vadd.f32 %v14071_v21, %v5326_v58  ;;  %v12988_v62 = vld [vmem:[#allocation16 + $0xa4] sm:$0xf]  ;;  %v11514_v25 = vld [vmem:[#allocation16 + $0xb0] sm:$0xf0]  ;;  %v11768_v55 = vld [vmem:[#allocation16 + $0x2a0] sm:$0xf] }
 0x47a   :  { %7369 = vmatpush.bf16.msrb.mxu1 %v11657_v23  ;;  %6517 = vmatpush.bf16.msra.mxu2 %v11221_v61  ;;  %v11313_v23 = vor.u32 %v12939_v0, %v11312_v33  ;;  %v11189_v61 = vor.u32 %v12905_v31, %v11186_v32  ;;  %v11394_v33 = vld [vmem:[#allocation13 + $0x3b8] sm:$0xf0]  ;;  %v11517_v21 = vor.u32 %v12988_v62, %v11514_v25  ;;  %v12984_v32 = vld [vmem:[#allocation16 + $0x84] sm:$0xf]  ;;  %v11466_v25 = vld [vmem:[#allocation16 + $0x50] sm:$0xf0] }
 0x47b   :  { %v5342_v14 = vadd.f32 %v5341_v35, %v5328_v17  ;;  %v5354_v0 = vadd.f32 %v14079_v59, %v5340_v12  ;;  %v11397_v31 = vor.u32 %v12957_v49, %v11394_v33  ;;  %v11498_v59 = vld [vmem:[#allocation16 + $0x90] sm:$0xf0]  ;;  %v11381_v58 = vor.u32 %v12953_v1, %v11378_v46  ;;  %v12976_v12 = vld [vmem:[#allocation16 + $0x44] sm:$0xf] }
 0x47c   :  { %v11501_v17 = vor.u32 %v12984_v32, %v11498_v59  ;;  %v13024_v49 = vld [vmem:[#allocation16 + $0x1c4] sm:$0xf]  ;;  %v11658_v33 = vld [vmem:[#allocation16 + $0x1d0] sm:$0xf0] }
 0x47d   :  { %7360 = vmatpush.bf16.msrb.mxu0 %v11449_v30  ;;  %6476 = vmatpush.bf16.msrb.mxu3 %v11329_v13  ;;  %v11801_v30 = vor.u32 %v13062_v5, %v11800_v4  ;;  %v5356_v24 = vadd.f32 %v5355_v6, %v5342_v14  ;;  %v11413_v13 = vor.u32 %v12961_v44, %v11410_v19  ;;  %v13002_v4 = vld [vmem:[#allocation16 + $0x10c] sm:$0xf0]  ;;  %v11752_v5 = vld [vmem:[#allocation16 + $0x280] sm:$0xf]  ;;  %v13028_v6 = vld [vmem:[#allocation16 + $0x1e4] sm:$0xf]  ;;  %v5381_v14 = vpop.f32.mrf.mxu1 }
 0x47e   :  { %7370 = vmatpush.bf16.msrb.mxu1 %v11641_v54  ;;  %6518 = vmatpush.bf16.msra.mxu2 %v11205_v28  ;;  %v11592_v54 = vld [vmem:[#allocation16 + $0x140] sm:$0xf]  ;;  %v11785_v28 = vor.u32 %v13058_v2, %v11784_v7  ;;  %v5503_v35 = vadd.f32 %v5354_v0, %v13903_v16  ;;  %v12949_v16 = vld [vmem:[#allocation13 + $0x36c] sm:$0xf]  ;;  %v11362_v44 = vld [vmem:[#allocation13 + $0x378] sm:$0xf0] }
 0x47f   :  { %v11593_v8 = vor.u32 %v13010_v39, %v11592_v54  ;;  %v3732_v19 = vperm.slane %v14058_v36, 6  ;;  %v13046_v2 = vld [vmem:[#allocation16 + $0x26c] sm:$0xf0]  ;;  %v11365_v62 = vor.u32 %v12949_v16, %v11362_v44  ;;  %v12945_v0 = vld [vmem:[#allocation13 + $0x34c] sm:$0xf] }
 0x480   :  { %vm5511_vm6 = vcmp.gt.f32.partialorder %v5503_v35, 0.0  ;;  %v12972_v32 = vld [vmem:[#allocation16 + $0x24] sm:$0xf]  ;;  %v11450_v1 = vld [vmem:[#allocation16 + $0x30] sm:$0xf0] }
 0x481   :  { %7361 = vmatpush.bf16.msrb.mxu0 %v11433_v53  ;;  %6477 = vmatpush.bf16.msrb.mxu3 %v11313_v23  ;;  %v13054_v53 = vld [vmem:[#allocation16 + $0x2ac] sm:$0xf0]  ;;  %v13020_v46 = vld [vmem:[#allocation16 + $0x1a4] sm:$0xf] }
 0x482   :  { %7371 = vmatpush.bf16.msrb.mxu1 %v11625_v42  ;;  %6519 = vmatpush.bf16.msra.mxu2 %v11189_v61  ;;  %v5507_v42 = vadd.f32 %v5356_v24, %v13905_v20  ;;  %v11769_v23 = vor.u32 %v13054_v53, %v11768_v55  ;;  %v13050_v20 = vld [vmem:[#allocation16 + $0x28c] sm:$0xf0]  ;;  %v11674_v61 = vld [vmem:[#allocation16 + $0x1f0] sm:$0xf0]  ;;  %v5395_v24 = vpop.f32.mrf.mxu2  ;;  %v11469_v55 = vor.u32 %v12976_v12, %v11466_v25  ;;  %v13016_v44 = vld [vmem:[#allocation16 + $0x184] sm:$0xf] }
 0x483   :  { %v11753_v54 = vor.u32 %v13050_v20, %v11752_v5  ;;  %v11677_v7 = vor.u32 %v13028_v6, %v11674_v61  ;;  %v11661_v53 = vor.u32 %v13024_v49, %v11658_v33  ;;  %v11704_v20 = vld [vmem:[#allocation16 + $0x220] sm:$0xf]  ;;  %v11434_v6 = vld [vmem:[#allocation16 + $0x10] sm:$0xf0] }
 0x484   :  { %7362 = vmatmul.bf16.vlgmr.msrb.gmra.mxu0 %v14095_v43  ;;  %6478 = vmatmul.bf16.vlgmr.msrb.gmra.mxu3 %v14042_v26  ;;  %v5523_v56 = vmul.f32 0.01, %v5507_v42  ;;  %vm5515_vm5 = vcmp.gt.f32.partialorder %v5507_v42, 0.0 }
 0x485   :  { %7410 = vmatpush.bf16.msra.mxu0 %v11549_v48  ;;  %6526 = vmatpush.bf16.msra.mxu3 %v11429_v9  ;;  %v11577_v48 = vor.u32 %v13006_v52, %v11576_v10  ;;  %v12980_v9 = vld [vmem:[#allocation16 + $0x64] sm:$0xf]  ;;  %v5383_v61 = vpop.f32.mrf.mxu1 }
 0x486   :  { %7372 = vmatpush.bf16.msrb.mxu1 %v11609_v15  ;;  %7382 = vmatpush.bf16.msrb.mxu2 %v11801_v30  ;;  %v5519_v15 = vmul.f32 0.01, %v5503_v35  ;;  %v11561_v30 = vor.u32 %v13002_v4, %v11560_v40  ;;  %v11330_v40 = vld [vmem:[#allocation13 + $0x338] sm:$0xf0]  ;;  %v5369_v4 = vpop.f32.mrf.mxu0 }
 0x487   :  { %6520 = vmatmul.bf16.vlgmr.msra.gmra.mxu2 %v14026_v51  ;;  %v11482_v51 = vld [vmem:[#allocation16 + $0x70] sm:$0xf0]  ;;  %v5409_v5 = vpop.f32.mrf.mxu3 }
 0x488   :  { %v11485_v39 = vor.u32 %v12980_v9, %v11482_v51  ;;  %v14111_v10 = vsel %vm5511_vm6, %v5503_v35, %v5519_v15  ;;  %v11642_v35 = vld [vmem:[#allocation16 + $0x1b0] sm:$0xf0]  ;;  %v11453_v51 = vor.u32 %v12972_v32, %v11450_v1  ;;  %v11552_v15 = vld [vmem:[#allocation16 + $0xe8] sm:$0xf] }
 0x489   :  { %7411 = vmatpush.bf16.msra.mxu0 %v11533_v29  ;;  %6527 = vmatpush.bf16.msra.mxu3 %v11413_v13  ;;  %v11736_v29 = vld [vmem:[#allocation16 + $0x260] sm:$0xf]  ;;  %v14106_v13 = vsel %vm5515_vm5, %v5507_v42, %v5523_v56  ;;  %v13038_v56 = vld [vmem:[#allocation16 + $0x22c] sm:$0xf0]  ;;  %v11536_v1 = vld [vmem:[#allocation16 + $0xc8] sm:$0xf] }
 0x48a   :  { %7373 = vmatpush.bf16.msrb.mxu1 %v11593_v8  ;;  %7383 = vmatpush.bf16.msrb.mxu2 %v11785_v28  ;;  %v11346_v8 = vld [vmem:[#allocation13 + $0x358] sm:$0xf0]  ;;  %v5368_v28 = vadd.f32 %v5367_v57, %v3732_v19  ;;  %v14115_v52 = vpack.c.bf16 %v14106_v13, %v14111_v10  ;;  %v11720_v42 = vld [vmem:[#allocation16 + $0x240] sm:$0xf]  ;;  %v11645_v57 = vor.u32 %v13020_v46, %v11642_v35 }
 0x48b   :  { %v11349_v59 = vor.u32 %v12945_v0, %v11346_v8  ;;  %v11705_v12 = vor.u32 %v13038_v56, %v11704_v20  ;;  %v11688_v0 = vld [vmem:[#allocation16 + $0x200] sm:$0xf]  ;;  %v13034_v8 = vld [vmem:[#allocation16 + $0x20c] sm:$0xf0]  ;;  %v12995_v46 = vld [vmem:[#allocation16 + $0xd4] sm:$0xf0] }
 0x48c   :  { %v13008_v20 = vld [vmem:[#allocation16 + $0x144] sm:$0xf] }
 0x48d   :  { %7412 = vmatpush.bf16.msra.mxu0 %v11517_v21  ;;  %6528 = vmatpush.bf16.msra.mxu3 %v11397_v31  ;;  %v11737_v21 = vor.u32 %v13046_v2, %v11736_v29  ;;  %v13042_v31 = vld [vmem:[#allocation16 + $0x24c] sm:$0xf0]  ;;  %v12999_v29 = vld [vmem:[#allocation16 + $0xf4] sm:$0xf0]  ;;  %v5397_v2 = vpop.f32.mrf.mxu2 }
 0x48e   :  { %7374 = vmatpush.bf16.msrb.mxu1 %v11577_v48  ;;  %7384 = vmatpush.bf16.msrb.mxu2 %v11769_v23  ;;  %v5382_v48 = vadd.f32 %v5381_v14, %v5368_v28  ;;  %v12941_v23 = vld [vmem:[#allocation13 + $0x32c] sm:$0xf]  ;;  %v11626_v14 = vld [vmem:[#allocation16 + $0x190] sm:$0xf0]  ;;  %v13012_v28 = vld [vmem:[#allocation16 + $0x164] sm:$0xf] }
 0x48f   :  { %v11333_v16 = vor.u32 %v12941_v23, %v11330_v40  ;;  %v11629_v33 = vor.u32 %v13016_v44, %v11626_v14  ;;  %v5411_v35 = vpop.f32.mrf.mxu3  ;;  %v11912_v23 = vld [vmem:[#allocation16 + $0x3c0] sm:$0xf]  ;;  %v13090_v40 = vld [vmem:[#allocation16 + $0x3cc] sm:$0xf0] }
 0x490   :  { %v5396_v9 = vadd.f32 %v5395_v24, %v5382_v48  ;;  %v11928_v24 = vld [vmem:[#allocation16 + $0x3e0] sm:$0xf]  ;;  %v11689_v48 = vor.u32 %v13034_v8, %v11688_v0  ;;  %v13086_v14 = vld [vmem:[#allocation16 + $0x3ac] sm:$0xf0] }
 0x491   :  { %7413 = vmatpush.bf16.msra.mxu0 %v11501_v17  ;;  %6529 = vmatpush.bf16.msra.mxu3 %v11381_v58  ;;  %v11721_v17 = vor.u32 %v13042_v31, %v11720_v42  ;;  %v12968_v58 = vld [vmem:[#allocation16 + $0x4] sm:$0xf]  ;;  %v11802_v42 = vld [vmem:[#allocation16 + $0x2f0] sm:$0xf0]  ;;  %v11896_v44 = vld [vmem:[#allocation16 + $0x3a0] sm:$0xf] }
 0x492   :  { %7375 = vmatpush.bf16.msrb.mxu1 %v11561_v30  ;;  %7385 = vmatpush.bf16.msrb.mxu2 %v11753_v54  ;;  %v5370_v30 = vadd.f32 %v5369_v4, %v3732_v19  ;;  %v5410_v54 = vadd.f32 %v5409_v5, %v5396_v9  ;;  %v11437_v49 = vor.u32 %v12968_v58, %v11434_v6  ;;  %v11880_v0 = vld [vmem:[#allocation16 + $0x380] sm:$0xf] }
 0x493   :  { %v11537_v9 = vor.u32 %v12995_v46, %v11536_v1  ;;  %v11913_v6 = vor.u32 %v13090_v40, %v11912_v23  ;;  %v12983_v1 = vld [vmem:[#allocation16 + $0x74] sm:$0xf0]  ;;  %v11680_v46 = vld [vmem:[#allocation16 + $0x1e8] sm:$0xf]  ;;  %v13078_v23 = vld [vmem:[#allocation16 + $0x36c] sm:$0xf0] }
 0x494   :  { %v5384_v25 = vadd.f32 %v5383_v61, %v5370_v30  ;;  %v5504_v32 = vadd.f32 %v5410_v54, %v13914_v63  ;;  %v11786_v63 = vld [vmem:[#allocation16 + $0x2d0] sm:$0xf0]  ;;  %v11520_v61 = vld [vmem:[#allocation16 + $0xa8] sm:$0xf]  ;;  %v3733_v40 = vperm.slane %v14058_v36, 7 }
 0x495   :  { %7414 = vmatpush.bf16.msra.mxu0 %v11485_v39  ;;  %6530 = vmatpush.bf16.msra.mxu3 %v11365_v62  ;;  %v12937_v39 = vld [vmem:[#allocation13 + $0x30c] sm:$0xf]  ;;  %v13094_v62 = vld [vmem:[#allocation16 + $0x3ec] sm:$0xf0] }
 0x496   :  { %7424 = vmatpush.bf16.msra.mxu1 %v11677_v7  ;;  %7386 = vmatpush.bf16.msrb.mxu2 %v11737_v21  ;;  %v11314_v7 = vld [vmem:[#allocation13 + $0x318] sm:$0xf0]  ;;  %v11553_v21 = vor.u32 %v12999_v29, %v11552_v15  ;;  %v5398_v31 = vadd.f32 %v5397_v2, %v5384_v25  ;;  %v5520_v56 = vmul.f32 0.01, %v5504_v32  ;;  %vm5512_vm7 = vcmp.gt.f32.partialorder %v5504_v32, 0.0 }
 0x497   :  { %7376 = vmatmul.bf16.vlgmr.msrb.gmra.mxu1 %v14115_v52  ;;  %v11317_v19 = vor.u32 %v12937_v39, %v11314_v7  ;;  %v13004_v29 = vld [vmem:[#allocation16 + $0x124] sm:$0xf]  ;;  %v11578_v39 = vld [vmem:[#allocation16 + $0x130] sm:$0xf0]  ;;  %v11504_v25 = vld [vmem:[#allocation16 + $0x88] sm:$0xf] }
 0x498   :  { %v5412_v4 = vadd.f32 %v5411_v35, %v5398_v31  ;;  %v13052_v7 = vld [vmem:[#allocation16 + $0x2a4] sm:$0xf]  ;;  %v11770_v2 = vld [vmem:[#allocation16 + $0x2b0] sm:$0xf0]  ;;  %v11581_v8 = vor.u32 %v13004_v29, %v11578_v39  ;;  %v11488_v31 = vld [vmem:[#allocation16 + $0x68] sm:$0xf] }
 0x499   :  { %7415 = vmatpush.bf16.msra.mxu0 %v11469_v55  ;;  %6531 = vmatpush.bf16.msra.mxu3 %v11349_v59  ;;  %v11610_v55 = vld [vmem:[#allocation16 + $0x170] sm:$0xf0]  ;;  %v11929_v59 = vor.u32 %v13094_v62, %v11928_v24  ;;  %v11897_v62 = vor.u32 %v13086_v14, %v11896_v44  ;;  %v13031_v35 = vld [vmem:[#allocation16 + $0x1f4] sm:$0xf0]  ;;  %v11848_v44 = vld [vmem:[#allocation16 + $0x340] sm:$0xf] }
 0x49a   :  { %7425 = vmatpush.bf16.msra.mxu1 %v11661_v53  ;;  %7387 = vmatpush.bf16.msrb.mxu2 %v11721_v17  ;;  %v13060_v53 = vld [vmem:[#allocation16 + $0x2e4] sm:$0xf]  ;;  %v11613_v5 = vor.u32 %v13012_v28, %v11610_v55  ;;  %v5508_v58 = vadd.f32 %v5412_v4, %v13916_v3  ;;  %v11773_v28 = vor.u32 %v13052_v7, %v11770_v2  ;;  %v5437_v4 = vpop.f32.mrf.mxu1  ;;  %v13074_v14 = vld [vmem:[#allocation16 + $0x34c] sm:$0xf0]  ;;  %v11456_v39 = vld [vmem:[#allocation16 + $0x28] sm:$0xf] }
 0x49b   :  { %v11805_v17 = vor.u32 %v13060_v53, %v11802_v42  ;;  %v13048_v53 = vld [vmem:[#allocation16 + $0x284] sm:$0xf]  ;;  %v11754_v42 = vld [vmem:[#allocation16 + $0x290] sm:$0xf0]  ;;  %v11849_v7 = vor.u32 %v13074_v14, %v11848_v44  ;;  %v12975_v2 = vld [vmem:[#allocation16 + $0x34] sm:$0xf0] }
 0x49c   :  { %vm5516_vm8 = vcmp.gt.f32.partialorder %v5508_v58, 0.0  ;;  %v5524_v15 = vmul.f32 0.01, %v5508_v58  ;;  %v13040_v29 = vld [vmem:[#allocation16 + $0x244] sm:$0xf] }
 0x49d   :  { %7416 = vmatpush.bf16.msra.mxu0 %v11453_v51  ;;  %6532 = vmatpush.bf16.msra.mxu3 %v11333_v16  ;;  %v11594_v51 = vld [vmem:[#allocation16 + $0x150] sm:$0xf0]  ;;  %v12991_v16 = vld [vmem:[#allocation16 + $0xb4] sm:$0xf0]  ;;  %v11616_v14 = vld [vmem:[#allocation16 + $0x168] sm:$0xf] }
 0x49e   :  { %7426 = vmatpush.bf16.msra.mxu1 %v11645_v57  ;;  %7388 = vmatpush.bf16.msrb.mxu2 %v11705_v12  ;;  %v13056_v57 = vld [vmem:[#allocation16 + $0x2c4] sm:$0xf]  ;;  %v11597_v30 = vor.u32 %v13008_v20, %v11594_v51  ;;  %v11521_v3 = vor.u32 %v12991_v16, %v11520_v61  ;;  %v14125_v12 = vsel %vm5512_vm7, %v5504_v32, %v5520_v56  ;;  %v5423_v32 = vpop.f32.mrf.mxu0  ;;  %v5451_v56 = vpop.f32.mrf.mxu2  ;;  %v11664_v61 = vld [vmem:[#allocation16 + $0x1c8] sm:$0xf]  ;;  %v13027_v16 = vld [vmem:[#allocation16 + $0x1d4] sm:$0xf0] }
 0x49f   :  { %v11789_v54 = vor.u32 %v13056_v57, %v11786_v63  ;;  %v14127_v24 = vsel %vm5516_vm8, %v5508_v58, %v5524_v15  ;;  %v11489_v20 = vor.u32 %v12983_v1, %v11488_v31  ;;  %v13044_v51 = vld [vmem:[#allocation16 + $0x264] sm:$0xf]  ;;  %v11738_v57 = vld [vmem:[#allocation16 + $0x270] sm:$0xf0]  ;;  %v11472_v63 = vld [vmem:[#allocation16 + $0x48] sm:$0xf]  ;;  %v5424_v15 = vadd.f32 %v5423_v32, %v3733_v40 }
 0x4a0   :  { %v11741_v36 = vor.u32 %v13044_v51, %v11738_v57  ;;  %v11706_v31 = vld [vmem:[#allocation16 + $0x230] sm:$0xf0]  ;;  %v11440_v32 = vld [vmem:[#allocation16 + $0x8] sm:$0xf] }
 0x4a1   :  { %7417 = vmatpush.bf16.msra.mxu0 %v11437_v49  ;;  %6533 = vmatpush.bf16.msra.mxu3 %v11317_v19  ;;  %v12987_v49 = vld [vmem:[#allocation16 + $0x94] sm:$0xf0]  ;;  %v11562_v19 = vld [vmem:[#allocation16 + $0x110] sm:$0xf0] }
 0x4a2   :  { %7427 = vmatpush.bf16.msra.mxu1 %v11629_v33  ;;  %7389 = vmatpush.bf16.msrb.mxu2 %v11689_v48  ;;  %v14131_v33 = vpack.c.bf16 %v14127_v24, %v14125_v12  ;;  %v11505_v55 = vor.u32 %v12987_v49, %v11504_v25  ;;  %v11864_v48 = vld [vmem:[#allocation16 + $0x360] sm:$0xf]  ;;  %v13023_v25 = vld [vmem:[#allocation16 + $0x1b4] sm:$0xf0]  ;;  %v5438_v49 = vadd.f32 %v5437_v4, %v5424_v15  ;;  %v5439_v1 = vpop.f32.mrf.mxu1  ;;  %v11690_v44 = vld [vmem:[#allocation16 + $0x210] sm:$0xf0] }
 0x4a3   :  { %v11865_v58 = vor.u32 %v13078_v23, %v11864_v48  ;;  %v13019_v48 = vld [vmem:[#allocation16 + $0x194] sm:$0xf0]  ;;  %v12997_v23 = vld [vmem:[#allocation16 + $0xec] sm:$0xf] }
 0x4a4   :  { %7418 = vmatmul.bf16.vlgmr.msra.gmra.mxu0 %v14095_v43  ;;  %6534 = vmatmul.bf16.vlgmr.msra.gmra.mxu3 %v14042_v26  ;;  %v13082_v26 = vld [vmem:[#allocation16 + $0x38c] sm:$0xf0]  ;;  %v13015_v15 = vld [vmem:[#allocation16 + $0x174] sm:$0xf0] }
 0x4a5   :  { %7466 = vmatpush.bf16.msrb.mxu0 %v11553_v21  ;;  %7396 = vmatpush.bf16.msrb.mxu3 %v11929_v59  ;;  %v13000_v21 = vld [vmem:[#allocation16 + $0x104] sm:$0xf]  ;;  %v11881_v59 = vor.u32 %v13082_v26, %v11880_v0  ;;  %v11832_v0 = vld [vmem:[#allocation16 + $0x320] sm:$0xf]  ;;  %v13070_v26 = vld [vmem:[#allocation16 + $0x32c] sm:$0xf0] }
 0x4a6   :  { %7428 = vmatpush.bf16.msra.mxu1 %v11613_v5  ;;  %7438 = vmatpush.bf16.msra.mxu2 %v11805_v17  ;;  %v11565_v5 = vor.u32 %v13000_v21, %v11562_v19  ;;  %v11757_v17 = vor.u32 %v13048_v53, %v11754_v42  ;;  %v13036_v19 = vld [vmem:[#allocation16 + $0x224] sm:$0xf]  ;;  %v11457_v53 = vor.u32 %v12975_v2, %v11456_v39  ;;  %v5453_v51 = vpop.f32.mrf.mxu2  ;;  %v11538_v2 = vld [vmem:[#allocation16 + $0xd8] sm:$0xf0] }
 0x4a7   :  { %7390 = vmatmul.bf16.vlgmr.msrb.gmra.mxu2 %v14131_v33  ;;  %v11709_v57 = vor.u32 %v13036_v19, %v11706_v31 }
 0x4a9   :  { %7467 = vmatpush.bf16.msrb.mxu0 %v11537_v9  ;;  %7397 = vmatpush.bf16.msrb.mxu3 %v11913_v6  ;;  %v11681_v9 = vor.u32 %v13031_v35, %v11680_v46  ;;  %v12979_v6 = vld [vmem:[#allocation16 + $0x54] sm:$0xf0]  ;;  %v11833_v46 = vor.u32 %v13070_v26, %v11832_v0  ;;  %v11632_v35 = vld [vmem:[#allocation16 + $0x188] sm:$0xf]  ;;  %v11914_v0 = vld [vmem:[#allocation16 + $0x3d0] sm:$0xf0] }
 0x4aa   :  { %7429 = vmatpush.bf16.msra.mxu1 %v11597_v30  ;;  %7439 = vmatpush.bf16.msra.mxu2 %v11789_v54  ;;  %v11473_v30 = vor.u32 %v12979_v6, %v11472_v63  ;;  %v11665_v54 = vor.u32 %v13027_v16, %v11664_v61  ;;  %v13092_v63 = vld [vmem:[#allocation16 + $0x3e4] sm:$0xf]  ;;  %v11633_v61 = vor.u32 %v13019_v48, %v11632_v35  ;;  %v11898_v35 = vld [vmem:[#allocation16 + $0x3b0] sm:$0xf0] }
 0x4ab   :  { %v13032_v16 = vld [vmem:[#allocation16 + $0x204] sm:$0xf] }
 0x4ad   :  { %7468 = vmatpush.bf16.msrb.mxu0 %v11521_v3  ;;  %7398 = vmatpush.bf16.msrb.mxu3 %v11897_v62  ;;  %v11722_v3 = vld [vmem:[#allocation16 + $0x250] sm:$0xf0]  ;;  %v11648_v62 = vld [vmem:[#allocation16 + $0x1a8] sm:$0xf] }
 0x4ae   :  { %7430 = vmatpush.bf16.msra.mxu1 %v11581_v8  ;;  %7440 = vmatpush.bf16.msra.mxu2 %v11773_v28  ;;  %v5425_v8 = vpop.f32.mrf.mxu0  ;;  %v5465_v28 = vpop.f32.mrf.mxu3  ;;  %v11725_v21 = vor.u32 %v13040_v29, %v11722_v3  ;;  %v11649_v42 = vor.u32 %v13023_v25, %v11648_v62  ;;  %v11693_v25 = vor.u32 %v13032_v16, %v11690_v44  ;;  %v11882_v16 = vld [vmem:[#allocation16 + $0x390] sm:$0xf0] }
 0x4af   :  { %v5426_v4 = vadd.f32 %v5425_v8, %v3733_v40  ;;  %v11617_v8 = vor.u32 %v13015_v15, %v11616_v14 }
 0x4b1   :  { %7469 = vmatpush.bf16.msrb.mxu0 %v11505_v55  ;;  %7399 = vmatpush.bf16.msrb.mxu3 %v11881_v59  ;;  %v5452_v55 = vadd.f32 %v5451_v56, %v5438_v49  ;;  %v12971_v59 = vld [vmem:[#allocation16 + $0x14] sm:$0xf0]  ;;  %v11930_v56 = vld [vmem:[#allocation16 + $0x3f0] sm:$0xf0]  ;;  %v13088_v49 = vld [vmem:[#allocation16 + $0x3c4] sm:$0xf] }
 0x4b2   :  { %7431 = vmatpush.bf16.msra.mxu1 %v11565_v5  ;;  %7441 = vmatpush.bf16.msra.mxu2 %v11757_v17  ;;  %v11554_v17 = vld [vmem:[#allocation16 + $0xf8] sm:$0xf0]  ;;  %v11441_v6 = vor.u32 %v12971_v59, %v11440_v32  ;;  %v11933_v39 = vor.u32 %v13092_v63, %v11930_v56  ;;  %v11917_v32 = vor.u32 %v13088_v49, %v11914_v0  ;;  %v12989_v59 = vld [vmem:[#allocation16 + $0xac] sm:$0xf] }
 0x4b3   :  { %v5466_v5 = vadd.f32 %v5465_v28, %v5452_v55  ;;  %v13011_v55 = vld [vmem:[#allocation16 + $0x154] sm:$0xf0]  ;;  %v12985_v56 = vld [vmem:[#allocation16 + $0x8c] sm:$0xf] }
 0x4b5   :  { %7470 = vmatpush.bf16.msrb.mxu0 %v11489_v20  ;;  %7400 = vmatpush.bf16.msrb.mxu3 %v11865_v58  ;;  %v11816_v20 = vld [vmem:[#allocation16 + $0x300] sm:$0xf]  ;;  %v5440_v58 = vadd.f32 %v5439_v1, %v5426_v4  ;;  %v5505_v3 = vadd.f32 %v5466_v5, %v13928_v34  ;;  %v13059_v34 = vld [vmem:[#allocation16 + $0x2d4] sm:$0xf0]  ;;  %v11522_v1 = vld [vmem:[#allocation16 + $0xb8] sm:$0xf0] }
 0x4b6   :  { %7480 = vmatpush.bf16.msrb.mxu1 %v11681_v9  ;;  %7442 = vmatpush.bf16.msra.mxu2 %v11741_v36  ;;  %v13066_v9 = vld [vmem:[#allocation16 + $0x30c] sm:$0xf0]  ;;  %v11557_v36 = vor.u32 %v12997_v23, %v11554_v17  ;;  %v5467_v62 = vpop.f32.mrf.mxu3  ;;  %v11584_v5 = vld [vmem:[#allocation16 + $0x128] sm:$0xf]  ;;  %v11525_v17 = vor.u32 %v12989_v59, %v11522_v1 }
 0x4b7   :  { %7432 = vmatmul.bf16.vlgmr.msra.gmra.mxu1 %v14115_v52  ;;  %v11817_v40 = vor.u32 %v13066_v9, %v11816_v20  ;;  %v5454_v29 = vadd.f32 %v5453_v51, %v5440_v58  ;;  %vm5513_vm9 = vcmp.gt.f32.partialorder %v5505_v3, 0.0  ;;  %v11776_v20 = vld [vmem:[#allocation16 + $0x2a8] sm:$0xf]  ;;  %v13055_v9 = vld [vmem:[#allocation16 + $0x2b4] sm:$0xf0] }
 0x4b8   :  { %v11506_v58 = vld [vmem:[#allocation16 + $0x98] sm:$0xf0]  ;;  %v11777_v14 = vor.u32 %v13055_v9, %v11776_v20  ;;  %v13068_v20 = vld [vmem:[#allocation16 + $0x324] sm:$0xf]  ;;  %v11834_v9 = vld [vmem:[#allocation16 + $0x330] sm:$0xf0] }
 0x4b9   :  { %7471 = vmatpush.bf16.msrb.mxu0 %v11473_v30  ;;  %7401 = vmatpush.bf16.msrb.mxu3 %v11849_v7  ;;  %v11808_v30 = vld [vmem:[#allocation16 + $0x2e8] sm:$0xf]  ;;  %v12993_v7 = vld [vmem:[#allocation16 + $0xcc] sm:$0xf]  ;;  %v5468_v26 = vadd.f32 %v5467_v62, %v5454_v29  ;;  %v11509_v15 = vor.u32 %v12985_v56, %v11506_v58  ;;  %v13076_v62 = vld [vmem:[#allocation16 + $0x364] sm:$0xf] }
 0x4ba   :  { %7481 = vmatpush.bf16.msrb.mxu1 %v11665_v54  ;;  %7443 = vmatpush.bf16.msra.mxu2 %v11725_v21  ;;  %v13063_v54 = vld [vmem:[#allocation16 + $0x2f4] sm:$0xf0]  ;;  %v11600_v21 = vld [vmem:[#allocation16 + $0x148] sm:$0xf]  ;;  %v11541_v19 = vor.u32 %v12993_v7, %v11538_v2  ;;  %v12981_v29 = vld [vmem:[#allocation16 + $0x6c] sm:$0xf] }
 0x4bb   :  { %v11809_v28 = vor.u32 %v13063_v54, %v11808_v30  ;;  %v5509_v31 = vadd.f32 %v5468_v26, %v13930_v60  ;;  %v11601_v23 = vor.u32 %v13011_v55, %v11600_v21  ;;  %v13007_v60 = vld [vmem:[#allocation16 + $0x134] sm:$0xf0]  ;;  %v11760_v30 = vld [vmem:[#allocation16 + $0x288] sm:$0xf]  ;;  %v13029_v7 = vld [vmem:[#allocation16 + $0x1ec] sm:$0xf] }
 0x4bc   :  { %v11585_v44 = vor.u32 %v13007_v60, %v11584_v5  ;;  %v13051_v54 = vld [vmem:[#allocation16 + $0x294] sm:$0xf0]  ;;  %v11682_v2 = vld [vmem:[#allocation16 + $0x1f8] sm:$0xf0] }
 0x4bd   :  { %7472 = vmatpush.bf16.msrb.mxu0 %v11457_v53  ;;  %7402 = vmatpush.bf16.msrb.mxu3 %v11833_v46  ;;  %v11792_v53 = vld [vmem:[#allocation16 + $0x2c8] sm:$0xf]  ;;  %v13084_v46 = vld [vmem:[#allocation16 + $0x3a4] sm:$0xf]  ;;  %vm5517_vm10 = vcmp.gt.f32.partialorder %v5509_v31, 0.0  ;;  %v11761_v0 = vor.u32 %v13051_v54, %v11760_v30  ;;  %v14151_v30 = vpop.f32.mrf.mxu0 }
 0x4be   :  { %7482 = vmatpush.bf16.msrb.mxu1 %v11649_v42  ;;  %7444 = vmatpush.bf16.msra.mxu2 %v11709_v57  ;;  %v5521_v42 = vmul.f32 0.01, %v5505_v3  ;;  %v5525_v48 = vmul.f32 0.01, %v5509_v31  ;;  %v11793_v4 = vor.u32 %v13059_v34, %v11792_v53  ;;  %v11901_v63 = vor.u32 %v13084_v46, %v11898_v35  ;;  %v13047_v21 = vld [vmem:[#allocation16 + $0x274] sm:$0xf0] }
 0x4bf   :  { %v11474_v53 = vld [vmem:[#allocation16 + $0x58] sm:$0xf0]  ;;  %v13025_v34 = vld [vmem:[#allocation16 + $0x1cc] sm:$0xf]  ;;  %v11728_v35 = vld [vmem:[#allocation16 + $0x248] sm:$0xf] }
 0x4c0   :  { %v14140_v51 = vsel %vm5513_vm9, %v5505_v3, %v5521_v42  ;;  %v14142_v57 = vsel %vm5517_vm10, %v5509_v31, %v5525_v48  ;;  %v11666_v42 = vld [vmem:[#allocation16 + $0x1d8] sm:$0xf0]  ;;  %v13072_v31 = vld [vmem:[#allocation16 + $0x344] sm:$0xf]  ;;  %v13043_v48 = vld [vmem:[#allocation16 + $0x254] sm:$0xf0] }
 0x4c1   :  { %7473 = vmatpush.bf16.msrb.mxu0 %v11441_v6  ;;  %7403 = vmatpush.bf16.msrb.mxu3 %v11817_v40  ;;  %v14147_v6 = vpack.c.bf16 %v14142_v57, %v14140_v51  ;;  %v13003_v40 = vld [vmem:[#allocation16 + $0x114] sm:$0xf0]  ;;  %v11669_v46 = vor.u32 %v13025_v34, %v11666_v42  ;;  %v11458_v5 = vld [vmem:[#allocation16 + $0x38] sm:$0xf0]  ;;  %v13064_v54 = vld [vmem:[#allocation16 + $0x304] sm:$0xf] }
 0x4c2   :  { %7483 = vmatpush.bf16.msrb.mxu1 %v11633_v61  ;;  %7445 = vmatpush.bf16.msra.mxu2 %v11693_v25  ;;  %v13080_v61 = vld [vmem:[#allocation16 + $0x384] sm:$0xf]  ;;  %v11866_v25 = vld [vmem:[#allocation16 + $0x370] sm:$0xf0]  ;;  %v11650_v60 = vld [vmem:[#allocation16 + $0x1b8] sm:$0xf0] }
 0x4c3   :  { %v11885_v3 = vor.u32 %v13080_v61, %v11882_v16  ;;  %v11869_v55 = vor.u32 %v13076_v62, %v11866_v25  ;;  %v11712_v61 = vld [vmem:[#allocation16 + $0x228] sm:$0xf]  ;;  %v13039_v16 = vld [vmem:[#allocation16 + $0x234] sm:$0xf0]  ;;  %v14153_v62 = vpop.f32.mrf.mxu1 }
 0x4c4   :  { %7474 = vmatmul.bf16.vlgmr.msrb.gmra.mxu0 %v14095_v43  ;;  %7404 = vmatmul.bf16.vlgmr.msrb.gmra.mxu3 %v14147_v6 }
 0x4c5   :  { %7522 = vmatpush.bf16.msra.mxu0 %v11557_v36  ;;  %7452 = vmatpush.bf16.msra.mxu3 %v11933_v39  ;;  %v11568_v36 = vld [vmem:[#allocation16 + $0x108] sm:$0xf]  ;;  %v11490_v39 = vld [vmem:[#allocation16 + $0x78] sm:$0xf0] }
 0x4c6   :  { %7484 = vmatpush.bf16.msrb.mxu1 %v11617_v8  ;;  %7494 = vmatpush.bf16.msrb.mxu2 %v11809_v28  ;;  %v11569_v49 = vor.u32 %v13003_v40, %v11568_v36  ;;  %v11493_v26 = vor.u32 %v12981_v29, %v11490_v39  ;;  %v11685_v8 = vor.u32 %v13029_v7, %v11682_v2  ;;  %v11744_v28 = vld [vmem:[#allocation16 + $0x268] sm:$0xf]  ;;  %v11442_v36 = vld [vmem:[#allocation16 + $0x18] sm:$0xf0]  ;;  %v13017_v40 = vld [vmem:[#allocation16 + $0x18c] sm:$0xf] }
 0x4c7   :  { %7446 = vmatmul.bf16.vlgmr.msra.gmra.mxu2 %v14131_v33  ;;  %v11745_v59 = vor.u32 %v13047_v21, %v11744_v28  ;;  %v11818_v29 = vld [vmem:[#allocation16 + $0x310] sm:$0xf0]  ;;  %v13103_v39 = vld [vmem:[#allocation19 + $0x38] sm:$0xff]  ;;  %v11936_v7 = vld [vmem:[#allocation16 + $0x3e8] sm:$0xf] }
 0x4c8   :  { %v13095_v2 = vld [vmem:[#allocation16 + $0x3f4] sm:$0xf0]  ;;  %v11821_v28 = vor.u32 %v13064_v54, %v11818_v29  ;;  %v11618_v21 = vld [vmem:[#allocation16 + $0x178] sm:$0xf0]  ;;  %v11888_v54 = vld [vmem:[#allocation16 + $0x388] sm:$0xf] }
 0x4c9   :  { %7523 = vmatpush.bf16.msra.mxu0 %v11541_v19  ;;  %7453 = vmatpush.bf16.msra.mxu3 %v11917_v32  ;;  %v12977_v19 = vld [vmem:[#allocation16 + $0x4c] sm:$0xf]  ;;  %v11850_v32 = vld [vmem:[#allocation16 + $0x350] sm:$0xf0]  ;;  %v11937_v34 = vor.u32 %v13095_v2, %v11936_v7  ;;  %v13083_v29 = vld [vmem:[#allocation16 + $0x394] sm:$0xf0] }
 0x4ca   :  { %7485 = vmatpush.bf16.msrb.mxu1 %v11601_v23  ;;  %7495 = vmatpush.bf16.msrb.mxu2 %v11793_v4  ;;  %v11477_v1 = vor.u32 %v12977_v19, %v11474_v53  ;;  %v12973_v23 = vld [vmem:[#allocation16 + $0x2c] sm:$0xf]  ;;  %v11853_v4 = vor.u32 %v13072_v31, %v11850_v32  ;;  %v14155_v53 = vpop.f32.mrf.mxu2  ;;  %v11920_v31 = vld [vmem:[#allocation16 + $0x3c8] sm:$0xf]  ;;  %v13091_v32 = vld [vmem:[#allocation16 + $0x3d4] sm:$0xf0] }
 0x4cb   :  { %v11461_v56 = vor.u32 %v12973_v23, %v11458_v5  ;;  %v13061_v19 = vld [vmem:[#allocation16 + $0x2ec] sm:$0xf]  ;;  %v14157_v5 = vpop.f32.mrf.mxu3  ;;  %v13100_v2 = vld [vmem:[#allocation19 + $0x20] sm:$0xff] }
 0x4cc   :  { %v13057_v23 = vld [vmem:[#allocation16 + $0x2cc] sm:$0xf] }
 0x4cd   :  { %7524 = vmatpush.bf16.msra.mxu0 %v11525_v17  ;;  %7454 = vmatpush.bf16.msra.mxu3 %v11901_v63  ;;  %v13021_v17 = vld [vmem:[#allocation16 + $0x1ac] sm:$0xf]  ;;  %v11729_v63 = vor.u32 %v13043_v48, %v11728_v35  ;;  %v11602_v48 = vld [vmem:[#allocation16 + $0x158] sm:$0xf0] }
 0x4ce   :  { %7486 = vmatpush.bf16.msrb.mxu1 %v11585_v44  ;;  %7496 = vmatpush.bf16.msrb.mxu2 %v11777_v14  ;;  %v11653_v58 = vor.u32 %v13021_v17, %v11650_v60  ;;  %v12969_v44 = vld [vmem:[#allocation16 + $0xc] sm:$0xf]  ;;  %v11837_v14 = vor.u32 %v13068_v20, %v11834_v9  ;;  %v11921_v17 = vor.u32 %v13091_v32, %v11920_v31  ;;  %v11904_v60 = vld [vmem:[#allocation16 + $0x3a8] sm:$0xf]  ;;  %v13087_v20 = vld [vmem:[#allocation16 + $0x3b4] sm:$0xf0] }
 0x4cf   :  { %v11445_v25 = vor.u32 %v12969_v44, %v11442_v36  ;;  %v13009_v35 = vld [vmem:[#allocation16 + $0x14c] sm:$0xf]  ;;  %v14160_v9 = vld [vmem:[#allocation15] sm:$0xf] }
 0x4d0   :  { %v11586_v44 = vld [vmem:[#allocation16 + $0x138] sm:$0xf0] }
 0x4d1   :  { %7525 = vmatpush.bf16.msra.mxu0 %v11509_v15  ;;  %7455 = vmatpush.bf16.msra.mxu3 %v11885_v3  ;;  %v11634_v15 = vld [vmem:[#allocation16 + $0x198] sm:$0xf0]  ;;  %v11713_v3 = vor.u32 %v13039_v16, %v11712_v61  ;;  %v13101_v61 = vld [vmem:[#allocation19 + $0x28] sm:$0xff] }
 0x4d2   :  { %7487 = vmatpush.bf16.msrb.mxu1 %v11569_v49  ;;  %7497 = vmatpush.bf16.msrb.mxu2 %v11761_v0  ;;  %v11637_v49 = vor.u32 %v13017_v40, %v11634_v15  ;;  %v11696_v0 = vld [vmem:[#allocation16 + $0x208] sm:$0xf]  ;;  %v13005_v16 = vld [vmem:[#allocation16 + $0x12c] sm:$0xf]  ;;  %v11778_v36 = vld [vmem:[#allocation16 + $0x2b8] sm:$0xf0]  ;;  %v6341_v40 = vpop.f32.mrf.mxu1 }
 0x4d3   :  { %v5668_v15 = vperm.slane %v14160_v9, 0  ;;  %v6369_v31 = vpop.f32.mrf.mxu3 }
 0x4d5   :  { %7526 = vmatpush.bf16.msra.mxu0 %v11493_v26  ;;  %7456 = vmatpush.bf16.msra.mxu3 %v11869_v55  ;;  %v13035_v26 = vld [vmem:[#allocation16 + $0x214] sm:$0xf0]  ;;  %v11810_v55 = vld [vmem:[#allocation16 + $0x2f8] sm:$0xf0] }
 0x4d6   :  { %7536 = vmatpush.bf16.msra.mxu1 %v11685_v8  ;;  %7498 = vmatpush.bf16.msrb.mxu2 %v11745_v59  ;;  %v13013_v8 = vld [vmem:[#allocation16 + $0x16c] sm:$0xf]  ;;  %v11697_v42 = vor.u32 %v13035_v26, %v11696_v0  ;;  %v11570_v0 = vld [vmem:[#allocation16 + $0x118] sm:$0xf0] }
 0x4d7   :  { %7488 = vmatmul.bf16.vlgmr.msrb.gmra.mxu1 %v14115_v52  ;;  %v11621_v59 = vor.u32 %v13013_v8, %v11618_v21  ;;  %v13049_v26 = vld [vmem:[#allocation16 + $0x28c] sm:$0xf]  ;;  %v11762_v8 = vld [vmem:[#allocation16 + $0x298] sm:$0xf0]  ;;  %v6326_v21 = vadd.f32 %v14151_v30, %v5668_v15 }
 0x4d9   :  { %7527 = vmatpush.bf16.msra.mxu0 %v11477_v1  ;;  %7457 = vmatpush.bf16.msra.mxu3 %v11853_v4  ;;  %v11813_v1 = vor.u32 %v13061_v19, %v11810_v55  ;;  %v11794_v4 = vld [vmem:[#allocation16 + $0x2d8] sm:$0xf0]  ;;  %v11872_v55 = vld [vmem:[#allocation16 + $0x368] sm:$0xf] }
 0x4da   :  { %7537 = vmatpush.bf16.msra.mxu1 %v11669_v46  ;;  %7499 = vmatpush.bf16.msrb.mxu2 %v11729_v63  ;;  %v13102_v46 = vld [vmem:[#allocation19 + $0x30] sm:$0xff]  ;;  %v6327_v63 = vpop.f32.mrf.mxu0 }
 0x4dd   :  { %7528 = vmatpush.bf16.msra.mxu0 %v11461_v56  ;;  %7458 = vmatpush.bf16.msra.mxu3 %v11837_v14  ;;  %v11605_v56 = vor.u32 %v13009_v35, %v11602_v48  ;;  %v13053_v14 = vld [vmem:[#allocation16 + $0x2ac] sm:$0xf]  ;;  %v13111_v48 = vld [vmem:[#allocation19 + $0x78] sm:$0xff] }
 0x4de   :  { %7538 = vmatpush.bf16.msra.mxu1 %v11653_v58  ;;  %7500 = vmatpush.bf16.msrb.mxu2 %v11713_v3  ;;  %v11797_v58 = vor.u32 %v13057_v23, %v11794_v4  ;;  %v6355_v3 = vpop.f32.mrf.mxu2  ;;  %v11781_v7 = vor.u32 %v13053_v14, %v11778_v36  ;;  %v13045_v23 = vld [vmem:[#allocation16 + $0x26c] sm:$0xf]  ;;  %v11746_v4 = vld [vmem:[#allocation16 + $0x278] sm:$0xf0] }
 0x4df   :  { %v13041_v14 = vld [vmem:[#allocation16 + $0x24c] sm:$0xf]  ;;  %v11730_v36 = vld [vmem:[#allocation16 + $0x258] sm:$0xf0] }
 0x4e1   :  { %7529 = vmatpush.bf16.msra.mxu0 %v11445_v25  ;;  %7459 = vmatpush.bf16.msra.mxu3 %v11821_v28  ;;  %v13001_v25 = vld [vmem:[#allocation16 + $0x10c] sm:$0xf]  ;;  %v11889_v28 = vor.u32 %v13083_v29, %v11888_v54  ;;  %v11733_v29 = vor.u32 %v13041_v14, %v11730_v36  ;;  %v13119_v14 = vld [vmem:[#allocation19 + $0xb8] sm:$0xff] }
 0x4e2   :  { %7539 = vmatpush.bf16.msra.mxu1 %v11637_v49  ;;  %7501 = vmatpush.bf16.msrb.mxu2 %v11697_v42  ;;  %v6328_v49 = vadd.f32 %v6327_v63, %v5668_v15  ;;  %v14166_v42 = vpop.f32.mrf.mxu0  ;;  %v11573_v32 = vor.u32 %v13001_v25, %v11570_v0  ;;  %v11856_v63 = vld [vmem:[#allocation16 + $0x348] sm:$0xf]  ;;  %v13071_v15 = vld [vmem:[#allocation16 + $0x334] sm:$0xf0]  ;;  %v5669_v25 = vperm.slane %v14160_v9, 1 }
 0x4e4   :  { %7530 = vmatmul.bf16.vlgmr.msra.gmra.mxu0 %v14095_v43  ;;  %7460 = vmatmul.bf16.vlgmr.msra.gmra.mxu3 %v14147_v6  ;;  %v11905_v43 = vor.u32 %v13087_v20, %v11904_v60  ;;  %v6342_v19 = vadd.f32 %v6341_v40, %v6328_v49 }
 0x4e5   :  { %7874 = vmatpush.bf16.msrb.mxu0 %v13103_v39  ;;  %7508 = vmatpush.bf16.msrb.mxu3 %v11937_v34  ;;  %v11589_v39 = vor.u32 %v13005_v16, %v11586_v44  ;;  %v13079_v34 = vld [vmem:[#allocation16 + $0x374] sm:$0xf0] }
 0x4e6   :  { %7540 = vmatpush.bf16.msra.mxu1 %v11621_v59  ;;  %7550 = vmatpush.bf16.msra.mxu2 %v11813_v1  ;;  %v11765_v59 = vor.u32 %v13049_v26, %v11762_v8  ;;  %v13099_v1 = vld [vmem:[#allocation19 + $0x18] sm:$0xff]  ;;  %v6356_v35 = vadd.f32 %v6355_v3, %v6342_v19  ;;  %v11873_v30 = vor.u32 %v13079_v34, %v11872_v55  ;;  %v13110_v44 = vld [vmem:[#allocation19 + $0x70] sm:$0xff]  ;;  %v13097_v3 = vld [vmem:[#allocation19 + $0x8] sm:$0xff] }
 0x4e7   :  { %7502 = vmatmul.bf16.vlgmr.msrb.gmra.mxu2 %v14131_v33  ;;  %v6423_v54 = vpop.f32.mrf.mxu3  ;;  %v11824_v26 = vld [vmem:[#allocation16 + $0x308] sm:$0xf]  ;;  %v13067_v8 = vld [vmem:[#allocation16 + $0x314] sm:$0xf0]  ;;  %v11938_v55 = vld [vmem:[#allocation16 + $0x3f8] sm:$0xf0] }
 0x4e8   :  { %v6370_v20 = vadd.f32 %v6369_v31, %v6356_v35  ;;  %v13108_v19 = vld [vmem:[#allocation19 + $0x60] sm:$0xff]  ;;  %v6382_v35 = vadd.f32 %v14166_v42, %v5669_v25 }
 0x4e9   :  { %7875 = vmatpush.bf16.msrb.mxu0 %v13102_v46  ;;  %7509 = vmatpush.bf16.msrb.mxu3 %v11921_v17  ;;  %v6340_v46 = vadd.f32 %v14153_v62, %v6326_v21  ;;  %v14169_v17 = vpop.f32.mrf.mxu1  ;;  %v13098_v62 = vld [vmem:[#allocation19 + $0x10] sm:$0xff] }
 0x4ea   :  { %7541 = vmatpush.bf16.msra.mxu1 %v11605_v56  ;;  %7551 = vmatpush.bf16.msra.mxu2 %v11797_v58  ;;  %v13075_v56 = vld [vmem:[#allocation16 + $0x354] sm:$0xf0]  ;;  %v14172_v58 = vpop.f32.mrf.mxu2  ;;  %v6383_v49 = vpop.f32.mrf.mxu0 }
 0x4eb   :  { %v6354_v60 = vadd.f32 %v14155_v53, %v6340_v46  ;;  %v11857_v40 = vor.u32 %v13075_v56, %v11856_v63  ;;  %v6544_v53 = vadd.f32 %v6370_v20, %v13986_v50  ;;  %v6384_v34 = vadd.f32 %v6383_v49, %v5669_v25  ;;  %v13089_v20 = vld [vmem:[#allocation16 + $0x3cc] sm:$0xf]  ;;  %v11922_v63 = vld [vmem:[#allocation16 + $0x3d8] sm:$0xf0] }
 0x4ec   :  { %v11825_v46 = vor.u32 %v13067_v8, %v11824_v26  ;;  %v6396_v56 = vadd.f32 %v14169_v17, %v6382_v35  ;;  %v13106_v17 = vld [vmem:[#allocation19 + $0x50] sm:$0xff]  ;;  %v5670_v8 = vperm.slane %v14160_v9, 2  ;;  %v13069_v35 = vld [vmem:[#allocation16 + $0x32c] sm:$0xf] }
 0x4ed   :  { %7876 = vmatpush.bf16.msrb.mxu0 %v13101_v61  ;;  %7510 = vmatpush.bf16.msrb.mxu3 %v11905_v43  ;;  %v11749_v61 = vor.u32 %v13045_v23, %v11746_v4  ;;  %v6368_v16 = vadd.f32 %v14157_v5, %v6354_v60  ;;  %v11840_v43 = vld [vmem:[#allocation16 + $0x328] sm:$0xf]  ;;  %v13109_v5 = vld [vmem:[#allocation19 + $0x68] sm:$0xff]  ;;  %v6560_v0 = vmul.f32 0.01, %v6544_v53  ;;  %vm6552_vm11 = vcmp.gt.f32.partialorder %v6544_v53, 0.0 }
 0x4ee   :  { %7542 = vmatpush.bf16.msra.mxu1 %v11589_v39  ;;  %7552 = vmatpush.bf16.msra.mxu2 %v11781_v7  ;;  %v13037_v7 = vld [vmem:[#allocation16 + $0x22c] sm:$0xf]  ;;  %v11841_v50 = vor.u32 %v13071_v15, %v11840_v43  ;;  %v6410_v42 = vadd.f32 %v14172_v58, %v6396_v56  ;;  %v11906_v43 = vld [vmem:[#allocation16 + $0x3b8] sm:$0xf0] }
 0x4ef   :  { %v6540_v39 = vadd.f32 %v6368_v16, %v13983_v38  ;;  %v13093_v38 = vld [vmem:[#allocation16 + $0x3ec] sm:$0xf]  ;;  %v6568_v23 = vsel %vm6552_vm11, %v6544_v53, %v6560_v0  ;;  %v13107_v16 = vld [vmem:[#allocation19 + $0x58] sm:$0xff] }
 0x4f0   :  { %v11941_v4 = vor.u32 %v13093_v38, %v11938_v55  ;;  %v13085_v53 = vld [vmem:[#allocation16 + $0x3ac] sm:$0xf]  ;;  %v6424_v15 = vadd.f32 %v6423_v54, %v6410_v42  ;;  %v11858_v55 = vld [vmem:[#allocation16 + $0x358] sm:$0xf0] }
 0x4f1   :  { %7877 = vmatpush.bf16.msrb.mxu0 %v13100_v2  ;;  %7511 = vmatpush.bf16.msrb.mxu3 %v11889_v28  ;;  %v11714_v2 = vld [vmem:[#allocation16 + $0x238] sm:$0xf0]  ;;  %v6397_v28 = vpop.f32.mrf.mxu1  ;;  %v6556_v31 = vmul.f32 0.01, %v6540_v39  ;;  %vm6548_vm12 = vcmp.gt.f32.partialorder %v6540_v39, 0.0  ;;  %v11909_v58 = vor.u32 %v13085_v53, %v11906_v43  ;;  %v13117_v54 = vld [vmem:[#allocation19 + $0xa8] sm:$0xff] }
 0x4f2   :  { %7543 = vmatpush.bf16.msra.mxu1 %v11573_v32  ;;  %7553 = vmatpush.bf16.msra.mxu2 %v11765_v59  ;;  %v11717_v21 = vor.u32 %v13037_v7, %v11714_v2  ;;  %v13033_v32 = vld [vmem:[#allocation16 + $0x20c] sm:$0xf]  ;;  %v11698_v59 = vld [vmem:[#allocation16 + $0x218] sm:$0xf0]  ;;  %v6541_v7 = vadd.f32 %v6424_v15, %v14004_v47  ;;  %v6437_v25 = vpop.f32.mrf.mxu0  ;;  %v13116_v47 = vld [vmem:[#allocation19 + $0xa0] sm:$0xff] }
 0x4f3   :  { %v11701_v60 = vor.u32 %v13033_v32, %v11698_v59  ;;  %v13105_v2 = vld [vmem:[#allocation19 + $0x48] sm:$0xff]  ;;  %v13115_v59 = vld [vmem:[#allocation19 + $0x98] sm:$0xff] }
 0x4f4   :  { %v13077_v0 = vld [vmem:[#allocation16 + $0x36c] sm:$0xf]  ;;  %v6557_v26 = vmul.f32 0.01, %v6541_v7  ;;  %vm6549_vm14 = vcmp.gt.f32.partialorder %v6541_v7, 0.0  ;;  %v13127_v43 = vld [vmem:[#allocation19 + $0xf8] sm:$0xff] }
 0x4f5   :  { %7878 = vmatpush.bf16.msrb.mxu0 %v13099_v1  ;;  %7512 = vmatpush.bf16.msrb.mxu3 %v11873_v30  ;;  %v6411_v1 = vpop.f32.mrf.mxu2  ;;  %v6425_v30 = vpop.f32.mrf.mxu3  ;;  %v13073_v38 = vld [vmem:[#allocation16 + $0x34c] sm:$0xf] }
 0x4f6   :  { %7888 = vmatpush.bf16.msrb.mxu1 %v13111_v48  ;;  %7554 = vmatpush.bf16.msra.mxu2 %v11749_v61  ;;  %v6398_v48 = vadd.f32 %v6397_v28, %v6384_v34  ;;  %v6564_v61 = vsel %vm6548_vm12, %v6540_v39, %v6556_v31  ;;  %v13081_v39 = vld [vmem:[#allocation16 + $0x38c] sm:$0xf]  ;;  %v6565_v34 = vsel %vm6549_vm14, %v6541_v7, %v6557_v26 }
 0x4f7   :  { %7544 = vmatmul.bf16.vlgmr.msra.gmra.mxu1 %v14115_v52  ;;  %v13096_v52 = vld [vmem:[#allocation19] sm:$0xff]  ;;  %v6438_v31 = vadd.f32 %v6437_v25, %v5670_v8  ;;  %v13113_v42 = vld [vmem:[#allocation19 + $0x88] sm:$0xff] }
 0x4f9   :  { %7879 = vmatpush.bf16.msrb.mxu0 %v13098_v62  ;;  %7513 = vmatpush.bf16.msrb.mxu3 %v11857_v40  ;;  %v6412_v62 = vadd.f32 %v6411_v1, %v6398_v48  ;;  %v11925_v40 = vor.u32 %v13089_v20, %v11922_v63  ;;  %v11861_v1 = vor.u32 %v13073_v38, %v11858_v55  ;;  %v11842_v48 = vld [vmem:[#allocation16 + $0x338] sm:$0xf0] }
 0x4fa   :  { %7889 = vmatpush.bf16.msrb.mxu1 %v13110_v44  ;;  %7555 = vmatpush.bf16.msra.mxu2 %v11733_v29  ;;  %v7610_v44 = vpack.c.bf16 %v6568_v23, %v6564_v61  ;;  %v13118_v29 = vld [vmem:[#allocation19 + $0xb0] sm:$0xff]  ;;  %v6439_v23 = vpop.f32.mrf.mxu0  ;;  %v11845_v63 = vor.u32 %v13069_v35, %v11842_v48 }
 0x4fb   :  { %v6426_v36 = vadd.f32 %v6425_v30, %v6412_v62  ;;  %v6440_v56 = vadd.f32 %v6439_v23, %v5670_v8  ;;  %v13065_v62 = vld [vmem:[#allocation16 + $0x30c] sm:$0xf]  ;;  %v13122_v8 = vld [vmem:[#allocation19 + $0xd0] sm:$0xff] }
 0x4fc   :  { %v13130_v35 = vld [vmem:[#allocation21 + $0x10] sm:$0xff] }
 0x4fd   :  { %7880 = vmatpush.bf16.msrb.mxu0 %v13097_v3  ;;  %7514 = vmatpush.bf16.msrb.mxu3 %v11841_v50  ;;  %v6545_v3 = vadd.f32 %v6426_v36, %v14006_v45  ;;  %v6451_v45 = vpop.f32.mrf.mxu1  ;;  %v6465_v28 = vpop.f32.mrf.mxu2 }
 0x4fe   :  { %7890 = vmatpush.bf16.msrb.mxu1 %v13109_v5  ;;  %7556 = vmatpush.bf16.msra.mxu2 %v11717_v21  ;;  %v11890_v5 = vld [vmem:[#allocation16 + $0x398] sm:$0xf0] }
 0x4ff   :  { %v6561_v49 = vmul.f32 0.01, %v6545_v3  ;;  %v11893_v50 = vor.u32 %v13081_v39, %v11890_v5  ;;  %vm6553_vm13 = vcmp.gt.f32.partialorder %v6545_v3, 0.0  ;;  %v13126_v39 = vld [vmem:[#allocation19 + $0xf0] sm:$0xff] }
 0x501   :  { %7881 = vmatpush.bf16.msrb.mxu0 %v13096_v52  ;;  %7515 = vmatpush.bf16.msrb.mxu3 %v11825_v46  ;;  %v11874_v52 = vld [vmem:[#allocation16 + $0x378] sm:$0xf0]  ;;  %v6569_v21 = vsel %vm6553_vm13, %v6545_v3, %v6561_v49  ;;  %v6452_v46 = vadd.f32 %v6451_v45, %v6438_v31  ;;  %v5671_v45 = vperm.slane %v14160_v9, 3 }
 0x502   :  { %7891 = vmatpush.bf16.msrb.mxu1 %v13108_v19  ;;  %7557 = vmatpush.bf16.msra.mxu2 %v11701_v60  ;;  %v11877_v19 = vor.u32 %v13077_v0, %v11874_v52  ;;  %v7611_v32 = vpack.c.bf16 %v6569_v21, %v6565_v34  ;;  %v13114_v60 = vld [vmem:[#allocation19 + $0x90] sm:$0xff]  ;;  %v6493_v49 = vpop.f32.mrf.mxu0  ;;  %v13133_v52 = vld [vmem:[#allocation21 + $0x28] sm:$0xff]  ;;  %v13131_v31 = vld [vmem:[#allocation21 + $0x18] sm:$0xff] }
 0x503   :  { %v6466_v30 = vadd.f32 %v6465_v28, %v6452_v46  ;;  %v13121_v34 = vld [vmem:[#allocation19 + $0xc8] sm:$0xff]  ;;  %v13120_v46 = vld [vmem:[#allocation19 + $0xc0] sm:$0xff] }
 0x504   :  { %7882 = vmatmul.bf16.vlgmr.msrb.gmra.mxu0 %v7610_v44  ;;  %7516 = vmatmul.bf16.vlgmr.msrb.gmra.mxu3 %v14147_v6 }
 0x505   :  { %7564 = vmatpush.bf16.msra.mxu3 %v11941_v4  ;;  %7558 = vmatmul.bf16.vlgmr.msra.gmra.mxu2 %v14131_v33  ;;  %v13104_v33 = vld [vmem:[#allocation19 + $0x40] sm:$0xff]  ;;  %v6453_v20 = vpop.f32.mrf.mxu1  ;;  %v6467_v44 = vpop.f32.mrf.mxu2 }
 0x506   :  { %7892 = vmatpush.bf16.msrb.mxu1 %v13107_v16  ;;  %7902 = vmatpush.bf16.msrb.mxu2 %v13119_v14  ;;  %v11826_v16 = vld [vmem:[#allocation16 + $0x318] sm:$0xf0]  ;;  %v6454_v14 = vadd.f32 %v6453_v20, %v6440_v56 }
 0x507   :  { %v6479_v4 = vpop.f32.mrf.mxu3  ;;  %v11829_v36 = vor.u32 %v13065_v62, %v11826_v16  ;;  %v13143_v56 = vld [vmem:[#allocation21 + $0x78] sm:$0xff]  ;;  %v13128_v62 = vld [vmem:[#allocation21] sm:$0xff] }
 0x508   :  { %v6480_v61 = vadd.f32 %v6479_v4, %v6466_v30 }
 0x509   :  { %7565 = vmatpush.bf16.msra.mxu3 %v11925_v40  ;;  %v6468_v40 = vadd.f32 %v6467_v44, %v6454_v14  ;;  %v13142_v14 = vld [vmem:[#allocation21 + $0x70] sm:$0xff] }
 0x50a   :  { %7893 = vmatpush.bf16.msrb.mxu1 %v13106_v17  ;;  %7903 = vmatpush.bf16.msrb.mxu2 %v13118_v29  ;;  %v6542_v53 = vadd.f32 %v6480_v61, %v14020_v37  ;;  %v13112_v29 = vld [vmem:[#allocation19 + $0x80] sm:$0xff]  ;;  %v13125_v37 = vld [vmem:[#allocation19 + $0xe8] sm:$0xff]  ;;  %v6495_v21 = vpop.f32.mrf.mxu0 }
 0x50c   :  { %v6558_v3 = vmul.f32 0.01, %v6542_v53  ;;  %vm6550_vm15 = vcmp.gt.f32.partialorder %v6542_v53, 0.0 }
 0x50d   :  { %7566 = vmatpush.bf16.msra.mxu3 %v11909_v58  ;;  %v6507_v0 = vpop.f32.mrf.mxu1  ;;  %v6521_v26 = vpop.f32.mrf.mxu2 }
 0x50e   :  { %7894 = vmatpush.bf16.msrb.mxu1 %v13105_v2  ;;  %7904 = vmatpush.bf16.msrb.mxu2 %v13117_v54  ;;  %v6566_v7 = vsel %vm6550_vm15, %v6542_v53, %v6558_v3  ;;  %v13135_v54 = vld [vmem:[#allocation21 + $0x38] sm:$0xff]  ;;  %v13138_v3 = vld [vmem:[#allocation21 + $0x50] sm:$0xff] }
 0x50f   :  { %v6481_v15 = vpop.f32.mrf.mxu3  ;;  %8194 = vmatpush.bf16.msra.mxu0 %v13135_v54 }
 0x510   :  { %v6482_v17 = vadd.f32 %v6481_v15, %v6468_v40  ;;  %v14194_v40 = vld [vmem:[#allocation18] sm:$0xf] }
 0x511   :  { %7567 = vmatpush.bf16.msra.mxu3 %v11893_v50  ;;  %v13124_v50 = vld [vmem:[#allocation19 + $0xe0] sm:$0xff] }
 0x512   :  { %7895 = vmatpush.bf16.msrb.mxu1 %v13104_v33  ;;  %7905 = vmatpush.bf16.msrb.mxu2 %v13116_v47  ;;  %v6546_v58 = vadd.f32 %v6482_v17, %v14022_v27  ;;  %v13134_v27 = vld [vmem:[#allocation21 + $0x30] sm:$0xff]  ;;  %v6494_v33 = vadd.f32 %v6493_v49, %v5671_v45  ;;  %v13132_v47 = vld [vmem:[#allocation21 + $0x20] sm:$0xff]  ;;  %v13139_v17 = vld [vmem:[#allocation21 + $0x58] sm:$0xff] }
 0x513   :  { %8195 = vmatpush.bf16.msra.mxu0 %v13134_v27  ;;  %v13136_v27 = vld [vmem:[#allocation21 + $0x40] sm:$0xff] }
 0x514   :  { %vm6554_vm0 = vcmp.gt.f32.partialorder %v6546_v58, 0.0  ;;  %v6562_v5 = vmul.f32 0.01, %v6546_v58  ;;  %v6508_v28 = vadd.f32 %v6507_v0, %v6494_v33 }
 0x515   :  { %7568 = vmatpush.bf16.msra.mxu3 %v11877_v19  ;;  %7896 = vmatmul.bf16.vlgmr.msrb.gmra.mxu1 %v7611_v32  ;;  %v6509_v55 = vpop.f32.mrf.mxu1  ;;  %v6496_v32 = vadd.f32 %v6495_v21, %v5671_v45  ;;  %v6523_v9 = vpop.f32.mrf.mxu2  ;;  %v13151_v45 = vld [vmem:[#allocation21 + $0xb8] sm:$0xff] }
 0x516   :  { %7906 = vmatpush.bf16.msrb.mxu2 %v13115_v59  ;;  %v6570_v2 = vsel %vm6554_vm0, %v6546_v58, %v6562_v5  ;;  %v6522_v38 = vadd.f32 %v6521_v26, %v6508_v28  ;;  %8208 = vmatpush.bf16.msra.mxu1 %v13143_v56  ;;  %v13145_v56 = vld [vmem:[#allocation21 + $0x88] sm:$0xff] }
 0x517   :  { %v7612_v25 = vpack.c.bf16 %v6570_v2, %v6566_v7  ;;  %8196 = vmatpush.bf16.msra.mxu0 %v13133_v52 }
 0x519   :  { %7569 = vmatpush.bf16.msra.mxu3 %v11861_v1  ;;  %v6510_v1 = vadd.f32 %v6509_v55, %v6496_v32  ;;  %v13149_v55 = vld [vmem:[#allocation21 + $0xa8] sm:$0xff]  ;;  %v6707_v32 = vperm.slane %v14194_v40, 1 }
 0x51a   :  { %7907 = vmatpush.bf16.msrb.mxu2 %v13114_v60  ;;  %v13129_v60 = vld [vmem:[#allocation21 + $0x8] sm:$0xff]  ;;  %8209 = vmatpush.bf16.msra.mxu1 %v13142_v14  ;;  %v13144_v14 = vld [vmem:[#allocation21 + $0x80] sm:$0xff] }
 0x51b   :  { %8197 = vmatpush.bf16.msra.mxu0 %v13132_v47  ;;  %v6524_v48 = vadd.f32 %v6523_v9, %v6510_v1  ;;  %v13150_v47 = vld [vmem:[#allocation21 + $0xb0] sm:$0xff] }
 0x51d   :  { %7570 = vmatpush.bf16.msra.mxu3 %v11845_v63  ;;  %v7377_v53 = vpop.f32.mrf.mxu1 }
 0x51e   :  { %7908 = vmatpush.bf16.msrb.mxu2 %v13113_v42 }
 0x51f   :  { %8198 = vmatpush.bf16.msra.mxu0 %v13131_v31 }
 0x521   :  { %7571 = vmatpush.bf16.msra.mxu3 %v11829_v36  ;;  %v13140_v36 = vld [vmem:[#allocation21 + $0x60] sm:$0xff] }
 0x522   :  { %7909 = vmatpush.bf16.msrb.mxu2 %v13112_v29 }
 0x523   :  { %8199 = vmatpush.bf16.msra.mxu0 %v13130_v35 }
 0x524   :  { %7572 = vmatmul.bf16.vlgmr.msra.gmra.mxu3 %v14147_v6  ;;  %v13123_v6 = vld [vmem:[#allocation19 + $0xd8] sm:$0xff] }
 0x525   :  { %7916 = vmatpush.bf16.msrb.mxu3 %v13127_v43  ;;  %7910 = vmatmul.bf16.vlgmr.msrb.gmra.mxu2 %v7612_v25  ;;  %v6706_v43 = vperm.slane %v14194_v40, 0  ;;  %v7379_v2 = vpop.f32.mrf.mxu1 }
 0x526   :  { %8222 = vmatpush.bf16.msra.mxu2 %v13151_v45 }
 0x527   :  { %v6535_v19 = vpop.f32.mrf.mxu3  ;;  %8200 = vmatpush.bf16.msra.mxu0 %v13129_v60 }
 0x528   :  { %v6536_v59 = vadd.f32 %v6535_v19, %v6522_v38 }
 0x529   :  { %7917 = vmatpush.bf16.msrb.mxu3 %v13126_v39 }
 0x52a   :  { %v6543_v23 = vadd.f32 %v6536_v59, %v14035_v22  ;;  %v13141_v22 = vld [vmem:[#allocation21 + $0x68] sm:$0xff]  ;;  %v7391_v15 = vpop.f32.mrf.mxu2  ;;  %8223 = vmatpush.bf16.msra.mxu2 %v13150_v47 }
 0x52b   :  { %8201 = vmatpush.bf16.msra.mxu0 %v13128_v62  ;;  %8210 = vmatpush.bf16.msra.mxu1 %v13141_v22 }
 0x52c   :  { %v6559_v20 = vmul.f32 0.01, %v6543_v23  ;;  %vm6551_vm1 = vcmp.gt.f32.partialorder %v6543_v23, 0.0 }
 0x52d   :  { %7918 = vmatpush.bf16.msrb.mxu3 %v13125_v37  ;;  %v13137_v37 = vld [vmem:[#allocation21 + $0x48] sm:$0xff] }
 0x52e   :  { %v6567_v16 = vsel %vm6551_vm1, %v6543_v23, %v6559_v20  ;;  %8224 = vmatpush.bf16.msra.mxu2 %v13149_v55 }
 0x52f   :  { %v6537_v4 = vpop.f32.mrf.mxu3  ;;  %8211 = vmatpush.bf16.msra.mxu1 %v13140_v36  ;;  %v13159_v36 = vld [vmem:[#allocation21 + $0xf8] sm:$0xff] }
 0x530   :  { %v6538_v30 = vadd.f32 %v6537_v4, %v6524_v48  ;;  %v13146_v4 = vld [vmem:[#allocation21 + $0x90] sm:$0xff] }
 0x531   :  { %7919 = vmatpush.bf16.msrb.mxu3 %v13124_v50 }
 0x532   :  { %v6547_v63 = vadd.f32 %v6538_v30, %v14037_v18  ;;  %v7363_v18 = vpop.f32.mrf.mxu0  ;;  %v7393_v49 = vpop.f32.mrf.mxu2 }
 0x533   :  { %8212 = vmatpush.bf16.msra.mxu1 %v13139_v17  ;;  %v7364_v29 = vadd.f32 %v7363_v18, %v6706_v43 }
 0x534   :  { %vm6555_vm2 = vcmp.gt.f32.partialorder %v6547_v63, 0.0  ;;  %v6563_v61 = vmul.f32 0.01, %v6547_v63  ;;  %v7433_v31 = vpop.f32.mrf.mxu1 }
 0x535   :  { %7920 = vmatpush.bf16.msrb.mxu3 %v13123_v6  ;;  %v7378_v58 = vadd.f32 %v7377_v53, %v7364_v29  ;;  %v13158_v53 = vld [vmem:[#allocation21 + $0xf0] sm:$0xff]  ;;  %v13157_v29 = vld [vmem:[#allocation21 + $0xe8] sm:$0xff] }
 0x536   :  { %v6571_v44 = vsel %vm6555_vm2, %v6547_v63, %v6563_v61 }
 0x537   :  { %v7613_v42 = vpack.c.bf16 %v6571_v44, %v6567_v16  ;;  %8213 = vmatpush.bf16.msra.mxu1 %v13138_v3  ;;  %v7392_v7 = vadd.f32 %v7391_v15, %v7378_v58  ;;  %v6708_v58 = vperm.slane %v14194_v40, 2 }
 0x539   :  { %7921 = vmatpush.bf16.msrb.mxu3 %v13122_v8 }
 0x53a   :  { %v7365_v39 = vpop.f32.mrf.mxu0 }
 0x53b   :  { %v7366_v54 = vadd.f32 %v7365_v39, %v6706_v43  ;;  %8214 = vmatpush.bf16.msra.mxu1 %v13137_v37  ;;  %v13156_v39 = vld [vmem:[#allocation21 + $0xe0] sm:$0xff] }
 0x53c   :  { %v7435_v23 = vpop.f32.mrf.mxu1 }
 0x53d   :  { %7922 = vmatpush.bf16.msrb.mxu3 %v13121_v34  ;;  %v7380_v50 = vadd.f32 %v7379_v2, %v7366_v54  ;;  %v13155_v2 = vld [vmem:[#allocation21 + $0xd8] sm:$0xff] }
 0x53f   :  { %v7394_v0 = vadd.f32 %v7393_v49, %v7380_v50  ;;  %8215 = vmatpush.bf16.msra.mxu1 %v13136_v27 }
 0x541   :  { %7923 = vmatpush.bf16.msrb.mxu3 %v13120_v46 }
 0x542   :  { %v7419_v21 = vpop.f32.mrf.mxu0 }
 0x543   :  { %v7420_v9 = vadd.f32 %v7419_v21, %v6707_v32 }
 0x544   :  { %7924 = vmatmul.bf16.vlgmr.msrb.gmra.mxu3 %v7613_v42 }
 0x545   :  { %v7434_v1 = vadd.f32 %v7433_v31, %v7420_v9  ;;  %8236 = vmatpush.bf16.msra.mxu3 %v13159_v36 }
 0x547   :  { %v7405_v5 = vpop.f32.mrf.mxu3 }
 0x548   :  { %v7406_v25 = vadd.f32 %v7405_v5, %v7392_v7 }
 0x549   :  { %8237 = vmatpush.bf16.msra.mxu3 %v13158_v53 }
 0x54a   :  { %v7578_v52 = vadd.f32 %v7406_v25, %v14091_v11  ;;  %v13148_v11 = vld [vmem:[#allocation21 + $0xa0] sm:$0xff]  ;;  %v7447_v59 = vpop.f32.mrf.mxu2  ;;  %v7421_v46 = vpop.f32.mrf.mxu0 }
 0x54b   :  { %8225 = vmatpush.bf16.msra.mxu2 %v13148_v11  ;;  %v7448_v48 = vadd.f32 %v7447_v59, %v7434_v1  ;;  %v7422_v30 = vadd.f32 %v7421_v46, %v6707_v32 }
 0x54c   :  { %v7594_v33 = vmul.f32 0.01, %v7578_v52  ;;  %vm7586_vm3 = vcmp.gt.f32.partialorder %v7578_v52, 0.0 }
 0x54d   :  { %v7436_v63 = vadd.f32 %v7435_v23, %v7422_v30  ;;  %8238 = vmatpush.bf16.msra.mxu3 %v13157_v29 }
 0x54e   :  { %v7602_v19 = vsel %vm7586_vm3, %v7578_v52, %v7594_v33  ;;  %v13153_v33 = vld [vmem:[#allocation21 + $0xc8] sm:$0xff] }
 0x54f   :  { %v7407_v26 = vpop.f32.mrf.mxu3 }
 0x550   :  { %v7408_v6 = vadd.f32 %v7407_v26, %v7394_v0  ;;  %v13154_v0 = vld [vmem:[#allocation21 + $0xd0] sm:$0xff] }
 0x551   :  { %8239 = vmatpush.bf16.msra.mxu3 %v13156_v39 }
 0x552   :  { %v7582_v8 = vadd.f32 %v7408_v6, %v14085_v41  ;;  %v13147_v41 = vld [vmem:[#allocation21 + $0x98] sm:$0xff]  ;;  %v7449_v20 = vpop.f32.mrf.mxu2 }
 0x553   :  { %8226 = vmatpush.bf16.msra.mxu2 %v13147_v41  ;;  %v7450_v61 = vadd.f32 %v7449_v20, %v7436_v63 }
 0x554   :  { %vm7590_vm4 = vcmp.gt.f32.partialorder %v7582_v8, 0.0  ;;  %v7598_v28 = vmul.f32 0.01, %v7582_v8  ;;  %v7489_v3 = vpop.f32.mrf.mxu1 }
 0x555   :  { %8240 = vmatpush.bf16.msra.mxu3 %v13155_v2 }
 0x556   :  { %v7606_v38 = vsel %vm7590_vm4, %v7582_v8, %v7598_v28 }
 0x557   :  { %v7930_v34 = vpack.c.bf16 %v7606_v38, %v7602_v19  ;;  %8227 = vmatpush.bf16.msra.mxu2 %v13146_v4  ;;  %v13152_v19 = vld [vmem:[#allocation21 + $0xc0] sm:$0xff] }
 0x559   :  { %8202 = vmatmul.bf16.vlgmr.msra.gmra.mxu0 %v7930_v34  ;;  %8241 = vmatpush.bf16.msra.mxu3 %v13154_v0 }
 0x55b   :  { %8228 = vmatpush.bf16.msra.mxu2 %v13145_v56 }
 0x55c   :  { %v7491_v49 = vpop.f32.mrf.mxu1 }
 0x55d   :  { %8242 = vmatpush.bf16.msra.mxu3 %v13153_v33 }
 0x55f   :  { %8229 = vmatpush.bf16.msra.mxu2 %v13144_v14 }
 0x561   :  { %8243 = vmatpush.bf16.msra.mxu3 %v13152_v19 }
 0x567   :  { %v7461_v35 = vpop.f32.mrf.mxu3 }
 0x568   :  { %v7462_v60 = vadd.f32 %v7461_v35, %v7448_v48 }
 0x56a   :  { %v7579_v62 = vadd.f32 %v7462_v60, %v14111_v10  ;;  %v7475_v10 = vpop.f32.mrf.mxu0 }
 0x56b   :  { %v7476_v5 = vadd.f32 %v7475_v10, %v6708_v58 }
 0x56c   :  { %v7595_v42 = vmul.f32 0.01, %v7579_v62  ;;  %vm7587_vm5 = vcmp.gt.f32.partialorder %v7579_v62, 0.0 }
 0x56d   :  { %v7490_v7 = vadd.f32 %v7489_v3, %v7476_v5 }
 0x56e   :  { %v7603_v43 = vsel %vm7587_vm5, %v7579_v62, %v7595_v42 }
 0x56f   :  { %v7463_v16 = vpop.f32.mrf.mxu3 }
 0x570   :  { %v7464_v44 = vadd.f32 %v7463_v16, %v7450_v61 }
 0x572   :  { %v7583_v22 = vadd.f32 %v7464_v44, %v14106_v13  ;;  %v7503_v13 = vpop.f32.mrf.mxu2  ;;  %v7477_v37 = vpop.f32.mrf.mxu0 }
 0x573   :  { %v7504_v25 = vadd.f32 %v7503_v13, %v7490_v7  ;;  %v7478_v50 = vadd.f32 %v7477_v37, %v6708_v58 }
 0x574   :  { %vm7591_vm6 = vcmp.gt.f32.partialorder %v7583_v22, 0.0  ;;  %v7599_v18 = vmul.f32 0.01, %v7583_v22  ;;  %v7545_v32 = vpop.f32.mrf.mxu1 }
 0x575   :  { %v7492_v45 = vadd.f32 %v7491_v49, %v7478_v50 }
 0x576   :  { %v7607_v15 = vsel %vm7591_vm6, %v7583_v22, %v7599_v18  ;;  %v13181_v22 = vld [vmem:[%s14250_s16] ss:$0 sm:$0xff] }
 0x577   :  { %v7931_v17 = vpack.c.bf16 %v7607_v15, %v7603_v43 }
 0x579   :  { %8216 = vmatmul.bf16.vlgmr.msra.gmra.mxu1 %v7931_v17 }
 0x57a   :  { %v7505_v52 = vpop.f32.mrf.mxu2  ;;  %v7531_v11 = vpop.f32.mrf.mxu0 }
 0x57b   :  { %v7506_v26 = vadd.f32 %v7505_v52, %v7492_v45 }
 0x582   :  { %v7533_v1 = vpop.f32.mrf.mxu0 }
 0x587   :  { %v7517_v54 = vpop.f32.mrf.mxu3 }
 0x588   :  { %v7518_v27 = vadd.f32 %v7517_v54, %v7504_v25  ;;  %v7559_v59 = vpop.f32.mrf.mxu2 }
 0x58a   :  { %v7580_v6 = vadd.f32 %v7518_v27, %v14125_v12  ;;  %v6709_v12 = vperm.slane %v14194_v40, 3  ;;  %v7883_v42 = vpop.f32.mrf.mxu0  ;;  %v8250_v27 = vlaneseq }
 0x58c   :  { %v7596_v28 = vmul.f32 0.01, %v7580_v6  ;;  %vm7588_vm7 = vcmp.gt.f32.partialorder %v7580_v6, 0.0  ;;  %v7532_v9 = vadd.f32 %v7531_v11, %v6709_v12  ;;  %v7534_v48 = vadd.f32 %v7533_v1, %v6709_v12 }
 0x58e   :  { %v7604_v55 = vsel %vm7588_vm7, %v7580_v6, %v7596_v28  ;;  %v7546_v41 = vadd.f32 %v7545_v32, %v7532_v9 }
 0x58f   :  { %v7519_v8 = vpop.f32.mrf.mxu3 }
 0x590   :  { %v7520_v47 = vadd.f32 %v7519_v8, %v7506_v26  ;;  %v7560_v35 = vadd.f32 %v7559_v59, %v7546_v41  ;;  %v7561_v4 = vpop.f32.mrf.mxu2  ;;  %v14211_v26 = vand.u32 127, %v8250_v27 }
 0x592   :  { %v7584_v21 = vadd.f32 %v7520_v47, %v14127_v24  ;;  %v7547_v24 = vpop.f32.mrf.mxu1  ;;  %v7885_v15 = vpop.f32.mrf.mxu0  ;;  %vm8252_vm14 = vcmp.lt.s32.totalorder %v14211_v26, 8  ;;  %vm8334_vm6 = vcmp.lt.s32.totalorder %v14211_v26, 32 }
 0x593   :  { %v7548_v30 = vadd.f32 %v7547_v24, %v7534_v48  ;;  %v7886_v10 = vadd.f32 %v13181_v22, %v7885_v15 }
 0x594   :  { %vm7592_vm8 = vcmp.gt.f32.partialorder %v7584_v21, 0.0  ;;  %v7600_v38 = vmul.f32 0.01, %v7584_v21 }
 0x595   :  { %v7562_v60 = vadd.f32 %v7561_v4, %v7548_v30 }
 0x596   :  { %v7608_v34 = vsel %vm7592_vm8, %v7584_v21, %v7600_v38 }
 0x597   :  { %v7932_v31 = vpack.c.bf16 %v7608_v34, %v7604_v55 }
 0x599   :  { %8230 = vmatmul.bf16.vlgmr.msra.gmra.mxu2 %v7932_v31 }
 0x59a   :  { %v7897_v36 = vpop.f32.mrf.mxu1 }
 0x5a2   :  { %v7899_v29 = vpop.f32.mrf.mxu1 }
 0x5a3   :  { %v7900_v39 = vadd.f32 %v7899_v29, %v7886_v10 }
 0x5a7   :  { %v7573_v46 = vpop.f32.mrf.mxu3 }
 0x5a8   :  { %v7574_v23 = vadd.f32 %v7573_v46, %v7560_v35  ;;  %v7911_v18 = vpop.f32.mrf.mxu2  ;;  %v13182_v35 = vld [vmem:[%s14252_s18] ss:$0 sm:$0xff] }
 0x5aa   :  { %v7581_v20 = vadd.f32 %v7574_v23, %v14140_v51  ;;  %v7884_v51 = vadd.f32 %v13181_v22, %v7883_v42 }
 0x5ac   :  { %v7597_v61 = vmul.f32 0.01, %v7581_v20  ;;  %vm7589_vm9 = vcmp.gt.f32.partialorder %v7581_v20, 0.0  ;;  %v7898_v53 = vadd.f32 %v7897_v36, %v7884_v51 }
 0x5ae   :  { %v7605_v16 = vsel %vm7589_vm9, %v7581_v20, %v7597_v61  ;;  %v7912_v43 = vadd.f32 %v7911_v18, %v7898_v53 }
 0x5af   :  { %v7575_v63 = vpop.f32.mrf.mxu3 }
 0x5b0   :  { %v7576_v56 = vadd.f32 %v7575_v63, %v7562_v60  ;;  %v7913_v58 = vpop.f32.mrf.mxu2  ;;  %v13548_v63 = vmov 5.0  }
 0x5b1   :  { %v7914_v13 = vadd.f32 %v7913_v58, %v7900_v39 }
 0x5b2   :  { %v7585_v62 = vadd.f32 %v7576_v56, %v14142_v57 }
 0x5b4   :  { %vm7593_vm10 = vcmp.gt.f32.partialorder %v7585_v62, 0.0  ;;  %v7601_v40 = vmul.f32 0.01, %v7585_v62 }
 0x5b6   :  { %v7609_v44 = vsel %vm7593_vm10, %v7585_v62, %v7601_v40 }
 0x5b7   :  { %v7933_v14 = vpack.c.bf16 %v7609_v44, %v7605_v16 }
 0x5b9   :  { %8244 = vmatmul.bf16.vlgmr.msra.gmra.mxu3 %v7933_v14 }
 0x5c7   :  { %v7925_v17 = vpop.f32.mrf.mxu3 }
 0x5c8   :  { %v7926_v57 = vadd.f32 %v7925_v17, %v7912_v43 }
 0x5ca   :  { %v12198_v3 = vmul.f32 -1.442695, %v7926_v57 }
 0x5cc   :  { %13183 = vpow2.f32 %v12198_v3 }
 0x5cf   :  { %v7927_v5 = vpop.f32.mrf.mxu3 }
 0x5d0   :  { %v7928_v7 = vadd.f32 %v7927_v5, %v7914_v13 }
 0x5d2   :  { %v13184_v2 = vpop.eup %13183  ;;  %v12199_v37 = vmul.f32 -1.442695, %v7928_v7 }
 0x5d3   :  { %v8259_v54 = vadd.f32 1.0, %v13184_v2 }
 0x5d4   :  { %13185 = vpow2.f32 %v12199_v37 }
 0x5d5   :  { %13187 = vrcp.f32 %v8259_v54  ;;  %v8272_v45 = vand.u32 2147483648, %v8259_v54  ;;  %v8270_v33 = vand.u32 2147483647, %v8259_v54  ;;  %vm8266_vm12 = vweird.f32 %v8259_v54 }
 0x5d6   :  { %v8203_v46 = vpop.f32.mrf.mxu0 }
 0x5d7   :  { %v8273_v28 = vor.u32 1.1754944e-38, %v8272_v45  ;;  %vm8271_vm15 = vcmp.eq.f32.partialorder %v8270_v33, 8.507059e+37  ;;  %v8204_v23 = vadd.f32 %v13182_v35, %v8203_v46 }
 0x5da   :  { %v13186_v25 = vpop.eup %13185 }
 0x5db   :  { %v13188_v49 = vpop.eup %13187  ;;  %v8260_v50 = vadd.f32 1.0, %v13186_v25 }
 0x5dc   :  { %v8262_v0 = vmul.f32 %v13188_v49, %v8259_v54  ;;  %vm8267_vm11 = vweird.f32 %v13188_v49 }
 0x5dd   :  { %13189 = vrcp.f32 %v8260_v50  ;;  %vm8268_vm13 = vmor %vm8266_vm12, %vm8267_vm11  ;;  %v8287_v31 = vand.u32 2147483648, %v8260_v50  ;;  %v8285_v32 = vand.u32 2147483647, %v8260_v50  ;;  %vm8281_vm1 = vweird.f32 %v8260_v50 }
 0x5de   :  { %v8263_v52 = vsub.f32 1.0, %v8262_v0  ;;  %v8205_v60 = vpop.f32.mrf.mxu0  ;;  %13191 = vrcp.f32 %v13548_v63 }
 0x5df   :  { %v8288_v59 = vor.u32 1.1754944e-38, %v8287_v31  ;;  %vm8286_vm3 = vcmp.eq.f32.partialorder %v8285_v32, 8.507059e+37  ;;  %v8206_v62 = vadd.f32 %v13182_v35, %v8205_v60 }
 0x5e0   :  { %v8264_v6 = vmul.f32 %v13188_v49, %v8263_v52 }
 0x5e2   :  { %v8265_v8 = vadd.f32 %v13188_v49, %v8264_v6 }
 0x5e3   :  { %v13190_v47 = vpop.eup %13189 }
 0x5e4   :  { %v8277_v21 = vmul.f32 %v13190_v47, %v8260_v50  ;;  %v8269_v19 = vsel %vm8268_vm13, %v13188_v49, %v8265_v8  ;;  %vm8282_vm0 = vweird.f32 %v13190_v47  ;;  %v13192_v42 = vpop.eup %13191 }
 0x5e5   :  { %v8274_v38 = vsel %vm8271_vm15, %v8273_v28, %v8269_v19  ;;  %vm8283_vm2 = vmor %vm8281_vm1, %vm8282_vm0  ;;  %v8324_v51 = vmul.f32 5.0, %v13192_v42  ;;  %vm8328_vm4 = vweird.f32 %v13192_v42 }
 0x5e6   :  { %v8278_v55 = vsub.f32 1.0, %v8277_v21  ;;  %v8291_v34 = vsel %vm8252_vm14, %v8274_v38, 0.0 }
 0x5e7   :  { %8293 = vst [vmem:[%s14253_s19] sm:$0xff] %v8291_v34  ;;  %v8325_v15 = vsub.f32 1.0, %v8324_v51 }
 0x5e8   :  { %v8279_v11 = vmul.f32 %v13190_v47, %v8278_v55 }
 0x5e9   :  { %v8326_v58 = vmul.f32 %v13192_v42, %v8325_v15 }
 0x5ea   :  { %v8280_v12 = vadd.f32 %v13190_v47, %v8279_v11 }
 0x5eb   :  { %v8327_v13 = vadd.f32 %v13192_v42, %v8326_v58 }
 0x5ec   :  { %v8284_v9 = vsel %vm8283_vm2, %v13190_v47, %v8280_v12 }
 0x5ed   :  { %v8289_v41 = vsel %vm8286_vm3, %v8288_v59, %v8284_v9  ;;  %v8329_v49 = vsel %vm8328_vm4, %v13192_v42, %v8327_v13 }
 0x5ee   :  { %v8292_v1 = vsel %vm8252_vm14, %v8289_v41, 0.0 }
 0x5ef   :  { %8294 = vst [vmem:[%s14253_s19 + $0x8] sm:$0xff] %v8292_v1 }
 0x5f6   :  { %v8217_v24 = vpop.f32.mrf.mxu1 }
 0x5f7   :  { %v8218_v4 = vadd.f32 %v8217_v24, %v8204_v23 }
 0x5fe   :  { %v8219_v61 = vpop.f32.mrf.mxu1 }
 0x5ff   :  { %v8220_v44 = vadd.f32 %v8219_v61, %v8206_v62 }
 0x61c   :  { %v8231_v48 = vpop.f32.mrf.mxu2 }
 0x61d   :  { %v8232_v30 = vadd.f32 %v8231_v48, %v8218_v4 }
 0x624   :  { %v8233_v16 = vpop.f32.mrf.mxu2 }
 0x625   :  { %v8234_v22 = vadd.f32 %v8233_v16, %v8220_v44 }
 0x63c   :  { %v8245_v20 = vpop.f32.mrf.mxu3 }
 0x63d   :  { %v8246_v56 = vadd.f32 %v8245_v20, %v8232_v30 }
 0x63f   :  { %v8295_v40 = vmul.f32 5.0, %v8246_v56 }
 0x641   :  { %v8299_v14 = vmin.f32 %v8295_v40, 20.0  ;;  %vm8297_vm7 = vcmp.gt.f32.partialorder %v8295_v40, 20.0 }
 0x643   :  { %v8301_v36 = vmul.f32 1.442695, %v8299_v14 }
 0x644   :  { %v8247_v18 = vpop.f32.mrf.mxu3 }
 0x645   :  { %13193 = vpow2.f32 %v8301_v36  ;;  %v8248_v53 = vadd.f32 %v8247_v18, %v8234_v22 }
 0x647   :  { %v8296_v43 = vmul.f32 5.0, %v8248_v53 }
 0x649   :  { %v8300_v17 = vmin.f32 %v8296_v43, 20.0  ;;  %vm8298_vm9 = vcmp.gt.f32.partialorder %v8296_v43, 20.0 }
 0x64b   :  { %v13194_v57 = vpop.eup %13193  ;;  %v8303_v29 = vmul.f32 1.442695, %v8300_v17 }
 0x64c   :  { %v8305_v10 = vadd.f32 1.0, %v13194_v57  ;;  %v8308_v3 = vmul.f32 -0.5, %v13194_v57  ;;  %v8311_v5 = vand.u32 2147483647, %v13194_v57 }
 0x64d   :  { %13195 = vpow2.f32 %v8303_v29 }
 0x64e   :  { %13197 = vlog2.f32 %v8305_v10  ;;  %v8309_v39 = vadd.f32 1.0, %v8308_v3  ;;  %vm8312_vm5 = vcmp.lt.f32.partialorder %v8311_v5, 0.0004427343 }
 0x650   :  { %v8310_v25 = vmul.f32 %v13194_v57, %v8309_v39 }
 0x653   :  { %v13196_v7 = vpop.eup %13195 }
 0x654   :  { %v13198_v2 = vpop.eup %13197  ;;  %v8314_v37 = vadd.f32 1.0, %v13196_v7  ;;  %v8317_v50 = vmul.f32 -0.5, %v13196_v7  ;;  %v8320_v6 = vand.u32 2147483647, %v13196_v7 }
 0x655   :  { %v8307_v54 = vmul.f32 0.6931472, %v13198_v2 }
 0x656   :  { %13199 = vlog2.f32 %v8314_v37  ;;  %v8318_v52 = vadd.f32 1.0, %v8317_v50  ;;  %vm8321_vm8 = vcmp.lt.f32.partialorder %v8320_v6, 0.0004427343 }
 0x657   :  { %v8313_v27 = vsel %vm8312_vm5, %v8310_v25, %v8307_v54 }
 0x658   :  { %v8330_v0 = vmul.f32 %v8329_v49, %v8313_v27  ;;  %v8319_v28 = vmul.f32 %v13196_v7, %v8318_v52 }
 0x65a   :  { %v8332_v45 = vsel %vm8297_vm7, %v8246_v56, %v8330_v0 }
 0x65b   :  { %v8335_v33 = vsel %vm8334_vm6, %v8332_v45, 0.0 }
 0x65c   :  { %v13200_v8 = vpop.eup %13199  ;;  %8337 = vst [vmem:[%s14254_s20] sm:$0xff] %v8335_v33 }
 0x65d   :  { %v8316_v47 = vmul.f32 0.6931472, %v13200_v8 }
 0x65f   :  { %v8322_v21 = vsel %vm8321_vm8, %v8319_v28, %v8316_v47 }
 0x660   :  { %v8331_v19 = vmul.f32 %v8329_v49, %v8322_v21 }
 0x662   :  { %v8333_v38 = vsel %vm8298_vm9, %v8248_v53, %v8331_v19 }
 0x663   :  { %v8336_v55 = vsel %vm8334_vm6, %v8333_v38, 0.0 }
 0x664   :  { %8338 = vst [vmem:[%s14254_s20 + $0x8] sm:$0xff] %v8336_v55 }
 0x665   :  { %8347 = vsyncpa [#allocation3], 1 }
 0x666   :  { %8348 = vsyncpa [#allocation5], 1 }
 0x667   :  { %8349 = vsyncpa [#allocation8], 1 }
 0x668   :  { %8350 = vsyncpa [#allocation11], 1 }
 0x669   :  { %8351 = vsyncpa [#allocation14], 1 }
 0x66a   :  { %8352 = vsyncpa [#allocation17], 1 }
 0x66b   :  { %8353 = vsyncpa [#allocation20], 1 }

</bundles_post_ra>
